<compile_context>
chip_gen: v7x
topology: tpu7x:2x2x1
jax: 0.10.0
libtpu: 0.0.40
codegen_flags: <defaults>
</compile_context>

<pallas_src>
import jax
import jax.numpy as jnp
from jax.experimental import pallas as pl
from jax.experimental.pallas import tpu as pltpu

# (cin, cout, kernel, stride) of CommonModel's convs. fc1's hard-coded 2304
# (= 64*6*6) input forces 84x84 spatial input.
CONV_CFGS = ((4, 32, 8, 4), (32, 64, 4, 2), (64, 64, 4, 1))
CPAD = 128            # conv output channels zero-padded to a full 128-lane vreg
TRUNK = 512           # fc2 / fc_val / fc_act width 448 padded to 4*128 lanes
FC1_IN = 2304         # 64 * 6 * 6, PyTorch (c, h, w) flatten order
CONV_TM = 512         # bounded conv M tile (multiple of 16, >=4 steps at real batches)
DENSE_TM = 256        # bounded dense M tile
VMEM_LIMIT = 64 * 1024 * 1024


# ---------------------------------------------------------------------------
# Pallas kernels
# ---------------------------------------------------------------------------
def _conv_mm_relu_kernel(x_ref, w_ref, b_ref, o_ref):
    """o = relu(x @ w + b); x:(tm,K) bf16, w:(K,128) bf16, b:(1,128) f32."""
    acc = jnp.dot(x_ref[...], w_ref[...], preferred_element_type=jnp.float32)
    acc = jnp.maximum(acc + b_ref[...], 0.0)
    o_ref[...] = acc.astype(o_ref.dtype)


def _dense_heads_kernel(x_ref, w1_ref, b1_ref, w2_ref, b2_ref, wva_ref, bva_ref,
                        wl_ref, bl_ref, wu_ref, bu_ref, logits_ref, values_ref):
    """Fused fc1/fc2 trunk + merged fc_val|fc_act residual + logits/value heads.

    Matmuls run bf16 x bf16 -> f32 on the MXU; bias / ReLU / residual math in
    f32 on the VPU; all intermediates stay in VMEM / vregs.  The trunk is
    zero-padded 448 -> 512, fc_val|fc_act share one (512, 1024) matmul, and
    the two 448->1 value heads share one (512, 128) matmul.
    """
    def mm(x, w_ref_, b_ref_):
        return jnp.dot(x.astype(jnp.bfloat16), w_ref_[...],
                       preferred_element_type=jnp.float32) + b_ref_[...]

    x = x_ref[...]                                       # (tm, 4608) bf16
    h1 = jnp.maximum(mm(x, w1_ref, b1_ref), 0.0)         # relu(fc1(flat))   (tm, 256)
    X = jnp.maximum(mm(h1, w2_ref, b2_ref), 0.0)         # relu(fc2(.))      (tm, 512)
    hva = jnp.maximum(mm(X, wva_ref, bva_ref), 0.0)      # [fc_val | fc_act] (tm, 1024)
    xt = X + hva[:, :TRUNK]                               # Xtout = X + relu(fc_val(X))
    xa = X + hva[:, TRUNK:]                               # X     = X + relu(fc_act(X))
    logits_ref[...] = mm(xa, wl_ref, bl_ref).astype(logits_ref.dtype)
    values_ref[...] = mm(xt, wu_ref, bu_ref).astype(values_ref.dtype)


# ---------------------------------------------------------------------------
# pallas_call wrappers
# ---------------------------------------------------------------------------
def conv_matmul_relu(x, w, b, tm_target=CONV_TM):
    """relu(x @ w + b): x (M,K) bf16, w (K,128) bf16, b (1,128) f32 -> (M,128) bf16."""
    m, kdim = x.shape
    ncol = w.shape[1]
    if m <= tm_target:
        tm, gm = m, 1          # single block equal to the full array dim
    else:
        tm, gm = tm_target, pl.cdiv(m, tm_target)   # partial last block is masked
    return pl.pallas_call(
        _conv_mm_relu_kernel,
        out_shape=jax.ShapeDtypeStruct((m, ncol), jnp.bfloat16),
        grid_spec=pltpu.PrefetchScalarGridSpec(
            num_scalar_prefetch=0,
            grid=(gm,),
            in_specs=[
                pl.BlockSpec((tm, kdim), lambda i: (i, 0)),   # full-K activation tile
                pl.BlockSpec((kdim, ncol), lambda i: (0, 0)), # weight, VMEM resident
                pl.BlockSpec((1, ncol), lambda i: (0, 0)),    # bias row
            ],
            out_specs=pl.BlockSpec((tm, ncol), lambda i: (i, 0)),
        ),
        compiler_params=pltpu.CompilerParams(
            dimension_semantics=("parallel",),
            vmem_limit_bytes=VMEM_LIMIT),
    )(x, w, b)


def dense_heads(flat, dense_params, tm):
    """Fused fc1 + fc2 + merged fc_val/fc_act residuals + heads, tiled over M."""
    (w1, b1), (w2, b2), (wva, bva), (wl, bl), (wu, bu) = dense_params
    mp, kin = flat.shape
    grid_m = mp // tm
    args = (flat, w1, b1, w2, b2, wva, bva, wl, bl, wu, bu)
    in_specs = [pl.BlockSpec((tm, kin), lambda i: (i, 0))]
    in_specs += [pl.BlockSpec(a.shape, lambda i: (0, 0)) for a in args[1:]]
    out_specs = [pl.BlockSpec((tm, 128), lambda i: (i, 0)),
                 pl.BlockSpec((tm, 128), lambda i: (i, 0))]
    out_shape = (jax.ShapeDtypeStruct((mp, 128), jnp.float32),
                 jax.ShapeDtypeStruct((mp, 128), jnp.float32))
    return pl.pallas_call(
        _dense_heads_kernel,
        out_shape=out_shape,
        grid_spec=pltpu.PrefetchScalarGridSpec(
            num_scalar_prefetch=0,
            grid=(grid_m,),
            in_specs=in_specs,
            out_specs=out_specs,
        ),
        compiler_params=pltpu.CompilerParams(
            dimension_semantics=("parallel",),
            vmem_limit_bytes=VMEM_LIMIT),
    )(*args)


# ---------------------------------------------------------------------------
# Glue (channels-last im2col) and parameter preparation
# ---------------------------------------------------------------------------
def im2col_nhwc(x, k, s, c_keep):
    """x: (n, H, W, C) -> (n*OH*OW, k*k*c_keep); K ordered (kh, kw, c).

    The channel slice `:c_keep` is folded into the same strided gather, so
    padded conv-output channels never reach the patch matrix or the matmul K.
    """
    n, h, w, _ = x.shape
    oh = (h - k) // s + 1
    ow = (w - k) // s + 1
    cols = []
    for di in range(k):
        for dj in range(k):
            cols.append(x[:, di:di + s * (oh - 1) + 1:s,
                          dj:dj + s * (ow - 1) + 1:s, :c_keep])
    p = jnp.stack(cols, axis=3)                   # (n, oh, ow, k*k, c_keep)
    return p.reshape(n * oh * ow, k * k * c_keep), oh, ow


def init_torch_like_params(key, n_acts):
    """Deterministic synthetic parameters in the PyTorch layouts of GlobalModel."""
    def unif(k_, shape, bound):
        return jax.random.uniform(k_, shape, jnp.float32, -bound, bound)

    p = {"conv": []}
    for (cin, cout, k, s) in CONV_CFGS:
        key, k1, k2 = jax.random.split(key, 3)
        bound = 1.0 / (cin * k * k) ** 0.5
        p["conv"].append((unif(k1, (cout, cin, k, k), bound),
                          unif(k2, (cout,), bound)))

    def linear(key_, in_, out_):
        key_, k1, k2 = jax.random.split(key_, 3)
        bound = 1.0 / in_ ** 0.5
        return key_, (unif(k1, (out_, in_), bound), unif(k2, (out_,), bound))

    key, p["fc1"] = linear(key, FC1_IN, 256)
    key, p["fc2"] = linear(key, 256, 448)
    key, p["fc_val"] = linear(key, 448, 448)
    key, p["fc_act"] = linear(key, 448, 448)
    key, p["fc_logits"] = linear(key, 448, n_acts)
    key, p["fc_value_int"] = linear(key, 448, 1)
    key, p["fc_value_ext"] = linear(key, 448, 1)
    return p


def prepare_params(tp, n_acts):
    """Hoist all layout work out of the forward pass (done once at init)."""
    prepped = {"convs": []}
    for (w, b), (cin, cout, k, s) in zip(tp["conv"], CONV_CFGS):
        wt = jnp.transpose(w, (2, 3, 1, 0))                    # (k, k, cin, cout)
        wt = jnp.pad(wt, ((0, 0), (0, 0), (0, 0), (0, CPAD - cout)))
        wm = wt.reshape(k * k * cin, CPAD).astype(jnp.bfloat16)   # real cin, padded cout
        bm = jnp.pad(b, (0, CPAD - cout)).reshape(1, CPAD).astype(jnp.float32)
        prepped["convs"].append((wm, bm))

    # fc1: PyTorch flattens the 64x6x6 map as (c, h, w); our flat activations
    # are (h, w, c) with c zero-padded to 128 -> permute + pad columns.
    w1, b1 = tp["fc1"]                                         # (256, 2304)
    w1 = w1.reshape(256, 64, 6, 6).transpose(0, 2, 3, 1)       # (256, 6, 6, 64)
    w1 = jnp.pad(w1, ((0, 0), (0, 0), (0, 0), (0, CPAD - 64)))
    w1 = jnp.transpose(w1.reshape(256, 6 * 6 * CPAD)).astype(jnp.bfloat16)  # (4608, 256)
    b1 = b1.reshape(1, -1).astype(jnp.float32)

    # fc2: 448 output columns padded to the 512-wide (lane-dense) trunk.
    w2, b2 = tp["fc2"]                                         # (448, 256)
    w2 = jnp.pad(w2.T, ((0, 0), (0, TRUNK - 448))).astype(jnp.bfloat16)     # (256, 512)
    b2 = jnp.pad(b2, (0, TRUNK - 448)).reshape(1, TRUNK).astype(jnp.float32)

    # fc_val | fc_act merged into one (512, 1024) matmul (shared input X).
    def pad_sq(wsq):                                           # (448,448) -> (512,512)
        return jnp.pad(wsq.T, ((0, TRUNK - 448), (0, TRUNK - 448)))
    wv, bv = tp["fc_val"]
    wa, ba = tp["fc_act"]
    wva = jnp.concatenate([pad_sq(wv), pad_sq(wa)], axis=1).astype(jnp.bfloat16)
    bva = jnp.concatenate([jnp.pad(bv, (0, TRUNK - 448)),
                           jnp.pad(ba, (0, TRUNK - 448))]
                          ).reshape(1, 2 * TRUNK).astype(jnp.float32)

    # Logits head: (512, 128); cols [0:n_acts] real.
    wl_t, bl_t = tp["fc_logits"]                               # (n_acts, 448)
    wl = jnp.pad(wl_t.T, ((0, TRUNK - 448), (0, 128 - n_acts))).astype(jnp.bfloat16)
    bl = jnp.pad(bl_t, (0, 128 - n_acts)).reshape(1, 128).astype(jnp.float32)

    # Both 448->1 value heads packed into one (512, 128): col0 = int, col1 = ext.
    wi, bi = tp["fc_value_int"]
    we, be = tp["fc_value_ext"]
    wu = jnp.pad(jnp.concatenate([wi, we], axis=0).T,          # (448, 2)
                 ((0, TRUNK - 448), (0, 128 - 2))).astype(jnp.bfloat16)
    bu = jnp.pad(jnp.concatenate([bi, be]), (0, 128 - 2)).reshape(1, 128).astype(jnp.float32)

    prepped["dense"] = ((w1, b1), (w2, b2), (wva, bva), (wl, bl), (wu, bu))
    return prepped


# ---------------------------------------------------------------------------
# Forward pass (GlobalModel.forward semantics)
# ---------------------------------------------------------------------------
def global_model_forward(params, obs, n_acts):
    """obs: (E, B, H, W, 4) [or (E, H, W, 4)] -> (logits, value_int, value_ext)."""
    batch_squeeze = obs.ndim == 4
    if batch_squeeze:
        obs = obs[:, None]
    E, B, H, W, C = obs.shape
    assert C == 4
    n = E * B

    # Channels-last, bf16 activations end-to-end (no NCHW transposes).
    x = obs.reshape(n, H, W, C).astype(jnp.bfloat16)
    for (wm, bm), (cin, _, k, s) in zip(params["convs"], CONV_CFGS):
        patches, oh, ow = im2col_nhwc(x, k, s, cin)     # contract only real cin
        y = conv_matmul_relu(patches, wm, bm)           # (n*oh*ow, 128) bf16
        x = y.reshape(n, oh, ow, CPAD)

    flat = x.reshape(n, -1)                             # (n, 6*6*128) = (n, 4608)

    # Pad batch rows to a multiple of 16 (bf16 sublane pairs) and to a
    # multiple of the dense M tile when tiling kicks in.
    tm = DENSE_TM
    mp = -(-n // 16) * 16
    if mp > tm:
        mp = -(-mp // tm) * tm
    else:
        tm = mp
    if mp != n:
        flat = jnp.pad(flat, ((0, mp - n), (0, 0)))

    logits_p, values_p = dense_heads(flat, params["dense"], tm)

    logits = logits_p[:n, :n_acts]
    value_int = values_p[:n, 0]
    value_ext = values_p[:n, 1]
    # TODO(synk): torch.distributions.Categorical has no Pallas equivalent; the
    # policy is returned as raw logits. RandomNet/sibling_net are only used by
    # intrinsic_rewards(), not forward(), and are not ported here.
    if batch_squeeze:
        return (logits.reshape(E, n_acts),
                value_int.reshape(E),
                value_ext.reshape(E))
    return (logits.reshape(E, B, n_acts),
            value_int.reshape(E, B),
            value_ext.reshape(E, B))


# ---------------------------------------------------------------------------
# Pure-JAX f32 reference (for a tolerance sanity check)
# ---------------------------------------------------------------------------
def reference_forward(tp, obs, n_acts):
    E, B, H, W, C = obs.shape
    n = E * B
    x = obs.reshape(n, H, W, C).astype(jnp.float32)
    for (w, b), (_, _, k, s) in zip(tp["conv"], CONV_CFGS):
        wk = jnp.transpose(w, (2, 3, 1, 0))             # HWIO
        x = jax.lax.conv_general_dilated(
            x, wk, window_strides=(s, s), padding="VALID",
            dimension_numbers=("NHWC", "HWIO", "NHWC"))
        x = jnp.maximum(x + b, 0.0)
    flat = jnp.transpose(x, (0, 3, 1, 2)).reshape(n, -1)   # torch (c,h,w) flatten

    def lin(name, v):
        w, b = tp[name]
        return v @ w.T + b

    h1 = jnp.maximum(lin("fc1", flat), 0.0)
    X = jnp.maximum(lin("fc2", h1), 0.0)
    xt = X + jnp.maximum(lin("fc_val", X), 0.0)
    xa = X + jnp.maximum(lin("fc_act", X), 0.0)
    logits = lin("fc_logits", xa)
    v_int = lin("fc_value_int", xt)[:, 0]
    v_ext = lin("fc_value_ext", xt)[:, 0]
    return (logits.reshape(E, B, n_acts),
            v_int.reshape(E, B),
            v_ext.reshape(E, B))


if __name__ == "__main__":
    key = jax.random.PRNGKey(0)
    kp, kx = jax.random.split(key)
    n_acts = 6
    torch_like = init_torch_like_params(kp, n_acts)
    params = prepare_params(torch_like, n_acts)

    # H = W = 84 is forced by the hard-coded 2304 flatten in CommonModel.
    E, B, H, W, C = 2, 2, 84, 84, 4
    obs = jax.random.uniform(kx, (E, B, H, W, C), dtype=jnp.float32)

    fwd = jax.jit(lambda p, o: global_model_forward(p, o, n_acts))
    logits, value_int, value_ext = jax.block_until_ready(fwd(params, obs))

    assert logits.shape == (E, B, n_acts)
    assert value_int.shape == (E, B)
    assert value_ext.shape == (E, B)
    assert bool(jnp.all(jnp.isfinite(logits)))
    assert bool(jnp.all(jnp.isfinite(value_int)))
    assert bool(jnp.all(jnp.isfinite(value_ext)))

    # Loose tolerance: kernel runs bf16 operands (f32 accumulate), ref is f32.
    ref_logits, ref_vi, ref_ve = reference_forward(torch_like, obs, n_acts)
    err = max(float(jnp.max(jnp.abs(logits - ref_logits))),
              float(jnp.max(jnp.abs(value_int - ref_vi))),
              float(jnp.max(jnp.abs(value_ext - ref_ve))))
    assert err < 0.1, f"max abs error vs f32 reference too large: {err}"

    print("KERNEL_OK")
</pallas_src>

<mosaic_0001>
module attributes {stable_mosaic.version = 11 : i64} {
  func.func @_conv_mm_relu_kernel(%arg0: i32, %arg1: memref<512x256xbf16, #tpu.memory_space<vmem>>, %arg2: memref<256x128xbf16, #tpu.memory_space<vmem>>, %arg3: memref<1x128xf32, #tpu.memory_space<vmem>>, %arg4: memref<512x128xbf16, #tpu.memory_space<vmem>>) attributes {dimension_semantics = [#tpu.dimension_semantics<parallel>], iteration_bounds = array<i64: 4>, scalar_prefetch = 0 : i64, scratch_operands = 0 : i64, tpu.core_type = #tpu.core_type<tc>, window_params = [{transform_indices = @transform_0, window_bounds = array<i64: 512, 256>}, {pipeline_mode = #tpu.pipeline_mode<synchronous>, transform_indices = @transform_1, window_bounds = array<i64: 256, 128>}, {pipeline_mode = #tpu.pipeline_mode<synchronous>, transform_indices = @transform_2, window_bounds = array<i64: 1, 128>}, {transform_indices = @transform_3, window_bounds = array<i64: 512, 128>}]} {
    %c0 = arith.constant 0 : index
    %c0_0 = arith.constant 0 : index
    %0 = vector.load %arg1[%c0, %c0_0] : memref<512x256xbf16, #tpu.memory_space<vmem>>, vector<512x256xbf16>
    %c0_1 = arith.constant 0 : index
    %c0_2 = arith.constant 0 : index
    %1 = vector.load %arg2[%c0_1, %c0_2] : memref<256x128xbf16, #tpu.memory_space<vmem>>, vector<256x128xbf16>
    %cst = arith.constant dense<0.000000e+00> : vector<512x128xf32>
    %2 = tpu.matmul %0, %1, %cst {dimension_numbers = #tpu.dot_dimension_numbers<[1], [0], [0], [1], [0, 0, 1, 1], [], []>} : vector<512x256xbf16>, vector<256x128xbf16>, vector<512x128xf32> -> vector<512x128xf32>
    %c0_3 = arith.constant 0 : index
    %c0_4 = arith.constant 0 : index
    %3 = vector.load %arg3[%c0_3, %c0_4] : memref<1x128xf32, #tpu.memory_space<vmem>>, vector<1x128xf32>
    %4 = vector.broadcast %3 : vector<1x128xf32> to vector<512x128xf32>
    %5 = arith.addf %2, %4 : vector<512x128xf32>
    %cst_5 = arith.constant 0.000000e+00 : f32
    %6 = vector.broadcast %cst_5 : f32 to vector<512x128xf32>
    %7 = arith.maximumf %5, %6 : vector<512x128xf32>
    %8 = arith.truncf %7 : vector<512x128xf32> to vector<512x128xbf16>
    %c0_6 = arith.constant 0 : index
    %c0_7 = arith.constant 0 : index
    %9 = vector.load %arg4[%c0_6, %c0_7] : memref<512x128xbf16, #tpu.memory_space<vmem>>, vector<512x128xbf16>
    tpu.vector_store %arg4[%c0_6, %c0_7], %8 {strides = array<i32>} : memref<512x128xbf16, #tpu.memory_space<vmem>>, vector<512x128xbf16>,
    return
  }
  func.func @transform_0(%arg0: i32) -> (i32, i32) {
    %c0_i32 = arith.constant 0 : i32
    %c0_i32_0 = arith.constant 0 : i32
    return %arg0, %c0_i32 : i32, i32
  }
  func.func @transform_1(%arg0: i32) -> (i32, i32) {
    %c0_i32 = arith.constant 0 : i32
    %c0_i32_0 = arith.constant 0 : i32
    %c0_i32_1 = arith.constant 0 : i32
    return %c0_i32, %c0_i32_0 : i32, i32
  }
  func.func @transform_2(%arg0: i32) -> (i32, i32) {
    %c0_i32 = arith.constant 0 : i32
    %c0_i32_0 = arith.constant 0 : i32
    %c0_i32_1 = arith.constant 0 : i32
    return %c0_i32, %c0_i32_0 : i32, i32
  }
  func.func @transform_3(%arg0: i32) -> (i32, i32) {
    %c0_i32 = arith.constant 0 : i32
    %c0_i32_0 = arith.constant 0 : i32
    return %arg0, %c0_i32 : i32, i32
  }
}

module attributes {stable_mosaic.version = 11 : i64} {
  func.func @_conv_mm_relu_kernel(%arg0: i32, %arg1: memref<324x512xbf16, #tpu.memory_space<vmem>>, %arg2: memref<512x128xbf16, #tpu.memory_space<vmem>>, %arg3: memref<1x128xf32, #tpu.memory_space<vmem>>, %arg4: memref<324x128xbf16, #tpu.memory_space<vmem>>) attributes {dimension_semantics = [#tpu.dimension_semantics<parallel>], iteration_bounds = array<i64: 1>, scalar_prefetch = 0 : i64, scratch_operands = 0 : i64, tpu.core_type = #tpu.core_type<tc>, window_params = [{transform_indices = @transform_0, window_bounds = array<i64: 324, 512>}, {pipeline_mode = #tpu.pipeline_mode<synchronous>, transform_indices = @transform_1, window_bounds = array<i64: 512, 128>}, {pipeline_mode = #tpu.pipeline_mode<synchronous>, transform_indices = @transform_2, window_bounds = array<i64: 1, 128>}, {transform_indices = @transform_3, window_bounds = array<i64: 324, 128>}]} {
    %c0 = arith.constant 0 : index
    %c0_0 = arith.constant 0 : index
    %0 = vector.load %arg1[%c0, %c0_0] : memref<324x512xbf16, #tpu.memory_space<vmem>>, vector<324x512xbf16>
    %c0_1 = arith.constant 0 : index
    %c0_2 = arith.constant 0 : index
    %1 = vector.load %arg2[%c0_1, %c0_2] : memref<512x128xbf16, #tpu.memory_space<vmem>>, vector<512x128xbf16>
    %cst = arith.constant dense<0.000000e+00> : vector<324x128xf32>
    %2 = tpu.matmul %0, %1, %cst {dimension_numbers = #tpu.dot_dimension_numbers<[1], [0], [0], [1], [0, 0, 1, 1], [], []>} : vector<324x512xbf16>, vector<512x128xbf16>, vector<324x128xf32> -> vector<324x128xf32>
    %c0_3 = arith.constant 0 : index
    %c0_4 = arith.constant 0 : index
    %3 = vector.load %arg3[%c0_3, %c0_4] : memref<1x128xf32, #tpu.memory_space<vmem>>, vector<1x128xf32>
    %4 = vector.broadcast %3 : vector<1x128xf32> to vector<324x128xf32>
    %5 = arith.addf %2, %4 : vector<324x128xf32>
    %cst_5 = arith.constant 0.000000e+00 : f32
    %6 = vector.broadcast %cst_5 : f32 to vector<324x128xf32>
    %7 = arith.maximumf %5, %6 : vector<324x128xf32>
    %8 = arith.truncf %7 : vector<324x128xf32> to vector<324x128xbf16>
    %c0_6 = arith.constant 0 : index
    %c0_7 = arith.constant 0 : index
    %9 = vector.load %arg4[%c0_6, %c0_7] : memref<324x128xbf16, #tpu.memory_space<vmem>>, vector<324x128xbf16>
    tpu.vector_store %arg4[%c0_6, %c0_7], %8 {strides = array<i32>} : memref<324x128xbf16, #tpu.memory_space<vmem>>, vector<324x128xbf16>,
    return
  }
  func.func @transform_0(%arg0: i32) -> (i32, i32) {
    %c0_i32 = arith.constant 0 : i32
    %c0_i32_0 = arith.constant 0 : i32
    return %arg0, %c0_i32 : i32, i32
  }
  func.func @transform_1(%arg0: i32) -> (i32, i32) {
    %c0_i32 = arith.constant 0 : i32
    %c0_i32_0 = arith.constant 0 : i32
    %c0_i32_1 = arith.constant 0 : i32
    return %c0_i32, %c0_i32_0 : i32, i32
  }
  func.func @transform_2(%arg0: i32) -> (i32, i32) {
    %c0_i32 = arith.constant 0 : i32
    %c0_i32_0 = arith.constant 0 : i32
    %c0_i32_1 = arith.constant 0 : i32
    return %c0_i32, %c0_i32_0 : i32, i32
  }
  func.func @transform_3(%arg0: i32) -> (i32, i32) {
    %c0_i32 = arith.constant 0 : i32
    %c0_i32_0 = arith.constant 0 : i32
    return %arg0, %c0_i32 : i32, i32
  }
}

module attributes {stable_mosaic.version = 11 : i64} {
  func.func @_conv_mm_relu_kernel(%arg0: i32, %arg1: memref<144x1024xbf16, #tpu.memory_space<vmem>>, %arg2: memref<1024x128xbf16, #tpu.memory_space<vmem>>, %arg3: memref<1x128xf32, #tpu.memory_space<vmem>>, %arg4: memref<144x128xbf16, #tpu.memory_space<vmem>>) attributes {dimension_semantics = [#tpu.dimension_semantics<parallel>], iteration_bounds = array<i64: 1>, scalar_prefetch = 0 : i64, scratch_operands = 0 : i64, tpu.core_type = #tpu.core_type<tc>, window_params = [{transform_indices = @transform_0, window_bounds = array<i64: 144, 1024>}, {pipeline_mode = #tpu.pipeline_mode<synchronous>, transform_indices = @transform_1, window_bounds = array<i64: 1024, 128>}, {pipeline_mode = #tpu.pipeline_mode<synchronous>, transform_indices = @transform_2, window_bounds = array<i64: 1, 128>}, {transform_indices = @transform_3, window_bounds = array<i64: 144, 128>}]} {
    %c0 = arith.constant 0 : index
    %c0_0 = arith.constant 0 : index
    %0 = vector.load %arg1[%c0, %c0_0] : memref<144x1024xbf16, #tpu.memory_space<vmem>>, vector<144x1024xbf16>
    %c0_1 = arith.constant 0 : index
    %c0_2 = arith.constant 0 : index
    %1 = vector.load %arg2[%c0_1, %c0_2] : memref<1024x128xbf16, #tpu.memory_space<vmem>>, vector<1024x128xbf16>
    %cst = arith.constant dense<0.000000e+00> : vector<144x128xf32>
    %2 = tpu.matmul %0, %1, %cst {dimension_numbers = #tpu.dot_dimension_numbers<[1], [0], [0], [1], [0, 0, 1, 1], [], []>} : vector<144x1024xbf16>, vector<1024x128xbf16>, vector<144x128xf32> -> vector<144x128xf32>
    %c0_3 = arith.constant 0 : index
    %c0_4 = arith.constant 0 : index
    %3 = vector.load %arg3[%c0_3, %c0_4] : memref<1x128xf32, #tpu.memory_space<vmem>>, vector<1x128xf32>
    %4 = vector.broadcast %3 : vector<1x128xf32> to vector<144x128xf32>
    %5 = arith.addf %2, %4 : vector<144x128xf32>
    %cst_5 = arith.constant 0.000000e+00 : f32
    %6 = vector.broadcast %cst_5 : f32 to vector<144x128xf32>
    %7 = arith.maximumf %5, %6 : vector<144x128xf32>
    %8 = arith.truncf %7 : vector<144x128xf32> to vector<144x128xbf16>
    %c0_6 = arith.constant 0 : index
    %c0_7 = arith.constant 0 : index
    %9 = vector.load %arg4[%c0_6, %c0_7] : memref<144x128xbf16, #tpu.memory_space<vmem>>, vector<144x128xbf16>
    tpu.vector_store %arg4[%c0_6, %c0_7], %8 {strides = array<i32>} : memref<144x128xbf16, #tpu.memory_space<vmem>>, vector<144x128xbf16>,
    return
  }
  func.func @transform_0(%arg0: i32) -> (i32, i32) {
    %c0_i32 = arith.constant 0 : i32
    %c0_i32_0 = arith.constant 0 : i32
    return %arg0, %c0_i32 : i32, i32
  }
  func.func @transform_1(%arg0: i32) -> (i32, i32) {
    %c0_i32 = arith.constant 0 : i32
    %c0_i32_0 = arith.constant 0 : i32
    %c0_i32_1 = arith.constant 0 : i32
    return %c0_i32, %c0_i32_0 : i32, i32
  }
  func.func @transform_2(%arg0: i32) -> (i32, i32) {
    %c0_i32 = arith.constant 0 : i32
    %c0_i32_0 = arith.constant 0 : i32
    %c0_i32_1 = arith.constant 0 : i32
    return %c0_i32, %c0_i32_0 : i32, i32
  }
  func.func @transform_3(%arg0: i32) -> (i32, i32) {
    %c0_i32 = arith.constant 0 : i32
    %c0_i32_0 = arith.constant 0 : i32
    return %arg0, %c0_i32 : i32, i32
  }
}

module attributes {stable_mosaic.version = 11 : i64} {
  func.func @_dense_heads_kernel(%arg0: i32, %arg1: memref<16x4608xbf16, #tpu.memory_space<vmem>>, %arg2: memref<4608x256xbf16, #tpu.memory_space<vmem>>, %arg3: memref<1x256xf32, #tpu.memory_space<vmem>>, %arg4: memref<256x512xbf16, #tpu.memory_space<vmem>>, %arg5: memref<1x512xf32, #tpu.memory_space<vmem>>, %arg6: memref<512x1024xbf16, #tpu.memory_space<vmem>>, %arg7: memref<1x1024xf32, #tpu.memory_space<vmem>>, %arg8: memref<512x128xbf16, #tpu.memory_space<vmem>>, %arg9: memref<1x128xf32, #tpu.memory_space<vmem>>, %arg10: memref<512x128xbf16, #tpu.memory_space<vmem>>, %arg11: memref<1x128xf32, #tpu.memory_space<vmem>>, %arg12: memref<16x128xf32, #tpu.memory_space<vmem>>, %arg13: memref<16x128xf32, #tpu.memory_space<vmem>>) attributes {dimension_semantics = [#tpu.dimension_semantics<parallel>], iteration_bounds = array<i64: 1>, scalar_prefetch = 0 : i64, scratch_operands = 0 : i64, tpu.core_type = #tpu.core_type<tc>, window_params = [{transform_indices = @transform_0, window_bounds = array<i64: 16, 4608>}, {pipeline_mode = #tpu.pipeline_mode<synchronous>, transform_indices = @transform_1, window_bounds = array<i64: 4608, 256>}, {pipeline_mode = #tpu.pipeline_mode<synchronous>, transform_indices = @transform_2, window_bounds = array<i64: 1, 256>}, {pipeline_mode = #tpu.pipeline_mode<synchronous>, transform_indices = @transform_3, window_bounds = array<i64: 256, 512>}, {pipeline_mode = #tpu.pipeline_mode<synchronous>, transform_indices = @transform_4, window_bounds = array<i64: 1, 512>}, {pipeline_mode = #tpu.pipeline_mode<synchronous>, transform_indices = @transform_5, window_bounds = array<i64: 512, 1024>}, {pipeline_mode = #tpu.pipeline_mode<synchronous>, transform_indices = @transform_6, window_bounds = array<i64: 1, 1024>}, {pipeline_mode = #tpu.pipeline_mode<synchronous>, transform_indices = @transform_7, window_bounds = array<i64: 512, 128>}, {pipeline_mode = #tpu.pipeline_mode<synchronous>, transform_indices = @transform_8, window_bounds = array<i64: 1, 128>}, {pipeline_mode = #tpu.pipeline_mode<synchronous>, transform_indices = @transform_9, window_bounds = array<i64: 512, 128>}, {pipeline_mode = #tpu.pipeline_mode<synchronous>, transform_indices = @transform_10, window_bounds = array<i64: 1, 128>}, {transform_indices = @transform_11, window_bounds = array<i64: 16, 128>}, {transform_indices = @transform_12, window_bounds = array<i64: 16, 128>}]} {
    %c0 = arith.constant 0 : index
    %c0_0 = arith.constant 0 : index
    %0 = vector.load %arg1[%c0, %c0_0] : memref<16x4608xbf16, #tpu.memory_space<vmem>>, vector<16x4608xbf16>
    %c0_1 = arith.constant 0 : index
    %c0_2 = arith.constant 0 : index
    %1 = vector.load %arg2[%c0_1, %c0_2] : memref<4608x256xbf16, #tpu.memory_space<vmem>>, vector<4608x256xbf16>
    %cst = arith.constant dense<0.000000e+00> : vector<16x256xf32>
    %2 = tpu.matmul %0, %1, %cst {dimension_numbers = #tpu.dot_dimension_numbers<[1], [0], [0], [1], [0, 0, 1, 1], [], []>} : vector<16x4608xbf16>, vector<4608x256xbf16>, vector<16x256xf32> -> vector<16x256xf32>
    %c0_3 = arith.constant 0 : index
    %c0_4 = arith.constant 0 : index
    %3 = vector.load %arg3[%c0_3, %c0_4] : memref<1x256xf32, #tpu.memory_space<vmem>>, vector<1x256xf32>
    %4 = vector.broadcast %3 : vector<1x256xf32> to vector<16x256xf32>
    %5 = arith.addf %2, %4 : vector<16x256xf32>
    %cst_5 = arith.constant 0.000000e+00 : f32
    %6 = vector.broadcast %cst_5 : f32 to vector<16x256xf32>
    %7 = arith.maximumf %5, %6 : vector<16x256xf32>
    %8 = arith.truncf %7 : vector<16x256xf32> to vector<16x256xbf16>
    %c0_6 = arith.constant 0 : index
    %c0_7 = arith.constant 0 : index
    %9 = vector.load %arg4[%c0_6, %c0_7] : memref<256x512xbf16, #tpu.memory_space<vmem>>, vector<256x512xbf16>
    %cst_8 = arith.constant dense<0.000000e+00> : vector<16x512xf32>
    %10 = tpu.matmul %8, %9, %cst_8 {dimension_numbers = #tpu.dot_dimension_numbers<[1], [0], [0], [1], [0, 0, 1, 1], [], []>} : vector<16x256xbf16>, vector<256x512xbf16>, vector<16x512xf32> -> vector<16x512xf32>
    %c0_9 = arith.constant 0 : index
    %c0_10 = arith.constant 0 : index
    %11 = vector.load %arg5[%c0_9, %c0_10] : memref<1x512xf32, #tpu.memory_space<vmem>>, vector<1x512xf32>
    %12 = vector.broadcast %11 : vector<1x512xf32> to vector<16x512xf32>
    %13 = arith.addf %10, %12 : vector<16x512xf32>
    %cst_11 = arith.constant 0.000000e+00 : f32
    %14 = vector.broadcast %cst_11 : f32 to vector<16x512xf32>
    %15 = arith.maximumf %13, %14 : vector<16x512xf32>
    %16 = arith.truncf %15 : vector<16x512xf32> to vector<16x512xbf16>
    %c0_12 = arith.constant 0 : index
    %c0_13 = arith.constant 0 : index
    %17 = vector.load %arg6[%c0_12, %c0_13] : memref<512x1024xbf16, #tpu.memory_space<vmem>>, vector<512x1024xbf16>
    %cst_14 = arith.constant dense<0.000000e+00> : vector<16x1024xf32>
    %18 = tpu.matmul %16, %17, %cst_14 {dimension_numbers = #tpu.dot_dimension_numbers<[1], [0], [0], [1], [0, 0, 1, 1], [], []>} : vector<16x512xbf16>, vector<512x1024xbf16>, vector<16x1024xf32> -> vector<16x1024xf32>
    %c0_15 = arith.constant 0 : index
    %c0_16 = arith.constant 0 : index
    %19 = vector.load %arg7[%c0_15, %c0_16] : memref<1x1024xf32, #tpu.memory_space<vmem>>, vector<1x1024xf32>
    %20 = vector.broadcast %19 : vector<1x1024xf32> to vector<16x1024xf32>
    %21 = arith.addf %18, %20 : vector<16x1024xf32>
    %cst_17 = arith.constant 0.000000e+00 : f32
    %22 = vector.broadcast %cst_17 : f32 to vector<16x1024xf32>
    %23 = arith.maximumf %21, %22 : vector<16x1024xf32>
    %24 = vector.extract_strided_slice %23 {offsets = [0, 0], sizes = [16, 512], strides = [1, 1]} : vector<16x1024xf32> to vector<16x512xf32>
    %25 = arith.addf %15, %24 : vector<16x512xf32>
    %26 = vector.extract_strided_slice %23 {offsets = [0, 512], sizes = [16, 512], strides = [1, 1]} : vector<16x1024xf32> to vector<16x512xf32>
    %27 = arith.addf %15, %26 : vector<16x512xf32>
    %28 = arith.truncf %27 : vector<16x512xf32> to vector<16x512xbf16>
    %c0_18 = arith.constant 0 : index
    %c0_19 = arith.constant 0 : index
    %29 = vector.load %arg8[%c0_18, %c0_19] : memref<512x128xbf16, #tpu.memory_space<vmem>>, vector<512x128xbf16>
    %cst_20 = arith.constant dense<0.000000e+00> : vector<16x128xf32>
    %30 = tpu.matmul %28, %29, %cst_20 {dimension_numbers = #tpu.dot_dimension_numbers<[1], [0], [0], [1], [0, 0, 1, 1], [], []>} : vector<16x512xbf16>, vector<512x128xbf16>, vector<16x128xf32> -> vector<16x128xf32>
    %c0_21 = arith.constant 0 : index
    %c0_22 = arith.constant 0 : index
    %31 = vector.load %arg9[%c0_21, %c0_22] : memref<1x128xf32, #tpu.memory_space<vmem>>, vector<1x128xf32>
    %32 = vector.broadcast %31 : vector<1x128xf32> to vector<16x128xf32>
    %33 = arith.addf %30, %32 : vector<16x128xf32>
    %c0_23 = arith.constant 0 : index
    %c0_24 = arith.constant 0 : index
    %34 = vector.load %arg12[%c0_23, %c0_24] : memref<16x128xf32, #tpu.memory_space<vmem>>, vector<16x128xf32>
    tpu.vector_store %arg12[%c0_23, %c0_24], %33 {strides = array<i32>} : memref<16x128xf32, #tpu.memory_space<vmem>>, vector<16x128xf32>,
    %35 = arith.truncf %25 : vector<16x512xf32> to vector<16x512xbf16>
    %c0_25 = arith.constant 0 : index
    %c0_26 = arith.constant 0 : index
    %36 = vector.load %arg10[%c0_25, %c0_26] : memref<512x128xbf16, #tpu.memory_space<vmem>>, vector<512x128xbf16>
    %cst_27 = arith.constant dense<0.000000e+00> : vector<16x128xf32>
    %37 = tpu.matmul %35, %36, %cst_27 {dimension_numbers = #tpu.dot_dimension_numbers<[1], [0], [0], [1], [0, 0, 1, 1], [], []>} : vector<16x512xbf16>, vector<512x128xbf16>, vector<16x128xf32> -> vector<16x128xf32>
    %c0_28 = arith.constant 0 : index
    %c0_29 = arith.constant 0 : index
    %38 = vector.load %arg11[%c0_28, %c0_29] : memref<1x128xf32, #tpu.memory_space<vmem>>, vector<1x128xf32>
    %39 = vector.broadcast %38 : vector<1x128xf32> to vector<16x128xf32>
    %40 = arith.addf %37, %39 : vector<16x128xf32>
    %c0_30 = arith.constant 0 : index
    %c0_31 = arith.constant 0 : index
    %41 = vector.load %arg13[%c0_30, %c0_31] : memref<16x128xf32, #tpu.memory_space<vmem>>, vector<16x128xf32>
    tpu.vector_store %arg13[%c0_30, %c0_31], %40 {strides = array<i32>} : memref<16x128xf32, #tpu.memory_space<vmem>>, vector<16x128xf32>,
    return
  }
  func.func @transform_0(%arg0: i32) -> (i32, i32) {
    %c0_i32 = arith.constant 0 : i32
    %c0_i32_0 = arith.constant 0 : i32
    return %arg0, %c0_i32 : i32, i32
  }
  func.func @transform_1(%arg0: i32) -> (i32, i32) {
    %c0_i32 = arith.constant 0 : i32
    %c0_i32_0 = arith.constant 0 : i32
    %c0_i32_1 = arith.constant 0 : i32
    return %c0_i32, %c0_i32_0 : i32, i32
  }
  func.func @transform_2(%arg0: i32) -> (i32, i32) {
    %c0_i32 = arith.constant 0 : i32
    %c0_i32_0 = arith.constant 0 : i32
    %c0_i32_1 = arith.constant 0 : i32
    return %c0_i32, %c0_i32_0 : i32, i32
  }
  func.func @transform_3(%arg0: i32) -> (i32, i32) {
    %c0_i32 = arith.constant 0 : i32
    %c0_i32_0 = arith.constant 0 : i32
    %c0_i32_1 = arith.constant 0 : i32
    return %c0_i32, %c0_i32_0 : i32, i32
  }
  func.func @transform_4(%arg0: i32) -> (i32, i32) {
    %c0_i32 = arith.constant 0 : i32
    %c0_i32_0 = arith.constant 0 : i32
    %c0_i32_1 = arith.constant 0 : i32
    return %c0_i32, %c0_i32_0 : i32, i32
  }
  func.func @transform_5(%arg0: i32) -> (i32, i32) {
    %c0_i32 = arith.constant 0 : i32
    %c0_i32_0 = arith.constant 0 : i32
    %c0_i32_1 = arith.constant 0 : i32
    return %c0_i32, %c0_i32_0 : i32, i32
  }
  func.func @transform_6(%arg0: i32) -> (i32, i32) {
    %c0_i32 = arith.constant 0 : i32
    %c0_i32_0 = arith.constant 0 : i32
    %c0_i32_1 = arith.constant 0 : i32
    return %c0_i32, %c0_i32_0 : i32, i32
  }
  func.func @transform_7(%arg0: i32) -> (i32, i32) {
    %c0_i32 = arith.constant 0 : i32
    %c0_i32_0 = arith.constant 0 : i32
    %c0_i32_1 = arith.constant 0 : i32
    return %c0_i32, %c0_i32_0 : i32, i32
  }
  func.func @transform_8(%arg0: i32) -> (i32, i32) {
    %c0_i32 = arith.constant 0 : i32
    %c0_i32_0 = arith.constant 0 : i32
    %c0_i32_1 = arith.constant 0 : i32
    return %c0_i32, %c0_i32_0 : i32, i32
  }
  func.func @transform_9(%arg0: i32) -> (i32, i32) {
    %c0_i32 = arith.constant 0 : i32
    %c0_i32_0 = arith.constant 0 : i32
    %c0_i32_1 = arith.constant 0 : i32
    return %c0_i32, %c0_i32_0 : i32, i32
  }
  func.func @transform_10(%arg0: i32) -> (i32, i32) {
    %c0_i32 = arith.constant 0 : i32
    %c0_i32_0 = arith.constant 0 : i32
    %c0_i32_1 = arith.constant 0 : i32
    return %c0_i32, %c0_i32_0 : i32, i32
  }
  func.func @transform_11(%arg0: i32) -> (i32, i32) {
    %c0_i32 = arith.constant 0 : i32
    %c0_i32_0 = arith.constant 0 : i32
    return %arg0, %c0_i32 : i32, i32
  }
  func.func @transform_12(%arg0: i32) -> (i32, i32) {
    %c0_i32 = arith.constant 0 : i32
    %c0_i32_0 = arith.constant 0 : i32
    return %arg0, %c0_i32 : i32, i32
  }
}

</mosaic_0001>

<bundles_post_ra>
// kernel: _lambda_.4
= control target key start
LH: loop header
LB: loop body
LE: loop exit
PB: predicated region body
PF: predicated region fallthrough
CT: control target
= control target key end

     0   :  { %8 = vsyncpa [#allocation3], 0  ;;  %s2813_s0 = inlined_call_operand.hbm [shape: bf16[1600,256], index: 0, kind: input, shape index: {}]   ;;  %s2814_s1 = inlined_call_operand.hbm [shape: bf16[256,128], index: 1, kind: input, shape index: {}]   ;;  %s2815_s2 = inlined_call_operand.hbm [shape: f32[1,128], index: 2, kind: input, shape index: {}]   ;;  %s2816_s3 = inlined_call_operand.hbm [shape: bf16[1600,128], index: 3, kind: output, shape index: {}]  }
   0x1   :  { %10 = vsyncpa [#allocation3 + $0x1], 0 }
   0x2   :  { %11 = vsyncpa [#allocation6], 0 }
   0x3   :  { %12 = vsyncpa [#allocation4], 0 }
   0x4   :  { %14 = vsyncpa [#allocation4 + $0x1], 0  ;;  %s2370_s12 = smov 0   ;;  %s2372_s13 = smov 0  }
   0x5   :  { %s2374_s14 = smov 0   ;;  %s2376_s15 = smov 0  }
   0x6 LB: > { %s2391_s16 = sadd.s32 4294967295, %s2337_s15   ;;  %s1540_s17 = sadd.s32 4294967294, %s2337_s15   ;;  %s2337_s15 = sphi %s2376_s15, %s2836_s15   ;;  %s2333_s14 = sphi %s2374_s14, %s2835_s14   ;;  %s2329_s13 = sphi %s2372_s13, %s2834_s13   ;;  %s2325_s12 = sphi %s2370_s12, %s2833_s12  }
   0x7   : > { %s2395_s18 = sadd.s32 1, %s2337_s15   ;;  %s27_s19 = sadd.s32 1, %s2333_s14 }
   0x8   : > { %s24_s20 = ssub.s32 %s2337_s15, %s2395_s18  ;;  %p34_p0 = scmp.ne.s32.totalorder %s2333_s14, %s2329_s13 }
   0x9   : > { %p25_p1 = scmp.eq.s32.totalorder %s24_s20, 0  ;;  %p35_p2 = scmp.eq.s32.totalorder %s2337_s15, 0 }
   0xa   : > { %p40_p3 = scmp.ne.s32.totalorder %s2329_s13, %s2325_s12  ;;  %p2817_p4 = scmp.eq.s32.totalorder %s2391_s16, 0 }
   0xb   : > { %s2407_s21 = scalar_select %p25_p1, %s2333_s14, %s27_s19  }
   0xc   : > { %p2409_p5 = por %p35_p2, %p34_p0  ;;  %p2415_p6 = por %p2817_p4, %p40_p3 }
   0xd   : > { %p106_p7 = scmp.eq.s32.totalorder %s2391_s16, 3  ;;  %p112_p8 = scmp.eq.s32.totalorder %s1540_s17, 3 }
   0xe   : > { %s2820_s22 = scalar_select %p2409_p5, 1, 0 }
   0xf   : > { %s2821_s23 = scalar_select %p2415_p6, 1, 0 }
  0x10   : > { %p1541_p9 = scmp.ge.s32.totalorder %s2337_s15, 1  ;;  %p119_p10 = scmp.lt.s32.totalorder %s2337_s15, 5 }
  0x11   : > { %p2422_p11 = por %p106_p7, %p34_p0  ;;  %p2426_p12 = por %p112_p8, %p40_p3 }
  0x12   : > { %p2430_p13 = pnand %p1541_p9, %p119_p10  ;;  %s2339_s27 = smov [#allocation5]  }
  0x13   : > { %s2822_s24 = scalar_select %p2422_p11, 1, 0 }
  0x14   : > { %s2823_s25 = scalar_select %p2426_p12, 1, 0 }
  0x15   : > { %s2824_s26 = scalar_select %p2430_p13, 1, 0 }
  0x16   : > { %p2014_p1 = pneg %p2430_p13  ;;  %s131_s28 = sshll.u32 %s2339_s27, 4  ;;  %s132_s28 = int_to_ptr.vmem [resolvable:$true] %s131_s28 }
  0x17   : > { %s2340_s30 = smov [#allocation7]   ;;  %s2183_s7 = scalar_lea.hbm %s2814_s1, 2048 }
  0x18   : > { %p2438_p2 = pnand %p2014_p1, %p2817_p4  ;;  %s145_s4 = sshll.u32 %s2340_s30, 4  ;;  %s2442_s4 = int_to_ptr.vmem [resolvable:$true] %s145_s4 }
  0x19   : > { %p2184_p0 = scmp.ne.s32.totalorder %s2814_s1, %s2183_s7  ;;  %p2190_p9 = scmp.lt.u32.totalorder %s2183_s7, %s2814_s1 }
  0x1a   : > { %p2185_p3 = pneg %p2438_p2 }
  0x1c   : > { %p2186_p7 = pnand %p2185_p3, %p2184_p0 }
  0x1e   : > { %p2187_p8 = pneg %p2186_p7 }
  0x20   : > { %p2192_p10 = pnand %p2190_p9, %p2187_p8 }
  0x22   : > { %2195 = shalt.err (!%p2192_p10)
}
  0x23   : > { %s2196_s17 = scalar_lea.vmem %s132_s28, 2048  ;;  %p2204_p11 = scmp.lt.s32.totalorder %s132_s28, %s132_s28 }
  0x24   : > { %p2197_p1 = scmp.ne.s32.totalorder %s132_s28, %s2196_s17  ;;  %p2205_p6 = scmp.lt.s32.totalorder %s2196_s17, %s2196_s17 }
  0x26   : > { %p2199_p4 = pnand %p2197_p1, %p2185_p3  ;;  %p2206_p13 = por %p2205_p6, %p2204_p11 }
  0x28   : > { %p2200_p12 = pneg %p2199_p4 }
  0x2a   : > { %p2207_p5 = pnand %p2206_p13, %p2200_p12 }
  0x2c   : > { %2210 = shalt.err (!%p2207_p5)
}
  0x2d   : > { %s2341_s19 = smov 64   ;;  %s2342_s20 = smov 4  }
  0x2e   : > { %2017 = dma.hbm_to_vmem [thread:$0]  (!%p2438_p2), %s2814_s1, 2048, %s132_s28, [#allocation6], %s2341_s19, %s2341_s19, %s2342_s20  }
  0x2f   : > { %s2211_s7 = scalar_lea.hbm %s2815_s2, 16 }
  0x30   : > { %p2212_p4 = scmp.ne.s32.totalorder %s2815_s2, %s2211_s7  ;;  %p2218_p11 = scmp.lt.u32.totalorder %s2211_s7, %s2815_s2 }
  0x32   : > { %p2214_p5 = pnand %p2212_p4, %p2185_p3 }
  0x34   : > { %p2215_p6 = pneg %p2214_p5 }
  0x36   : > { %p2220_p12 = pnand %p2218_p11, %p2215_p6 }
  0x38   : > { %2223 = shalt.err (!%p2220_p12)
}
  0x39   : > { %s2224_s28 = scalar_lea.vmem %s2442_s4, 16  ;;  %s2231_s17 = scalar_lea.vmem %s2442_s4, 32 }
  0x3a   : > { %p2225_p13 = scmp.ne.s32.totalorder %s2442_s4, %s2224_s28  ;;  %p2232_p8 = scmp.lt.s32.totalorder %s2442_s4, %s2442_s4 }
  0x3b   : > { %p2233_p9 = scmp.lt.s32.totalorder %s2231_s17, %s2224_s28 }
  0x3c   : > { %p2227_p0 = pnand %p2225_p13, %p2185_p3 }
  0x3d   : > { %p2234_p10 = por %p2233_p9, %p2232_p8 }
  0x3e   : > { %p2228_p7 = pneg %p2227_p0 }
  0x40   : > { %p2235_p1 = pnand %p2234_p10, %p2228_p7 }
  0x42   : > { %2238 = shalt.err (!%p2235_p1)
}
  0x43   : > { %2020 = dma.hbm_to_vmem [thread:$0]  (!%p2438_p2), %s2815_s2, 16, %s2442_s4, [#allocation6]  }
  0x44   : > { %p1544_p4 = scmp.ge.s32.totalorder %s2337_s15, 4 }
  0x45   : > { %p2826_p3 = scmp.ne.s32.totalorder (!%p1544_p4), %s2820_s22, 0 }
  0x46   : > { %152 = sbr.rel (%p1544_p4) target bundleno = 112 (0x70), region = 24 }
  0x4d   : > { %155 = sbr.rel (!%p2826_p3) target bundleno = 112 (0x70), region = 28  ;;  %s156_s27 = sand.u32 (%p2826_p3), 1, %s2333_s14  }
  0x4e   : > { %s1546_s30 = sshll.u32 (%p2826_p3), %s2337_s15, 6  ;;  %s1545_s5 = sshll.u32 (%p2826_p3), %s156_s27, 9 }
  0x4f   : > { %s162_s6 = ssub.s32 (%p2826_p3), 200, %s1546_s30  ;;  %s2500_s8 = scalar_lea.sflag (%p2826_p3), [#allocation3], %s156_s27 }
  0x50   : > { %p163_p5 = scmp.lt.s32.totalorder (%p2826_p3), %s162_s6, 64  ;;  %s160_s4 = scalar_lea.vmem (%p2826_p3), [#allocation2], %s1545_s5 }
  0x54   : > { %s2838_s6 = smov (!%p163_p5, %s162_s6), 64 }
  0x55   : > { %s2497_s29 = sshll.u32 %s2838_s6, 7 }
  0x56   : > { %s168_s7 = ssub.s32 8192, %s2497_s29 }
  0x57   : > { %169 = vsyncadd %s2500_s8, %s168_s7  ;;  %p1549_p2 = scmp.ne.s32.totalorder %s2497_s29, 0  ;;  %s1715_s22 = sshll.u32 %s2337_s15, 13 }
  0x58   : > { %s2508_s11 = scalar_lea.hbm %s2813_s0, %s1715_s22  ;;  %s175_s28 = sshll.u32 %s160_s4, 4  ;;  %s2510_s28 = int_to_ptr.vmem [resolvable:$true] %s175_s28 }
  0x59   : > { %s2239_s17 = scalar_lea.hbm %s2508_s11, %s2497_s29  ;;  %s2243_s27 = scalar_lea.hbm %s2813_s0, 25600 }
  0x5a   : > { %p2240_p6 = scmp.ne.s32.totalorder %s2508_s11, %s2239_s17  ;;  %p2244_p13 = scmp.lt.u32.totalorder %s2508_s11, %s2813_s0 }
  0x5b   : > { %p2245_p0 = scmp.lt.u32.totalorder %s2243_s27, %s2239_s17  ;;  %p2247_p8 = scmp.lt.u32.totalorder %s2239_s17, %s2508_s11 }
  0x5c   : > { %p2241_p11 = pnand %p2240_p6, %p1549_p2 }
  0x5d   : > { %p2246_p7 = por %p2245_p0, %p2244_p13 }
  0x5e   : > { %p2242_p12 = pneg %p2241_p11 }
  0x5f   : > { %p2248_p9 = por %p2247_p8, %p2246_p7 }
  0x61   : > { %p2249_p10 = pnand %p2248_p9, %p2242_p12 }
  0x63   : > { %2252 = shalt.err (!%p2249_p10)
}
  0x64   : > { %s2253_s6 = scalar_lea.vmem %s2510_s28, %s2497_s29  ;;  %s2343_s7 = smov [#allocation2]  }
  0x65   : > { %p2254_p1 = scmp.ne.s32.totalorder %s2510_s28, %s2253_s6  ;;  %s2257_s4 = sshll.u32 %s2343_s7, 4  ;;  %s2258_s4 = int_to_ptr.vmem [resolvable:$false] %s2257_s4 }
  0x66   : > { %s2259_s22 = scalar_lea.vmem %s2258_s4, 16384  ;;  %p2260_p5 = scmp.lt.s32.totalorder %s2510_s28, %s2258_s4 }
  0x67   : > { %p2255_p4 = pnand %p2254_p1, %p1549_p2  ;;  %p2261_p6 = scmp.lt.s32.totalorder %s2259_s22, %s2253_s6 }
  0x69   : > { %p2256_p3 = pneg %p2255_p4  ;;  %p2262_p11 = por %p2261_p6, %p2260_p5 }
  0x6b   : > { %p2263_p13 = pnand %p2262_p11, %p2256_p3 }
  0x6d   : > { %2266 = shalt.err (!%p2263_p13)
}
  0x6e   : > { %s2344_s9 = smov 128   ;;  %s2345_s10 = smov 8  }
  0x6f   : > { %181 = dma.hbm_to_vmem [thread:$0]  (%p1549_p2), %s2508_s11, %s2497_s29, %s2510_s28, %s2500_s8, %s2344_s9, %s2344_s9, %s2345_s10  }
  0x70 PF: > { %p2827_p12 = scmp.ne.s32.totalorder %s2824_s26, 0 }
  0x71   : > { %s2540_s17 = sand.u32 (!%p2827_p12), 1, %s2329_s13   ;;  %p2828_p0 = scmp.ne.s32.totalorder (!%p2827_p12), %s2821_s23, 0 }
  0x72   : > { %187 = sbr.rel (%p2827_p12) target bundleno = 559 (0x22f), region = 32  ;;  %s1555_s19 = sshll.u32 (!%p2827_p12), %s2540_s17, 9 }
  0x73   : > { %s190_s20 = scalar_lea.sflag (!%p2827_p12), [#allocation3], %s2540_s17  ;;  %s2544_s27 = scalar_lea.vmem (!%p2827_p12), [#allocation2], %s1555_s19 }
  0x79   : > { %2312 = dma.done.wait (%p2828_p0), %s190_s20, 8192  }
  0x7a   : > { %2314 = vsyncadd (%p2828_p0), %s190_s20, 4294959104  ;;  %p2829_p2 = scmp.eq.s32.totalorder %s2391_s16, 0 }
  0x7c   : > { %2316 = dma.done.wait (%p2829_p2), [#allocation6], 2064   ;;  %p2830_p7 = pmov %p2829_p2 }
  0x7d   : > { %v2346_v0 = vmov 0   ;;  %v2071_v1 = vld [vmem:[#allocation5] sm:$0xff]   ;;  %v2072_v2 = vld [vmem:[#allocation5 + $0x8] sm:$0xff]   ;;  %v2073_v3 = vld [vmem:[#allocation5 + $0x10] sm:$0xff]   ;;  %s1558_s23 = sshll.u32 %s2540_s17, 8  ;;  %s1429_s29 = scalar_lea.sflag [#allocation4], %s2540_s17 }
  0x7e   : > { %2318 = vsyncadd (%p2830_p7), [#allocation6], 4294965232  ;;  %755 = vmatprep.subr.bf16.mxu0 %v2346_v0  ;;  %1972 = vmatprep.subr.bf16.mxu1 %v2346_v0  ;;  %v2074_v4 = vld [vmem:[#allocation5 + $0x18] sm:$0xff]   ;;  %v2075_v5 = vld [vmem:[#allocation5 + $0x20] sm:$0xff]   ;;  %s2657_s26 = scalar_lea.vmem [#allocation8], %s1558_s23  ;;  %p2831_p8 = scmp.ne.s32.totalorder %s2822_s24, 0 }
  0x7f   : > { %756 = vmatpush1.bf16.msra.mxu0 %v2071_v1  ;;  %1988 = vmatpush1.bf16.msra.mxu1 %v2071_v1  ;;  %v2089_v6 = vld [vmem:[%s2544_s27 + $0x4] ss:$8 sps:$4 sm:$0xff]   ;;  %v2077_v9 = vld [vmem:[#allocation5 + $0x30] sm:$0xff]   ;;  %v2078_v10 = vld [vmem:[#allocation5 + $0x38] sm:$0xff]   ;;  %s1705_s8 = sshll.u32 (%p2831_p8), %s2391_s16, 6 }
  0x80   : > { %757 = vmatprep.subr.bf16.mxu0 %v2346_v0  ;;  %1973 = vmatprep.subr.bf16.mxu1 %v2346_v0  ;;  %v2076_v7 = vld [vmem:[#allocation5 + $0x28] sm:$0xff]   ;;  %v2079_v11 = vld [vmem:[#allocation5 + $0x40] sm:$0xff]   ;;  %v2081_v13 = vld [vmem:[#allocation5 + $0x50] sm:$0xff]   ;;  %s1437_s11 = ssub.s32 (%p2831_p8), 200, %s1705_s8 }
  0x81   : > { %v2092_v8 = vld [vmem:[%s2544_s27 + $0x104] ss:$8 sps:$4 sm:$0xff]   ;;  %787 = vmatprep.mubr.bf16.mxu0 %v2089_v6  ;;  %v2082_v14 = vld [vmem:[#allocation5 + $0x58] sm:$0xff]   ;;  %v2085_v17 = vld [vmem:[#allocation5 + $0x70] sm:$0xff]   ;;  %p1438_p9 = scmp.lt.s32.totalorder (%p2831_p8), %s1437_s11, 64 }
  0x82   : > { %915 = vmatprep.mubr.bf16.mxu1 %v2092_v8  ;;  %v2080_v12 = vld [vmem:[#allocation5 + $0x48] sm:$0xff]   ;;  %v2083_v15 = vld [vmem:[#allocation5 + $0x60] sm:$0xff]   ;;  %v2086_v18 = vld [vmem:[#allocation5 + $0x78] sm:$0xff]  }
  0x83   : > { %758 = vmatpush1.bf16.msra.mxu0 %v2072_v2  ;;  %1989 = vmatpush1.bf16.msra.mxu1 %v2072_v2  ;;  %v2084_v16 = vld [vmem:[#allocation5 + $0x68] sm:$0xff]   ;;  %v2093_v21 = vld [vmem:[%s2544_s27 + $0x14] ss:$8 sps:$4 sm:$0xff]   ;;  %v2097_v23 = vld [vmem:[%s2544_s27 + $0x10] ss:$8 sps:$4 sm:$0xff]  }
  0x84   : > { %759 = vmatprep.subr.bf16.mxu0 %v2346_v0  ;;  %1974 = vmatprep.subr.bf16.mxu1 %v2346_v0  ;;  %v2087_v19 = vld [vmem:[%s2544_s27] ss:$8 sps:$4 sm:$0xff]   ;;  %v2095_v22 = vld [vmem:[%s2544_s27 + $0x114] ss:$8 sps:$4 sm:$0xff]   ;;  %v2098_v24 = vld [vmem:[%s2544_s27 + $0x110] ss:$8 sps:$4 sm:$0xff]  }
  0x85   : > { %v2090_v20 = vld [vmem:[%s2544_s27 + $0x100] ss:$8 sps:$4 sm:$0xff]   ;;  %v2099_v25 = vld [vmem:[%s2544_s27 + $0x24] ss:$8 sps:$4 sm:$0xff]   ;;  %v2105_v29 = vld [vmem:[%s2544_s27 + $0x34] ss:$8 sps:$4 sm:$0xff]  }
  0x86   : > { %v2101_v26 = vld [vmem:[%s2544_s27 + $0x124] ss:$8 sps:$4 sm:$0xff]   ;;  %v2103_v27 = vld [vmem:[%s2544_s27 + $0x20] ss:$8 sps:$4 sm:$0xff]   ;;  %v2107_v30 = vld [vmem:[%s2544_s27 + $0x134] ss:$8 sps:$4 sm:$0xff]  }
  0x87   : > { %760 = vmatpush1.bf16.msra.mxu0 %v2073_v3  ;;  %1990 = vmatpush1.bf16.msra.mxu1 %v2073_v3  ;;  %v2104_v28 = vld [vmem:[%s2544_s27 + $0x120] ss:$8 sps:$4 sm:$0xff]   ;;  %v2109_v31 = vld [vmem:[%s2544_s27 + $0x30] ss:$8 sps:$4 sm:$0xff]   ;;  %v2111_v33 = vld [vmem:[%s2544_s27 + $0x44] ss:$8 sps:$4 sm:$0xff]  }
  0x88   : > { %761 = vmatprep.subr.bf16.mxu0 %v2346_v0  ;;  %1975 = vmatprep.subr.bf16.mxu1 %v2346_v0  ;;  %v2110_v32 = vld [vmem:[%s2544_s27 + $0x130] ss:$8 sps:$4 sm:$0xff]   ;;  %v2113_v34 = vld [vmem:[%s2544_s27 + $0x144] ss:$8 sps:$4 sm:$0xff]   ;;  %v2115_v35 = vld [vmem:[%s2544_s27 + $0x40] ss:$8 sps:$4 sm:$0xff]  }
  0x89   : > { %v2116_v36 = vld [vmem:[%s2544_s27 + $0x140] ss:$8 sps:$4 sm:$0xff]   ;;  %v2117_v37 = vld [vmem:[%s2544_s27 + $0x54] ss:$8 sps:$4 sm:$0xff]   ;;  %v2121_v39 = vld [vmem:[%s2544_s27 + $0x50] ss:$8 sps:$4 sm:$0xff]  }
  0x8a   : > { %v2119_v38 = vld [vmem:[%s2544_s27 + $0x154] ss:$8 sps:$4 sm:$0xff]   ;;  %v2122_v40 = vld [vmem:[%s2544_s27 + $0x150] ss:$8 sps:$4 sm:$0xff]   ;;  %v2123_v41 = vld [vmem:[%s2544_s27 + $0x64] ss:$8 sps:$4 sm:$0xff]  }
  0x8b   : > { %762 = vmatpush1.bf16.msra.mxu0 %v2074_v4  ;;  %1991 = vmatpush1.bf16.msra.mxu1 %v2074_v4  ;;  %v2125_v42 = vld [vmem:[%s2544_s27 + $0x164] ss:$8 sps:$4 sm:$0xff]   ;;  %v2127_v43 = vld [vmem:[%s2544_s27 + $0x60] ss:$8 sps:$4 sm:$0xff]   ;;  %v2129_v45 = vld [vmem:[%s2544_s27 + $0x74] ss:$8 sps:$4 sm:$0xff]  }
  0x8c   : > { %763 = vmatprep.subr.bf16.mxu0 %v2346_v0  ;;  %1976 = vmatprep.subr.bf16.mxu1 %v2346_v0  ;;  %v2128_v44 = vld [vmem:[%s2544_s27 + $0x160] ss:$8 sps:$4 sm:$0xff]   ;;  %v2131_v46 = vld [vmem:[%s2544_s27 + $0x174] ss:$8 sps:$4 sm:$0xff]   ;;  %v2133_v47 = vld [vmem:[%s2544_s27 + $0x70] ss:$8 sps:$4 sm:$0xff]  }
  0x8d   : > { %v2134_v48 = vld [vmem:[%s2544_s27 + $0x170] ss:$8 sps:$4 sm:$0xff]   ;;  %v2135_v49 = vld [vmem:[%s2544_s27 + $0x84] ss:$8 sps:$4 sm:$0xff]   ;;  %v2139_v51 = vld [vmem:[%s2544_s27 + $0x80] ss:$8 sps:$4 sm:$0xff]  }
  0x8e   : > { %v2137_v50 = vld [vmem:[%s2544_s27 + $0x184] ss:$8 sps:$4 sm:$0xff]   ;;  %v2140_v52 = vld [vmem:[%s2544_s27 + $0x180] ss:$8 sps:$4 sm:$0xff]   ;;  %v2141_v53 = vld [vmem:[%s2544_s27 + $0x94] ss:$8 sps:$4 sm:$0xff]  }
  0x8f   : > { %764 = vmatpush1.bf16.msra.mxu0 %v2075_v5  ;;  %1992 = vmatpush1.bf16.msra.mxu1 %v2075_v5  ;;  %v2143_v54 = vld [vmem:[%s2544_s27 + $0x194] ss:$8 sps:$4 sm:$0xff]   ;;  %v2145_v55 = vld [vmem:[%s2544_s27 + $0x90] ss:$8 sps:$4 sm:$0xff]   ;;  %v2147_v57 = vld [vmem:[%s2544_s27 + $0xa4] ss:$8 sps:$4 sm:$0xff]  }
  0x90   : > { %765 = vmatprep.subr.bf16.mxu0 %v2346_v0  ;;  %1977 = vmatprep.subr.bf16.mxu1 %v2346_v0  ;;  %v2146_v56 = vld [vmem:[%s2544_s27 + $0x190] ss:$8 sps:$4 sm:$0xff]   ;;  %v2149_v58 = vld [vmem:[%s2544_s27 + $0x1a4] ss:$8 sps:$4 sm:$0xff]   ;;  %v2151_v59 = vld [vmem:[%s2544_s27 + $0xa0] ss:$8 sps:$4 sm:$0xff]  }
  0x91   : > { %v2152_v60 = vld [vmem:[%s2544_s27 + $0x1a0] ss:$8 sps:$4 sm:$0xff]   ;;  %v2153_v61 = vld [vmem:[%s2544_s27 + $0xb4] ss:$8 sps:$4 sm:$0xff]   ;;  %v2157_v63 = vld [vmem:[%s2544_s27 + $0xb0] ss:$8 sps:$4 sm:$0xff]  }
  0x92   : > { %v2155_v62 = vld [vmem:[%s2544_s27 + $0x1b4] ss:$8 sps:$4 sm:$0xff]   ;;  %v2159_v1 = vld [vmem:[%s2544_s27 + $0xc4] ss:$8 sps:$4 sm:$0xff]   ;;  %v2163_v3 = vld [vmem:[%s2544_s27 + $0xc0] ss:$8 sps:$4 sm:$0xff]  }
  0x93   : > { %766 = vmatpush1.bf16.msra.mxu0 %v2076_v7  ;;  %1993 = vmatpush1.bf16.msra.mxu1 %v2076_v7  ;;  %v2161_v2 = vld [vmem:[%s2544_s27 + $0x1c4] ss:$8 sps:$4 sm:$0xff]   ;;  %v2164_v4 = vld [vmem:[%s2544_s27 + $0x1c0] ss:$8 sps:$4 sm:$0xff]   ;;  %v2165_v5 = vld [vmem:[%s2544_s27 + $0xd4] ss:$8 sps:$4 sm:$0xff]  }
  0x94   : > { %767 = vmatprep.subr.bf16.mxu0 %v2346_v0  ;;  %1978 = vmatprep.subr.bf16.mxu1 %v2346_v0  ;;  %v2167_v6 = vld [vmem:[%s2544_s27 + $0x1d4] ss:$8 sps:$4 sm:$0xff]   ;;  %v2169_v7 = vld [vmem:[%s2544_s27 + $0xd0] ss:$8 sps:$4 sm:$0xff]  }
  0x95   : > { %v2170_v8 = vld [vmem:[%s2544_s27 + $0x1d0] ss:$8 sps:$4 sm:$0xff]  }
  0x97   : > { %768 = vmatpush1.bf16.msra.mxu0 %v2077_v9  ;;  %1994 = vmatpush1.bf16.msra.mxu1 %v2077_v9  ;;  %v2171_v9 = vld [vmem:[%s2544_s27 + $0xe4] ss:$8 sps:$4 sm:$0xff]  }
  0x98   : > { %769 = vmatprep.subr.bf16.mxu0 %v2346_v0  ;;  %1979 = vmatprep.subr.bf16.mxu1 %v2346_v0 }
  0x9b   : > { %770 = vmatpush1.bf16.msra.mxu0 %v2078_v10  ;;  %1995 = vmatpush1.bf16.msra.mxu1 %v2078_v10  ;;  %v2173_v10 = vld [vmem:[%s2544_s27 + $0x1e4] ss:$8 sps:$4 sm:$0xff]  }
  0x9c   : > { %771 = vmatprep.subr.bf16.mxu0 %v2346_v0  ;;  %1980 = vmatprep.subr.bf16.mxu1 %v2346_v0 }
  0x9f   : > { %772 = vmatpush1.bf16.msra.mxu0 %v2079_v11  ;;  %1996 = vmatpush1.bf16.msra.mxu1 %v2079_v11  ;;  %v2175_v11 = vld [vmem:[%s2544_s27 + $0xe0] ss:$8 sps:$4 sm:$0xff]  }
  0xa0   : > { %773 = vmatprep.subr.bf16.mxu0 %v2346_v0  ;;  %1981 = vmatprep.subr.bf16.mxu1 %v2346_v0 }
  0xa3   : > { %774 = vmatpush1.bf16.msra.mxu0 %v2080_v12  ;;  %1997 = vmatpush1.bf16.msra.mxu1 %v2080_v12  ;;  %v2176_v12 = vld [vmem:[%s2544_s27 + $0x1e0] ss:$8 sps:$4 sm:$0xff]  }
  0xa4   : > { %775 = vmatprep.subr.bf16.mxu0 %v2346_v0  ;;  %1982 = vmatprep.subr.bf16.mxu1 %v2346_v0 }
  0xa7   : > { %776 = vmatpush1.bf16.msra.mxu0 %v2081_v13  ;;  %1998 = vmatpush1.bf16.msra.mxu1 %v2081_v13  ;;  %v2177_v13 = vld [vmem:[%s2544_s27 + $0xf4] ss:$8 sps:$4 sm:$0xff]  }
  0xa8   : > { %777 = vmatprep.subr.bf16.mxu0 %v2346_v0  ;;  %1983 = vmatprep.subr.bf16.mxu1 %v2346_v0 }
  0xab   : > { %778 = vmatpush1.bf16.msra.mxu0 %v2082_v14  ;;  %1999 = vmatpush1.bf16.msra.mxu1 %v2082_v14  ;;  %v2179_v14 = vld [vmem:[%s2544_s27 + $0x1f4] ss:$8 sps:$4 sm:$0xff]  }
  0xac   : > { %779 = vmatprep.subr.bf16.mxu0 %v2346_v0  ;;  %1984 = vmatprep.subr.bf16.mxu1 %v2346_v0 }
  0xaf   : > { %780 = vmatpush1.bf16.msra.mxu0 %v2083_v15  ;;  %2000 = vmatpush1.bf16.msra.mxu1 %v2083_v15  ;;  %v2181_v15 = vld [vmem:[%s2544_s27 + $0xf0] ss:$8 sps:$4 sm:$0xff]  }
  0xb0   : > { %781 = vmatprep.subr.bf16.mxu0 %v2346_v0  ;;  %1985 = vmatprep.subr.bf16.mxu1 %v2346_v0 }
  0xb3   : > { %782 = vmatpush1.bf16.msra.mxu0 %v2084_v16  ;;  %2001 = vmatpush1.bf16.msra.mxu1 %v2084_v16  ;;  %v2182_v16 = vld [vmem:[%s2544_s27 + $0x1f0] ss:$8 sps:$4 sm:$0xff]  }
  0xb4   : > { %783 = vmatprep.subr.bf16.mxu0 %v2346_v0  ;;  %1986 = vmatprep.subr.bf16.mxu1 %v2346_v0 }
  0xb7   : > { %784 = vmatpush1.bf16.msra.mxu0 %v2085_v17  ;;  %2002 = vmatpush1.bf16.msra.mxu1 %v2085_v17  ;;  %v2650_v17 = vld [vmem:[#allocation7] ss:$0 sm:$0xff] }
  0xb8   : > { %785 = vmatprep.subr.bf16.mxu0 %v2346_v0  ;;  %1987 = vmatprep.subr.bf16.mxu1 %v2346_v0  ;;  %v2158_v0 = vld [vmem:[%s2544_s27 + $0x1b0] ss:$8 sps:$4 sm:$0xff]  }
  0xbb   : > { %786 = vmatpush1.bf16.msra.mxu0 %v2086_v18  ;;  %2003 = vmatpush1.bf16.msra.mxu1 %v2086_v18 }
  0xbe   : > { %788 = vmatmul.mubr.bf16.vlgmr.msra.gmra.mrb[0].mxu0 %v2087_v19  ;;  %916 = vmatmul.mubr.bf16.vlgmr.msra.gmra.mrb[0].mxu1 %v2090_v20 }
  0xbf   : > { %795 = vmatprep.mubr.bf16.mxu0 %v2093_v21  ;;  %923 = vmatprep.mubr.bf16.mxu1 %v2095_v22 }
  0xc6   : > { %796 = vmatmul.mubr.bf16.gmra.mrb[4].mxu0 %v2097_v23  ;;  %924 = vmatmul.mubr.bf16.gmra.mrb[4].mxu1 %v2098_v24 }
  0xc7   : > { %803 = vmatprep.mubr.bf16.mxu0 %v2099_v25  ;;  %931 = vmatprep.mubr.bf16.mxu1 %v2101_v26 }
  0xce   : > { %804 = vmatmul.mubr.bf16.gmra.mrb[8].mxu0 %v2103_v27  ;;  %932 = vmatmul.mubr.bf16.gmra.mrb[8].mxu1 %v2104_v28 }
  0xcf   : > { %811 = vmatprep.mubr.bf16.mxu0 %v2105_v29  ;;  %939 = vmatprep.mubr.bf16.mxu1 %v2107_v30 }
  0xd6   : > { %812 = vmatmul.mubr.bf16.gmra.mrb[12].mxu0 %v2109_v31  ;;  %940 = vmatmul.mubr.bf16.gmra.mrb[12].mxu1 %v2110_v32 }
  0xd7   : > { %819 = vmatprep.mubr.bf16.mxu0 %v2111_v33  ;;  %947 = vmatprep.mubr.bf16.mxu1 %v2113_v34 }
  0xde   : > { %820 = vmatmul.mubr.bf16.gmra.mrb[16].mxu0 %v2115_v35  ;;  %948 = vmatmul.mubr.bf16.gmra.mrb[16].mxu1 %v2116_v36 }
  0xdf   : > { %827 = vmatprep.mubr.bf16.mxu0 %v2117_v37  ;;  %955 = vmatprep.mubr.bf16.mxu1 %v2119_v38 }
  0xe6   : > { %828 = vmatmul.mubr.bf16.gmra.mrb[20].mxu0 %v2121_v39  ;;  %956 = vmatmul.mubr.bf16.gmra.mrb[20].mxu1 %v2122_v40 }
  0xe7   : > { %835 = vmatprep.mubr.bf16.mxu0 %v2123_v41  ;;  %963 = vmatprep.mubr.bf16.mxu1 %v2125_v42 }
  0xee   : > { %836 = vmatmul.mubr.bf16.gmra.mrb[24].mxu0 %v2127_v43  ;;  %964 = vmatmul.mubr.bf16.gmra.mrb[24].mxu1 %v2128_v44 }
  0xef   : > { %843 = vmatprep.mubr.bf16.mxu0 %v2129_v45  ;;  %971 = vmatprep.mubr.bf16.mxu1 %v2131_v46 }
  0xf6   : > { %844 = vmatmul.mubr.bf16.gmra.mrb[28].mxu0 %v2133_v47  ;;  %972 = vmatmul.mubr.bf16.gmra.mrb[28].mxu1 %v2134_v48 }
  0xf7   : > { %851 = vmatprep.mubr.bf16.mxu0 %v2135_v49  ;;  %979 = vmatprep.mubr.bf16.mxu1 %v2137_v50 }
  0xfe   : > { %852 = vmatmul.mubr.bf16.gmra.mrb[32].mxu0 %v2139_v51  ;;  %980 = vmatmul.mubr.bf16.gmra.mrb[32].mxu1 %v2140_v52 }
  0xff   : > { %859 = vmatprep.mubr.bf16.mxu0 %v2141_v53  ;;  %987 = vmatprep.mubr.bf16.mxu1 %v2143_v54 }
 0x106   : > { %860 = vmatmul.mubr.bf16.gmra.mrb[36].mxu0 %v2145_v55  ;;  %988 = vmatmul.mubr.bf16.gmra.mrb[36].mxu1 %v2146_v56 }
 0x107   : > { %867 = vmatprep.mubr.bf16.mxu0 %v2147_v57  ;;  %995 = vmatprep.mubr.bf16.mxu1 %v2149_v58 }
 0x10e   : > { %868 = vmatmul.mubr.bf16.gmra.mrb[40].mxu0 %v2151_v59  ;;  %996 = vmatmul.mubr.bf16.gmra.mrb[40].mxu1 %v2152_v60 }
 0x10f   : > { %875 = vmatprep.mubr.bf16.mxu0 %v2153_v61  ;;  %1003 = vmatprep.mubr.bf16.mxu1 %v2155_v62 }
 0x116   : > { %876 = vmatmul.mubr.bf16.gmra.mrb[44].mxu0 %v2157_v63  ;;  %1004 = vmatmul.mubr.bf16.gmra.mrb[44].mxu1 %v2158_v0 }
 0x117   : > { %883 = vmatprep.mubr.bf16.mxu0 %v2159_v1  ;;  %1011 = vmatprep.mubr.bf16.mxu1 %v2161_v2 }
 0x11e   : > { %884 = vmatmul.mubr.bf16.gmra.mrb[48].mxu0 %v2163_v3  ;;  %1012 = vmatmul.mubr.bf16.gmra.mrb[48].mxu1 %v2164_v4 }
 0x11f   : > { %891 = vmatprep.mubr.bf16.mxu0 %v2165_v5  ;;  %1019 = vmatprep.mubr.bf16.mxu1 %v2167_v6 }
 0x126   : > { %892 = vmatmul.mubr.bf16.gmra.mrb[52].mxu0 %v2169_v7  ;;  %1020 = vmatmul.mubr.bf16.gmra.mrb[52].mxu1 %v2170_v8 }
 0x127   : > { %899 = vmatprep.mubr.bf16.mxu0 %v2171_v9  ;;  %1027 = vmatprep.mubr.bf16.mxu1 %v2173_v10 }
 0x12e   : > { %900 = vmatmul.mubr.bf16.gmra.mrb[56].mxu0 %v2175_v11  ;;  %1028 = vmatmul.mubr.bf16.gmra.mrb[56].mxu1 %v2176_v12 }
 0x12f   : > { %907 = vmatprep.mubr.bf16.mxu0 %v2177_v13  ;;  %1035 = vmatprep.mubr.bf16.mxu1 %v2179_v14 }
 0x136   : > { %908 = vmatmul.mubr.bf16.gmra.mrb[60].mxu0 %v2181_v15  ;;  %1036 = vmatmul.mubr.bf16.gmra.mrb[60].mxu1 %v2182_v16 }
 0x191   : > { %v789_v18 = vpop.f32.mrb[0].mxu0  ;;  %v917_v19 = vpop.f32.mrb[0].mxu1 }
 0x192   : > { %v790_v20 = vadd.f32 %v2650_v17, %v789_v18  ;;  %v918_v21 = vadd.f32 %v2650_v17, %v917_v19  ;;  %v791_v22 = vpop.f32.mrb[1].mxu0  ;;  %v919_v23 = vpop.f32.mrb[1].mxu1 }
 0x193   : > { %v792_v24 = vpop.f32.mrb[2].mxu0  ;;  %v920_v25 = vpop.f32.mrb[2].mxu1 }
 0x194   : > { %v793_v26 = vadd.f32 %v2650_v17, %v792_v24  ;;  %v921_v27 = vadd.f32 %v2650_v17, %v920_v25  ;;  %v794_v28 = vpop.f32.mrb[3].mxu0  ;;  %v922_v29 = vpop.f32.mrb[3].mxu1  ;;  %v1044_v30 = vmax.f32 %v790_v20, 0.0  ;;  %v1076_v31 = vmax.f32 %v918_v21, 0.0 }
 0x196   : > { %v1045_v32 = vmax.f32 %v793_v26, 0.0  ;;  %v1077_v33 = vmax.f32 %v921_v27, 0.0 }
 0x198   : > { %v1784_v34 = vpack.c.bf16 %v1045_v32, %v1044_v30  ;;  %v1864_v35 = vpack.c.bf16 %v1077_v33, %v1076_v31 }
 0x199   : > { %v797_v36 = vpop.f32.mrb[4].mxu0  ;;  %v925_v37 = vpop.f32.mrb[4].mxu1 }
 0x19a   : > { %1785 = vst [vmem:[%s2657_s26] sm:$0xff] %v1784_v34   ;;  %1956 = vst [vmem:[%s2657_s26 + $0x80] sm:$0xff] %v1864_v35   ;;  %v798_v38 = vadd.f32 %v2650_v17, %v797_v36  ;;  %v926_v39 = vadd.f32 %v2650_v17, %v925_v37  ;;  %v799_v40 = vpop.f32.mrb[5].mxu0  ;;  %v927_v41 = vpop.f32.mrb[5].mxu1 }
 0x19b   : > { %v800_v42 = vpop.f32.mrb[6].mxu0  ;;  %v928_v43 = vpop.f32.mrb[6].mxu1 }
 0x19c   : > { %v801_v44 = vadd.f32 %v2650_v17, %v800_v42  ;;  %v929_v45 = vadd.f32 %v2650_v17, %v928_v43  ;;  %v802_v46 = vpop.f32.mrb[7].mxu0  ;;  %v930_v47 = vpop.f32.mrb[7].mxu1  ;;  %v1046_v48 = vmax.f32 %v798_v38, 0.0  ;;  %v1078_v49 = vmax.f32 %v926_v39, 0.0 }
 0x19e   : > { %v1047_v50 = vmax.f32 %v801_v44, 0.0  ;;  %v1079_v51 = vmax.f32 %v929_v45, 0.0 }
 0x1a0   : > { %v1789_v52 = vpack.c.bf16 %v1047_v50, %v1046_v48  ;;  %v1869_v53 = vpack.c.bf16 %v1079_v51, %v1078_v49 }
 0x1a1   : > { %v805_v54 = vpop.f32.mrb[8].mxu0  ;;  %v933_v55 = vpop.f32.mrb[8].mxu1 }
 0x1a2   : > { %1941 = vst [vmem:[%s2657_s26 + $0x8] sm:$0xff] %v1789_v52   ;;  %1957 = vst [vmem:[%s2657_s26 + $0x88] sm:$0xff] %v1869_v53   ;;  %v806_v56 = vadd.f32 %v2650_v17, %v805_v54  ;;  %v934_v57 = vadd.f32 %v2650_v17, %v933_v55  ;;  %v807_v58 = vpop.f32.mrb[9].mxu0  ;;  %v935_v59 = vpop.f32.mrb[9].mxu1 }
 0x1a3   : > { %v808_v60 = vpop.f32.mrb[10].mxu0  ;;  %v936_v61 = vpop.f32.mrb[10].mxu1 }
 0x1a4   : > { %v809_v62 = vadd.f32 %v2650_v17, %v808_v60  ;;  %v937_v63 = vadd.f32 %v2650_v17, %v936_v61  ;;  %v810_v0 = vpop.f32.mrb[11].mxu0  ;;  %v938_v1 = vpop.f32.mrb[11].mxu1  ;;  %v1048_v2 = vmax.f32 %v806_v56, 0.0  ;;  %v1080_v3 = vmax.f32 %v934_v57, 0.0 }
 0x1a6   : > { %v1049_v4 = vmax.f32 %v809_v62, 0.0  ;;  %v1081_v5 = vmax.f32 %v937_v63, 0.0 }
 0x1a8   : > { %v1794_v6 = vpack.c.bf16 %v1049_v4, %v1048_v2  ;;  %v1874_v7 = vpack.c.bf16 %v1081_v5, %v1080_v3 }
 0x1a9   : > { %v813_v8 = vpop.f32.mrb[12].mxu0  ;;  %v941_v9 = vpop.f32.mrb[12].mxu1 }
 0x1aa   : > { %1942 = vst [vmem:[%s2657_s26 + $0x10] sm:$0xff] %v1794_v6   ;;  %1958 = vst [vmem:[%s2657_s26 + $0x90] sm:$0xff] %v1874_v7   ;;  %v814_v10 = vadd.f32 %v2650_v17, %v813_v8  ;;  %v942_v11 = vadd.f32 %v2650_v17, %v941_v9  ;;  %v815_v12 = vpop.f32.mrb[13].mxu0  ;;  %v943_v13 = vpop.f32.mrb[13].mxu1 }
 0x1ab   : > { %v816_v14 = vpop.f32.mrb[14].mxu0  ;;  %v944_v15 = vpop.f32.mrb[14].mxu1 }
 0x1ac   : > { %v817_v16 = vadd.f32 %v2650_v17, %v816_v14  ;;  %v945_v18 = vadd.f32 %v2650_v17, %v944_v15  ;;  %v818_v19 = vpop.f32.mrb[15].mxu0  ;;  %v946_v20 = vpop.f32.mrb[15].mxu1  ;;  %v1050_v21 = vmax.f32 %v814_v10, 0.0  ;;  %v1082_v22 = vmax.f32 %v942_v11, 0.0 }
 0x1ae   : > { %v1051_v23 = vmax.f32 %v817_v16, 0.0  ;;  %v1083_v24 = vmax.f32 %v945_v18, 0.0 }
 0x1b0   : > { %v1799_v25 = vpack.c.bf16 %v1051_v23, %v1050_v21  ;;  %v1879_v26 = vpack.c.bf16 %v1083_v24, %v1082_v22 }
 0x1b1   : > { %v821_v27 = vpop.f32.mrb[16].mxu0  ;;  %v949_v28 = vpop.f32.mrb[16].mxu1 }
 0x1b2   : > { %1943 = vst [vmem:[%s2657_s26 + $0x18] sm:$0xff] %v1799_v25   ;;  %1959 = vst [vmem:[%s2657_s26 + $0x98] sm:$0xff] %v1879_v26   ;;  %v822_v29 = vadd.f32 %v2650_v17, %v821_v27  ;;  %v950_v30 = vadd.f32 %v2650_v17, %v949_v28  ;;  %v823_v31 = vpop.f32.mrb[17].mxu0  ;;  %v951_v32 = vpop.f32.mrb[17].mxu1 }
 0x1b3   : > { %v824_v33 = vpop.f32.mrb[18].mxu0  ;;  %v952_v34 = vpop.f32.mrb[18].mxu1 }
 0x1b4   : > { %v825_v35 = vadd.f32 %v2650_v17, %v824_v33  ;;  %v953_v36 = vadd.f32 %v2650_v17, %v952_v34  ;;  %v826_v37 = vpop.f32.mrb[19].mxu0  ;;  %v954_v38 = vpop.f32.mrb[19].mxu1  ;;  %v1052_v39 = vmax.f32 %v822_v29, 0.0  ;;  %v1084_v40 = vmax.f32 %v950_v30, 0.0 }
 0x1b6   : > { %v1053_v41 = vmax.f32 %v825_v35, 0.0  ;;  %v1085_v42 = vmax.f32 %v953_v36, 0.0 }
 0x1b8   : > { %v1804_v43 = vpack.c.bf16 %v1053_v41, %v1052_v39  ;;  %v1884_v44 = vpack.c.bf16 %v1085_v42, %v1084_v40 }
 0x1b9   : > { %v829_v45 = vpop.f32.mrb[20].mxu0  ;;  %v957_v46 = vpop.f32.mrb[20].mxu1 }
 0x1ba   : > { %1944 = vst [vmem:[%s2657_s26 + $0x20] sm:$0xff] %v1804_v43   ;;  %1960 = vst [vmem:[%s2657_s26 + $0xa0] sm:$0xff] %v1884_v44   ;;  %v830_v47 = vadd.f32 %v2650_v17, %v829_v45  ;;  %v958_v48 = vadd.f32 %v2650_v17, %v957_v46  ;;  %v831_v49 = vpop.f32.mrb[21].mxu0  ;;  %v959_v50 = vpop.f32.mrb[21].mxu1 }
 0x1bb   : > { %v832_v51 = vpop.f32.mrb[22].mxu0  ;;  %v960_v52 = vpop.f32.mrb[22].mxu1 }
 0x1bc   : > { %v833_v53 = vadd.f32 %v2650_v17, %v832_v51  ;;  %v961_v54 = vadd.f32 %v2650_v17, %v960_v52  ;;  %v834_v55 = vpop.f32.mrb[23].mxu0  ;;  %v962_v56 = vpop.f32.mrb[23].mxu1  ;;  %v1054_v57 = vmax.f32 %v830_v47, 0.0  ;;  %v1086_v58 = vmax.f32 %v958_v48, 0.0 }
 0x1be   : > { %v1055_v59 = vmax.f32 %v833_v53, 0.0  ;;  %v1087_v60 = vmax.f32 %v961_v54, 0.0 }
 0x1c0   : > { %v1809_v61 = vpack.c.bf16 %v1055_v59, %v1054_v57  ;;  %v1889_v62 = vpack.c.bf16 %v1087_v60, %v1086_v58 }
 0x1c1   : > { %v837_v63 = vpop.f32.mrb[24].mxu0  ;;  %v965_v0 = vpop.f32.mrb[24].mxu1 }
 0x1c2   : > { %1945 = vst [vmem:[%s2657_s26 + $0x28] sm:$0xff] %v1809_v61   ;;  %1961 = vst [vmem:[%s2657_s26 + $0xa8] sm:$0xff] %v1889_v62   ;;  %v838_v1 = vadd.f32 %v2650_v17, %v837_v63  ;;  %v966_v2 = vadd.f32 %v2650_v17, %v965_v0  ;;  %v839_v3 = vpop.f32.mrb[25].mxu0  ;;  %v967_v4 = vpop.f32.mrb[25].mxu1 }
 0x1c3   : > { %v840_v5 = vpop.f32.mrb[26].mxu0  ;;  %v968_v6 = vpop.f32.mrb[26].mxu1 }
 0x1c4   : > { %v841_v7 = vadd.f32 %v2650_v17, %v840_v5  ;;  %v969_v8 = vadd.f32 %v2650_v17, %v968_v6  ;;  %v842_v9 = vpop.f32.mrb[27].mxu0  ;;  %v970_v10 = vpop.f32.mrb[27].mxu1  ;;  %v1056_v11 = vmax.f32 %v838_v1, 0.0  ;;  %v1088_v12 = vmax.f32 %v966_v2, 0.0 }
 0x1c6   : > { %v1057_v13 = vmax.f32 %v841_v7, 0.0  ;;  %v1089_v14 = vmax.f32 %v969_v8, 0.0 }
 0x1c8   : > { %v1814_v15 = vpack.c.bf16 %v1057_v13, %v1056_v11  ;;  %v1894_v16 = vpack.c.bf16 %v1089_v14, %v1088_v12 }
 0x1c9   : > { %v845_v18 = vpop.f32.mrb[28].mxu0  ;;  %v973_v19 = vpop.f32.mrb[28].mxu1 }
 0x1ca   : > { %1946 = vst [vmem:[%s2657_s26 + $0x30] sm:$0xff] %v1814_v15   ;;  %1962 = vst [vmem:[%s2657_s26 + $0xb0] sm:$0xff] %v1894_v16   ;;  %v846_v20 = vadd.f32 %v2650_v17, %v845_v18  ;;  %v974_v21 = vadd.f32 %v2650_v17, %v973_v19  ;;  %v847_v22 = vpop.f32.mrb[29].mxu0  ;;  %v975_v23 = vpop.f32.mrb[29].mxu1 }
 0x1cb   : > { %v848_v24 = vpop.f32.mrb[30].mxu0  ;;  %v976_v25 = vpop.f32.mrb[30].mxu1 }
 0x1cc   : > { %v849_v26 = vadd.f32 %v2650_v17, %v848_v24  ;;  %v977_v27 = vadd.f32 %v2650_v17, %v976_v25  ;;  %v850_v28 = vpop.f32.mrb[31].mxu0  ;;  %v978_v29 = vpop.f32.mrb[31].mxu1  ;;  %v1058_v30 = vmax.f32 %v846_v20, 0.0  ;;  %v1090_v31 = vmax.f32 %v974_v21, 0.0 }
 0x1ce   : > { %v1059_v32 = vmax.f32 %v849_v26, 0.0  ;;  %v1091_v33 = vmax.f32 %v977_v27, 0.0 }
 0x1d0   : > { %v1819_v34 = vpack.c.bf16 %v1059_v32, %v1058_v30  ;;  %v1899_v35 = vpack.c.bf16 %v1091_v33, %v1090_v31 }
 0x1d1   : > { %v853_v36 = vpop.f32.mrb[32].mxu0  ;;  %v981_v37 = vpop.f32.mrb[32].mxu1 }
 0x1d2   : > { %1947 = vst [vmem:[%s2657_s26 + $0x38] sm:$0xff] %v1819_v34   ;;  %1963 = vst [vmem:[%s2657_s26 + $0xb8] sm:$0xff] %v1899_v35   ;;  %v854_v38 = vadd.f32 %v2650_v17, %v853_v36  ;;  %v982_v39 = vadd.f32 %v2650_v17, %v981_v37  ;;  %v855_v40 = vpop.f32.mrb[33].mxu0  ;;  %v983_v41 = vpop.f32.mrb[33].mxu1 }
 0x1d3   : > { %v856_v42 = vpop.f32.mrb[34].mxu0  ;;  %v984_v43 = vpop.f32.mrb[34].mxu1 }
 0x1d4   : > { %v857_v44 = vadd.f32 %v2650_v17, %v856_v42  ;;  %v985_v45 = vadd.f32 %v2650_v17, %v984_v43  ;;  %v858_v46 = vpop.f32.mrb[35].mxu0  ;;  %v986_v47 = vpop.f32.mrb[35].mxu1  ;;  %v1060_v48 = vmax.f32 %v854_v38, 0.0  ;;  %v1092_v49 = vmax.f32 %v982_v39, 0.0 }
 0x1d6   : > { %v1061_v50 = vmax.f32 %v857_v44, 0.0  ;;  %v1093_v51 = vmax.f32 %v985_v45, 0.0 }
 0x1d8   : > { %v1824_v52 = vpack.c.bf16 %v1061_v50, %v1060_v48  ;;  %v1904_v53 = vpack.c.bf16 %v1093_v51, %v1092_v49 }
 0x1d9   : > { %v861_v54 = vpop.f32.mrb[36].mxu0  ;;  %v989_v55 = vpop.f32.mrb[36].mxu1 }
 0x1da   : > { %1948 = vst [vmem:[%s2657_s26 + $0x40] sm:$0xff] %v1824_v52   ;;  %1964 = vst [vmem:[%s2657_s26 + $0xc0] sm:$0xff] %v1904_v53   ;;  %v862_v56 = vadd.f32 %v2650_v17, %v861_v54  ;;  %v990_v57 = vadd.f32 %v2650_v17, %v989_v55  ;;  %v863_v58 = vpop.f32.mrb[37].mxu0  ;;  %v991_v59 = vpop.f32.mrb[37].mxu1 }
 0x1db   : > { %v864_v60 = vpop.f32.mrb[38].mxu0  ;;  %v992_v61 = vpop.f32.mrb[38].mxu1 }
 0x1dc   : > { %v865_v62 = vadd.f32 %v2650_v17, %v864_v60  ;;  %v993_v63 = vadd.f32 %v2650_v17, %v992_v61  ;;  %v866_v0 = vpop.f32.mrb[39].mxu0  ;;  %v994_v1 = vpop.f32.mrb[39].mxu1  ;;  %v1062_v2 = vmax.f32 %v862_v56, 0.0  ;;  %v1094_v3 = vmax.f32 %v990_v57, 0.0 }
 0x1de   : > { %v1063_v4 = vmax.f32 %v865_v62, 0.0  ;;  %v1095_v5 = vmax.f32 %v993_v63, 0.0 }
 0x1e0   : > { %v1829_v6 = vpack.c.bf16 %v1063_v4, %v1062_v2  ;;  %v1909_v7 = vpack.c.bf16 %v1095_v5, %v1094_v3 }
 0x1e1   : > { %v869_v8 = vpop.f32.mrb[40].mxu0  ;;  %v997_v9 = vpop.f32.mrb[40].mxu1 }
 0x1e2   : > { %1949 = vst [vmem:[%s2657_s26 + $0x48] sm:$0xff] %v1829_v6   ;;  %1965 = vst [vmem:[%s2657_s26 + $0xc8] sm:$0xff] %v1909_v7   ;;  %v870_v10 = vadd.f32 %v2650_v17, %v869_v8  ;;  %v998_v11 = vadd.f32 %v2650_v17, %v997_v9  ;;  %v871_v12 = vpop.f32.mrb[41].mxu0  ;;  %v999_v13 = vpop.f32.mrb[41].mxu1 }
 0x1e3   : > { %v872_v14 = vpop.f32.mrb[42].mxu0  ;;  %v1000_v15 = vpop.f32.mrb[42].mxu1 }
 0x1e4   : > { %v873_v16 = vadd.f32 %v2650_v17, %v872_v14  ;;  %v1001_v18 = vadd.f32 %v2650_v17, %v1000_v15  ;;  %v874_v19 = vpop.f32.mrb[43].mxu0  ;;  %v1002_v20 = vpop.f32.mrb[43].mxu1  ;;  %v1064_v21 = vmax.f32 %v870_v10, 0.0  ;;  %v1096_v22 = vmax.f32 %v998_v11, 0.0 }
 0x1e6   : > { %v1065_v23 = vmax.f32 %v873_v16, 0.0  ;;  %v1097_v24 = vmax.f32 %v1001_v18, 0.0 }
 0x1e8   : > { %v1834_v25 = vpack.c.bf16 %v1065_v23, %v1064_v21  ;;  %v1914_v26 = vpack.c.bf16 %v1097_v24, %v1096_v22 }
 0x1e9   : > { %v877_v27 = vpop.f32.mrb[44].mxu0  ;;  %v1005_v28 = vpop.f32.mrb[44].mxu1 }
 0x1ea   : > { %1950 = vst [vmem:[%s2657_s26 + $0x50] sm:$0xff] %v1834_v25   ;;  %1966 = vst [vmem:[%s2657_s26 + $0xd0] sm:$0xff] %v1914_v26   ;;  %v878_v29 = vadd.f32 %v2650_v17, %v877_v27  ;;  %v1006_v30 = vadd.f32 %v2650_v17, %v1005_v28  ;;  %v879_v31 = vpop.f32.mrb[45].mxu0  ;;  %v1007_v32 = vpop.f32.mrb[45].mxu1 }
 0x1eb   : > { %v880_v33 = vpop.f32.mrb[46].mxu0  ;;  %v1008_v34 = vpop.f32.mrb[46].mxu1 }
 0x1ec   : > { %v881_v35 = vadd.f32 %v2650_v17, %v880_v33  ;;  %v1009_v36 = vadd.f32 %v2650_v17, %v1008_v34  ;;  %v882_v37 = vpop.f32.mrb[47].mxu0  ;;  %v1010_v38 = vpop.f32.mrb[47].mxu1  ;;  %v1066_v39 = vmax.f32 %v878_v29, 0.0  ;;  %v1098_v40 = vmax.f32 %v1006_v30, 0.0 }
 0x1ee   : > { %v1067_v41 = vmax.f32 %v881_v35, 0.0  ;;  %v1099_v42 = vmax.f32 %v1009_v36, 0.0 }
 0x1f0   : > { %v1839_v43 = vpack.c.bf16 %v1067_v41, %v1066_v39  ;;  %v1919_v44 = vpack.c.bf16 %v1099_v42, %v1098_v40 }
 0x1f1   : > { %v885_v45 = vpop.f32.mrb[48].mxu0  ;;  %v1013_v46 = vpop.f32.mrb[48].mxu1 }
 0x1f2   : > { %1951 = vst [vmem:[%s2657_s26 + $0x58] sm:$0xff] %v1839_v43   ;;  %1967 = vst [vmem:[%s2657_s26 + $0xd8] sm:$0xff] %v1919_v44   ;;  %v886_v47 = vadd.f32 %v2650_v17, %v885_v45  ;;  %v1014_v48 = vadd.f32 %v2650_v17, %v1013_v46  ;;  %v887_v49 = vpop.f32.mrb[49].mxu0  ;;  %v1015_v50 = vpop.f32.mrb[49].mxu1 }
 0x1f3   : > { %v888_v51 = vpop.f32.mrb[50].mxu0  ;;  %v1016_v52 = vpop.f32.mrb[50].mxu1 }
 0x1f4   : > { %v889_v53 = vadd.f32 %v2650_v17, %v888_v51  ;;  %v1017_v54 = vadd.f32 %v2650_v17, %v1016_v52  ;;  %v890_v55 = vpop.f32.mrb[51].mxu0  ;;  %v1018_v56 = vpop.f32.mrb[51].mxu1  ;;  %v1068_v57 = vmax.f32 %v886_v47, 0.0  ;;  %v1100_v58 = vmax.f32 %v1014_v48, 0.0 }
 0x1f6   : > { %v1069_v59 = vmax.f32 %v889_v53, 0.0  ;;  %v1101_v60 = vmax.f32 %v1017_v54, 0.0 }
 0x1f8   : > { %v1844_v61 = vpack.c.bf16 %v1069_v59, %v1068_v57  ;;  %v1924_v62 = vpack.c.bf16 %v1101_v60, %v1100_v58 }
 0x1f9   : > { %v893_v63 = vpop.f32.mrb[52].mxu0  ;;  %v1021_v0 = vpop.f32.mrb[52].mxu1 }
 0x1fa   : > { %1952 = vst [vmem:[%s2657_s26 + $0x60] sm:$0xff] %v1844_v61   ;;  %1968 = vst [vmem:[%s2657_s26 + $0xe0] sm:$0xff] %v1924_v62   ;;  %v894_v1 = vadd.f32 %v2650_v17, %v893_v63  ;;  %v1022_v2 = vadd.f32 %v2650_v17, %v1021_v0  ;;  %v895_v3 = vpop.f32.mrb[53].mxu0  ;;  %v1023_v4 = vpop.f32.mrb[53].mxu1 }
 0x1fb   : > { %v896_v5 = vpop.f32.mrb[54].mxu0  ;;  %v1024_v6 = vpop.f32.mrb[54].mxu1 }
 0x1fc   : > { %v897_v7 = vadd.f32 %v2650_v17, %v896_v5  ;;  %v1025_v8 = vadd.f32 %v2650_v17, %v1024_v6  ;;  %v898_v9 = vpop.f32.mrb[55].mxu0  ;;  %v1026_v10 = vpop.f32.mrb[55].mxu1  ;;  %v1070_v11 = vmax.f32 %v894_v1, 0.0  ;;  %v1102_v12 = vmax.f32 %v1022_v2, 0.0 }
 0x1fe   : > { %v1071_v13 = vmax.f32 %v897_v7, 0.0  ;;  %v1103_v14 = vmax.f32 %v1025_v8, 0.0 }
 0x200   : > { %v1849_v15 = vpack.c.bf16 %v1071_v13, %v1070_v11  ;;  %v1929_v16 = vpack.c.bf16 %v1103_v14, %v1102_v12 }
 0x201   : > { %v901_v18 = vpop.f32.mrb[56].mxu0  ;;  %v1029_v19 = vpop.f32.mrb[56].mxu1 }
 0x202   : > { %1953 = vst [vmem:[%s2657_s26 + $0x68] sm:$0xff] %v1849_v15   ;;  %1969 = vst [vmem:[%s2657_s26 + $0xe8] sm:$0xff] %v1929_v16   ;;  %v902_v20 = vadd.f32 %v2650_v17, %v901_v18  ;;  %v1030_v21 = vadd.f32 %v2650_v17, %v1029_v19  ;;  %v903_v22 = vpop.f32.mrb[57].mxu0  ;;  %v1031_v23 = vpop.f32.mrb[57].mxu1 }
 0x203   : > { %v904_v24 = vpop.f32.mrb[58].mxu0  ;;  %v1032_v25 = vpop.f32.mrb[58].mxu1 }
 0x204   : > { %v905_v26 = vadd.f32 %v2650_v17, %v904_v24  ;;  %v1033_v27 = vadd.f32 %v2650_v17, %v1032_v25  ;;  %v906_v28 = vpop.f32.mrb[59].mxu0  ;;  %v1034_v29 = vpop.f32.mrb[59].mxu1  ;;  %v1072_v30 = vmax.f32 %v902_v20, 0.0  ;;  %v1104_v31 = vmax.f32 %v1030_v21, 0.0 }
 0x206   : > { %v1073_v32 = vmax.f32 %v905_v26, 0.0  ;;  %v1105_v33 = vmax.f32 %v1033_v27, 0.0 }
 0x208   : > { %v1854_v34 = vpack.c.bf16 %v1073_v32, %v1072_v30  ;;  %v1934_v35 = vpack.c.bf16 %v1105_v33, %v1104_v31 }
 0x209   : > { %v909_v36 = vpop.f32.mrb[60].mxu0  ;;  %v1037_v37 = vpop.f32.mrb[60].mxu1 }
 0x20a   : > { %1954 = vst [vmem:[%s2657_s26 + $0x70] sm:$0xff] %v1854_v34   ;;  %1970 = vst [vmem:[%s2657_s26 + $0xf0] sm:$0xff] %v1934_v35   ;;  %v910_v38 = vadd.f32 %v2650_v17, %v909_v36  ;;  %v1038_v39 = vadd.f32 %v2650_v17, %v1037_v37  ;;  %v911_v40 = vpop.f32.mrb[61].mxu0  ;;  %v1039_v41 = vpop.f32.mrb[61].mxu1 }
 0x20b   : > { %v912_v42 = vpop.f32.mrb[62].mxu0  ;;  %v1040_v43 = vpop.f32.mrb[62].mxu1 }
 0x20c   : > { %v913_v44 = vadd.f32 %v2650_v17, %v912_v42  ;;  %v1041_v45 = vadd.f32 %v2650_v17, %v1040_v43  ;;  %v914_v46 = vpop.f32.mrb[63].mxu0  ;;  %v1042_v47 = vpop.f32.mrb[63].mxu1  ;;  %v1074_v48 = vmax.f32 %v910_v38, 0.0  ;;  %v1106_v49 = vmax.f32 %v1038_v39, 0.0  ;;  %1435 = sbr.rel (!%p2831_p8) target bundleno = 559 (0x22f), region = 48 }
 0x20e   : > { %v1075_v50 = vmax.f32 %v913_v44, 0.0  ;;  %v1107_v51 = vmax.f32 %v1041_v45, 0.0 }
 0x210   : > { %v1859_v52 = vpack.c.bf16 %v1075_v50, %v1074_v48  ;;  %v1939_v53 = vpack.c.bf16 %v1107_v51, %v1106_v49 }
 0x212   : > { %1955 = vst [vmem:[%s2657_s26 + $0x78] sm:$0xff] %v1859_v52   ;;  %1971 = vst [vmem:[%s2657_s26 + $0xf8] sm:$0xff] %v1939_v53  }
 0x213   : > { %s2840_s11 = smov (!%p1438_p9, %s1437_s11), 64 }
 0x214   : > { %s2755_s28 = sshll.u32 %s2840_s11, 6 }
 0x215   : > { %s1442_s30 = ssub.s32 4096, %s2755_s28 }
 0x216   : > { %1443 = vsyncadd %s1429_s29, %s1442_s30  ;;  %p1707_p10 = scmp.ne.s32.totalorder %s2755_s28, 0  ;;  %s1780_s24 = sshll.u32 %s2391_s16, 12 }
 0x217   : > { %s2765_s7 = scalar_lea.hbm %s2816_s3, %s1780_s24  ;;  %s1448_s4 = sshll.u32 %s2657_s26, 4  ;;  %s2768_s4 = int_to_ptr.vmem [resolvable:$true] %s1448_s4 }
 0x218   : > { %s2267_s22 = scalar_lea.vmem %s2768_s4, %s2755_s28  ;;  %s2347_s9 = smov [#allocation8]  }
 0x219   : > { %p2268_p1 = scmp.ne.s32.totalorder %s2768_s4, %s2267_s22  ;;  %s2271_s10 = sshll.u32 %s2347_s9, 4  ;;  %s2272_s10 = int_to_ptr.vmem [resolvable:$false] %s2271_s10 }
 0x21a   : > { %s2273_s16 = scalar_lea.vmem %s2272_s10, 8192  ;;  %p2274_p5 = scmp.lt.s32.totalorder %s2768_s4, %s2272_s10 }
 0x21b   : > { %p2269_p4 = pnand %p2268_p1, %p1707_p10  ;;  %p2275_p6 = scmp.lt.s32.totalorder %s2273_s16, %s2267_s22 }
 0x21d   : > { %p2270_p3 = pneg %p2269_p4  ;;  %p2276_p11 = por %p2275_p6, %p2274_p5 }
 0x21f   : > { %p2277_p13 = pnand %p2276_p11, %p2270_p3 }
 0x221   : > { %2280 = shalt.err (!%p2277_p13)
}
 0x222   : > { %s2281_s19 = scalar_lea.hbm %s2765_s7, %s2755_s28  ;;  %s2285_s23 = scalar_lea.hbm %s2816_s3, 12800 }
 0x223   : > { %p2282_p12 = scmp.ne.s32.totalorder %s2765_s7, %s2281_s19  ;;  %p2286_p7 = scmp.lt.u32.totalorder %s2765_s7, %s2816_s3 }
 0x224   : > { %p2287_p8 = scmp.lt.u32.totalorder %s2285_s23, %s2281_s19  ;;  %p2289_p1 = scmp.lt.u32.totalorder %s2281_s19, %s2765_s7 }
 0x225   : > { %p2283_p0 = pnand %p2282_p12, %p1707_p10 }
 0x226   : > { %p2288_p9 = por %p2287_p8, %p2286_p7 }
 0x227   : > { %p2284_p2 = pneg %p2283_p0 }
 0x228   : > { %p2290_p4 = por %p2289_p1, %p2288_p9 }
 0x22a   : > { %p2291_p3 = pnand %p2290_p4, %p2284_p2 }
 0x22c   : > { %2294 = shalt.err (!%p2291_p3)
}
 0x22d   : > { %s2348_s11 = smov 64   ;;  %s2349_s30 = smov 4  }
 0x22e   : > { %1454 = dma.vmem_to_hbm [thread:$0]  (%p1707_p10), %s2768_s4, %s2755_s28, %s2765_s7, %s1429_s29, %s2348_s11, %s2348_s11, %s2349_s30  }
 0x22f PF: > { %p2029_p5 = scmp.ge.s32.totalorder %s2337_s15, 2  ;;  %s1463_s24 = sand.u32 1, %s2325_s12  }
 0x230   : > { %p2832_p6 = scmp.ne.s32.totalorder %s2823_s25, 0  ;;  %s1464_s5 = scalar_lea.sflag [#allocation4], %s1463_s24 }
 0x232   : > { %p2022_p11 = pnand %p2029_p5, %p2832_p6 }
 0x234   : > { %2320 = dma.done.wait (!%p2022_p11), %s1464_s5, 4096  }
 0x235   : > { %2322 = vsyncadd (!%p2022_p11), %s1464_s5, 4294963200  ;;  %p17_p13 = scmp.ge.s32.totalorder %s2395_s18, 6   ;;  %s2833_s12 = smov %s2329_s13 }
 0x236   : > { %s2834_s13 = smov %s2333_s14  ;;  %s2835_s14 = smov %s2407_s21 }
 0x237   : > { %s2836_s15 = smov %s2395_s18  ;;  %19 = sbr.rel (!%p17_p13) target bundleno = 6 (0x6), region = 85 }
 0x23e   :  { %1469 = vsyncpa [#allocation3], 1 }
 0x23f   :  { %1471 = vsyncpa [#allocation3 + $0x1], 1 }
 0x240   :  { %1472 = vsyncpa [#allocation6], 1 }
 0x241   :  { %1473 = vsyncpa [#allocation4], 1 }
 0x242   :  { %1475 = vsyncpa [#allocation4 + $0x1], 1 }

// kernel: _lambda_.5
= control target key start
LH: loop header
LB: loop body
LE: loop exit
PB: predicated region body
PF: predicated region fallthrough
CT: control target
= control target key end

     0   :  { %8 = vsyncpa [#allocation3], 0  ;;  %s2296_s0 = inlined_call_operand.hbm [shape: bf16[324,512], index: 0, kind: input, shape index: {}]   ;;  %s2297_s1 = inlined_call_operand.hbm [shape: bf16[512,128], index: 1, kind: input, shape index: {}]   ;;  %s2298_s2 = inlined_call_operand.hbm [shape: f32[1,128], index: 2, kind: input, shape index: {}]   ;;  %s2299_s3 = inlined_call_operand.hbm [shape: bf16[324,128], index: 3, kind: output, shape index: {}]  }
   0x1   :  { %9 = vsyncpa [#allocation6], 0 }
   0x2   :  { %10 = vsyncpa [#allocation4], 0  ;;  %s2138_s12 = smov [#allocation5]   ;;  %s2044_s16 = scalar_lea.hbm %s2297_s1, 4096 }
   0x3   :  { %s28_s13 = sshll.u32 %s2138_s12, 4  ;;  %p2045_p0 = scmp.ne.s32.totalorder %s2297_s1, %s2044_s16  ;;  %s29_s13 = int_to_ptr.vmem [resolvable:$true] %s28_s13 }
   0x4   :  { %p2048_p1 = scmp.lt.u32.totalorder %s2044_s16, %s2297_s1 }
   0x6   :  { %p2050_p2 = pnand %p2048_p1, %p2045_p0 }
   0x8   :  { %2053 = shalt.err (!%p2050_p2)
}
   0x9   :  { %s2054_s21 = scalar_lea.vmem %s29_s13, 4096  ;;  %p2059_p4 = scmp.lt.s32.totalorder %s29_s13, %s29_s13 }
   0xa   :  { %p2055_p3 = scmp.ne.s32.totalorder %s29_s13, %s2054_s21  ;;  %p2060_p5 = scmp.lt.s32.totalorder %s2054_s21, %s2054_s21 }
   0xc   :  { %p2061_p6 = por %p2060_p5, %p2059_p4 }
   0xe   :  { %p2062_p7 = pnand %p2061_p6, %p2055_p3 }
  0x10   :  { %2065 = shalt.err (!%p2062_p7)
}
  0x11   :  { %s2139_s22 = smov 64   ;;  %s2140_s23 = smov 4  }
  0x12   :  { %34 = dma.hbm_to_vmem [thread:$0]  %s2297_s1, 4096, %s29_s13, [#allocation6], %s2139_s22, %s2139_s22, %s2140_s23  }
  0x13   :  { %s2141_s26 = smov [#allocation2]   ;;  %s2066_s30 = scalar_lea.hbm %s2296_s0, 10496 }
  0x14   :  { %s16_s27 = sshll.u32 %s2141_s26, 4  ;;  %p2067_p8 = scmp.ne.s32.totalorder %s2296_s0, %s2066_s30  ;;  %s17_s27 = int_to_ptr.vmem [resolvable:$true] %s16_s27 }
  0x15   :  { %p2070_p9 = scmp.lt.u32.totalorder %s2066_s30, %s2296_s0 }
  0x17   :  { %p2072_p10 = pnand %p2070_p9, %p2067_p8 }
  0x19   :  { %2075 = shalt.err (!%p2072_p10)
}
  0x1a   :  { %s2076_s8 = scalar_lea.vmem %s17_s27, 10496  ;;  %p2081_p12 = scmp.lt.s32.totalorder %s17_s27, %s17_s27 }
  0x1b   :  { %p2077_p11 = scmp.ne.s32.totalorder %s17_s27, %s2076_s8  ;;  %p2082_p13 = scmp.lt.s32.totalorder %s2076_s8, %s2076_s8 }
  0x1d   :  { %p2083_p0 = por %p2082_p13, %p2081_p12 }
  0x1f   :  { %p2084_p1 = pnand %p2083_p0, %p2077_p11 }
  0x21   :  { %2087 = shalt.err (!%p2084_p1)
}
  0x22   :  { %s2142_s1 = smov 256   ;;  %s2143_s9 = smov 16  }
  0x23   :  { %22 = dma.hbm_to_vmem [thread:$0]  %s2296_s0, 10496, %s17_s27, [#allocation3], %s2142_s1, %s2142_s1, %s2143_s9  }
  0x24   :  { %s2144_s12 = smov [#allocation7]   ;;  %s2088_s16 = scalar_lea.hbm %s2298_s2, 16 }
  0x25   :  { %s41_s13 = sshll.u32 %s2144_s12, 4  ;;  %p2089_p2 = scmp.ne.s32.totalorder %s2298_s2, %s2088_s16  ;;  %s42_s13 = int_to_ptr.vmem [resolvable:$true] %s41_s13 }
  0x26   :  { %p2092_p3 = scmp.lt.u32.totalorder %s2088_s16, %s2298_s2 }
  0x28   :  { %p2094_p4 = pnand %p2092_p3, %p2089_p2 }
  0x2a   :  { %2097 = shalt.err (!%p2094_p4)
}
  0x2b   :  { %s2098_s21 = scalar_lea.vmem %s42_s13, 16  ;;  %s2102_s0 = scalar_lea.vmem %s42_s13, 32 }
  0x2c   :  { %p2099_p5 = scmp.ne.s32.totalorder %s42_s13, %s2098_s21  ;;  %p2103_p6 = scmp.lt.s32.totalorder %s42_s13, %s42_s13 }
  0x2d   :  { %p2104_p7 = scmp.lt.s32.totalorder %s2102_s0, %s2098_s21 }
  0x2f   :  { %p2105_p8 = por %p2104_p7, %p2103_p6 }
  0x31   :  { %p2106_p9 = pnand %p2105_p8, %p2099_p5 }
  0x33   :  { %2109 = shalt.err (!%p2106_p9)
}
  0x34   :  { %44 = dma.hbm_to_vmem [thread:$0]  %s2298_s2, 16, %s42_s13, [#allocation6]  }
  0x35   :  { %2132 = dma.done.wait [#allocation3], 10496  }
  0x36   :  { %2133 = vsyncadd [#allocation3], 4294956800 }
  0x37   :  { %2134 = dma.done.wait [#allocation6], 4112  }
  0x38   :  { %2135 = vsyncadd [#allocation6], 4294963184  ;;  %v2145_v0 = vmov 0   ;;  %v1888_v1 = vld [vmem:[#allocation5] sm:$0xff]   ;;  %v1890_v3 = vld [vmem:[#allocation5 + $0x8] sm:$0xff]   ;;  %s2146_s2 = smov [#allocation8]  }
  0x39   :  { %814 = vmatprep.subr.bf16.mxu1 %v2145_v0  ;;  %1014 = vmatprep.subr.bf16.mxu0 %v2145_v0  ;;  %v1889_v2 = vld [vmem:[#allocation5 + $0x80] sm:$0xff]   ;;  %v1891_v4 = vld [vmem:[#allocation5 + $0x88] sm:$0xff]   ;;  %v1892_v5 = vld [vmem:[#allocation5 + $0x10] sm:$0xff]   ;;  %s1466_s26 = sshll.u32 %s2146_s2, 4  ;;  %s1467_s26 = int_to_ptr.vmem [resolvable:$true] %s1466_s26 }
  0x3a   :  { %815 = vmatpush1.bf16.msra.mxu1 %v1888_v1  ;;  %1015 = vmatpush1.bf16.msra.mxu0 %v1889_v2  ;;  %v1893_v6 = vld [vmem:[#allocation5 + $0x90] sm:$0xff]   ;;  %v1894_v7 = vld [vmem:[#allocation5 + $0x18] sm:$0xff]   ;;  %v1896_v9 = vld [vmem:[#allocation5 + $0x20] sm:$0xff]   ;;  %s2110_s27 = scalar_lea.vmem %s1467_s26, 2624  ;;  %p2115_p11 = scmp.lt.s32.totalorder %s1467_s26, %s1467_s26 }
  0x3b   :  { %816 = vmatprep.subr.bf16.mxu1 %v2145_v0  ;;  %1016 = vmatprep.subr.bf16.mxu0 %v2145_v0  ;;  %v1895_v8 = vld [vmem:[#allocation5 + $0x98] sm:$0xff]   ;;  %v1897_v10 = vld [vmem:[#allocation5 + $0xa0] sm:$0xff]   ;;  %v1898_v11 = vld [vmem:[#allocation5 + $0x28] sm:$0xff]   ;;  %p2111_p10 = scmp.ne.s32.totalorder %s1467_s26, %s2110_s27  ;;  %p2116_p12 = scmp.lt.s32.totalorder %s2110_s27, %s2110_s27 }
  0x3c   :  { %v1899_v12 = vld [vmem:[#allocation5 + $0xa8] sm:$0xff]   ;;  %v1900_v13 = vld [vmem:[#allocation5 + $0x30] sm:$0xff]   ;;  %v1902_v15 = vld [vmem:[#allocation5 + $0x38] sm:$0xff]  }
  0x3d   :  { %v1901_v14 = vld [vmem:[#allocation5 + $0xb0] sm:$0xff]   ;;  %v1903_v16 = vld [vmem:[#allocation5 + $0xb8] sm:$0xff]   ;;  %v1904_v17 = vld [vmem:[#allocation5 + $0x40] sm:$0xff]   ;;  %p2117_p13 = por %p2116_p12, %p2115_p11 }
  0x3e   :  { %817 = vmatpush1.bf16.msra.mxu1 %v1890_v3  ;;  %1017 = vmatpush1.bf16.msra.mxu0 %v1891_v4  ;;  %v1905_v18 = vld [vmem:[#allocation5 + $0xc0] sm:$0xff]   ;;  %v1906_v20 = vld [vmem:[#allocation5 + $0x48] sm:$0xff]   ;;  %v1908_v23 = vld [vmem:[#allocation5 + $0x50] sm:$0xff]  }
  0x3f   :  { %818 = vmatprep.subr.bf16.mxu1 %v2145_v0  ;;  %1018 = vmatprep.subr.bf16.mxu0 %v2145_v0  ;;  %v1922_v19 = vld [vmem:[#allocation2 + $0x4] ss:$16 sps:$4 sm:$0xff]   ;;  %v1925_v21 = vld [vmem:[#allocation2 + $0xc] ss:$16 sps:$4 sm:$0xff]   ;;  %v1920_v35 = vld [vmem:[#allocation2] ss:$16 sps:$4 sm:$0xff]   ;;  %p2118_p0 = pnand %p2117_p13, %p2111_p10 }
  0x40   :  { %v1907_v22 = vld [vmem:[#allocation5 + $0xc8] sm:$0xff]   ;;  %846 = vmatprep.mubr.bf16.mxu1 %v1922_v19  ;;  %1046 = vmatprep.mubr.bf16.mxu0 %v1925_v21  ;;  %v1909_v24 = vld [vmem:[#allocation5 + $0xd0] sm:$0xff]   ;;  %v1910_v25 = vld [vmem:[#allocation5 + $0x58] sm:$0xff]  }
  0x41   :  { %v1911_v26 = vld [vmem:[#allocation5 + $0xd8] sm:$0xff]   ;;  %v1912_v27 = vld [vmem:[#allocation5 + $0x60] sm:$0xff]   ;;  %v1914_v29 = vld [vmem:[#allocation5 + $0x68] sm:$0xff]  }
  0x42   :  { %819 = vmatpush1.bf16.msra.mxu1 %v1892_v5  ;;  %1019 = vmatpush1.bf16.msra.mxu0 %v1893_v6  ;;  %v1913_v28 = vld [vmem:[#allocation5 + $0xe0] sm:$0xff]   ;;  %v1915_v30 = vld [vmem:[#allocation5 + $0xe8] sm:$0xff]   ;;  %v1916_v31 = vld [vmem:[#allocation5 + $0x70] sm:$0xff]  }
  0x43   :  { %820 = vmatprep.subr.bf16.mxu1 %v2145_v0  ;;  %1020 = vmatprep.subr.bf16.mxu0 %v2145_v0  ;;  %v1917_v32 = vld [vmem:[#allocation5 + $0xf0] sm:$0xff]   ;;  %v1918_v33 = vld [vmem:[#allocation5 + $0x78] sm:$0xff]  }
  0x44   :  { %v1919_v34 = vld [vmem:[#allocation5 + $0xf8] sm:$0xff]   ;;  %v1926_v37 = vld [vmem:[#allocation2 + $0x24] ss:$16 sps:$4 sm:$0xff]   ;;  %v1930_v39 = vld [vmem:[#allocation2 + $0x20] ss:$16 sps:$4 sm:$0xff]  }
  0x45   :  { %v1923_v36 = vld [vmem:[#allocation2 + $0x8] ss:$16 sps:$4 sm:$0xff]   ;;  %v1928_v38 = vld [vmem:[#allocation2 + $0x2c] ss:$16 sps:$4 sm:$0xff]   ;;  %v1932_v41 = vld [vmem:[#allocation2 + $0x44] ss:$16 sps:$4 sm:$0xff]  }
  0x46   :  { %821 = vmatpush1.bf16.msra.mxu1 %v1894_v7  ;;  %1021 = vmatpush1.bf16.msra.mxu0 %v1895_v8  ;;  %v1931_v40 = vld [vmem:[#allocation2 + $0x28] ss:$16 sps:$4 sm:$0xff]   ;;  %v1934_v42 = vld [vmem:[#allocation2 + $0x4c] ss:$16 sps:$4 sm:$0xff]   ;;  %v1936_v43 = vld [vmem:[#allocation2 + $0x40] ss:$16 sps:$4 sm:$0xff]  }
  0x47   :  { %822 = vmatprep.subr.bf16.mxu1 %v2145_v0  ;;  %1022 = vmatprep.subr.bf16.mxu0 %v2145_v0  ;;  %v1937_v44 = vld [vmem:[#allocation2 + $0x48] ss:$16 sps:$4 sm:$0xff]   ;;  %v1938_v45 = vld [vmem:[#allocation2 + $0x64] ss:$16 sps:$4 sm:$0xff]   ;;  %v1940_v46 = vld [vmem:[#allocation2 + $0x6c] ss:$16 sps:$4 sm:$0xff]  }
  0x48   :  { %v1942_v47 = vld [vmem:[#allocation2 + $0x60] ss:$16 sps:$4 sm:$0xff]   ;;  %v1943_v48 = vld [vmem:[#allocation2 + $0x68] ss:$16 sps:$4 sm:$0xff]   ;;  %v1944_v49 = vld [vmem:[#allocation2 + $0x84] ss:$16 sps:$4 sm:$0xff]  }
  0x49   :  { %v1946_v50 = vld [vmem:[#allocation2 + $0x8c] ss:$16 sps:$4 sm:$0xff]   ;;  %v1948_v51 = vld [vmem:[#allocation2 + $0x80] ss:$16 sps:$4 sm:$0xff]   ;;  %v1949_v52 = vld [vmem:[#allocation2 + $0x88] ss:$16 sps:$4 sm:$0xff]  }
  0x4a   :  { %823 = vmatpush1.bf16.msra.mxu1 %v1896_v9  ;;  %1023 = vmatpush1.bf16.msra.mxu0 %v1897_v10  ;;  %v1950_v53 = vld [vmem:[#allocation2 + $0xa4] ss:$16 sps:$4 sm:$0xff]   ;;  %v1952_v54 = vld [vmem:[#allocation2 + $0xac] ss:$16 sps:$4 sm:$0xff]   ;;  %v1954_v55 = vld [vmem:[#allocation2 + $0xa0] ss:$16 sps:$4 sm:$0xff]  }
  0x4b   :  { %824 = vmatprep.subr.bf16.mxu1 %v2145_v0  ;;  %1024 = vmatprep.subr.bf16.mxu0 %v2145_v0  ;;  %v1955_v56 = vld [vmem:[#allocation2 + $0xa8] ss:$16 sps:$4 sm:$0xff]   ;;  %v1956_v57 = vld [vmem:[#allocation2 + $0xc4] ss:$16 sps:$4 sm:$0xff]   ;;  %v1958_v58 = vld [vmem:[#allocation2 + $0xcc] ss:$16 sps:$4 sm:$0xff]  }
  0x4c   :  { %v1960_v59 = vld [vmem:[#allocation2 + $0xc0] ss:$16 sps:$4 sm:$0xff]   ;;  %v1961_v60 = vld [vmem:[#allocation2 + $0xc8] ss:$16 sps:$4 sm:$0xff]   ;;  %v1962_v61 = vld [vmem:[#allocation2 + $0xe4] ss:$16 sps:$4 sm:$0xff]  }
  0x4d   :  { %v1964_v62 = vld [vmem:[#allocation2 + $0xec] ss:$16 sps:$4 sm:$0xff]   ;;  %v1966_v63 = vld [vmem:[#allocation2 + $0xe0] ss:$16 sps:$4 sm:$0xff]   ;;  %v1968_v1 = vld [vmem:[#allocation2 + $0x104] ss:$16 sps:$4 sm:$0xff]  }
  0x4e   :  { %825 = vmatpush1.bf16.msra.mxu1 %v1898_v11  ;;  %1025 = vmatpush1.bf16.msra.mxu0 %v1899_v12  ;;  %v1970_v2 = vld [vmem:[#allocation2 + $0x10c] ss:$16 sps:$4 sm:$0xff]   ;;  %v1972_v3 = vld [vmem:[#allocation2 + $0x100] ss:$16 sps:$4 sm:$0xff]   ;;  %v1973_v4 = vld [vmem:[#allocation2 + $0x108] ss:$16 sps:$4 sm:$0xff]  }
  0x4f   :  { %826 = vmatprep.subr.bf16.mxu1 %v2145_v0  ;;  %1026 = vmatprep.subr.bf16.mxu0 %v2145_v0  ;;  %v1974_v5 = vld [vmem:[#allocation2 + $0x124] ss:$16 sps:$4 sm:$0xff]   ;;  %v1976_v6 = vld [vmem:[#allocation2 + $0x12c] ss:$16 sps:$4 sm:$0xff]   ;;  %v1978_v7 = vld [vmem:[#allocation2 + $0x120] ss:$16 sps:$4 sm:$0xff]  }
  0x50   :  { %v1979_v8 = vld [vmem:[#allocation2 + $0x128] ss:$16 sps:$4 sm:$0xff]   ;;  %v1980_v9 = vld [vmem:[#allocation2 + $0x144] ss:$16 sps:$4 sm:$0xff]   ;;  %v1982_v10 = vld [vmem:[#allocation2 + $0x14c] ss:$16 sps:$4 sm:$0xff]  }
  0x51   :  { %v1984_v11 = vld [vmem:[#allocation2 + $0x140] ss:$16 sps:$4 sm:$0xff]   ;;  %v1985_v12 = vld [vmem:[#allocation2 + $0x148] ss:$16 sps:$4 sm:$0xff]   ;;  %v1998_v21 = vld [vmem:[#allocation2 + $0x1a4] ss:$16 sps:$4 sm:$0xff]  }
  0x52   :  { %827 = vmatpush1.bf16.msra.mxu1 %v1900_v13  ;;  %1027 = vmatpush1.bf16.msra.mxu0 %v1901_v14  ;;  %v1986_v13 = vld [vmem:[#allocation2 + $0x164] ss:$16 sps:$4 sm:$0xff]   ;;  %v1988_v14 = vld [vmem:[#allocation2 + $0x16c] ss:$16 sps:$4 sm:$0xff]   ;;  %v1996_v19 = vld [vmem:[#allocation2 + $0x180] ss:$16 sps:$4 sm:$0xff]  }
  0x53   :  { %828 = vmatprep.subr.bf16.mxu1 %v2145_v0  ;;  %1028 = vmatprep.subr.bf16.mxu0 %v2145_v0 }
  0x56   :  { %829 = vmatpush1.bf16.msra.mxu1 %v1902_v15  ;;  %1029 = vmatpush1.bf16.msra.mxu0 %v1903_v16  ;;  %v1990_v15 = vld [vmem:[#allocation2 + $0x160] ss:$16 sps:$4 sm:$0xff]   ;;  %v1991_v16 = vld [vmem:[#allocation2 + $0x168] ss:$16 sps:$4 sm:$0xff]  }
  0x57   :  { %830 = vmatprep.subr.bf16.mxu1 %v2145_v0  ;;  %1030 = vmatprep.subr.bf16.mxu0 %v2145_v0 }
  0x5a   :  { %831 = vmatpush1.bf16.msra.mxu1 %v1904_v17  ;;  %1031 = vmatpush1.bf16.msra.mxu0 %v1905_v18  ;;  %v1992_v17 = vld [vmem:[#allocation2 + $0x184] ss:$16 sps:$4 sm:$0xff]   ;;  %v1994_v18 = vld [vmem:[#allocation2 + $0x18c] ss:$16 sps:$4 sm:$0xff]  }
  0x5b   :  { %832 = vmatprep.subr.bf16.mxu1 %v2145_v0  ;;  %1032 = vmatprep.subr.bf16.mxu0 %v2145_v0 }
  0x5e   :  { %833 = vmatpush1.bf16.msra.mxu1 %v1906_v20  ;;  %1033 = vmatpush1.bf16.msra.mxu0 %v1907_v22  ;;  %v1997_v20 = vld [vmem:[#allocation2 + $0x188] ss:$16 sps:$4 sm:$0xff]   ;;  %v2000_v22 = vld [vmem:[#allocation2 + $0x1ac] ss:$16 sps:$4 sm:$0xff]  }
  0x5f   :  { %834 = vmatprep.subr.bf16.mxu1 %v2145_v0  ;;  %1034 = vmatprep.subr.bf16.mxu0 %v2145_v0 }
  0x62   :  { %835 = vmatpush1.bf16.msra.mxu1 %v1908_v23  ;;  %1035 = vmatpush1.bf16.msra.mxu0 %v1909_v24  ;;  %v2002_v23 = vld [vmem:[#allocation2 + $0x1a0] ss:$16 sps:$4 sm:$0xff]   ;;  %v2003_v24 = vld [vmem:[#allocation2 + $0x1a8] ss:$16 sps:$4 sm:$0xff]  }
  0x63   :  { %836 = vmatprep.subr.bf16.mxu1 %v2145_v0  ;;  %1036 = vmatprep.subr.bf16.mxu0 %v2145_v0 }
  0x66   :  { %837 = vmatpush1.bf16.msra.mxu1 %v1910_v25  ;;  %1037 = vmatpush1.bf16.msra.mxu0 %v1911_v26  ;;  %v2004_v25 = vld [vmem:[#allocation2 + $0x1c4] ss:$16 sps:$4 sm:$0xff]   ;;  %v2006_v26 = vld [vmem:[#allocation2 + $0x1cc] ss:$16 sps:$4 sm:$0xff]  }
  0x67   :  { %838 = vmatprep.subr.bf16.mxu1 %v2145_v0  ;;  %1038 = vmatprep.subr.bf16.mxu0 %v2145_v0 }
  0x6a   :  { %839 = vmatpush1.bf16.msra.mxu1 %v1912_v27  ;;  %1039 = vmatpush1.bf16.msra.mxu0 %v1913_v28  ;;  %v2008_v27 = vld [vmem:[#allocation2 + $0x1c0] ss:$16 sps:$4 sm:$0xff]   ;;  %v2009_v28 = vld [vmem:[#allocation2 + $0x1c8] ss:$16 sps:$4 sm:$0xff]  }
  0x6b   :  { %840 = vmatprep.subr.bf16.mxu1 %v2145_v0  ;;  %1040 = vmatprep.subr.bf16.mxu0 %v2145_v0 }
  0x6e   :  { %841 = vmatpush1.bf16.msra.mxu1 %v1914_v29  ;;  %1041 = vmatpush1.bf16.msra.mxu0 %v1915_v30  ;;  %v2010_v29 = vld [vmem:[#allocation2 + $0x1e4] ss:$16 sps:$4 sm:$0xff]   ;;  %v2012_v30 = vld [vmem:[#allocation2 + $0x1ec] ss:$16 sps:$4 sm:$0xff]  }
  0x6f   :  { %842 = vmatprep.subr.bf16.mxu1 %v2145_v0  ;;  %1042 = vmatprep.subr.bf16.mxu0 %v2145_v0 }
  0x72   :  { %843 = vmatpush1.bf16.msra.mxu1 %v1916_v31  ;;  %1043 = vmatpush1.bf16.msra.mxu0 %v1917_v32  ;;  %v2014_v31 = vld [vmem:[#allocation2 + $0x1e0] ss:$16 sps:$4 sm:$0xff]   ;;  %v2015_v32 = vld [vmem:[#allocation2 + $0x1e8] ss:$16 sps:$4 sm:$0xff]  }
  0x73   :  { %844 = vmatprep.subr.bf16.mxu1 %v2145_v0  ;;  %1044 = vmatprep.subr.bf16.mxu0 %v2145_v0  ;;  %v1967_v0 = vld [vmem:[#allocation2 + $0xe8] ss:$16 sps:$4 sm:$0xff]  }
  0x76   :  { %845 = vmatpush1.bf16.msra.mxu1 %v1918_v33  ;;  %1045 = vmatpush1.bf16.msra.mxu0 %v1919_v34  ;;  %v2016_v33 = vld [vmem:[#allocation2 + $0x204] ss:$16 sps:$4 sm:$0xff]   ;;  %v2018_v34 = vld [vmem:[#allocation2 + $0x20c] ss:$16 sps:$4 sm:$0xff]  }
  0x79   :  { %847 = vmatmul.mubr.bf16.vlgmr.msra.gmra.mrb[0].mxu1 %v1920_v35  ;;  %1047 = vmatmul.mubr.bf16.vlgmr.msra.gmra.mrb[0].mxu0 %v1923_v36  ;;  %v2020_v35 = vld [vmem:[#allocation2 + $0x200] ss:$16 sps:$4 sm:$0xff]   ;;  %v2021_v36 = vld [vmem:[#allocation2 + $0x208] ss:$16 sps:$4 sm:$0xff]  }
  0x7a   :  { %854 = vmatprep.mubr.bf16.mxu1 %v1926_v37  ;;  %1054 = vmatprep.mubr.bf16.mxu0 %v1928_v38  ;;  %v2022_v37 = vld [vmem:[#allocation2 + $0x224] ss:$16 sps:$4 sm:$0xff]   ;;  %v2024_v38 = vld [vmem:[#allocation2 + $0x22c] ss:$16 sps:$4 sm:$0xff]  }
  0x81   :  { %855 = vmatmul.mubr.bf16.gmra.mrb[4].mxu1 %v1930_v39  ;;  %1055 = vmatmul.mubr.bf16.gmra.mrb[4].mxu0 %v1931_v40  ;;  %v2026_v39 = vld [vmem:[#allocation2 + $0x220] ss:$16 sps:$4 sm:$0xff]   ;;  %v2027_v40 = vld [vmem:[#allocation2 + $0x228] ss:$16 sps:$4 sm:$0xff]  }
  0x82   :  { %862 = vmatprep.mubr.bf16.mxu1 %v1932_v41  ;;  %1062 = vmatprep.mubr.bf16.mxu0 %v1934_v42  ;;  %v2028_v41 = vld [vmem:[#allocation2 + $0x244] ss:$16 sps:$4 sm:$0xff]   ;;  %v2030_v42 = vld [vmem:[#allocation2 + $0x24c] ss:$16 sps:$4 sm:$0xff]  }
  0x89   :  { %863 = vmatmul.mubr.bf16.gmra.mrb[8].mxu1 %v1936_v43  ;;  %1063 = vmatmul.mubr.bf16.gmra.mrb[8].mxu0 %v1937_v44  ;;  %v2032_v43 = vld [vmem:[#allocation2 + $0x240] ss:$16 sps:$4 sm:$0xff]   ;;  %v2033_v44 = vld [vmem:[#allocation2 + $0x248] ss:$16 sps:$4 sm:$0xff]  }
  0x8a   :  { %870 = vmatprep.mubr.bf16.mxu1 %v1938_v45  ;;  %1070 = vmatprep.mubr.bf16.mxu0 %v1940_v46  ;;  %v2034_v45 = vld [vmem:[#allocation2 + $0x264] ss:$16 sps:$4 sm:$0xff]   ;;  %v2036_v46 = vld [vmem:[#allocation2 + $0x26c] ss:$16 sps:$4 sm:$0xff]  }
  0x91   :  { %871 = vmatmul.mubr.bf16.gmra.mrb[12].mxu1 %v1942_v47  ;;  %1071 = vmatmul.mubr.bf16.gmra.mrb[12].mxu0 %v1943_v48  ;;  %v135_v47 = vld [vmem:[#allocation2 + $0x280] sm:$0x33]  ;;  %v136_v48 = vld [vmem:[#allocation2 + $0x288] sm:$0x33] }
  0x92   :  { %878 = vmatprep.mubr.bf16.mxu1 %v1944_v49  ;;  %1078 = vmatprep.mubr.bf16.mxu0 %v1946_v50  ;;  %v2038_v49 = vld [vmem:[#allocation2 + $0x260] ss:$16 sps:$4 sm:$0xff]   ;;  %v2039_v50 = vld [vmem:[#allocation2 + $0x268] ss:$16 sps:$4 sm:$0xff]  }
  0x99   :  { %879 = vmatmul.mubr.bf16.gmra.mrb[16].mxu1 %v1948_v51  ;;  %1079 = vmatmul.mubr.bf16.gmra.mrb[16].mxu0 %v1949_v52  ;;  %v1561_v51 = vcombine.high %v135_v47, %v135_v47  ;;  %v1563_v52 = vcombine.high %v136_v48, %v136_v48 }
  0x9a   :  { %886 = vmatprep.mubr.bf16.mxu1 %v1950_v53  ;;  %1086 = vmatprep.mubr.bf16.mxu0 %v1952_v54  ;;  %v1560_v53 = vcombine.low %v135_v47, %v135_v47  ;;  %v1562_v54 = vcombine.low %v136_v48, %v136_v48 }
  0xa1   :  { %887 = vmatmul.mubr.bf16.gmra.mrb[20].mxu1 %v1954_v55  ;;  %1087 = vmatmul.mubr.bf16.gmra.mrb[20].mxu0 %v1955_v56  ;;  %v2238_v55 = vld [vmem:[#allocation7] ss:$0 sm:$0xff] }
  0xa2   :  { %894 = vmatprep.mubr.bf16.mxu1 %v1956_v57  ;;  %1094 = vmatprep.mubr.bf16.mxu0 %v1958_v58 }
  0xa9   :  { %895 = vmatmul.mubr.bf16.gmra.mrb[24].mxu1 %v1960_v59  ;;  %1095 = vmatmul.mubr.bf16.gmra.mrb[24].mxu0 %v1961_v60 }
  0xaa   :  { %902 = vmatprep.mubr.bf16.mxu1 %v1962_v61  ;;  %1102 = vmatprep.mubr.bf16.mxu0 %v1964_v62 }
  0xb1   :  { %903 = vmatmul.mubr.bf16.gmra.mrb[28].mxu1 %v1966_v63  ;;  %1103 = vmatmul.mubr.bf16.gmra.mrb[28].mxu0 %v1967_v0 }
  0xb2   :  { %910 = vmatprep.mubr.bf16.mxu1 %v1968_v1  ;;  %1110 = vmatprep.mubr.bf16.mxu0 %v1970_v2 }
  0xb9   :  { %911 = vmatmul.mubr.bf16.gmra.mrb[32].mxu1 %v1972_v3  ;;  %1111 = vmatmul.mubr.bf16.gmra.mrb[32].mxu0 %v1973_v4 }
  0xba   :  { %918 = vmatprep.mubr.bf16.mxu1 %v1974_v5  ;;  %1118 = vmatprep.mubr.bf16.mxu0 %v1976_v6 }
  0xc1   :  { %919 = vmatmul.mubr.bf16.gmra.mrb[36].mxu1 %v1978_v7  ;;  %1119 = vmatmul.mubr.bf16.gmra.mrb[36].mxu0 %v1979_v8 }
  0xc2   :  { %926 = vmatprep.mubr.bf16.mxu1 %v1980_v9  ;;  %1126 = vmatprep.mubr.bf16.mxu0 %v1982_v10 }
  0xc9   :  { %927 = vmatmul.mubr.bf16.gmra.mrb[40].mxu1 %v1984_v11  ;;  %1127 = vmatmul.mubr.bf16.gmra.mrb[40].mxu0 %v1985_v12 }
  0xca   :  { %934 = vmatprep.mubr.bf16.mxu1 %v1986_v13  ;;  %1134 = vmatprep.mubr.bf16.mxu0 %v1988_v14 }
  0xd1   :  { %935 = vmatmul.mubr.bf16.gmra.mrb[44].mxu1 %v1990_v15  ;;  %1135 = vmatmul.mubr.bf16.gmra.mrb[44].mxu0 %v1991_v16 }
  0xd2   :  { %942 = vmatprep.mubr.bf16.mxu1 %v1992_v17  ;;  %1142 = vmatprep.mubr.bf16.mxu0 %v1994_v18 }
  0xd9   :  { %943 = vmatmul.mubr.bf16.gmra.mrb[48].mxu1 %v1996_v19  ;;  %1143 = vmatmul.mubr.bf16.gmra.mrb[48].mxu0 %v1997_v20 }
  0xda   :  { %950 = vmatprep.mubr.bf16.mxu1 %v1998_v21  ;;  %1150 = vmatprep.mubr.bf16.mxu0 %v2000_v22 }
  0xe1   :  { %951 = vmatmul.mubr.bf16.gmra.mrb[52].mxu1 %v2002_v23  ;;  %1151 = vmatmul.mubr.bf16.gmra.mrb[52].mxu0 %v2003_v24 }
  0xe2   :  { %958 = vmatprep.mubr.bf16.mxu1 %v2004_v25  ;;  %1158 = vmatprep.mubr.bf16.mxu0 %v2006_v26 }
  0xe9   :  { %959 = vmatmul.mubr.bf16.gmra.mrb[56].mxu1 %v2008_v27  ;;  %1159 = vmatmul.mubr.bf16.gmra.mrb[56].mxu0 %v2009_v28 }
  0xea   :  { %966 = vmatprep.mubr.bf16.mxu1 %v2010_v29  ;;  %1166 = vmatprep.mubr.bf16.mxu0 %v2012_v30 }
  0xf1   :  { %967 = vmatmul.mubr.bf16.gmra.mrb[60].mxu1 %v2014_v31  ;;  %1167 = vmatmul.mubr.bf16.gmra.mrb[60].mxu0 %v2015_v32 }
  0xf2   :  { %974 = vmatprep.mubr.bf16.mxu1 %v2016_v33  ;;  %1174 = vmatprep.mubr.bf16.mxu0 %v2018_v34 }
  0xf9   :  { %975 = vmatmul.mubr.bf16.gmra.mrb[64].mxu1 %v2020_v35  ;;  %1175 = vmatmul.mubr.bf16.gmra.mrb[64].mxu0 %v2021_v36 }
  0xfa   :  { %982 = vmatprep.mubr.bf16.mxu1 %v2022_v37  ;;  %1182 = vmatprep.mubr.bf16.mxu0 %v2024_v38 }
 0x101   :  { %983 = vmatmul.mubr.bf16.gmra.mrb[68].mxu1 %v2026_v39  ;;  %1183 = vmatmul.mubr.bf16.gmra.mrb[68].mxu0 %v2027_v40 }
 0x102   :  { %990 = vmatprep.mubr.bf16.mxu1 %v2028_v41  ;;  %1190 = vmatprep.mubr.bf16.mxu0 %v2030_v42 }
 0x109   :  { %991 = vmatmul.mubr.bf16.gmra.mrb[72].mxu1 %v2032_v43  ;;  %1191 = vmatmul.mubr.bf16.gmra.mrb[72].mxu0 %v2033_v44 }
 0x10a   :  { %998 = vmatprep.mubr.bf16.mxu1 %v2034_v45  ;;  %1198 = vmatprep.mubr.bf16.mxu0 %v2036_v46 }
 0x111   :  { %999 = vmatmul.mubr.bf16.gmra.mrb[76].mxu1 %v2038_v49  ;;  %1199 = vmatmul.mubr.bf16.gmra.mrb[76].mxu0 %v2039_v50 }
 0x112   :  { %1006 = vmatprep.mubr.bf16.mxu1 %v1561_v51  ;;  %1206 = vmatprep.mubr.bf16.mxu0 %v1563_v52 }
 0x119   :  { %1007 = vmatmul.mubr.bf16.gmra.mrb[80].mxu1 %v1560_v53  ;;  %1207 = vmatmul.mubr.bf16.gmra.mrb[80].mxu0 %v1562_v54 }
 0x14c   :  { %v848_v56 = vpop.f32.mrb[0].mxu1  ;;  %v1048_v58 = vpop.f32.mrb[0].mxu0 }
 0x14d   :  { %v849_v57 = vadd.f32 %v2238_v55, %v848_v56  ;;  %v850_v59 = vpop.f32.mrb[1].mxu1  ;;  %v1050_v60 = vpop.f32.mrb[1].mxu0 }
 0x14e   :  { %v851_v61 = vpop.f32.mrb[2].mxu1  ;;  %v1051_v0 = vpop.f32.mrb[2].mxu0 }
 0x14f   :  { %v1049_v62 = vadd.f32 %v1048_v58, %v849_v57  ;;  %v852_v63 = vadd.f32 %v2238_v55, %v851_v61  ;;  %v853_v1 = vpop.f32.mrb[3].mxu1  ;;  %v1053_v2 = vpop.f32.mrb[3].mxu0 }
 0x151   :  { %v1052_v3 = vadd.f32 %v1051_v0, %v852_v63  ;;  %v1214_v4 = vmax.f32 %v1049_v62, 0.0 }
 0x153   :  { %v1215_v5 = vmax.f32 %v1052_v3, 0.0 }
 0x154   :  { %v856_v6 = vpop.f32.mrb[4].mxu1  ;;  %v1056_v9 = vpop.f32.mrb[4].mxu0 }
 0x155   :  { %v1681_v7 = vpack.c.bf16 %v1215_v5, %v1214_v4  ;;  %v857_v8 = vadd.f32 %v2238_v55, %v856_v6  ;;  %v858_v10 = vpop.f32.mrb[5].mxu1  ;;  %v1058_v11 = vpop.f32.mrb[5].mxu0 }
 0x156   :  { %v859_v12 = vpop.f32.mrb[6].mxu1  ;;  %v1059_v15 = vpop.f32.mrb[6].mxu0 }
 0x157   :  { %1682 = vst [vmem:[#allocation8] sm:$0xff] %v1681_v7   ;;  %v1057_v13 = vadd.f32 %v1056_v9, %v857_v8  ;;  %v860_v14 = vadd.f32 %v2238_v55, %v859_v12  ;;  %v861_v16 = vpop.f32.mrb[7].mxu1  ;;  %v1061_v17 = vpop.f32.mrb[7].mxu0 }
 0x159   :  { %v1060_v18 = vadd.f32 %v1059_v15, %v860_v14  ;;  %v1216_v19 = vmax.f32 %v1057_v13, 0.0 }
 0x15b   :  { %v1217_v20 = vmax.f32 %v1060_v18, 0.0 }
 0x15c   :  { %v864_v21 = vpop.f32.mrb[8].mxu1  ;;  %v1064_v24 = vpop.f32.mrb[8].mxu0 }
 0x15d   :  { %v1686_v22 = vpack.c.bf16 %v1217_v20, %v1216_v19  ;;  %v865_v23 = vadd.f32 %v2238_v55, %v864_v21  ;;  %v866_v25 = vpop.f32.mrb[9].mxu1  ;;  %v1066_v26 = vpop.f32.mrb[9].mxu0 }
 0x15e   :  { %v867_v27 = vpop.f32.mrb[10].mxu1  ;;  %v1067_v30 = vpop.f32.mrb[10].mxu0 }
 0x15f   :  { %1778 = vst [vmem:[#allocation8 + $0x8] sm:$0xff] %v1686_v22   ;;  %v1065_v28 = vadd.f32 %v1064_v24, %v865_v23  ;;  %v868_v29 = vadd.f32 %v2238_v55, %v867_v27  ;;  %v869_v31 = vpop.f32.mrb[11].mxu1  ;;  %v1069_v32 = vpop.f32.mrb[11].mxu0 }
 0x161   :  { %v1068_v33 = vadd.f32 %v1067_v30, %v868_v29  ;;  %v1218_v34 = vmax.f32 %v1065_v28, 0.0 }
 0x163   :  { %v1219_v35 = vmax.f32 %v1068_v33, 0.0 }
 0x164   :  { %v872_v36 = vpop.f32.mrb[12].mxu1  ;;  %v1072_v39 = vpop.f32.mrb[12].mxu0 }
 0x165   :  { %v1691_v37 = vpack.c.bf16 %v1219_v35, %v1218_v34  ;;  %v873_v38 = vadd.f32 %v2238_v55, %v872_v36  ;;  %v874_v40 = vpop.f32.mrb[13].mxu1  ;;  %v1074_v41 = vpop.f32.mrb[13].mxu0 }
 0x166   :  { %v875_v42 = vpop.f32.mrb[14].mxu1  ;;  %v1075_v45 = vpop.f32.mrb[14].mxu0 }
 0x167   :  { %1779 = vst [vmem:[#allocation8 + $0x10] sm:$0xff] %v1691_v37   ;;  %v1073_v43 = vadd.f32 %v1072_v39, %v873_v38  ;;  %v876_v44 = vadd.f32 %v2238_v55, %v875_v42  ;;  %v877_v46 = vpop.f32.mrb[15].mxu1  ;;  %v1077_v47 = vpop.f32.mrb[15].mxu0 }
 0x169   :  { %v1076_v48 = vadd.f32 %v1075_v45, %v876_v44  ;;  %v1220_v49 = vmax.f32 %v1073_v43, 0.0 }
 0x16b   :  { %v1221_v50 = vmax.f32 %v1076_v48, 0.0 }
 0x16c   :  { %v880_v51 = vpop.f32.mrb[16].mxu1  ;;  %v1080_v54 = vpop.f32.mrb[16].mxu0 }
 0x16d   :  { %v1696_v52 = vpack.c.bf16 %v1221_v50, %v1220_v49  ;;  %v881_v53 = vadd.f32 %v2238_v55, %v880_v51  ;;  %v882_v56 = vpop.f32.mrb[17].mxu1  ;;  %v1082_v57 = vpop.f32.mrb[17].mxu0 }
 0x16e   :  { %v883_v58 = vpop.f32.mrb[18].mxu1  ;;  %v1083_v61 = vpop.f32.mrb[18].mxu0 }
 0x16f   :  { %1780 = vst [vmem:[#allocation8 + $0x18] sm:$0xff] %v1696_v52   ;;  %v1081_v59 = vadd.f32 %v1080_v54, %v881_v53  ;;  %v884_v60 = vadd.f32 %v2238_v55, %v883_v58  ;;  %v885_v62 = vpop.f32.mrb[19].mxu1  ;;  %v1085_v63 = vpop.f32.mrb[19].mxu0 }
 0x171   :  { %v1084_v0 = vadd.f32 %v1083_v61, %v884_v60  ;;  %v1222_v1 = vmax.f32 %v1081_v59, 0.0 }
 0x173   :  { %v1223_v2 = vmax.f32 %v1084_v0, 0.0 }
 0x174   :  { %v888_v3 = vpop.f32.mrb[20].mxu1  ;;  %v1088_v6 = vpop.f32.mrb[20].mxu0 }
 0x175   :  { %v1701_v4 = vpack.c.bf16 %v1223_v2, %v1222_v1  ;;  %v889_v5 = vadd.f32 %v2238_v55, %v888_v3  ;;  %v890_v7 = vpop.f32.mrb[21].mxu1  ;;  %v1090_v8 = vpop.f32.mrb[21].mxu0 }
 0x176   :  { %v891_v9 = vpop.f32.mrb[22].mxu1  ;;  %v1091_v12 = vpop.f32.mrb[22].mxu0 }
 0x177   :  { %1781 = vst [vmem:[#allocation8 + $0x20] sm:$0xff] %v1701_v4   ;;  %v1089_v10 = vadd.f32 %v1088_v6, %v889_v5  ;;  %v892_v11 = vadd.f32 %v2238_v55, %v891_v9  ;;  %v893_v13 = vpop.f32.mrb[23].mxu1  ;;  %v1093_v14 = vpop.f32.mrb[23].mxu0 }
 0x179   :  { %v1092_v15 = vadd.f32 %v1091_v12, %v892_v11  ;;  %v1224_v16 = vmax.f32 %v1089_v10, 0.0 }
 0x17b   :  { %v1225_v17 = vmax.f32 %v1092_v15, 0.0 }
 0x17c   :  { %v896_v18 = vpop.f32.mrb[24].mxu1  ;;  %v1096_v21 = vpop.f32.mrb[24].mxu0 }
 0x17d   :  { %v1706_v19 = vpack.c.bf16 %v1225_v17, %v1224_v16  ;;  %v897_v20 = vadd.f32 %v2238_v55, %v896_v18  ;;  %v898_v22 = vpop.f32.mrb[25].mxu1  ;;  %v1098_v23 = vpop.f32.mrb[25].mxu0 }
 0x17e   :  { %v899_v24 = vpop.f32.mrb[26].mxu1  ;;  %v1099_v27 = vpop.f32.mrb[26].mxu0 }
 0x17f   :  { %1782 = vst [vmem:[#allocation8 + $0x28] sm:$0xff] %v1706_v19   ;;  %v1097_v25 = vadd.f32 %v1096_v21, %v897_v20  ;;  %v900_v26 = vadd.f32 %v2238_v55, %v899_v24  ;;  %v901_v28 = vpop.f32.mrb[27].mxu1  ;;  %v1101_v29 = vpop.f32.mrb[27].mxu0 }
 0x181   :  { %v1100_v30 = vadd.f32 %v1099_v27, %v900_v26  ;;  %v1226_v31 = vmax.f32 %v1097_v25, 0.0 }
 0x183   :  { %v1227_v32 = vmax.f32 %v1100_v30, 0.0 }
 0x184   :  { %v904_v33 = vpop.f32.mrb[28].mxu1  ;;  %v1104_v36 = vpop.f32.mrb[28].mxu0 }
 0x185   :  { %v1711_v34 = vpack.c.bf16 %v1227_v32, %v1226_v31  ;;  %v905_v35 = vadd.f32 %v2238_v55, %v904_v33  ;;  %v906_v37 = vpop.f32.mrb[29].mxu1  ;;  %v1106_v38 = vpop.f32.mrb[29].mxu0 }
 0x186   :  { %v907_v39 = vpop.f32.mrb[30].mxu1  ;;  %v1107_v42 = vpop.f32.mrb[30].mxu0 }
 0x187   :  { %1783 = vst [vmem:[#allocation8 + $0x30] sm:$0xff] %v1711_v34   ;;  %v1105_v40 = vadd.f32 %v1104_v36, %v905_v35  ;;  %v908_v41 = vadd.f32 %v2238_v55, %v907_v39  ;;  %v909_v43 = vpop.f32.mrb[31].mxu1  ;;  %v1109_v44 = vpop.f32.mrb[31].mxu0 }
 0x189   :  { %v1108_v45 = vadd.f32 %v1107_v42, %v908_v41  ;;  %v1228_v46 = vmax.f32 %v1105_v40, 0.0 }
 0x18b   :  { %v1229_v47 = vmax.f32 %v1108_v45, 0.0 }
 0x18c   :  { %v912_v48 = vpop.f32.mrb[32].mxu1  ;;  %v1112_v51 = vpop.f32.mrb[32].mxu0 }
 0x18d   :  { %v1716_v49 = vpack.c.bf16 %v1229_v47, %v1228_v46  ;;  %v913_v50 = vadd.f32 %v2238_v55, %v912_v48  ;;  %v914_v52 = vpop.f32.mrb[33].mxu1  ;;  %v1114_v53 = vpop.f32.mrb[33].mxu0 }
 0x18e   :  { %v915_v54 = vpop.f32.mrb[34].mxu1  ;;  %v1115_v58 = vpop.f32.mrb[34].mxu0 }
 0x18f   :  { %1784 = vst [vmem:[#allocation8 + $0x38] sm:$0xff] %v1716_v49   ;;  %v1113_v56 = vadd.f32 %v1112_v51, %v913_v50  ;;  %v916_v57 = vadd.f32 %v2238_v55, %v915_v54  ;;  %v917_v59 = vpop.f32.mrb[35].mxu1  ;;  %v1117_v60 = vpop.f32.mrb[35].mxu0 }
 0x191   :  { %v1116_v61 = vadd.f32 %v1115_v58, %v916_v57  ;;  %v1230_v62 = vmax.f32 %v1113_v56, 0.0 }
 0x193   :  { %v1231_v63 = vmax.f32 %v1116_v61, 0.0 }
 0x194   :  { %v920_v0 = vpop.f32.mrb[36].mxu1  ;;  %v1120_v3 = vpop.f32.mrb[36].mxu0 }
 0x195   :  { %v1721_v1 = vpack.c.bf16 %v1231_v63, %v1230_v62  ;;  %v921_v2 = vadd.f32 %v2238_v55, %v920_v0  ;;  %v922_v4 = vpop.f32.mrb[37].mxu1  ;;  %v1122_v5 = vpop.f32.mrb[37].mxu0 }
 0x196   :  { %v923_v6 = vpop.f32.mrb[38].mxu1  ;;  %v1123_v9 = vpop.f32.mrb[38].mxu0 }
 0x197   :  { %1785 = vst [vmem:[#allocation8 + $0x40] sm:$0xff] %v1721_v1   ;;  %v1121_v7 = vadd.f32 %v1120_v3, %v921_v2  ;;  %v924_v8 = vadd.f32 %v2238_v55, %v923_v6  ;;  %v925_v10 = vpop.f32.mrb[39].mxu1  ;;  %v1125_v11 = vpop.f32.mrb[39].mxu0 }
 0x199   :  { %v1124_v12 = vadd.f32 %v1123_v9, %v924_v8  ;;  %v1232_v13 = vmax.f32 %v1121_v7, 0.0 }
 0x19b   :  { %v1233_v14 = vmax.f32 %v1124_v12, 0.0 }
 0x19c   :  { %v928_v15 = vpop.f32.mrb[40].mxu1  ;;  %v1128_v18 = vpop.f32.mrb[40].mxu0 }
 0x19d   :  { %v1726_v16 = vpack.c.bf16 %v1233_v14, %v1232_v13  ;;  %v929_v17 = vadd.f32 %v2238_v55, %v928_v15  ;;  %v930_v19 = vpop.f32.mrb[41].mxu1  ;;  %v1130_v20 = vpop.f32.mrb[41].mxu0 }
 0x19e   :  { %v931_v21 = vpop.f32.mrb[42].mxu1  ;;  %v1131_v24 = vpop.f32.mrb[42].mxu0 }
 0x19f   :  { %1786 = vst [vmem:[#allocation8 + $0x48] sm:$0xff] %v1726_v16   ;;  %v1129_v22 = vadd.f32 %v1128_v18, %v929_v17  ;;  %v932_v23 = vadd.f32 %v2238_v55, %v931_v21  ;;  %v933_v25 = vpop.f32.mrb[43].mxu1  ;;  %v1133_v26 = vpop.f32.mrb[43].mxu0 }
 0x1a1   :  { %v1132_v27 = vadd.f32 %v1131_v24, %v932_v23  ;;  %v1234_v28 = vmax.f32 %v1129_v22, 0.0 }
 0x1a3   :  { %v1235_v29 = vmax.f32 %v1132_v27, 0.0 }
 0x1a4   :  { %v936_v30 = vpop.f32.mrb[44].mxu1  ;;  %v1136_v33 = vpop.f32.mrb[44].mxu0 }
 0x1a5   :  { %v1731_v31 = vpack.c.bf16 %v1235_v29, %v1234_v28  ;;  %v937_v32 = vadd.f32 %v2238_v55, %v936_v30  ;;  %v938_v34 = vpop.f32.mrb[45].mxu1  ;;  %v1138_v35 = vpop.f32.mrb[45].mxu0 }
 0x1a6   :  { %v939_v36 = vpop.f32.mrb[46].mxu1  ;;  %v1139_v39 = vpop.f32.mrb[46].mxu0 }
 0x1a7   :  { %1787 = vst [vmem:[#allocation8 + $0x50] sm:$0xff] %v1731_v31   ;;  %v1137_v37 = vadd.f32 %v1136_v33, %v937_v32  ;;  %v940_v38 = vadd.f32 %v2238_v55, %v939_v36  ;;  %v941_v40 = vpop.f32.mrb[47].mxu1  ;;  %v1141_v41 = vpop.f32.mrb[47].mxu0 }
 0x1a9   :  { %v1140_v42 = vadd.f32 %v1139_v39, %v940_v38  ;;  %v1236_v43 = vmax.f32 %v1137_v37, 0.0 }
 0x1ab   :  { %v1237_v44 = vmax.f32 %v1140_v42, 0.0 }
 0x1ac   :  { %v944_v45 = vpop.f32.mrb[48].mxu1  ;;  %v1144_v48 = vpop.f32.mrb[48].mxu0 }
 0x1ad   :  { %v1736_v46 = vpack.c.bf16 %v1237_v44, %v1236_v43  ;;  %v945_v47 = vadd.f32 %v2238_v55, %v944_v45  ;;  %v946_v49 = vpop.f32.mrb[49].mxu1  ;;  %v1146_v50 = vpop.f32.mrb[49].mxu0 }
 0x1ae   :  { %v947_v51 = vpop.f32.mrb[50].mxu1  ;;  %v1147_v54 = vpop.f32.mrb[50].mxu0 }
 0x1af   :  { %1788 = vst [vmem:[#allocation8 + $0x58] sm:$0xff] %v1736_v46   ;;  %v1145_v52 = vadd.f32 %v1144_v48, %v945_v47  ;;  %v948_v53 = vadd.f32 %v2238_v55, %v947_v51  ;;  %v949_v56 = vpop.f32.mrb[51].mxu1  ;;  %v1149_v57 = vpop.f32.mrb[51].mxu0 }
 0x1b1   :  { %v1148_v58 = vadd.f32 %v1147_v54, %v948_v53  ;;  %v1238_v59 = vmax.f32 %v1145_v52, 0.0 }
 0x1b3   :  { %v1239_v60 = vmax.f32 %v1148_v58, 0.0 }
 0x1b4   :  { %v952_v61 = vpop.f32.mrb[52].mxu1  ;;  %v1152_v0 = vpop.f32.mrb[52].mxu0 }
 0x1b5   :  { %v1741_v62 = vpack.c.bf16 %v1239_v60, %v1238_v59  ;;  %v953_v63 = vadd.f32 %v2238_v55, %v952_v61  ;;  %v954_v1 = vpop.f32.mrb[53].mxu1  ;;  %v1154_v2 = vpop.f32.mrb[53].mxu0 }
 0x1b6   :  { %v955_v3 = vpop.f32.mrb[54].mxu1  ;;  %v1155_v6 = vpop.f32.mrb[54].mxu0 }
 0x1b7   :  { %1789 = vst [vmem:[#allocation8 + $0x60] sm:$0xff] %v1741_v62   ;;  %v1153_v4 = vadd.f32 %v1152_v0, %v953_v63  ;;  %v956_v5 = vadd.f32 %v2238_v55, %v955_v3  ;;  %v957_v7 = vpop.f32.mrb[55].mxu1  ;;  %v1157_v8 = vpop.f32.mrb[55].mxu0 }
 0x1b9   :  { %v1156_v9 = vadd.f32 %v1155_v6, %v956_v5  ;;  %v1240_v10 = vmax.f32 %v1153_v4, 0.0 }
 0x1bb   :  { %v1241_v11 = vmax.f32 %v1156_v9, 0.0 }
 0x1bc   :  { %v960_v12 = vpop.f32.mrb[56].mxu1  ;;  %v1160_v15 = vpop.f32.mrb[56].mxu0 }
 0x1bd   :  { %v1746_v13 = vpack.c.bf16 %v1241_v11, %v1240_v10  ;;  %v961_v14 = vadd.f32 %v2238_v55, %v960_v12  ;;  %v962_v16 = vpop.f32.mrb[57].mxu1  ;;  %v1162_v17 = vpop.f32.mrb[57].mxu0 }
 0x1be   :  { %v963_v18 = vpop.f32.mrb[58].mxu1  ;;  %v1163_v21 = vpop.f32.mrb[58].mxu0 }
 0x1bf   :  { %1790 = vst [vmem:[#allocation8 + $0x68] sm:$0xff] %v1746_v13   ;;  %v1161_v19 = vadd.f32 %v1160_v15, %v961_v14  ;;  %v964_v20 = vadd.f32 %v2238_v55, %v963_v18  ;;  %v965_v22 = vpop.f32.mrb[59].mxu1  ;;  %v1165_v23 = vpop.f32.mrb[59].mxu0 }
 0x1c1   :  { %v1164_v24 = vadd.f32 %v1163_v21, %v964_v20  ;;  %v1242_v25 = vmax.f32 %v1161_v19, 0.0 }
 0x1c3   :  { %v1243_v26 = vmax.f32 %v1164_v24, 0.0 }
 0x1c4   :  { %v968_v27 = vpop.f32.mrb[60].mxu1  ;;  %v1168_v30 = vpop.f32.mrb[60].mxu0 }
 0x1c5   :  { %v1751_v28 = vpack.c.bf16 %v1243_v26, %v1242_v25  ;;  %v969_v29 = vadd.f32 %v2238_v55, %v968_v27  ;;  %v970_v31 = vpop.f32.mrb[61].mxu1  ;;  %v1170_v32 = vpop.f32.mrb[61].mxu0 }
 0x1c6   :  { %v971_v33 = vpop.f32.mrb[62].mxu1  ;;  %v1171_v36 = vpop.f32.mrb[62].mxu0 }
 0x1c7   :  { %1791 = vst [vmem:[#allocation8 + $0x70] sm:$0xff] %v1751_v28   ;;  %v1169_v34 = vadd.f32 %v1168_v30, %v969_v29  ;;  %v972_v35 = vadd.f32 %v2238_v55, %v971_v33  ;;  %v973_v37 = vpop.f32.mrb[63].mxu1  ;;  %v1173_v38 = vpop.f32.mrb[63].mxu0 }
 0x1c9   :  { %v1172_v39 = vadd.f32 %v1171_v36, %v972_v35  ;;  %v1244_v40 = vmax.f32 %v1169_v34, 0.0 }
 0x1cb   :  { %v1245_v41 = vmax.f32 %v1172_v39, 0.0 }
 0x1cc   :  { %v976_v42 = vpop.f32.mrb[64].mxu1  ;;  %v1176_v45 = vpop.f32.mrb[64].mxu0 }
 0x1cd   :  { %v1756_v43 = vpack.c.bf16 %v1245_v41, %v1244_v40  ;;  %v977_v44 = vadd.f32 %v2238_v55, %v976_v42  ;;  %v978_v46 = vpop.f32.mrb[65].mxu1  ;;  %v1178_v47 = vpop.f32.mrb[65].mxu0 }
 0x1ce   :  { %v979_v48 = vpop.f32.mrb[66].mxu1  ;;  %v1179_v51 = vpop.f32.mrb[66].mxu0 }
 0x1cf   :  { %1792 = vst [vmem:[#allocation8 + $0x78] sm:$0xff] %v1756_v43   ;;  %v1177_v49 = vadd.f32 %v1176_v45, %v977_v44  ;;  %v980_v50 = vadd.f32 %v2238_v55, %v979_v48  ;;  %v981_v52 = vpop.f32.mrb[67].mxu1  ;;  %v1181_v53 = vpop.f32.mrb[67].mxu0 }
 0x1d1   :  { %v1180_v54 = vadd.f32 %v1179_v51, %v980_v50  ;;  %v1246_v56 = vmax.f32 %v1177_v49, 0.0 }
 0x1d3   :  { %v1247_v57 = vmax.f32 %v1180_v54, 0.0 }
 0x1d4   :  { %v984_v58 = vpop.f32.mrb[68].mxu1  ;;  %v1184_v61 = vpop.f32.mrb[68].mxu0 }
 0x1d5   :  { %v1761_v59 = vpack.c.bf16 %v1247_v57, %v1246_v56  ;;  %v985_v60 = vadd.f32 %v2238_v55, %v984_v58  ;;  %v986_v62 = vpop.f32.mrb[69].mxu1  ;;  %v1186_v63 = vpop.f32.mrb[69].mxu0 }
 0x1d6   :  { %v987_v0 = vpop.f32.mrb[70].mxu1  ;;  %v1187_v3 = vpop.f32.mrb[70].mxu0 }
 0x1d7   :  { %1793 = vst [vmem:[#allocation8 + $0x80] sm:$0xff] %v1761_v59   ;;  %v1185_v1 = vadd.f32 %v1184_v61, %v985_v60  ;;  %v988_v2 = vadd.f32 %v2238_v55, %v987_v0  ;;  %v989_v4 = vpop.f32.mrb[71].mxu1  ;;  %v1189_v5 = vpop.f32.mrb[71].mxu0 }
 0x1d9   :  { %v1188_v6 = vadd.f32 %v1187_v3, %v988_v2  ;;  %v1248_v7 = vmax.f32 %v1185_v1, 0.0 }
 0x1db   :  { %v1249_v8 = vmax.f32 %v1188_v6, 0.0 }
 0x1dc   :  { %v992_v9 = vpop.f32.mrb[72].mxu1  ;;  %v1192_v12 = vpop.f32.mrb[72].mxu0 }
 0x1dd   :  { %v1766_v10 = vpack.c.bf16 %v1249_v8, %v1248_v7  ;;  %v993_v11 = vadd.f32 %v2238_v55, %v992_v9  ;;  %v994_v13 = vpop.f32.mrb[73].mxu1  ;;  %v1194_v14 = vpop.f32.mrb[73].mxu0 }
 0x1de   :  { %v995_v15 = vpop.f32.mrb[74].mxu1  ;;  %v1195_v18 = vpop.f32.mrb[74].mxu0 }
 0x1df   :  { %1794 = vst [vmem:[#allocation8 + $0x88] sm:$0xff] %v1766_v10   ;;  %v1193_v16 = vadd.f32 %v1192_v12, %v993_v11  ;;  %v996_v17 = vadd.f32 %v2238_v55, %v995_v15  ;;  %v997_v19 = vpop.f32.mrb[75].mxu1  ;;  %v1197_v20 = vpop.f32.mrb[75].mxu0 }
 0x1e1   :  { %v1196_v21 = vadd.f32 %v1195_v18, %v996_v17  ;;  %v1250_v22 = vmax.f32 %v1193_v16, 0.0 }
 0x1e3   :  { %v1251_v23 = vmax.f32 %v1196_v21, 0.0 }
 0x1e4   :  { %v1000_v24 = vpop.f32.mrb[76].mxu1  ;;  %v1200_v27 = vpop.f32.mrb[76].mxu0 }
 0x1e5   :  { %v1771_v25 = vpack.c.bf16 %v1251_v23, %v1250_v22  ;;  %v1001_v26 = vadd.f32 %v2238_v55, %v1000_v24  ;;  %v1002_v28 = vpop.f32.mrb[77].mxu1  ;;  %v1202_v29 = vpop.f32.mrb[77].mxu0 }
 0x1e6   :  { %v1003_v30 = vpop.f32.mrb[78].mxu1  ;;  %v1203_v33 = vpop.f32.mrb[78].mxu0 }
 0x1e7   :  { %1795 = vst [vmem:[#allocation8 + $0x90] sm:$0xff] %v1771_v25   ;;  %v1201_v31 = vadd.f32 %v1200_v27, %v1001_v26  ;;  %v1004_v32 = vadd.f32 %v2238_v55, %v1003_v30  ;;  %v1005_v34 = vpop.f32.mrb[79].mxu1  ;;  %v1205_v35 = vpop.f32.mrb[79].mxu0 }
 0x1e9   :  { %v1204_v36 = vadd.f32 %v1203_v33, %v1004_v32  ;;  %v1252_v37 = vmax.f32 %v1201_v31, 0.0 }
 0x1eb   :  { %v1253_v38 = vmax.f32 %v1204_v36, 0.0 }
 0x1ec   :  { %v1008_v39 = vpop.f32.mrb[80].mxu1  ;;  %v1208_v42 = vpop.f32.mrb[80].mxu0 }
 0x1ed   :  { %v1776_v40 = vpack.c.bf16 %v1253_v38, %v1252_v37  ;;  %v1009_v41 = vadd.f32 %v2238_v55, %v1008_v39  ;;  %v1010_v43 = vpop.f32.mrb[81].mxu1  ;;  %v1210_v44 = vpop.f32.mrb[81].mxu0 }
 0x1ee   :  { %v1011_v45 = vpop.f32.mrb[82].mxu1  ;;  %v1211_v47 = vpop.f32.mrb[82].mxu0 }
 0x1ef   :  { %1796 = vst [vmem:[#allocation8 + $0x98] sm:$0xff] %v1776_v40   ;;  %v1209_v46 = vadd.f32 %v1208_v42, %v1009_v41  ;;  %v1012_v48 = vpop.f32.mrb[83].mxu1  ;;  %v1212_v49 = vpop.f32.mrb[83].mxu0 }
 0x1f1   :  { %v1254_v50 = vmax.f32 %v1209_v46, 0.0 }
 0x1f3   :  { %v1677_v51 = vpack.c.bf16 %v1254_v50, %v1254_v50 }
 0x1f5   :  { %1460 = vst [vmem:[#allocation8 + $0xa0] sm:$0x3] %v1677_v51 }
 0x1f6   :  { %2121 = shalt.err (!%p2118_p0)
}
 0x1f7   :  { %s2122_s30 = scalar_lea.hbm %s2299_s3, 2624 }
 0x1f8   :  { %p2123_p1 = scmp.ne.s32.totalorder %s2299_s3, %s2122_s30  ;;  %p2126_p2 = scmp.lt.u32.totalorder %s2122_s30, %s2299_s3 }
 0x1fa   :  { %p2128_p3 = pnand %p2126_p2, %p2123_p1 }
 0x1fc   :  { %2131 = shalt.err (!%p2128_p3)
}
 0x1fd   :  { %1472 = dma.vmem_to_hbm [thread:$0]  %s1467_s26, 2624, %s2299_s3, [#allocation4], %s2139_s22, %s2139_s22, %s2140_s23  }
 0x1fe   :  { %2136 = dma.done.wait [#allocation4], 2624  }
 0x1ff   :  { %2137 = vsyncadd [#allocation4], 4294964672 }
 0x200   :  { %1476 = vsyncpa [#allocation3], 1 }
 0x201   :  { %1477 = vsyncpa [#allocation6], 1 }
 0x202   :  { %1478 = vsyncpa [#allocation4], 1 }

// kernel: _lambda_.6
= control target key start
LH: loop header
LB: loop body
LE: loop exit
PB: predicated region body
PF: predicated region fallthrough
CT: control target
= control target key end

     0   :  { %8 = vsyncpa [#allocation3], 0  ;;  %s2380_s0 = inlined_call_operand.hbm [shape: bf16[144,1024], index: 0, kind: input, shape index: {}]   ;;  %s2381_s1 = inlined_call_operand.hbm [shape: bf16[1024,128], index: 1, kind: input, shape index: {}]   ;;  %s2382_s2 = inlined_call_operand.hbm [shape: f32[1,128], index: 2, kind: input, shape index: {}]   ;;  %s2383_s3 = inlined_call_operand.hbm [shape: bf16[144,128], index: 3, kind: output, shape index: {}]  }
   0x1   :  { %9 = vsyncpa [#allocation6], 0 }
   0x2   :  { %10 = vsyncpa [#allocation4], 0  ;;  %s2224_s12 = smov [#allocation5]   ;;  %s2130_s16 = scalar_lea.hbm %s2381_s1, 8192 }
   0x3   :  { %s28_s13 = sshll.u32 %s2224_s12, 4  ;;  %p2131_p0 = scmp.ne.s32.totalorder %s2381_s1, %s2130_s16  ;;  %s29_s13 = int_to_ptr.vmem [resolvable:$true] %s28_s13 }
   0x4   :  { %p2134_p1 = scmp.lt.u32.totalorder %s2130_s16, %s2381_s1 }
   0x6   :  { %p2136_p2 = pnand %p2134_p1, %p2131_p0 }
   0x8   :  { %2139 = shalt.err (!%p2136_p2)
}
   0x9   :  { %s2140_s21 = scalar_lea.vmem %s29_s13, 8192  ;;  %p2145_p4 = scmp.lt.s32.totalorder %s29_s13, %s29_s13 }
   0xa   :  { %p2141_p3 = scmp.ne.s32.totalorder %s29_s13, %s2140_s21  ;;  %p2146_p5 = scmp.lt.s32.totalorder %s2140_s21, %s2140_s21 }
   0xc   :  { %p2147_p6 = por %p2146_p5, %p2145_p4 }
   0xe   :  { %p2148_p7 = pnand %p2147_p6, %p2141_p3 }
  0x10   :  { %2151 = shalt.err (!%p2148_p7)
}
  0x11   :  { %s2225_s22 = smov 64   ;;  %s2226_s23 = smov 4  }
  0x12   :  { %34 = dma.hbm_to_vmem [thread:$0]  %s2381_s1, 8192, %s29_s13, [#allocation6], %s2225_s22, %s2225_s22, %s2226_s23  }
  0x13   :  { %s2227_s26 = smov [#allocation2]   ;;  %s2152_s30 = scalar_lea.hbm %s2380_s0, 9216 }
  0x14   :  { %s16_s27 = sshll.u32 %s2227_s26, 4  ;;  %p2153_p8 = scmp.ne.s32.totalorder %s2380_s0, %s2152_s30  ;;  %s17_s27 = int_to_ptr.vmem [resolvable:$true] %s16_s27 }
  0x15   :  { %p2156_p9 = scmp.lt.u32.totalorder %s2152_s30, %s2380_s0 }
  0x17   :  { %p2158_p10 = pnand %p2156_p9, %p2153_p8 }
  0x19   :  { %2161 = shalt.err (!%p2158_p10)
}
  0x1a   :  { %s2162_s8 = scalar_lea.vmem %s17_s27, 9216  ;;  %p2167_p12 = scmp.lt.s32.totalorder %s17_s27, %s17_s27 }
  0x1b   :  { %p2163_p11 = scmp.ne.s32.totalorder %s17_s27, %s2162_s8  ;;  %p2168_p13 = scmp.lt.s32.totalorder %s2162_s8, %s2162_s8 }
  0x1d   :  { %p2169_p0 = por %p2168_p13, %p2167_p12 }
  0x1f   :  { %p2170_p1 = pnand %p2169_p0, %p2163_p11 }
  0x21   :  { %2173 = shalt.err (!%p2170_p1)
}
  0x22   :  { %s2228_s1 = smov 512   ;;  %s2229_s9 = smov 32  }
  0x23   :  { %22 = dma.hbm_to_vmem [thread:$0]  %s2380_s0, 9216, %s17_s27, [#allocation3], %s2228_s1, %s2228_s1, %s2229_s9  }
  0x24   :  { %s2230_s12 = smov [#allocation7]   ;;  %s2174_s16 = scalar_lea.hbm %s2382_s2, 16 }
  0x25   :  { %s41_s13 = sshll.u32 %s2230_s12, 4  ;;  %p2175_p2 = scmp.ne.s32.totalorder %s2382_s2, %s2174_s16  ;;  %s42_s13 = int_to_ptr.vmem [resolvable:$true] %s41_s13 }
  0x26   :  { %p2178_p3 = scmp.lt.u32.totalorder %s2174_s16, %s2382_s2 }
  0x28   :  { %p2180_p4 = pnand %p2178_p3, %p2175_p2 }
  0x2a   :  { %2183 = shalt.err (!%p2180_p4)
}
  0x2b   :  { %s2184_s21 = scalar_lea.vmem %s42_s13, 16  ;;  %s2188_s0 = scalar_lea.vmem %s42_s13, 32 }
  0x2c   :  { %p2185_p5 = scmp.ne.s32.totalorder %s42_s13, %s2184_s21  ;;  %p2189_p6 = scmp.lt.s32.totalorder %s42_s13, %s42_s13 }
  0x2d   :  { %p2190_p7 = scmp.lt.s32.totalorder %s2188_s0, %s2184_s21 }
  0x2f   :  { %p2191_p8 = por %p2190_p7, %p2189_p6 }
  0x31   :  { %p2192_p9 = pnand %p2191_p8, %p2185_p5 }
  0x33   :  { %2195 = shalt.err (!%p2192_p9)
}
  0x34   :  { %44 = dma.hbm_to_vmem [thread:$0]  %s2382_s2, 16, %s42_s13, [#allocation6]  }
  0x35   :  { %2218 = dma.done.wait [#allocation3], 9216  }
  0x36   :  { %2219 = vsyncadd [#allocation3], 4294958080 }
  0x37   :  { %2220 = dma.done.wait [#allocation6], 8208  }
  0x38   :  { %2221 = vsyncadd [#allocation6], 4294959088  ;;  %v2066_v0 = vld [vmem:[#allocation5 + $0x40] sm:$0xff]   ;;  %v2070_v4 = vld [vmem:[#allocation5 + $0x48] sm:$0xff]   ;;  %s2231_s2 = smov [#allocation8]  }
  0x39   :  { %v2067_v1 = vld [vmem:[#allocation5 + $0xc0] sm:$0xff]   ;;  %1778 = vmatprep.subr.bf16.mxu0 %v2066_v0  ;;  %v2071_v5 = vld [vmem:[#allocation5 + $0xc8] sm:$0xff]   ;;  %v2074_v8 = vld [vmem:[#allocation5 + $0x50] sm:$0xff]   ;;  %s1539_s26 = sshll.u32 %s2231_s2, 4  ;;  %s1540_s26 = int_to_ptr.vmem [resolvable:$true] %s1539_s26 }
  0x3a   :  { %v2068_v2 = vld [vmem:[#allocation5] sm:$0xff]   ;;  %1848 = vmatprep.subr.bf16.mxu1 %v2067_v1  ;;  %v2072_v6 = vld [vmem:[#allocation5 + $0x8] sm:$0xff]   ;;  %v2075_v9 = vld [vmem:[#allocation5 + $0xd0] sm:$0xff]   ;;  %s2196_s27 = scalar_lea.vmem %s1540_s26, 1152  ;;  %p2201_p11 = scmp.lt.s32.totalorder %s1540_s26, %s1540_s26 }
  0x3b   :  { %v2069_v3 = vld [vmem:[#allocation5 + $0x80] sm:$0xff]   ;;  %1779 = vmatpush3.bf16.msra.mxu0 %v2068_v2  ;;  %v2073_v7 = vld [vmem:[#allocation5 + $0x88] sm:$0xff]   ;;  %v2076_v10 = vld [vmem:[#allocation5 + $0x10] sm:$0xff]   ;;  %p2197_p10 = scmp.ne.s32.totalorder %s1540_s26, %s2196_s27  ;;  %p2202_p12 = scmp.lt.s32.totalorder %s2196_s27, %s2196_s27 }
  0x3c   :  { %1849 = vmatpush3.bf16.msra.mxu1 %v2069_v3  ;;  %1780 = vmatprep.subr.bf16.mxu0 %v2070_v4  ;;  %v2077_v11 = vld [vmem:[#allocation5 + $0x90] sm:$0xff]   ;;  %v2078_v12 = vld [vmem:[#allocation5 + $0x58] sm:$0xff]   ;;  %v2082_v16 = vld [vmem:[#allocation5 + $0x60] sm:$0xff]  }
  0x3d   :  { %1850 = vmatprep.subr.bf16.mxu1 %v2071_v5  ;;  %v2079_v13 = vld [vmem:[#allocation5 + $0xd8] sm:$0xff]   ;;  %v2083_v17 = vld [vmem:[#allocation5 + $0xe0] sm:$0xff]   ;;  %v2086_v20 = vld [vmem:[#allocation5 + $0x68] sm:$0xff]   ;;  %p2203_p13 = por %p2202_p12, %p2201_p11 }
  0x3e   :  { %v2080_v14 = vld [vmem:[#allocation5 + $0x18] sm:$0xff]   ;;  %v2084_v18 = vld [vmem:[#allocation5 + $0x20] sm:$0xff]   ;;  %v2087_v21 = vld [vmem:[#allocation5 + $0xe8] sm:$0xff]  }
  0x3f   :  { %1781 = vmatpush3.bf16.msra.mxu0 %v2072_v6  ;;  %v2081_v15 = vld [vmem:[#allocation5 + $0x98] sm:$0xff]   ;;  %v2085_v19 = vld [vmem:[#allocation5 + $0xa0] sm:$0xff]   ;;  %v2088_v22 = vld [vmem:[#allocation5 + $0x28] sm:$0xff]   ;;  %p2204_p0 = pnand %p2203_p13, %p2197_p10 }
  0x40   :  { %1851 = vmatpush3.bf16.msra.mxu1 %v2073_v7  ;;  %1782 = vmatprep.subr.bf16.mxu0 %v2074_v8  ;;  %v2089_v23 = vld [vmem:[#allocation5 + $0xa8] sm:$0xff]   ;;  %v2090_v24 = vld [vmem:[#allocation5 + $0x70] sm:$0xff]   ;;  %v2094_v28 = vld [vmem:[#allocation5 + $0x78] sm:$0xff]  }
  0x41   :  { %1852 = vmatprep.subr.bf16.mxu1 %v2075_v9  ;;  %v2091_v25 = vld [vmem:[#allocation5 + $0xf0] sm:$0xff]   ;;  %v2095_v29 = vld [vmem:[#allocation5 + $0xf8] sm:$0xff]   ;;  %v55_v32 = vld [vmem:[#allocation2] sm:$0xff] }
  0x42   :  { %v2092_v26 = vld [vmem:[#allocation5 + $0x30] sm:$0xff]   ;;  %v2096_v30 = vld [vmem:[#allocation5 + $0x38] sm:$0xff]   ;;  %v59_v33 = vld [vmem:[#allocation2 + $0x20] sm:$0xff] }
  0x43   :  { %1783 = vmatpush3.bf16.msra.mxu0 %v2076_v10  ;;  %v2093_v27 = vld [vmem:[#allocation5 + $0xb0] sm:$0xff]   ;;  %v2097_v31 = vld [vmem:[#allocation5 + $0xb8] sm:$0xff]   ;;  %v56_v34 = vld [vmem:[#allocation2 + $0x8] sm:$0xff]  ;;  %v1553_v35 = vcombine.low %v55_v32, %v59_v33  ;;  %v1554_v36 = vcombine.high %v55_v32, %v59_v33 }
  0x44   :  { %1853 = vmatpush3.bf16.msra.mxu1 %v2077_v11  ;;  %1784 = vmatprep.subr.bf16.mxu0 %v2078_v12  ;;  %v60_v37 = vld [vmem:[#allocation2 + $0x28] sm:$0xff]  ;;  %v2098_v40 = vld [vmem:[#allocation5 + $0x140] sm:$0xff]   ;;  %v2106_v62 = vld [vmem:[#allocation5 + $0x150] sm:$0xff]  }
  0x45   :  { %1854 = vmatprep.subr.bf16.mxu1 %v2079_v13  ;;  %v1555_v38 = vcombine.low %v56_v34, %v60_v37  ;;  %v1556_v39 = vcombine.high %v56_v34, %v60_v37  ;;  %1038 = vmatprep.mubr.bf16.mxu0 %v1554_v36  ;;  %v2099_v41 = vld [vmem:[#allocation5 + $0x100] sm:$0xff]   ;;  %v64_v47 = vld [vmem:[#allocation2 + $0x48] sm:$0xff]  ;;  %v2107_v63 = vld [vmem:[#allocation5 + $0x110] sm:$0xff]  }
  0x46   :  { %v2100_v42 = vld [vmem:[#allocation5 + $0x1c0] sm:$0xff]   ;;  %v68_v48 = vld [vmem:[#allocation2 + $0x68] sm:$0xff]  ;;  %v2108_v0 = vld [vmem:[#allocation5 + $0x1d0] sm:$0xff]  }
  0x47   :  { %1785 = vmatpush3.bf16.msra.mxu0 %v2080_v14  ;;  %1143 = vmatprep.mubr.bf16.mxu1 %v1556_v39  ;;  %v2101_v43 = vld [vmem:[#allocation5 + $0x180] sm:$0xff]   ;;  %v1564_v49 = vcombine.high %v64_v47, %v68_v48  ;;  %v2102_v50 = vld [vmem:[#allocation5 + $0x148] sm:$0xff]   ;;  %v1563_v53 = vcombine.low %v64_v47, %v68_v48  ;;  %v2109_v1 = vld [vmem:[#allocation5 + $0x190] sm:$0xff]  }
  0x48   :  { %1855 = vmatpush3.bf16.msra.mxu1 %v2081_v15  ;;  %1786 = vmatprep.subr.bf16.mxu0 %v2082_v16  ;;  %v63_v44 = vld [vmem:[#allocation2 + $0x40] sm:$0xff]  ;;  %v2103_v52 = vld [vmem:[#allocation5 + $0x108] sm:$0xff]   ;;  %v2110_v10 = vld [vmem:[#allocation5 + $0x158] sm:$0xff]  }
  0x49   :  { %1856 = vmatprep.subr.bf16.mxu1 %v2083_v17  ;;  %v67_v45 = vld [vmem:[#allocation2 + $0x60] sm:$0xff]  ;;  %v2104_v54 = vld [vmem:[#allocation5 + $0x1c8] sm:$0xff]   ;;  %v2111_v11 = vld [vmem:[#allocation5 + $0x118] sm:$0xff]  }
  0x4a   :  { %v1562_v46 = vcombine.high %v63_v44, %v67_v45  ;;  %v1561_v51 = vcombine.low %v63_v44, %v67_v45  ;;  %v2105_v55 = vld [vmem:[#allocation5 + $0x188] sm:$0xff]   ;;  %v71_v56 = vld [vmem:[#allocation2 + $0x80] sm:$0xff]  ;;  %v2112_v12 = vld [vmem:[#allocation5 + $0x1d8] sm:$0xff]  }
  0x4b   :  { %1787 = vmatpush3.bf16.msra.mxu0 %v2084_v18  ;;  %v75_v57 = vld [vmem:[#allocation2 + $0xa0] sm:$0xff]  ;;  %v72_v58 = vld [vmem:[#allocation2 + $0x88] sm:$0xff]  ;;  %v2113_v13 = vld [vmem:[#allocation5 + $0x198] sm:$0xff]  }
  0x4c   :  { %1857 = vmatpush3.bf16.msra.mxu1 %v2085_v19  ;;  %1788 = vmatprep.subr.bf16.mxu0 %v2086_v20  ;;  %v76_v59 = vld [vmem:[#allocation2 + $0xa8] sm:$0xff]  ;;  %v1570_v60 = vcombine.high %v71_v56, %v75_v57  ;;  %v1569_v2 = vcombine.low %v71_v56, %v75_v57  ;;  %v79_v3 = vld [vmem:[#allocation2 + $0xc0] sm:$0xff]  ;;  %v2126_v47 = vld [vmem:[#allocation5 + $0x178] sm:$0xff]  }
  0x4d   :  { %1858 = vmatprep.subr.bf16.mxu1 %v2087_v21  ;;  %v1572_v61 = vcombine.high %v72_v58, %v76_v59  ;;  %v83_v4 = vld [vmem:[#allocation2 + $0xe0] sm:$0xff]  ;;  %v80_v5 = vld [vmem:[#allocation2 + $0xc8] sm:$0xff]  ;;  %v1571_v6 = vcombine.low %v72_v58, %v76_v59 }
  0x4e   :  { %v1578_v7 = vcombine.high %v79_v3, %v83_v4  ;;  %v84_v8 = vld [vmem:[#allocation2 + $0xe8] sm:$0xff]  ;;  %v87_v14 = vld [vmem:[#allocation2 + $0x100] sm:$0xff]  ;;  %v1577_v19 = vcombine.low %v79_v3, %v83_v4 }
  0x4f   :  { %1789 = vmatpush3.bf16.msra.mxu0 %v2088_v22  ;;  %v1580_v9 = vcombine.high %v80_v5, %v84_v8  ;;  %v91_v15 = vld [vmem:[#allocation2 + $0x120] sm:$0xff]  ;;  %v88_v16 = vld [vmem:[#allocation2 + $0x108] sm:$0xff]  ;;  %v1579_v21 = vcombine.low %v80_v5, %v84_v8  ;;  %v58_v8 = vld [vmem:[#allocation2 + $0x18] sm:$0xff] }
  0x50   :  { %1859 = vmatpush3.bf16.msra.mxu1 %v2089_v23  ;;  %1790 = vmatprep.subr.bf16.mxu0 %v2090_v24  ;;  %v92_v17 = vld [vmem:[#allocation2 + $0x128] sm:$0xff]  ;;  %v2114_v18 = vld [vmem:[#allocation5 + $0x160] sm:$0xff]   ;;  %v1586_v22 = vcombine.high %v87_v14, %v91_v15  ;;  %v1585_v32 = vcombine.low %v87_v14, %v91_v15  ;;  %v65_v14 = vld [vmem:[#allocation2 + $0x50] sm:$0xff] }
  0x51   :  { %1860 = vmatprep.subr.bf16.mxu1 %v2091_v25  ;;  %v2115_v20 = vld [vmem:[#allocation5 + $0x120] sm:$0xff]   ;;  %v1588_v24 = vcombine.high %v88_v16, %v92_v17  ;;  %v2120_v33 = vld [vmem:[#allocation5 + $0x1e8] sm:$0xff]   ;;  %v1587_v34 = vcombine.low %v88_v16, %v92_v17  ;;  %v69_v15 = vld [vmem:[#allocation2 + $0x70] sm:$0xff] }
  0x52   :  { %v2116_v23 = vld [vmem:[#allocation5 + $0x1e0] sm:$0xff]   ;;  %v2121_v36 = vld [vmem:[#allocation5 + $0x1a8] sm:$0xff]   ;;  %v66_v16 = vld [vmem:[#allocation2 + $0x58] sm:$0xff] }
  0x53   :  { %1791 = vmatpush3.bf16.msra.mxu0 %v2092_v26  ;;  %v2117_v25 = vld [vmem:[#allocation5 + $0x1a0] sm:$0xff]   ;;  %v2118_v26 = vld [vmem:[#allocation5 + $0x168] sm:$0xff]   ;;  %v70_v17 = vld [vmem:[#allocation2 + $0x78] sm:$0xff] }
  0x54   :  { %1861 = vmatpush3.bf16.msra.mxu1 %v2093_v27  ;;  %1792 = vmatprep.subr.bf16.mxu0 %v2094_v28  ;;  %v2119_v27 = vld [vmem:[#allocation5 + $0x128] sm:$0xff]   ;;  %v95_v28 = vld [vmem:[#allocation2 + $0x140] sm:$0xff] }
  0x55   :  { %1862 = vmatprep.subr.bf16.mxu1 %v2095_v29  ;;  %v99_v29 = vld [vmem:[#allocation2 + $0x160] sm:$0xff]  ;;  %v104_v44 = vld [vmem:[#allocation2 + $0x188] sm:$0xff] }
  0x56   :  { %v103_v39 = vld [vmem:[#allocation2 + $0x180] sm:$0xff]  ;;  %v108_v45 = vld [vmem:[#allocation2 + $0x1a8] sm:$0xff] }
  0x57   :  { %1793 = vmatpush3.bf16.msra.mxu0 %v2096_v30  ;;  %v96_v30 = vld [vmem:[#allocation2 + $0x148] sm:$0xff]  ;;  %v1603_v59 = vcombine.low %v104_v44, %v108_v45 }
  0x58   :  { %1863 = vmatpush3.bf16.msra.mxu1 %v2097_v31  ;;  %1918 = vmatprep.subr.bf16.mxu0 %v2098_v40  ;;  %v100_v31 = vld [vmem:[#allocation2 + $0x168] sm:$0xff]  ;;  %v2123_v40 = vld [vmem:[#allocation5 + $0x130] sm:$0xff]  }
  0x59   :  { %1988 = vmatprep.subr.bf16.mxu1 %v2100_v42  ;;  %v1596_v37 = vcombine.high %v96_v30, %v100_v31  ;;  %v107_v42 = vld [vmem:[#allocation2 + $0x1a0] sm:$0xff]  ;;  %v1595_v48 = vcombine.low %v96_v30, %v100_v31  ;;  %v112_v56 = vld [vmem:[#allocation2 + $0x1c8] sm:$0xff]  ;;  %v81_v30 = vld [vmem:[#allocation2 + $0xd0] sm:$0xff] }
  0x5a   :  { %1039 = vmatmul.mubr.bf16.vlgmr.msra.gmra.mrb[0].mxu0 %v1553_v35  ;;  %v1594_v35 = vcombine.high %v95_v28, %v99_v29  ;;  %v116_v57 = vld [vmem:[#allocation2 + $0x1e8] sm:$0xff]  ;;  %v1601_v58 = vcombine.low %v103_v39, %v107_v42  ;;  %v85_v31 = vld [vmem:[#allocation2 + $0xf0] sm:$0xff] }
  0x5b   :  { %1144 = vmatmul.mubr.bf16.vlgmr.msra.gmra.mrb[0].mxu1 %v1555_v38  ;;  %1919 = vmatpush3.bf16.msra.mxu0 %v2099_v41  ;;  %v2122_v38 = vld [vmem:[#allocation5 + $0x170] sm:$0xff]   ;;  %v1611_v3 = vcombine.low %v112_v56, %v116_v57 }
  0x5c   :  { %1989 = vmatpush3.bf16.msra.mxu1 %v2101_v43  ;;  %1046 = vmatprep.mubr.bf16.mxu0 %v1562_v46  ;;  %v2124_v41 = vld [vmem:[#allocation5 + $0x1f0] sm:$0xff]   ;;  %v1593_v46 = vcombine.low %v95_v28, %v99_v29 }
  0x5d   :  { %1151 = vmatprep.mubr.bf16.mxu1 %v1564_v49  ;;  %1920 = vmatprep.subr.bf16.mxu0 %v2102_v50  ;;  %v2125_v43 = vld [vmem:[#allocation5 + $0x1b0] sm:$0xff]   ;;  %v1602_v49 = vcombine.high %v103_v39, %v107_v42  ;;  %v2127_v50 = vld [vmem:[#allocation5 + $0x138] sm:$0xff]   ;;  %v1581_v42 = vcombine.low %v81_v30, %v85_v31 }
  0x5e   :  { %1990 = vmatprep.subr.bf16.mxu1 %v2104_v54  ;;  %v111_v54 = vld [vmem:[#allocation2 + $0x1c0] sm:$0xff]  ;;  %v93_v39 = vld [vmem:[#allocation2 + $0x130] sm:$0xff] }
  0x5f   :  { %1921 = vmatpush3.bf16.msra.mxu0 %v2103_v52  ;;  %v2128_v52 = vld [vmem:[#allocation5 + $0x1f8] sm:$0xff]  }
  0x60   :  { %1991 = vmatpush3.bf16.msra.mxu1 %v2105_v55  ;;  %1922 = vmatprep.subr.bf16.mxu0 %v2106_v62  ;;  %v115_v55 = vld [vmem:[#allocation2 + $0x1e0] sm:$0xff] }
  0x61   :  { %1992 = vmatprep.subr.bf16.mxu1 %v2108_v0  ;;  %v119_v62 = vld [vmem:[#allocation2 + $0x200] sm:$0xff]  ;;  %v120_v0 = vld [vmem:[#allocation2 + $0x208] sm:$0xff] }
  0x62   :  { %1047 = vmatmul.mubr.bf16.gmra.mrb[4].mxu0 %v1561_v51  ;;  %v1604_v51 = vcombine.high %v104_v44, %v108_v45 }
  0x63   :  { %1152 = vmatmul.mubr.bf16.gmra.mrb[4].mxu1 %v1563_v53  ;;  %1054 = vmatprep.mubr.bf16.mxu0 %v1570_v60  ;;  %v2129_v53 = vld [vmem:[#allocation5 + $0x1b8] sm:$0xff]   ;;  %v1610_v60 = vcombine.high %v111_v54, %v115_v55 }
  0x64   :  { %1159 = vmatprep.mubr.bf16.mxu1 %v1572_v61  ;;  %1923 = vmatpush3.bf16.msra.mxu0 %v2107_v63  ;;  %v1612_v61 = vcombine.high %v112_v56, %v116_v57  ;;  %v123_v63 = vld [vmem:[#allocation2 + $0x220] sm:$0xff]  ;;  %v106_v56 = vld [vmem:[#allocation2 + $0x198] sm:$0xff] }
  0x65   :  { %1993 = vmatpush3.bf16.msra.mxu1 %v2109_v1  ;;  %1924 = vmatprep.subr.bf16.mxu0 %v2110_v10  ;;  %v124_v1 = vld [vmem:[#allocation2 + $0x228] sm:$0xff]  ;;  %v1618_v4 = vcombine.high %v119_v62, %v123_v63  ;;  %v1617_v10 = vcombine.low %v119_v62, %v123_v63  ;;  %v110_v57 = vld [vmem:[#allocation2 + $0x1b8] sm:$0xff]  ;;  %v113_v62 = vld [vmem:[#allocation2 + $0x1d0] sm:$0xff] }
  0x66   :  { %1994 = vmatprep.subr.bf16.mxu1 %v2112_v12  ;;  %v1620_v5 = vcombine.high %v120_v0, %v124_v1  ;;  %v117_v63 = vld [vmem:[#allocation2 + $0x1f0] sm:$0xff] }
  0x68   :  { %1925 = vmatpush3.bf16.msra.mxu0 %v2111_v11  ;;  %v1619_v11 = vcombine.low %v120_v0, %v124_v1  ;;  %v114_v0 = vld [vmem:[#allocation2 + $0x1d8] sm:$0xff] }
  0x69   :  { %1995 = vmatpush3.bf16.msra.mxu1 %v2113_v13  ;;  %1926 = vmatprep.subr.bf16.mxu0 %v2114_v18  ;;  %v118_v1 = vld [vmem:[#allocation2 + $0x1f8] sm:$0xff] }
  0x6a   :  { %1055 = vmatmul.mubr.bf16.gmra.mrb[8].mxu0 %v1569_v2  ;;  %1996 = vmatprep.subr.bf16.mxu1 %v2116_v23  ;;  %v1609_v2 = vcombine.low %v111_v54, %v115_v55  ;;  %v77_v23 = vld [vmem:[#allocation2 + $0xb0] sm:$0xff] }
  0x6b   :  { %1160 = vmatmul.mubr.bf16.gmra.mrb[8].mxu1 %v1571_v6  ;;  %1062 = vmatprep.mubr.bf16.mxu0 %v1578_v7  ;;  %v57_v6 = vld [vmem:[#allocation2 + $0x10] sm:$0xff] }
  0x6c   :  { %1167 = vmatprep.mubr.bf16.mxu1 %v1580_v9  ;;  %1927 = vmatpush3.bf16.msra.mxu0 %v2115_v20  ;;  %v61_v7 = vld [vmem:[#allocation2 + $0x30] sm:$0xff]  ;;  %v62_v9 = vld [vmem:[#allocation2 + $0x38] sm:$0xff]  ;;  %v1566_v20 = vcombine.high %v65_v14, %v69_v15 }
  0x6d   :  { %1997 = vmatpush3.bf16.msra.mxu1 %v2117_v25  ;;  %1928 = vmatprep.subr.bf16.mxu0 %v2118_v26  ;;  %v1558_v12 = vcombine.high %v57_v6, %v61_v7  ;;  %v1560_v13 = vcombine.high %v58_v8, %v62_v9  ;;  %v1557_v18 = vcombine.low %v57_v6, %v61_v7  ;;  %v78_v25 = vld [vmem:[#allocation2 + $0xb8] sm:$0xff]  ;;  %v105_v54 = vld [vmem:[#allocation2 + $0x190] sm:$0xff] }
  0x6e   :  { %1998 = vmatprep.subr.bf16.mxu1 %v2120_v33  ;;  %v1565_v26 = vcombine.low %v65_v14, %v69_v15  ;;  %v86_v33 = vld [vmem:[#allocation2 + $0xf8] sm:$0xff]  ;;  %v109_v55 = vld [vmem:[#allocation2 + $0x1b0] sm:$0xff] }
  0x6f   :  { %v121_v6 = vld [vmem:[#allocation2 + $0x210] sm:$0xff] }
  0x70   :  { %1929 = vmatpush3.bf16.msra.mxu0 %v2119_v27  ;;  %v1567_v27 = vcombine.low %v66_v16, %v70_v17  ;;  %v125_v7 = vld [vmem:[#allocation2 + $0x230] sm:$0xff] }
  0x71   :  { %1999 = vmatpush3.bf16.msra.mxu1 %v2121_v36  ;;  %1930 = vmatprep.subr.bf16.mxu0 %v2122_v38  ;;  %v1582_v36 = vcombine.high %v81_v30, %v85_v31  ;;  %v89_v38 = vld [vmem:[#allocation2 + $0x110] sm:$0xff]  ;;  %v1621_v14 = vcombine.low %v121_v6, %v125_v7 }
  0x72   :  { %1063 = vmatmul.mubr.bf16.gmra.mrb[12].mxu0 %v1577_v19  ;;  %2000 = vmatprep.subr.bf16.mxu1 %v2124_v41  ;;  %v1559_v19 = vcombine.low %v58_v8, %v62_v9  ;;  %v94_v41 = vld [vmem:[#allocation2 + $0x138] sm:$0xff]  ;;  %v1590_v44 = vcombine.high %v89_v38, %v93_v39 }
  0x73   :  { %1168 = vmatmul.mubr.bf16.gmra.mrb[12].mxu1 %v1579_v21  ;;  %1070 = vmatprep.mubr.bf16.mxu0 %v1586_v22  ;;  %v1568_v21 = vcombine.high %v66_v16, %v70_v17  ;;  %v73_v22 = vld [vmem:[#allocation2 + $0x90] sm:$0xff]  ;;  %v122_v8 = vld [vmem:[#allocation2 + $0x218] sm:$0xff] }
  0x74   :  { %1175 = vmatprep.mubr.bf16.mxu1 %v1588_v24  ;;  %1931 = vmatpush3.bf16.msra.mxu0 %v2123_v40  ;;  %v74_v24 = vld [vmem:[#allocation2 + $0x98] sm:$0xff]  ;;  %v1574_v28 = vcombine.high %v73_v22, %v77_v23 }
  0x75   :  { %2001 = vmatpush3.bf16.msra.mxu1 %v2125_v43  ;;  %1932 = vmatprep.subr.bf16.mxu0 %v2126_v47  ;;  %v1576_v29 = vcombine.high %v74_v24, %v78_v25  ;;  %v90_v40 = vld [vmem:[#allocation2 + $0x118] sm:$0xff]  ;;  %v101_v47 = vld [vmem:[#allocation2 + $0x170] sm:$0xff] }
  0x76   :  { %2002 = vmatprep.subr.bf16.mxu1 %v2128_v52  ;;  %v1592_v45 = vcombine.high %v90_v40, %v94_v41  ;;  %v126_v9 = vld [vmem:[#allocation2 + $0x238] sm:$0xff] }
  0x77   :  { %v1623_v15 = vcombine.low %v122_v8, %v126_v9 }
  0x78   :  { %1933 = vmatpush3.bf16.msra.mxu0 %v2127_v50  ;;  %v1589_v50 = vcombine.low %v89_v38, %v93_v39 }
  0x79   :  { %2003 = vmatpush3.bf16.msra.mxu1 %v2129_v53 }
  0x7a   :  { %1071 = vmatmul.mubr.bf16.gmra.mrb[16].mxu0 %v1585_v32  ;;  %v82_v32 = vld [vmem:[#allocation2 + $0xd8] sm:$0xff] }
  0x7b   :  { %1176 = vmatmul.mubr.bf16.gmra.mrb[16].mxu1 %v1587_v34  ;;  %1078 = vmatprep.mubr.bf16.mxu0 %v1594_v35  ;;  %v1573_v34 = vcombine.low %v73_v22, %v77_v23  ;;  %v1575_v35 = vcombine.low %v74_v24, %v78_v25  ;;  %v1583_v43 = vcombine.low %v82_v32, %v86_v33 }
  0x7c   :  { %1183 = vmatprep.mubr.bf16.mxu1 %v1596_v37  ;;  %v1584_v37 = vcombine.high %v82_v32, %v86_v33 }
  0x82   :  { %1079 = vmatmul.mubr.bf16.gmra.mrb[20].mxu0 %v1593_v46  ;;  %v97_v46 = vld [vmem:[#allocation2 + $0x150] sm:$0xff] }
  0x83   :  { %1184 = vmatmul.mubr.bf16.gmra.mrb[20].mxu1 %v1595_v48  ;;  %1086 = vmatprep.mubr.bf16.mxu0 %v1602_v49  ;;  %v98_v48 = vld [vmem:[#allocation2 + $0x158] sm:$0xff]  ;;  %v1598_v52 = vcombine.high %v97_v46, %v101_v47 }
  0x84   :  { %1191 = vmatprep.mubr.bf16.mxu1 %v1604_v51  ;;  %v102_v49 = vld [vmem:[#allocation2 + $0x178] sm:$0xff]  ;;  %v1591_v51 = vcombine.low %v90_v40, %v94_v41 }
  0x85   :  { %v1600_v53 = vcombine.high %v98_v48, %v102_v49 }
  0x8a   :  { %1087 = vmatmul.mubr.bf16.gmra.mrb[24].mxu0 %v1601_v58  ;;  %v1597_v58 = vcombine.low %v97_v46, %v101_v47 }
  0x8b   :  { %1192 = vmatmul.mubr.bf16.gmra.mrb[24].mxu1 %v1603_v59  ;;  %1094 = vmatprep.mubr.bf16.mxu0 %v1610_v60  ;;  %v1599_v59 = vcombine.low %v98_v48, %v102_v49  ;;  %v1606_v60 = vcombine.high %v105_v54, %v109_v55 }
  0x8c   :  { %1199 = vmatprep.mubr.bf16.mxu1 %v1612_v61  ;;  %v1608_v61 = vcombine.high %v106_v56, %v110_v57 }
  0x92   :  { %1095 = vmatmul.mubr.bf16.gmra.mrb[28].mxu0 %v1609_v2  ;;  %v1605_v2 = vcombine.low %v105_v54, %v109_v55 }
  0x93   :  { %1200 = vmatmul.mubr.bf16.gmra.mrb[28].mxu1 %v1611_v3  ;;  %1102 = vmatprep.mubr.bf16.mxu0 %v1618_v4  ;;  %v1607_v3 = vcombine.low %v106_v56, %v110_v57  ;;  %v1614_v4 = vcombine.high %v113_v62, %v117_v63 }
  0x94   :  { %1207 = vmatprep.mubr.bf16.mxu1 %v1620_v5  ;;  %v1616_v5 = vcombine.high %v114_v0, %v118_v1 }
  0x9a   :  { %1103 = vmatmul.mubr.bf16.gmra.mrb[32].mxu0 %v1617_v10  ;;  %v1613_v10 = vcombine.low %v113_v62, %v117_v63 }
  0x9b   :  { %1208 = vmatmul.mubr.bf16.gmra.mrb[32].mxu1 %v1619_v11  ;;  %1248 = vmatprep.mubr.bf16.mxu0 %v1558_v12  ;;  %v1615_v11 = vcombine.low %v114_v0, %v118_v1  ;;  %v1622_v12 = vcombine.high %v121_v6, %v125_v7 }
  0x9c   :  { %1353 = vmatprep.mubr.bf16.mxu1 %v1560_v13  ;;  %v1624_v13 = vcombine.high %v122_v8, %v126_v9 }
  0xa2   :  { %1249 = vmatmul.mubr.bf16.vlgmr.msra.gmra.mrb[36].mxu0 %v1557_v18  ;;  %v2291_v18 = vld [vmem:[#allocation7] ss:$0 sm:$0xff] }
  0xa3   :  { %1354 = vmatmul.mubr.bf16.vlgmr.msra.gmra.mrb[36].mxu1 %v1559_v19  ;;  %1256 = vmatprep.mubr.bf16.mxu0 %v1566_v20 }
  0xa4   :  { %1361 = vmatprep.mubr.bf16.mxu1 %v1568_v21 }
  0xaa   :  { %1257 = vmatmul.mubr.bf16.gmra.mrb[40].mxu0 %v1565_v26 }
  0xab   :  { %1362 = vmatmul.mubr.bf16.gmra.mrb[40].mxu1 %v1567_v27  ;;  %1264 = vmatprep.mubr.bf16.mxu0 %v1574_v28 }
  0xac   :  { %1369 = vmatprep.mubr.bf16.mxu1 %v1576_v29 }
  0xb2   :  { %1265 = vmatmul.mubr.bf16.gmra.mrb[44].mxu0 %v1573_v34 }
  0xb3   :  { %1370 = vmatmul.mubr.bf16.gmra.mrb[44].mxu1 %v1575_v35  ;;  %1272 = vmatprep.mubr.bf16.mxu0 %v1582_v36 }
  0xb4   :  { %1377 = vmatprep.mubr.bf16.mxu1 %v1584_v37 }
  0xba   :  { %1273 = vmatmul.mubr.bf16.gmra.mrb[48].mxu0 %v1581_v42 }
  0xbb   :  { %1378 = vmatmul.mubr.bf16.gmra.mrb[48].mxu1 %v1583_v43  ;;  %1280 = vmatprep.mubr.bf16.mxu0 %v1590_v44 }
  0xbc   :  { %1385 = vmatprep.mubr.bf16.mxu1 %v1592_v45 }
  0xc2   :  { %1281 = vmatmul.mubr.bf16.gmra.mrb[52].mxu0 %v1589_v50 }
  0xc3   :  { %1386 = vmatmul.mubr.bf16.gmra.mrb[52].mxu1 %v1591_v51  ;;  %1288 = vmatprep.mubr.bf16.mxu0 %v1598_v52 }
  0xc4   :  { %1393 = vmatprep.mubr.bf16.mxu1 %v1600_v53 }
  0xca   :  { %1289 = vmatmul.mubr.bf16.gmra.mrb[56].mxu0 %v1597_v58 }
  0xcb   :  { %1394 = vmatmul.mubr.bf16.gmra.mrb[56].mxu1 %v1599_v59  ;;  %1296 = vmatprep.mubr.bf16.mxu0 %v1606_v60 }
  0xcc   :  { %1401 = vmatprep.mubr.bf16.mxu1 %v1608_v61 }
  0xd2   :  { %1297 = vmatmul.mubr.bf16.gmra.mrb[60].mxu0 %v1605_v2 }
  0xd3   :  { %1402 = vmatmul.mubr.bf16.gmra.mrb[60].mxu1 %v1607_v3  ;;  %1304 = vmatprep.mubr.bf16.mxu0 %v1614_v4 }
  0xd4   :  { %1409 = vmatprep.mubr.bf16.mxu1 %v1616_v5 }
  0xda   :  { %1305 = vmatmul.mubr.bf16.gmra.mrb[64].mxu0 %v1613_v10 }
  0xdb   :  { %1410 = vmatmul.mubr.bf16.gmra.mrb[64].mxu1 %v1615_v11  ;;  %1312 = vmatprep.mubr.bf16.mxu0 %v1622_v12 }
  0xdc   :  { %1417 = vmatprep.mubr.bf16.mxu1 %v1624_v13 }
  0xe2   :  { %1313 = vmatmul.mubr.bf16.gmra.mrb[68].mxu0 %v1621_v14 }
  0xe3   :  { %1418 = vmatmul.mubr.bf16.gmra.mrb[68].mxu1 %v1623_v15 }
 0x12d   :  { %v1794_v16 = vpop.f32.mrb[0].mxu0 }
 0x12e   :  { %v1864_v17 = vpop.f32.mrb[0].mxu1  ;;  %v1795_v19 = vpop.f32.mrb[1].mxu0 }
 0x12f   :  { %v1796_v20 = vadd.f32 %v1795_v19, %v1794_v16  ;;  %v1865_v21 = vpop.f32.mrb[1].mxu1  ;;  %v1797_v22 = vpop.f32.mrb[2].mxu0 }
 0x130   :  { %v1866_v23 = vadd.f32 %v1865_v21, %v1864_v17  ;;  %v1867_v24 = vpop.f32.mrb[2].mxu1  ;;  %v1798_v25 = vpop.f32.mrb[3].mxu0 }
 0x131   :  { %v1041_v26 = vadd.f32 %v1796_v20, %v2291_v18  ;;  %v1799_v27 = vadd.f32 %v1798_v25, %v1797_v22  ;;  %v1868_v28 = vpop.f32.mrb[3].mxu1 }
 0x132   :  { %v1869_v29 = vadd.f32 %v1868_v28, %v1867_v24 }
 0x133   :  { %v2294_v30 = vadd.f32 %v1866_v23, %v1041_v26  ;;  %v1044_v31 = vadd.f32 %v1799_v27, %v2291_v18 }
 0x135   :  { %v2297_v32 = vadd.f32 %v1869_v29, %v1044_v31  ;;  %v1800_v33 = vpop.f32.mrb[4].mxu0 }
 0x136   :  { %v1870_v34 = vpop.f32.mrb[4].mxu1  ;;  %v1801_v35 = vpop.f32.mrb[5].mxu0 }
 0x137   :  { %v1802_v36 = vadd.f32 %v1801_v35, %v1800_v33  ;;  %v1871_v37 = vpop.f32.mrb[5].mxu1  ;;  %v1803_v38 = vpop.f32.mrb[6].mxu0 }
 0x138   :  { %v1872_v39 = vadd.f32 %v1871_v37, %v1870_v34  ;;  %v1873_v40 = vpop.f32.mrb[6].mxu1  ;;  %v1804_v41 = vpop.f32.mrb[7].mxu0 }
 0x139   :  { %v1049_v42 = vadd.f32 %v1802_v36, %v2291_v18  ;;  %v1805_v43 = vadd.f32 %v1804_v41, %v1803_v38  ;;  %v1874_v44 = vpop.f32.mrb[7].mxu1 }
 0x13a   :  { %v1875_v45 = vadd.f32 %v1874_v44, %v1873_v40 }
 0x13b   :  { %v2300_v46 = vadd.f32 %v1872_v39, %v1049_v42  ;;  %v1052_v47 = vadd.f32 %v1805_v43, %v2291_v18 }
 0x13d   :  { %v2303_v48 = vadd.f32 %v1875_v45, %v1052_v47  ;;  %v1806_v49 = vpop.f32.mrb[8].mxu0 }
 0x13e   :  { %v1876_v50 = vpop.f32.mrb[8].mxu1  ;;  %v1807_v51 = vpop.f32.mrb[9].mxu0 }
 0x13f   :  { %v1808_v52 = vadd.f32 %v1807_v51, %v1806_v49  ;;  %v1877_v53 = vpop.f32.mrb[9].mxu1  ;;  %v1809_v54 = vpop.f32.mrb[10].mxu0 }
 0x140   :  { %v1878_v55 = vadd.f32 %v1877_v53, %v1876_v50  ;;  %v1879_v56 = vpop.f32.mrb[10].mxu1  ;;  %v1810_v57 = vpop.f32.mrb[11].mxu0 }
 0x141   :  { %v1057_v58 = vadd.f32 %v1808_v52, %v2291_v18  ;;  %v1811_v59 = vadd.f32 %v1810_v57, %v1809_v54  ;;  %v1880_v60 = vpop.f32.mrb[11].mxu1 }
 0x142   :  { %v1881_v61 = vadd.f32 %v1880_v60, %v1879_v56 }
 0x143   :  { %v2306_v62 = vadd.f32 %v1878_v55, %v1057_v58  ;;  %v1060_v63 = vadd.f32 %v1811_v59, %v2291_v18 }
 0x145   :  { %v2309_v0 = vadd.f32 %v1881_v61, %v1060_v63  ;;  %v1812_v1 = vpop.f32.mrb[12].mxu0 }
 0x146   :  { %v1882_v2 = vpop.f32.mrb[12].mxu1  ;;  %v1813_v3 = vpop.f32.mrb[13].mxu0 }
 0x147   :  { %v1814_v4 = vadd.f32 %v1813_v3, %v1812_v1  ;;  %v1883_v5 = vpop.f32.mrb[13].mxu1  ;;  %v1815_v6 = vpop.f32.mrb[14].mxu0 }
 0x148   :  { %v1884_v7 = vadd.f32 %v1883_v5, %v1882_v2  ;;  %v1885_v8 = vpop.f32.mrb[14].mxu1  ;;  %v1816_v9 = vpop.f32.mrb[15].mxu0 }
 0x149   :  { %v1065_v10 = vadd.f32 %v1814_v4, %v2291_v18  ;;  %v1817_v11 = vadd.f32 %v1816_v9, %v1815_v6  ;;  %v1886_v12 = vpop.f32.mrb[15].mxu1 }
 0x14a   :  { %v1887_v13 = vadd.f32 %v1886_v12, %v1885_v8 }
 0x14b   :  { %v2312_v14 = vadd.f32 %v1884_v7, %v1065_v10  ;;  %v1068_v15 = vadd.f32 %v1817_v11, %v2291_v18 }
 0x14d   :  { %v2315_v16 = vadd.f32 %v1887_v13, %v1068_v15  ;;  %v1818_v17 = vpop.f32.mrb[16].mxu0 }
 0x14e   :  { %v1888_v19 = vpop.f32.mrb[16].mxu1  ;;  %v1819_v20 = vpop.f32.mrb[17].mxu0 }
 0x14f   :  { %v1820_v21 = vadd.f32 %v1819_v20, %v1818_v17  ;;  %v1889_v22 = vpop.f32.mrb[17].mxu1  ;;  %v1821_v23 = vpop.f32.mrb[18].mxu0 }
 0x150   :  { %v1890_v24 = vadd.f32 %v1889_v22, %v1888_v19  ;;  %v1891_v25 = vpop.f32.mrb[18].mxu1  ;;  %v1822_v26 = vpop.f32.mrb[19].mxu0 }
 0x151   :  { %v1073_v27 = vadd.f32 %v1820_v21, %v2291_v18  ;;  %v1823_v28 = vadd.f32 %v1822_v26, %v1821_v23  ;;  %v1892_v29 = vpop.f32.mrb[19].mxu1 }
 0x152   :  { %v1893_v31 = vadd.f32 %v1892_v29, %v1891_v25 }
 0x153   :  { %v2318_v33 = vadd.f32 %v1890_v24, %v1073_v27  ;;  %v1076_v34 = vadd.f32 %v1823_v28, %v2291_v18 }
 0x155   :  { %v2321_v35 = vadd.f32 %v1893_v31, %v1076_v34  ;;  %v1824_v36 = vpop.f32.mrb[20].mxu0 }
 0x156   :  { %v1894_v37 = vpop.f32.mrb[20].mxu1  ;;  %v1825_v38 = vpop.f32.mrb[21].mxu0 }
 0x157   :  { %v1826_v39 = vadd.f32 %v1825_v38, %v1824_v36  ;;  %v1895_v40 = vpop.f32.mrb[21].mxu1  ;;  %v1827_v41 = vpop.f32.mrb[22].mxu0 }
 0x158   :  { %v1896_v42 = vadd.f32 %v1895_v40, %v1894_v37  ;;  %v1897_v43 = vpop.f32.mrb[22].mxu1  ;;  %v1828_v44 = vpop.f32.mrb[23].mxu0 }
 0x159   :  { %v1081_v45 = vadd.f32 %v1826_v39, %v2291_v18  ;;  %v1829_v47 = vadd.f32 %v1828_v44, %v1827_v41  ;;  %v1898_v49 = vpop.f32.mrb[23].mxu1 }
 0x15a   :  { %v1899_v50 = vadd.f32 %v1898_v49, %v1897_v43 }
 0x15b   :  { %v2324_v51 = vadd.f32 %v1896_v42, %v1081_v45  ;;  %v1084_v52 = vadd.f32 %v1829_v47, %v2291_v18 }
 0x15d   :  { %v2327_v53 = vadd.f32 %v1899_v50, %v1084_v52  ;;  %v1830_v54 = vpop.f32.mrb[24].mxu0 }
 0x15e   :  { %v1900_v55 = vpop.f32.mrb[24].mxu1  ;;  %v1831_v56 = vpop.f32.mrb[25].mxu0 }
 0x15f   :  { %v1832_v57 = vadd.f32 %v1831_v56, %v1830_v54  ;;  %v1901_v58 = vpop.f32.mrb[25].mxu1  ;;  %v1833_v59 = vpop.f32.mrb[26].mxu0 }
 0x160   :  { %v1902_v60 = vadd.f32 %v1901_v58, %v1900_v55  ;;  %v1903_v61 = vpop.f32.mrb[26].mxu1  ;;  %v1834_v63 = vpop.f32.mrb[27].mxu0 }
 0x161   :  { %v1089_v1 = vadd.f32 %v1832_v57, %v2291_v18  ;;  %v1835_v2 = vadd.f32 %v1834_v63, %v1833_v59  ;;  %v1904_v3 = vpop.f32.mrb[27].mxu1 }
 0x162   :  { %v1905_v4 = vadd.f32 %v1904_v3, %v1903_v61 }
 0x163   :  { %v2330_v5 = vadd.f32 %v1902_v60, %v1089_v1  ;;  %v1092_v6 = vadd.f32 %v1835_v2, %v2291_v18 }
 0x165   :  { %v2333_v7 = vadd.f32 %v1905_v4, %v1092_v6  ;;  %v1836_v8 = vpop.f32.mrb[28].mxu0 }
 0x166   :  { %v1906_v9 = vpop.f32.mrb[28].mxu1  ;;  %v1837_v10 = vpop.f32.mrb[29].mxu0 }
 0x167   :  { %v1838_v11 = vadd.f32 %v1837_v10, %v1836_v8  ;;  %v1907_v12 = vpop.f32.mrb[29].mxu1  ;;  %v1839_v13 = vpop.f32.mrb[30].mxu0 }
 0x168   :  { %v1908_v15 = vadd.f32 %v1907_v12, %v1906_v9  ;;  %v1909_v17 = vpop.f32.mrb[30].mxu1  ;;  %v1840_v19 = vpop.f32.mrb[31].mxu0 }
 0x169   :  { %v1097_v20 = vadd.f32 %v1838_v11, %v2291_v18  ;;  %v1841_v21 = vadd.f32 %v1840_v19, %v1839_v13  ;;  %v1910_v22 = vpop.f32.mrb[31].mxu1 }
 0x16a   :  { %v1911_v23 = vadd.f32 %v1910_v22, %v1909_v17 }
 0x16b   :  { %v2336_v24 = vadd.f32 %v1908_v15, %v1097_v20  ;;  %v1100_v25 = vadd.f32 %v1841_v21, %v2291_v18 }
 0x16d   :  { %v2339_v26 = vadd.f32 %v1911_v23, %v1100_v25  ;;  %v1842_v27 = vpop.f32.mrb[32].mxu0 }
 0x16e   :  { %v1912_v28 = vpop.f32.mrb[32].mxu1  ;;  %v1843_v29 = vpop.f32.mrb[33].mxu0 }
 0x16f   :  { %v1844_v31 = vadd.f32 %v1843_v29, %v1842_v27  ;;  %v1913_v34 = vpop.f32.mrb[33].mxu1  ;;  %v1845_v36 = vpop.f32.mrb[34].mxu0 }
 0x170   :  { %v1914_v37 = vadd.f32 %v1913_v34, %v1912_v28  ;;  %v1915_v38 = vpop.f32.mrb[34].mxu1  ;;  %v1846_v39 = vpop.f32.mrb[35].mxu0 }
 0x171   :  { %v1105_v40 = vadd.f32 %v1844_v31, %v2291_v18  ;;  %v1847_v41 = vadd.f32 %v1846_v39, %v1845_v36  ;;  %v1916_v42 = vpop.f32.mrb[35].mxu1 }
 0x172   :  { %v1917_v43 = vadd.f32 %v1916_v42, %v1915_v38 }
 0x173   :  { %v2342_v44 = vadd.f32 %v1914_v37, %v1105_v40  ;;  %v1108_v45 = vadd.f32 %v1847_v41, %v2291_v18 }
 0x175   :  { %v2345_v47 = vadd.f32 %v1917_v43, %v1108_v45  ;;  %v1934_v49 = vpop.f32.mrb[36].mxu0 }
 0x176   :  { %v2004_v50 = vpop.f32.mrb[36].mxu1  ;;  %v1935_v52 = vpop.f32.mrb[37].mxu0 }
 0x177   :  { %v1936_v54 = vadd.f32 %v1935_v52, %v1934_v49  ;;  %v2005_v55 = vpop.f32.mrb[37].mxu1  ;;  %v1937_v56 = vpop.f32.mrb[38].mxu0 }
 0x178   :  { %v2006_v57 = vadd.f32 %v2005_v55, %v2004_v50  ;;  %v2007_v58 = vpop.f32.mrb[38].mxu1  ;;  %v1938_v59 = vpop.f32.mrb[39].mxu0 }
 0x179   :  { %v1251_v60 = vadd.f32 %v1936_v54, %v2294_v30  ;;  %v1939_v61 = vadd.f32 %v1938_v59, %v1937_v56  ;;  %v2008_v63 = vpop.f32.mrb[39].mxu1 }
 0x17a   :  { %v2009_v1 = vadd.f32 %v2008_v63, %v2007_v58 }
 0x17b   :  { %v1356_v2 = vadd.f32 %v2006_v57, %v1251_v60  ;;  %v1254_v3 = vadd.f32 %v1939_v61, %v2297_v32 }
 0x17d   :  { %v1359_v18 = vadd.f32 %v2009_v1, %v1254_v3  ;;  %v1940_v4 = vpop.f32.mrb[40].mxu0  ;;  %v1426_v9 = vmax.f32 %v1356_v2, 0.0 }
 0x17e   :  { %v2010_v6 = vpop.f32.mrb[40].mxu1  ;;  %v1941_v8 = vpop.f32.mrb[41].mxu0 }
 0x17f   :  { %v1427_v10 = vmax.f32 %v1359_v18, 0.0  ;;  %v1942_v11 = vadd.f32 %v1941_v8, %v1940_v4  ;;  %v2011_v12 = vpop.f32.mrb[41].mxu1  ;;  %v1943_v13 = vpop.f32.mrb[42].mxu0 }
 0x180   :  { %v2012_v15 = vadd.f32 %v2011_v12, %v2010_v6  ;;  %v2013_v17 = vpop.f32.mrb[42].mxu1  ;;  %v1944_v19 = vpop.f32.mrb[43].mxu0 }
 0x181   :  { %v1728_v20 = vpack.c.bf16 %v1427_v10, %v1426_v9  ;;  %v1259_v30 = vadd.f32 %v1942_v11, %v2300_v46  ;;  %v1945_v21 = vadd.f32 %v1944_v19, %v1943_v13  ;;  %v2014_v22 = vpop.f32.mrb[43].mxu1 }
 0x182   :  { %v2015_v23 = vadd.f32 %v2014_v22, %v2013_v17 }
 0x183   :  { %1729 = vst [vmem:[#allocation8] sm:$0xff] %v1728_v20   ;;  %v1364_v32 = vadd.f32 %v2012_v15, %v1259_v30  ;;  %v1262_v25 = vadd.f32 %v1945_v21, %v2303_v48 }
 0x185   :  { %v1367_v27 = vadd.f32 %v2015_v23, %v1262_v25  ;;  %v1946_v28 = vpop.f32.mrb[44].mxu0  ;;  %v1428_v34 = vmax.f32 %v1364_v32, 0.0 }
 0x186   :  { %v2016_v29 = vpop.f32.mrb[44].mxu1  ;;  %v1947_v31 = vpop.f32.mrb[45].mxu0 }
 0x187   :  { %v1429_v36 = vmax.f32 %v1367_v27, 0.0  ;;  %v1948_v37 = vadd.f32 %v1947_v31, %v1946_v28  ;;  %v2017_v38 = vpop.f32.mrb[45].mxu1  ;;  %v1949_v39 = vpop.f32.mrb[46].mxu0 }
 0x188   :  { %v2018_v40 = vadd.f32 %v2017_v38, %v2016_v29  ;;  %v2019_v41 = vpop.f32.mrb[46].mxu1  ;;  %v1950_v42 = vpop.f32.mrb[47].mxu0 }
 0x189   :  { %v1733_v46 = vpack.c.bf16 %v1429_v36, %v1428_v34  ;;  %v1267_v43 = vadd.f32 %v1948_v37, %v2306_v62  ;;  %v1951_v45 = vadd.f32 %v1950_v42, %v1949_v39  ;;  %v2020_v49 = vpop.f32.mrb[47].mxu1 }
 0x18a   :  { %v2021_v50 = vadd.f32 %v2020_v49, %v2019_v41 }
 0x18b   :  { %1770 = vst [vmem:[#allocation8 + $0x8] sm:$0xff] %v1733_v46   ;;  %v1372_v48 = vadd.f32 %v2018_v40, %v1267_v43  ;;  %v1270_v52 = vadd.f32 %v1951_v45, %v2309_v0 }
 0x18d   :  { %v1375_v54 = vadd.f32 %v2021_v50, %v1270_v52  ;;  %v1952_v55 = vpop.f32.mrb[48].mxu0  ;;  %v1430_v58 = vmax.f32 %v1372_v48, 0.0 }
 0x18e   :  { %v2022_v56 = vpop.f32.mrb[48].mxu1  ;;  %v1953_v57 = vpop.f32.mrb[49].mxu0 }
 0x18f   :  { %v1431_v59 = vmax.f32 %v1375_v54, 0.0  ;;  %v1954_v60 = vadd.f32 %v1953_v57, %v1952_v55  ;;  %v2023_v61 = vpop.f32.mrb[49].mxu1  ;;  %v1955_v63 = vpop.f32.mrb[50].mxu0 }
 0x190   :  { %v2024_v1 = vadd.f32 %v2023_v61, %v2022_v56  ;;  %v2025_v2 = vpop.f32.mrb[50].mxu1  ;;  %v1956_v3 = vpop.f32.mrb[51].mxu0 }
 0x191   :  { %v1738_v62 = vpack.c.bf16 %v1431_v59, %v1430_v58  ;;  %v1275_v18 = vadd.f32 %v1954_v60, %v2312_v14  ;;  %v1957_v4 = vadd.f32 %v1956_v3, %v1955_v63  ;;  %v2026_v6 = vpop.f32.mrb[51].mxu1 }
 0x192   :  { %v2027_v8 = vadd.f32 %v2026_v6, %v2025_v2 }
 0x193   :  { %1771 = vst [vmem:[#allocation8 + $0x10] sm:$0xff] %v1738_v62   ;;  %v1380_v0 = vadd.f32 %v2024_v1, %v1275_v18  ;;  %v1278_v9 = vadd.f32 %v1957_v4, %v2315_v16 }
 0x195   :  { %v1383_v10 = vadd.f32 %v2027_v8, %v1278_v9  ;;  %v1958_v11 = vpop.f32.mrb[52].mxu0  ;;  %v1432_v15 = vmax.f32 %v1380_v0, 0.0 }
 0x196   :  { %v2028_v12 = vpop.f32.mrb[52].mxu1  ;;  %v1959_v13 = vpop.f32.mrb[53].mxu0 }
 0x197   :  { %v1433_v17 = vmax.f32 %v1383_v10, 0.0  ;;  %v1960_v19 = vadd.f32 %v1959_v13, %v1958_v11  ;;  %v2029_v20 = vpop.f32.mrb[53].mxu1  ;;  %v1961_v30 = vpop.f32.mrb[54].mxu0 }
 0x198   :  { %v2030_v21 = vadd.f32 %v2029_v20, %v2028_v12  ;;  %v2031_v22 = vpop.f32.mrb[54].mxu1  ;;  %v1962_v23 = vpop.f32.mrb[55].mxu0 }
 0x199   :  { %v1743_v14 = vpack.c.bf16 %v1433_v17, %v1432_v15  ;;  %v1283_v32 = vadd.f32 %v1960_v19, %v2318_v33  ;;  %v1963_v25 = vadd.f32 %v1962_v23, %v1961_v30  ;;  %v2032_v27 = vpop.f32.mrb[55].mxu1 }
 0x19a   :  { %v2033_v28 = vadd.f32 %v2032_v27, %v2031_v22 }
 0x19b   :  { %1772 = vst [vmem:[#allocation8 + $0x18] sm:$0xff] %v1743_v14   ;;  %v1388_v16 = vadd.f32 %v2030_v21, %v1283_v32  ;;  %v1286_v29 = vadd.f32 %v1963_v25, %v2321_v35 }
 0x19d   :  { %v1391_v31 = vadd.f32 %v2033_v28, %v1286_v29  ;;  %v1964_v34 = vpop.f32.mrb[56].mxu0  ;;  %v1434_v38 = vmax.f32 %v1388_v16, 0.0 }
 0x19e   :  { %v2034_v36 = vpop.f32.mrb[56].mxu1  ;;  %v1965_v37 = vpop.f32.mrb[57].mxu0 }
 0x19f   :  { %v1435_v39 = vmax.f32 %v1391_v31, 0.0  ;;  %v1966_v40 = vadd.f32 %v1965_v37, %v1964_v34  ;;  %v2035_v41 = vpop.f32.mrb[57].mxu1  ;;  %v1967_v42 = vpop.f32.mrb[58].mxu0 }
 0x1a0   :  { %v2036_v46 = vadd.f32 %v2035_v41, %v2034_v36  ;;  %v2037_v43 = vpop.f32.mrb[58].mxu1  ;;  %v1968_v45 = vpop.f32.mrb[59].mxu0 }
 0x1a1   :  { %v1748_v33 = vpack.c.bf16 %v1435_v39, %v1434_v38  ;;  %v1291_v49 = vadd.f32 %v1966_v40, %v2324_v51  ;;  %v1969_v50 = vadd.f32 %v1968_v45, %v1967_v42  ;;  %v2038_v48 = vpop.f32.mrb[59].mxu1 }
 0x1a2   :  { %v2039_v52 = vadd.f32 %v2038_v48, %v2037_v43 }
 0x1a3   :  { %1773 = vst [vmem:[#allocation8 + $0x20] sm:$0xff] %v1748_v33   ;;  %v1396_v35 = vadd.f32 %v2036_v46, %v1291_v49  ;;  %v1294_v54 = vadd.f32 %v1969_v50, %v2327_v53 }
 0x1a5   :  { %v1399_v55 = vadd.f32 %v2039_v52, %v1294_v54  ;;  %v1970_v56 = vpop.f32.mrb[60].mxu0  ;;  %v1436_v59 = vmax.f32 %v1396_v35, 0.0 }
 0x1a6   :  { %v2040_v57 = vpop.f32.mrb[60].mxu1  ;;  %v1971_v58 = vpop.f32.mrb[61].mxu0 }
 0x1a7   :  { %v1437_v60 = vmax.f32 %v1399_v55, 0.0  ;;  %v1972_v61 = vadd.f32 %v1971_v58, %v1970_v56  ;;  %v2041_v63 = vpop.f32.mrb[61].mxu1  ;;  %v1973_v1 = vpop.f32.mrb[62].mxu0 }
 0x1a8   :  { %v2042_v2 = vadd.f32 %v2041_v63, %v2040_v57  ;;  %v2043_v3 = vpop.f32.mrb[62].mxu1  ;;  %v1974_v62 = vpop.f32.mrb[63].mxu0 }
 0x1a9   :  { %v1753_v51 = vpack.c.bf16 %v1437_v60, %v1436_v59  ;;  %v1299_v18 = vadd.f32 %v1972_v61, %v2330_v5  ;;  %v1975_v4 = vadd.f32 %v1974_v62, %v1973_v1  ;;  %v2044_v6 = vpop.f32.mrb[63].mxu1 }
 0x1aa   :  { %v2045_v8 = vadd.f32 %v2044_v6, %v2043_v3 }
 0x1ab   :  { %1774 = vst [vmem:[#allocation8 + $0x28] sm:$0xff] %v1753_v51   ;;  %v1404_v53 = vadd.f32 %v2042_v2, %v1299_v18  ;;  %v1302_v0 = vadd.f32 %v1975_v4, %v2333_v7 }
 0x1ad   :  { %v1407_v9 = vadd.f32 %v2045_v8, %v1302_v0  ;;  %v1976_v10 = vpop.f32.mrb[64].mxu0  ;;  %v1438_v13 = vmax.f32 %v1404_v53, 0.0 }
 0x1ae   :  { %v2046_v11 = vpop.f32.mrb[64].mxu1  ;;  %v1977_v12 = vpop.f32.mrb[65].mxu0 }
 0x1af   :  { %v1439_v15 = vmax.f32 %v1407_v9, 0.0  ;;  %v1978_v17 = vadd.f32 %v1977_v12, %v1976_v10  ;;  %v2047_v19 = vpop.f32.mrb[65].mxu1  ;;  %v1979_v20 = vpop.f32.mrb[66].mxu0 }
 0x1b0   :  { %v2048_v30 = vadd.f32 %v2047_v19, %v2046_v11  ;;  %v2049_v21 = vpop.f32.mrb[66].mxu1  ;;  %v1980_v22 = vpop.f32.mrb[67].mxu0 }
 0x1b1   :  { %v1758_v5 = vpack.c.bf16 %v1439_v15, %v1438_v13  ;;  %v1307_v23 = vadd.f32 %v1978_v17, %v2336_v24  ;;  %v1981_v14 = vadd.f32 %v1980_v22, %v1979_v20  ;;  %v2050_v32 = vpop.f32.mrb[67].mxu1 }
 0x1b2   :  { %v2051_v25 = vadd.f32 %v2050_v32, %v2049_v21 }
 0x1b3   :  { %1775 = vst [vmem:[#allocation8 + $0x30] sm:$0xff] %v1758_v5   ;;  %v1412_v7 = vadd.f32 %v2048_v30, %v1307_v23  ;;  %v1310_v27 = vadd.f32 %v1981_v14, %v2339_v26 }
 0x1b5   :  { %v1415_v28 = vadd.f32 %v2051_v25, %v1310_v27  ;;  %v1982_v16 = vpop.f32.mrb[68].mxu0  ;;  %v1440_v34 = vmax.f32 %v1412_v7, 0.0 }
 0x1b6   :  { %v2052_v29 = vpop.f32.mrb[68].mxu1  ;;  %v1983_v31 = vpop.f32.mrb[69].mxu0 }
 0x1b7   :  { %v1441_v36 = vmax.f32 %v1415_v28, 0.0  ;;  %v1984_v37 = vadd.f32 %v1983_v31, %v1982_v16  ;;  %v2053_v38 = vpop.f32.mrb[69].mxu1  ;;  %v1985_v39 = vpop.f32.mrb[70].mxu0 }
 0x1b8   :  { %v2054_v40 = vadd.f32 %v2053_v38, %v2052_v29  ;;  %v2055_v41 = vpop.f32.mrb[70].mxu1  ;;  %v1986_v42 = vpop.f32.mrb[71].mxu0 }
 0x1b9   :  { %v1763_v24 = vpack.c.bf16 %v1441_v36, %v1440_v34  ;;  %v1315_v46 = vadd.f32 %v1984_v37, %v2342_v44  ;;  %v1987_v43 = vadd.f32 %v1986_v42, %v1985_v39  ;;  %v2056_v45 = vpop.f32.mrb[71].mxu1 }
 0x1ba   :  { %v2057_v33 = vadd.f32 %v2056_v45, %v2055_v41 }
 0x1bb   :  { %1776 = vst [vmem:[#allocation8 + $0x38] sm:$0xff] %v1763_v24   ;;  %v1420_v26 = vadd.f32 %v2054_v40, %v1315_v46  ;;  %v1318_v49 = vadd.f32 %v1987_v43, %v2345_v47 }
 0x1bd   :  { %v1423_v50 = vadd.f32 %v2057_v33, %v1318_v49  ;;  %v1442_v48 = vmax.f32 %v1420_v26, 0.0 }
 0x1bf   :  { %v1443_v52 = vmax.f32 %v1423_v50, 0.0 }
 0x1c1   :  { %v1768_v35 = vpack.c.bf16 %v1443_v52, %v1442_v48 }
 0x1c3   :  { %1777 = vst [vmem:[#allocation8 + $0x40] sm:$0xff] %v1768_v35  }
 0x1c4   :  { %2207 = shalt.err (!%p2204_p0)
}
 0x1c5   :  { %s2208_s30 = scalar_lea.hbm %s2383_s3, 1152 }
 0x1c6   :  { %p2209_p1 = scmp.ne.s32.totalorder %s2383_s3, %s2208_s30  ;;  %p2212_p2 = scmp.lt.u32.totalorder %s2208_s30, %s2383_s3 }
 0x1c8   :  { %p2214_p3 = pnand %p2212_p2, %p2209_p1 }
 0x1ca   :  { %2217 = shalt.err (!%p2214_p3)
}
 0x1cb   :  { %1545 = dma.vmem_to_hbm [thread:$0]  %s1540_s26, 1152, %s2383_s3, [#allocation4], %s2225_s22, %s2225_s22, %s2226_s23  }
 0x1cc   :  { %2222 = dma.done.wait [#allocation4], 1152  }
 0x1cd   :  { %2223 = vsyncadd [#allocation4], 4294966144 }
 0x1ce   :  { %1549 = vsyncpa [#allocation3], 1 }
 0x1cf   :  { %1550 = vsyncpa [#allocation6], 1 }
 0x1d0   :  { %1551 = vsyncpa [#allocation4], 1 }

// kernel: squeeze.2
= control target key start
LH: loop header
LB: loop body
LE: loop exit
PB: predicated region body
PF: predicated region fallthrough
CT: control target
= control target key end

     0   :  { %s85_s0 = inlined_call_operand.vmem [shape: f32[4], index: 0, kind: input, shape index: {}]   ;;  %s86_s1 = inlined_call_operand.hbm [shape: f32[2,2], index: 1, kind: output, shape index: {}]  }
   0x1   :  { %v5_v0 = vld [vmem:[%s85_s0] sm:$0x1] }
   0x2   :  { %2 = vsyncpa [#allocation1], 0  ;;  %6 = vst [vmem:[#allocation3] sm:$0x1] %v5_v0  ;;  %vm8_vm0 = vcmask 15360   ;;  %s58_s0 = smov 126  }
   0x3   :  { %s59_s8 = smov [#allocation0]  }
   0x4   :  { %s26_s9 = sshll.u32 %s59_s8, 4  ;;  %s27_s9 = int_to_ptr.vmem [resolvable:$true] %s26_s9 }
   0x5   :  { %s34_s10 = scalar_lea.vmem %s27_s9, 32  ;;  %p39_p1 = scmp.lt.s32.totalorder %s27_s9, %s27_s9 }
   0x6   :  { %p35_p0 = scmp.ne.s32.totalorder %s27_s9, %s34_s10  ;;  %p40_p2 = scmp.lt.s32.totalorder %s34_s10, %s34_s10 }
   0x8   :  { %p41_p3 = por %p40_p2, %p39_p1 }
   0x9   :  { %v10_v1 = vld [vmem:[#allocation3] sm:$0x1]  }
   0xa   :  { %v7_v2 = vld [vmem:[#allocation3] sm:$0x1]   ;;  %11 = vrot.lane.b32.xlu0 %v10_v1, %s58_s0  ;;  %p42_p4 = pnand %p41_p3, %p35_p0 }
   0xb   :  { %9 = vst.msk [vmem:[#allocation2] sm:$0x1] %vm8_vm0, %v7_v2  }
  0x7c   :  { %v12_v3 = vpop.permute.xlu0 %11  }
  0x7d   :  { %15 = vst.msk [vmem:[#allocation2 + $0x1] sm:$0x1] %vm8_vm0, %v12_v3  }
  0x84   :  { %v19_v4 = vld [vmem:[#allocation2] sm:$0x3] }
  0x85   :  { %21 = vst [vmem:[#allocation0] sm:$0x3] %v19_v4 }
  0x86   :  { %45 = shalt.err (!%p42_p4)
}
  0x87   :  { %s46_s13 = scalar_lea.hbm %s86_s1, 32 }
  0x88   :  { %p47_p5 = scmp.ne.s32.totalorder %s86_s1, %s46_s13  ;;  %p50_p6 = scmp.lt.u32.totalorder %s46_s13, %s86_s1 }
  0x8a   :  { %p52_p7 = pnand %p50_p6, %p47_p5 }
  0x8c   :  { %55 = shalt.err (!%p52_p7)
}
  0x8d   :  { %29 = dma.vmem_to_hbm [thread:$0]  %s27_s9, 32, %s86_s1, [#allocation1]  }
  0x8e   :  { %56 = dma.done.wait [#allocation1], 32  }
  0x8f   :  { %57 = vsyncadd [#allocation1], 4294967264 }
  0x90   :  { %31 = vsyncpa [#allocation1], 1 }

// kernel: _lambda_.7
= control target key start
LH: loop header
LB: loop body
LE: loop exit
PB: predicated region body
PF: predicated region fallthrough
CT: control target
= control target key end

     0   :  { %18 = vsyncpa [#allocation3], 0  ;;  %s10868_s0 = inlined_call_operand.hbm [shape: bf16[16,4608], index: 0, kind: input, shape index: {}]   ;;  %s10869_s1 = inlined_call_operand.hbm [shape: bf16[4608,256], index: 1, kind: input, shape index: {}]   ;;  %s10870_s2 = inlined_call_operand.hbm [shape: f32[1,256], index: 2, kind: input, shape index: {}]   ;;  %s10871_s3 = inlined_call_operand.hbm [shape: bf16[256,512], index: 3, kind: input, shape index: {}]   ;;  %s10872_s4 = inlined_call_operand.hbm [shape: f32[1,512], index: 4, kind: input, shape index: {}]   ;;  %s10873_s5 = inlined_call_operand.hbm [shape: bf16[512,1024], index: 5, kind: input, shape index: {}]   ;;  %s10874_s6 = inlined_call_operand.hbm [shape: f32[1,1024], index: 6, kind: input, shape index: {}]   ;;  %s10875_s7 = inlined_call_operand.hbm [shape: bf16[512,128], index: 7, kind: input, shape index: {}]   ;;  %s10876_s8 = inlined_call_operand.hbm [shape: f32[1,128], index: 8, kind: input, shape index: {}]   ;;  %s10877_s9 = inlined_call_operand.hbm [shape: bf16[512,128], index: 9, kind: input, shape index: {}]   ;;  %s10878_s10 = inlined_call_operand.hbm [shape: f32[1,128], index: 10, kind: input, shape index: {}]   ;;  %s10879_s11 = inlined_call_operand.hbm [shape: f32[16,128], index: 11, kind: output, shape index: {0}]   ;;  %s10880_s12 = inlined_call_operand.hbm [shape: f32[16,128], index: 12, kind: output, shape index: {1}]  }
   0x1   :  { %19 = vsyncpa [#allocation6], 0 }
   0x2   :  { %20 = vsyncpa [#allocation9], 0 }
   0x3   :  { %21 = vsyncpa [#allocation12], 0 }
   0x4   :  { %22 = vsyncpa [#allocation15], 0 }
   0x5   :  { %23 = vsyncpa [#allocation18], 0 }
   0x6   :  { %24 = vsyncpa [#allocation4], 0 }
   0x7   :  { %25 = vsyncpa [#allocation22], 0  ;;  %s10437_s21 = smov [#allocation5]   ;;  %s10135_s25 = scalar_lea.hbm %s10869_s1, 73728 }
   0x8   :  { %s43_s22 = sshll.u32 %s10437_s21, 4  ;;  %p10136_p0 = scmp.ne.s32.totalorder %s10869_s1, %s10135_s25  ;;  %s44_s22 = int_to_ptr.vmem [resolvable:$true] %s43_s22 }
   0x9   :  { %p10139_p1 = scmp.lt.u32.totalorder %s10135_s25, %s10869_s1 }
   0xb   :  { %p10141_p2 = pnand %p10139_p1, %p10136_p0 }
   0xd   :  { %10144 = shalt.err (!%p10141_p2)
}
   0xe   :  { %s10145_s30 = scalar_lea.vmem %s44_s22, 73728  ;;  %p10150_p4 = scmp.lt.s32.totalorder %s44_s22, %s44_s22 }
   0xf   :  { %p10146_p3 = scmp.ne.s32.totalorder %s44_s22, %s10145_s30  ;;  %p10151_p5 = scmp.lt.s32.totalorder %s10145_s30, %s10145_s30 }
  0x11   :  { %p10152_p6 = por %p10151_p5, %p10150_p4 }
  0x13   :  { %p10153_p7 = pnand %p10152_p6, %p10146_p3 }
  0x15   :  { %10156 = shalt.err (!%p10153_p7)
}
  0x16   :  { %s10438_s13 = smov 128   ;;  %s10439_s14 = smov 8  }
  0x17   :  { %49 = dma.hbm_to_vmem [thread:$0]  %s10869_s1, 73728, %s44_s22, [#allocation6], %s10438_s13, %s10438_s13, %s10439_s14  }
  0x18   :  { %s10440_s17 = smov [#allocation8]   ;;  %s10157_s21 = scalar_lea.hbm %s10871_s3, 8192 }
  0x19   :  { %s65_s18 = sshll.u32 %s10440_s17, 4  ;;  %p10158_p8 = scmp.ne.s32.totalorder %s10871_s3, %s10157_s21  ;;  %s66_s18 = int_to_ptr.vmem [resolvable:$true] %s65_s18 }
  0x1a   :  { %p10161_p9 = scmp.lt.u32.totalorder %s10157_s21, %s10871_s3 }
  0x1c   :  { %p10163_p10 = pnand %p10161_p9, %p10158_p8 }
  0x1e   :  { %10166 = shalt.err (!%p10163_p10)
}
  0x1f   :  { %s10167_s27 = scalar_lea.vmem %s66_s18, 8192  ;;  %p10172_p12 = scmp.lt.s32.totalorder %s66_s18, %s66_s18 }
  0x20   :  { %p10168_p11 = scmp.ne.s32.totalorder %s66_s18, %s10167_s27  ;;  %p10173_p13 = scmp.lt.s32.totalorder %s10167_s27, %s10167_s27 }
  0x22   :  { %p10174_p0 = por %p10173_p13, %p10172_p12 }
  0x24   :  { %p10175_p1 = pnand %p10174_p0, %p10168_p11 }
  0x26   :  { %10178 = shalt.err (!%p10175_p1)
}
  0x27   :  { %s10441_s1 = smov 256   ;;  %s10442_s22 = smov 16  }
  0x28   :  { %71 = dma.hbm_to_vmem [thread:$0]  %s10871_s3, 8192, %s66_s18, [#allocation9], %s10441_s1, %s10441_s1, %s10442_s22  }
  0x29   :  { %s10443_s30 = smov [#allocation11]   ;;  %s10179_s19 = scalar_lea.hbm %s10873_s5, 32768 }
  0x2a   :  { %s87_s15 = sshll.u32 %s10443_s30, 4  ;;  %p10180_p2 = scmp.ne.s32.totalorder %s10873_s5, %s10179_s19  ;;  %s88_s15 = int_to_ptr.vmem [resolvable:$true] %s87_s15 }
  0x2b   :  { %p10183_p3 = scmp.lt.u32.totalorder %s10179_s19, %s10873_s5 }
  0x2d   :  { %p10185_p4 = pnand %p10183_p3, %p10180_p2 }
  0x2f   :  { %10188 = shalt.err (!%p10185_p4)
}
  0x30   :  { %s10189_s25 = scalar_lea.vmem %s88_s15, 32768  ;;  %p10194_p6 = scmp.lt.s32.totalorder %s88_s15, %s88_s15 }
  0x31   :  { %p10190_p5 = scmp.ne.s32.totalorder %s88_s15, %s10189_s25  ;;  %p10195_p7 = scmp.lt.s32.totalorder %s10189_s25, %s10189_s25 }
  0x33   :  { %p10196_p8 = por %p10195_p7, %p10194_p6 }
  0x35   :  { %p10197_p9 = pnand %p10196_p8, %p10190_p5 }
  0x37   :  { %10200 = shalt.err (!%p10197_p9)
}
  0x38   :  { %s10444_s3 = smov 512   ;;  %s10445_s18 = smov 32  }
  0x39   :  { %93 = dma.hbm_to_vmem [thread:$0]  %s10873_s5, 32768, %s88_s15, [#allocation12], %s10444_s3, %s10444_s3, %s10445_s18  }
  0x3a   :  { %s10446_s1 = smov [#allocation14]   ;;  %s10201_s30 = scalar_lea.hbm %s10875_s7, 4096 }
  0x3b   :  { %s109_s22 = sshll.u32 %s10446_s1, 4  ;;  %p10202_p10 = scmp.ne.s32.totalorder %s10875_s7, %s10201_s30  ;;  %s110_s22 = int_to_ptr.vmem [resolvable:$true] %s109_s22 }
  0x3c   :  { %p10205_p11 = scmp.lt.u32.totalorder %s10201_s30, %s10875_s7 }
  0x3e   :  { %p10207_p12 = pnand %p10205_p11, %p10202_p10 }
  0x40   :  { %10210 = shalt.err (!%p10207_p12)
}
  0x41   :  { %s10211_s21 = scalar_lea.vmem %s110_s22, 4096  ;;  %p10216_p0 = scmp.lt.s32.totalorder %s110_s22, %s110_s22 }
  0x42   :  { %p10212_p13 = scmp.ne.s32.totalorder %s110_s22, %s10211_s21  ;;  %p10217_p1 = scmp.lt.s32.totalorder %s10211_s21, %s10211_s21 }
  0x44   :  { %p10218_p2 = por %p10217_p1, %p10216_p0 }
  0x46   :  { %p10219_p3 = pnand %p10218_p2, %p10212_p13 }
  0x48   :  { %10222 = shalt.err (!%p10219_p3)
}
  0x49   :  { %s10447_s5 = smov 64   ;;  %s10448_s15 = smov 4  }
  0x4a   :  { %115 = dma.hbm_to_vmem [thread:$0]  %s10875_s7, 4096, %s110_s22, [#allocation15], %s10447_s5, %s10447_s5, %s10448_s15  }
  0x4b   :  { %s10449_s25 = smov [#allocation17]   ;;  %s10450_s18 = smov [#allocation2]  }
  0x4c   :  { %s131_s3 = sshll.u32 %s10449_s25, 4  ;;  %s31_s26 = sshll.u32 %s10450_s18, 4  ;;  %s132_s3 = int_to_ptr.vmem [resolvable:$true] %s131_s3  ;;  %s10576_s26 = int_to_ptr.vmem [resolvable:$true] %s31_s26 }
  0x4d   :  { %s10223_s28 = scalar_lea.hbm %s10877_s9, 4096 }
  0x4e   :  { %p10224_p4 = scmp.ne.s32.totalorder %s10877_s9, %s10223_s28  ;;  %p10227_p5 = scmp.lt.u32.totalorder %s10223_s28, %s10877_s9 }
  0x50   :  { %p10229_p6 = pnand %p10227_p5, %p10224_p4 }
  0x52   :  { %10232 = shalt.err (!%p10229_p6)
}
  0x53   :  { %s10233_s7 = scalar_lea.vmem %s132_s3, 4096  ;;  %p10238_p8 = scmp.lt.s32.totalorder %s132_s3, %s132_s3 }
  0x54   :  { %p10234_p7 = scmp.ne.s32.totalorder %s132_s3, %s10233_s7  ;;  %p10239_p9 = scmp.lt.s32.totalorder %s10233_s7, %s10233_s7 }
  0x56   :  { %p10240_p10 = por %p10239_p9, %p10238_p8 }
  0x58   :  { %p10241_p11 = pnand %p10240_p10, %p10234_p7 }
  0x5a   :  { %10244 = shalt.err (!%p10241_p11)
}
  0x5b   :  { %137 = dma.hbm_to_vmem [thread:$0]  %s10877_s9, 4096, %s132_s3, [#allocation18], %s10447_s5, %s10447_s5, %s10448_s15  }
  0x5c   :  { %s10245_s23 = scalar_lea.hbm %s10868_s0, 4608 }
  0x5d   :  { %p10246_p12 = scmp.ne.s32.totalorder %s10868_s0, %s10245_s23  ;;  %p10249_p13 = scmp.lt.u32.totalorder %s10245_s23, %s10868_s0 }
  0x5f   :  { %p10251_p0 = pnand %p10249_p13, %p10246_p12 }
  0x61   :  { %10254 = shalt.err (!%p10251_p0)
}
  0x62   :  { %s10255_s1 = scalar_lea.vmem %s10576_s26, 4608  ;;  %p10260_p2 = scmp.lt.s32.totalorder %s10576_s26, %s10576_s26 }
  0x63   :  { %p10256_p1 = scmp.ne.s32.totalorder %s10576_s26, %s10255_s1  ;;  %p10261_p3 = scmp.lt.s32.totalorder %s10255_s1, %s10255_s1 }
  0x65   :  { %p10262_p4 = por %p10261_p3, %p10260_p2 }
  0x67   :  { %p10263_p5 = pnand %p10262_p4, %p10256_p1 }
  0x69   :  { %10266 = shalt.err (!%p10263_p5)
}
  0x6a   :  { %s10451_s9 = smov 2304   ;;  %s10452_s5 = smov 144  }
  0x6b   :  { %37 = dma.hbm_to_vmem [thread:$0]  %s10868_s0, 4608, %s10576_s26, [#allocation3], %s10451_s9, %s10451_s9, %s10452_s5  }
  0x6c   :  { %s10453_s28 = smov [#allocation7]   ;;  %s10454_s30 = smov [#allocation10]  }
  0x6d   :  { %s56_s29 = sshll.u32 %s10453_s28, 4  ;;  %s78_s16 = sshll.u32 %s10454_s30, 4  ;;  %s57_s29 = int_to_ptr.vmem [resolvable:$true] %s56_s29  ;;  %s79_s16 = int_to_ptr.vmem [resolvable:$true] %s78_s16 }
  0x6e   :  { %s10267_s22 = scalar_lea.hbm %s10870_s2, 32 }
  0x6f   :  { %p10268_p6 = scmp.ne.s32.totalorder %s10870_s2, %s10267_s22  ;;  %p10271_p7 = scmp.lt.u32.totalorder %s10267_s22, %s10870_s2 }
  0x71   :  { %p10273_p8 = pnand %p10271_p7, %p10268_p6 }
  0x73   :  { %10276 = shalt.err (!%p10273_p8)
}
  0x74   :  { %s10277_s0 = scalar_lea.vmem %s57_s29, 32  ;;  %p10282_p10 = scmp.lt.s32.totalorder %s57_s29, %s57_s29 }
  0x75   :  { %p10278_p9 = scmp.ne.s32.totalorder %s57_s29, %s10277_s0  ;;  %p10283_p11 = scmp.lt.s32.totalorder %s10277_s0, %s10277_s0 }
  0x77   :  { %p10284_p12 = por %p10283_p11, %p10282_p10 }
  0x79   :  { %p10285_p13 = pnand %p10284_p12, %p10278_p9 }
  0x7b   :  { %10288 = shalt.err (!%p10285_p13)
}
  0x7c   :  { %59 = dma.hbm_to_vmem [thread:$0]  %s10870_s2, 32, %s57_s29, [#allocation6]  }
  0x7d   :  { %s10289_s27 = scalar_lea.hbm %s10872_s4, 64 }
  0x7e   :  { %p10290_p0 = scmp.ne.s32.totalorder %s10872_s4, %s10289_s27  ;;  %p10293_p1 = scmp.lt.u32.totalorder %s10289_s27, %s10872_s4 }
  0x80   :  { %p10295_p2 = pnand %p10293_p1, %p10290_p0 }
  0x82   :  { %10298 = shalt.err (!%p10295_p2)
}
  0x83   :  { %s10299_s3 = scalar_lea.vmem %s79_s16, 64  ;;  %p10304_p4 = scmp.lt.s32.totalorder %s79_s16, %s79_s16 }
  0x84   :  { %p10300_p3 = scmp.ne.s32.totalorder %s79_s16, %s10299_s3  ;;  %p10305_p5 = scmp.lt.s32.totalorder %s10299_s3, %s10299_s3 }
  0x86   :  { %p10306_p6 = por %p10305_p5, %p10304_p4 }
  0x88   :  { %p10307_p7 = pnand %p10306_p6, %p10300_p3 }
  0x8a   :  { %10310 = shalt.err (!%p10307_p7)
}
  0x8b   :  { %81 = dma.hbm_to_vmem [thread:$0]  %s10872_s4, 64, %s79_s16, [#allocation9]  }
  0x8c   :  { %s10455_s29 = smov [#allocation13]   ;;  %s10456_s17 = smov [#allocation16]  }
  0x8d   :  { %s100_s30 = sshll.u32 %s10455_s29, 4  ;;  %s122_s7 = sshll.u32 %s10456_s17, 4  ;;  %s101_s30 = int_to_ptr.vmem [resolvable:$true] %s100_s30  ;;  %s123_s7 = int_to_ptr.vmem [resolvable:$true] %s122_s7 }
  0x8e   :  { %s10311_s20 = scalar_lea.hbm %s10874_s6, 128 }
  0x8f   :  { %p10312_p8 = scmp.ne.s32.totalorder %s10874_s6, %s10311_s20  ;;  %p10315_p9 = scmp.lt.u32.totalorder %s10311_s20, %s10874_s6 }
  0x91   :  { %p10317_p10 = pnand %p10315_p9, %p10312_p8 }
  0x93   :  { %10320 = shalt.err (!%p10317_p10)
}
  0x94   :  { %s10321_s4 = scalar_lea.vmem %s101_s30, 128  ;;  %p10326_p12 = scmp.lt.s32.totalorder %s101_s30, %s101_s30 }
  0x95   :  { %p10322_p11 = scmp.ne.s32.totalorder %s101_s30, %s10321_s4  ;;  %p10327_p13 = scmp.lt.s32.totalorder %s10321_s4, %s10321_s4 }
  0x97   :  { %p10328_p0 = por %p10327_p13, %p10326_p12 }
  0x99   :  { %p10329_p1 = pnand %p10328_p0, %p10322_p11 }
  0x9b   :  { %10332 = shalt.err (!%p10329_p1)
}
  0x9c   :  { %103 = dma.hbm_to_vmem [thread:$0]  %s10874_s6, 128, %s101_s30, [#allocation12]  }
  0x9d   :  { %s10333_s27 = scalar_lea.hbm %s10876_s8, 16 }
  0x9e   :  { %p10334_p2 = scmp.ne.s32.totalorder %s10876_s8, %s10333_s27  ;;  %p10337_p3 = scmp.lt.u32.totalorder %s10333_s27, %s10876_s8 }
  0xa0   :  { %p10339_p4 = pnand %p10337_p3, %p10334_p2 }
  0xa2   :  { %10342 = shalt.err (!%p10339_p4)
}
  0xa3   :  { %s10343_s3 = scalar_lea.vmem %s123_s7, 16  ;;  %s10347_s2 = scalar_lea.vmem %s123_s7, 32 }
  0xa4   :  { %p10344_p5 = scmp.ne.s32.totalorder %s123_s7, %s10343_s3  ;;  %p10348_p6 = scmp.lt.s32.totalorder %s123_s7, %s123_s7 }
  0xa5   :  { %p10349_p7 = scmp.lt.s32.totalorder %s10347_s2, %s10343_s3 }
  0xa7   :  { %p10350_p8 = por %p10349_p7, %p10348_p6 }
  0xa9   :  { %p10351_p9 = pnand %p10350_p8, %p10344_p5 }
  0xab   :  { %10354 = shalt.err (!%p10351_p9)
}
  0xac   :  { %125 = dma.hbm_to_vmem [thread:$0]  %s10876_s8, 16, %s123_s7, [#allocation15]  }
  0xad   :  { %s10457_s29 = smov [#allocation19]   ;;  %s10355_s19 = scalar_lea.hbm %s10878_s10, 16 }
  0xae   :  { %s144_s30 = sshll.u32 %s10457_s29, 4  ;;  %p10356_p10 = scmp.ne.s32.totalorder %s10878_s10, %s10355_s19  ;;  %s145_s30 = int_to_ptr.vmem [resolvable:$true] %s144_s30 }
  0xaf   :  { %p10359_p11 = scmp.lt.u32.totalorder %s10355_s19, %s10878_s10 }
  0xb1   :  { %p10361_p12 = pnand %p10359_p11, %p10356_p10 }
  0xb3   :  { %10364 = shalt.err (!%p10361_p12)
}
  0xb4   :  { %s10365_s26 = scalar_lea.vmem %s145_s30, 16  ;;  %s10369_s8 = scalar_lea.vmem %s145_s30, 32 }
  0xb5   :  { %p10366_p13 = scmp.ne.s32.totalorder %s145_s30, %s10365_s26  ;;  %p10370_p0 = scmp.lt.s32.totalorder %s145_s30, %s145_s30 }
  0xb6   :  { %p10371_p1 = scmp.lt.s32.totalorder %s10369_s8, %s10365_s26 }
  0xb8   :  { %p10372_p2 = por %p10371_p1, %p10370_p0 }
  0xba   :  { %p10373_p3 = pnand %p10372_p2, %p10366_p13 }
  0xbc   :  { %10376 = shalt.err (!%p10373_p3)
}
  0xbd   :  { %147 = dma.hbm_to_vmem [thread:$0]  %s10878_s10, 16, %s145_s30, [#allocation18]  }
  0xbe   :  { %10421 = dma.done.wait [#allocation3], 4608  }
  0xbf   :  { %10422 = vsyncadd [#allocation3], 4294962688 }
  0xc0   :  { %10423 = dma.done.wait [#allocation6], 73760  }
  0xc1   :  { %10424 = vsyncadd [#allocation6], 4294893536 }
  0xc2   :  { %10425 = dma.done.wait [#allocation9], 8256  }
  0xc3   :  { %10426 = vsyncadd [#allocation9], 4294959040 }
  0xc4   :  { %10427 = dma.done.wait [#allocation12], 32896  }
  0xc5   :  { %10428 = vsyncadd [#allocation12], 4294934400 }
  0xc6   :  { %10429 = dma.done.wait [#allocation15], 4112  }
  0xc7   :  { %10430 = vsyncadd [#allocation15], 4294963184 }
  0xc8   :  { %10431 = dma.done.wait [#allocation18], 4112  }
  0xc9   :  { %10432 = vsyncadd [#allocation18], 4294963184  ;;  %v9057_v0 = vld [vmem:[#allocation5 + $0x304] ss:$8 sps:$4 sm:$0xff]   ;;  %v9059_v1 = vld [vmem:[#allocation5 + $0x300] ss:$8 sps:$4 sm:$0xff]  }
  0xca   :  { %3995 = vmatprep.subr.bf16.mxu0 %v9057_v0  ;;  %v9060_v2 = vld [vmem:[#allocation5 + $0x314] ss:$8 sps:$4 sm:$0xff]   ;;  %v9062_v3 = vld [vmem:[#allocation5 + $0x310] ss:$8 sps:$4 sm:$0xff]   ;;  %v9063_v4 = vld [vmem:[#allocation5 + $0x324] ss:$8 sps:$4 sm:$0xff]  }
  0xcb   :  { %3996 = vmatpush1.bf16.msra.mxu0 %v9059_v1  ;;  %v9065_v5 = vld [vmem:[#allocation5 + $0x320] ss:$8 sps:$4 sm:$0xff]   ;;  %v9066_v6 = vld [vmem:[#allocation5 + $0x334] ss:$8 sps:$4 sm:$0xff]   ;;  %v9068_v7 = vld [vmem:[#allocation5 + $0x330] ss:$8 sps:$4 sm:$0xff]  }
  0xcc   :  { %3997 = vmatprep.subr.bf16.mxu0 %v9060_v2  ;;  %v9069_v8 = vld [vmem:[#allocation5 + $0x344] ss:$8 sps:$4 sm:$0xff]   ;;  %v9071_v9 = vld [vmem:[#allocation5 + $0x340] ss:$8 sps:$4 sm:$0xff]   ;;  %v9072_v10 = vld [vmem:[#allocation5 + $0x354] ss:$8 sps:$4 sm:$0xff]  }
  0xcd   :  { %v9074_v11 = vld [vmem:[#allocation5 + $0x350] ss:$8 sps:$4 sm:$0xff]   ;;  %v9075_v12 = vld [vmem:[#allocation5 + $0x364] ss:$8 sps:$4 sm:$0xff]   ;;  %v9077_v14 = vld [vmem:[#allocation5 + $0x360] ss:$8 sps:$4 sm:$0xff]  }
  0xce   :  { %v9107_v13 = vld [vmem:[#allocation2 + $0x1c] ss:$144 sps:$4 sm:$0xff]   ;;  %v9080_v16 = vld [vmem:[#allocation5 + $0x370] ss:$8 sps:$4 sm:$0xff]   ;;  %v9083_v18 = vld [vmem:[#allocation5 + $0x380] ss:$8 sps:$4 sm:$0xff]  }
  0xcf   :  { %3998 = vmatpush1.bf16.msra.mxu0 %v9062_v3  ;;  %v9078_v15 = vld [vmem:[#allocation5 + $0x374] ss:$8 sps:$4 sm:$0xff]   ;;  %4027 = vmatprep.mubr.bf16.mxu0 %v9107_v13  ;;  %v9081_v17 = vld [vmem:[#allocation5 + $0x384] ss:$8 sps:$4 sm:$0xff]   ;;  %v9086_v20 = vld [vmem:[#allocation5 + $0x390] ss:$8 sps:$4 sm:$0xff]  }
  0xd0   :  { %3999 = vmatprep.subr.bf16.mxu0 %v9063_v4  ;;  %v9084_v19 = vld [vmem:[#allocation5 + $0x394] ss:$8 sps:$4 sm:$0xff]   ;;  %v9087_v21 = vld [vmem:[#allocation5 + $0x3a4] ss:$8 sps:$4 sm:$0xff]   ;;  %v9089_v22 = vld [vmem:[#allocation5 + $0x3a0] ss:$8 sps:$4 sm:$0xff]  }
  0xd1   :  { %v9090_v23 = vld [vmem:[#allocation5 + $0x3b4] ss:$8 sps:$4 sm:$0xff]   ;;  %v9092_v24 = vld [vmem:[#allocation5 + $0x3b0] ss:$8 sps:$4 sm:$0xff]   ;;  %v9093_v25 = vld [vmem:[#allocation5 + $0x3c4] ss:$8 sps:$4 sm:$0xff]  }
  0xd2   :  { %v9095_v26 = vld [vmem:[#allocation5 + $0x3c0] ss:$8 sps:$4 sm:$0xff]   ;;  %v9096_v27 = vld [vmem:[#allocation5 + $0x3d4] ss:$8 sps:$4 sm:$0xff]   ;;  %v9098_v28 = vld [vmem:[#allocation5 + $0x3d0] ss:$8 sps:$4 sm:$0xff]  }
  0xd3   :  { %4000 = vmatpush1.bf16.msra.mxu0 %v9065_v5  ;;  %v9099_v29 = vld [vmem:[#allocation5 + $0x3e4] ss:$8 sps:$4 sm:$0xff]   ;;  %v9101_v30 = vld [vmem:[#allocation5 + $0x3e0] ss:$8 sps:$4 sm:$0xff]   ;;  %v9102_v31 = vld [vmem:[#allocation5 + $0x3f4] ss:$8 sps:$4 sm:$0xff]  }
  0xd4   :  { %4001 = vmatprep.subr.bf16.mxu0 %v9066_v6  ;;  %v9104_v32 = vld [vmem:[#allocation5 + $0x3f0] ss:$8 sps:$4 sm:$0xff]   ;;  %v9110_v33 = vld [vmem:[#allocation5 + $0x404] ss:$8 sps:$4 sm:$0xff]   ;;  %v9108_v35 = vld [vmem:[#allocation5 + $0x400] ss:$8 sps:$4 sm:$0xff]  }
  0xd5   :  { %v9105_v34 = vld [vmem:[#allocation2 + $0x18] ss:$144 sps:$4 sm:$0xff]   ;;  %v9158_v36 = vld [vmem:[#allocation2 + $0x24] ss:$144 sps:$4 sm:$0xff]   ;;  %v9156_v4 = vld [vmem:[#allocation2 + $0x20] ss:$144 sps:$4 sm:$0xff]  }
  0xd6   :  { %v9113_v37 = vld [vmem:[#allocation5 + $0x414] ss:$8 sps:$4 sm:$0xff]   ;;  %v9111_v38 = vld [vmem:[#allocation5 + $0x410] ss:$8 sps:$4 sm:$0xff]   ;;  %v9116_v39 = vld [vmem:[#allocation5 + $0x424] ss:$8 sps:$4 sm:$0xff]  }
  0xd7   :  { %4002 = vmatpush1.bf16.msra.mxu0 %v9068_v7  ;;  %v9114_v40 = vld [vmem:[#allocation5 + $0x420] ss:$8 sps:$4 sm:$0xff]   ;;  %v9119_v41 = vld [vmem:[#allocation5 + $0x434] ss:$8 sps:$4 sm:$0xff]   ;;  %v9117_v42 = vld [vmem:[#allocation5 + $0x430] ss:$8 sps:$4 sm:$0xff]  }
  0xd8   :  { %4003 = vmatprep.subr.bf16.mxu0 %v9069_v8  ;;  %v9122_v43 = vld [vmem:[#allocation5 + $0x444] ss:$8 sps:$4 sm:$0xff]   ;;  %v9120_v44 = vld [vmem:[#allocation5 + $0x440] ss:$8 sps:$4 sm:$0xff]   ;;  %v9125_v45 = vld [vmem:[#allocation5 + $0x454] ss:$8 sps:$4 sm:$0xff]  }
  0xd9   :  { %v9123_v46 = vld [vmem:[#allocation5 + $0x450] ss:$8 sps:$4 sm:$0xff]   ;;  %v9128_v47 = vld [vmem:[#allocation5 + $0x464] ss:$8 sps:$4 sm:$0xff]   ;;  %v9126_v48 = vld [vmem:[#allocation5 + $0x460] ss:$8 sps:$4 sm:$0xff]  }
  0xda   :  { %v9131_v49 = vld [vmem:[#allocation5 + $0x474] ss:$8 sps:$4 sm:$0xff]   ;;  %v9129_v50 = vld [vmem:[#allocation5 + $0x470] ss:$8 sps:$4 sm:$0xff]   ;;  %v9134_v51 = vld [vmem:[#allocation5 + $0x484] ss:$8 sps:$4 sm:$0xff]  }
  0xdb   :  { %4004 = vmatpush1.bf16.msra.mxu0 %v9071_v9  ;;  %v9132_v52 = vld [vmem:[#allocation5 + $0x480] ss:$8 sps:$4 sm:$0xff]   ;;  %v9137_v53 = vld [vmem:[#allocation5 + $0x494] ss:$8 sps:$4 sm:$0xff]   ;;  %v9135_v54 = vld [vmem:[#allocation5 + $0x490] ss:$8 sps:$4 sm:$0xff]  }
  0xdc   :  { %4005 = vmatprep.subr.bf16.mxu0 %v9072_v10  ;;  %v9140_v55 = vld [vmem:[#allocation5 + $0x4a4] ss:$8 sps:$4 sm:$0xff]   ;;  %v9138_v56 = vld [vmem:[#allocation5 + $0x4a0] ss:$8 sps:$4 sm:$0xff]   ;;  %v9143_v57 = vld [vmem:[#allocation5 + $0x4b4] ss:$8 sps:$4 sm:$0xff]  }
  0xdd   :  { %v9141_v58 = vld [vmem:[#allocation5 + $0x4b0] ss:$8 sps:$4 sm:$0xff]   ;;  %v9146_v59 = vld [vmem:[#allocation5 + $0x4c4] ss:$8 sps:$4 sm:$0xff]   ;;  %v9144_v60 = vld [vmem:[#allocation5 + $0x4c0] ss:$8 sps:$4 sm:$0xff]  }
  0xde   :  { %v9149_v61 = vld [vmem:[#allocation5 + $0x4d4] ss:$8 sps:$4 sm:$0xff]   ;;  %v9147_v62 = vld [vmem:[#allocation5 + $0x4d0] ss:$8 sps:$4 sm:$0xff]   ;;  %v9152_v63 = vld [vmem:[#allocation5 + $0x4e4] ss:$8 sps:$4 sm:$0xff]  }
  0xdf   :  { %4006 = vmatpush1.bf16.msra.mxu0 %v9074_v11  ;;  %v9150_v0 = vld [vmem:[#allocation5 + $0x4e0] ss:$8 sps:$4 sm:$0xff]   ;;  %v9155_v1 = vld [vmem:[#allocation5 + $0x4f4] ss:$8 sps:$4 sm:$0xff]   ;;  %v9153_v2 = vld [vmem:[#allocation5 + $0x4f0] ss:$8 sps:$4 sm:$0xff]  }
  0xe0   :  { %4007 = vmatprep.subr.bf16.mxu0 %v9075_v12  ;;  %v9161_v3 = vld [vmem:[#allocation5 + $0x504] ss:$8 sps:$4 sm:$0xff]   ;;  %v9159_v5 = vld [vmem:[#allocation5 + $0x500] ss:$8 sps:$4 sm:$0xff]   ;;  %v9164_v7 = vld [vmem:[#allocation5 + $0x514] ss:$8 sps:$4 sm:$0xff]  }
  0xe1   :  { %v9209_v6 = vld [vmem:[#allocation2 + $0x2c] ss:$144 sps:$4 sm:$0xff]   ;;  %v9162_v8 = vld [vmem:[#allocation5 + $0x510] ss:$8 sps:$4 sm:$0xff]   ;;  %v9165_v10 = vld [vmem:[#allocation5 + $0x520] ss:$8 sps:$4 sm:$0xff]  }
  0xe2   :  { %v9167_v9 = vld [vmem:[#allocation5 + $0x524] ss:$8 sps:$4 sm:$0xff]   ;;  %v9170_v11 = vld [vmem:[#allocation5 + $0x534] ss:$8 sps:$4 sm:$0xff]   ;;  %v9168_v12 = vld [vmem:[#allocation5 + $0x530] ss:$8 sps:$4 sm:$0xff]  }
  0xe3   :  { %4008 = vmatpush1.bf16.msra.mxu0 %v9077_v14  ;;  %v9173_v13 = vld [vmem:[#allocation5 + $0x544] ss:$8 sps:$4 sm:$0xff]   ;;  %v9171_v14 = vld [vmem:[#allocation5 + $0x540] ss:$8 sps:$4 sm:$0xff]   ;;  %s10458_s10 = smov [#allocation20]  }
  0xe4   :  { %4009 = vmatprep.subr.bf16.mxu0 %v9078_v15  ;;  %v9176_v15 = vld [vmem:[#allocation5 + $0x554] ss:$8 sps:$4 sm:$0xff]   ;;  %s7811_s16 = sshll.u32 %s10458_s10, 4  ;;  %s7812_s16 = int_to_ptr.vmem [resolvable:$true] %s7811_s16 }
  0xe5   :  { %s10377_s24 = scalar_lea.vmem %s7812_s16, 256  ;;  %p10382_p5 = scmp.lt.s32.totalorder %s7812_s16, %s7812_s16 }
  0xe6   :  { %p10378_p4 = scmp.ne.s32.totalorder %s7812_s16, %s10377_s24  ;;  %p10383_p6 = scmp.lt.s32.totalorder %s10377_s24, %s10377_s24 }
  0xe7   :  { %4010 = vmatpush1.bf16.msra.mxu0 %v9080_v16  ;;  %v9174_v16 = vld [vmem:[#allocation5 + $0x550] ss:$8 sps:$4 sm:$0xff]  }
  0xe8   :  { %4011 = vmatprep.subr.bf16.mxu0 %v9081_v17  ;;  %v9179_v17 = vld [vmem:[#allocation5 + $0x564] ss:$8 sps:$4 sm:$0xff]   ;;  %p10384_p7 = por %p10383_p6, %p10382_p5 }
  0xea   :  { %p10385_p8 = pnand %p10384_p7, %p10378_p4 }
  0xeb   :  { %4012 = vmatpush1.bf16.msra.mxu0 %v9083_v18  ;;  %v9177_v18 = vld [vmem:[#allocation5 + $0x560] ss:$8 sps:$4 sm:$0xff]  }
  0xec   :  { %4013 = vmatprep.subr.bf16.mxu0 %v9084_v19  ;;  %v9182_v19 = vld [vmem:[#allocation5 + $0x574] ss:$8 sps:$4 sm:$0xff]  }
  0xef   :  { %4014 = vmatpush1.bf16.msra.mxu0 %v9086_v20  ;;  %v9180_v20 = vld [vmem:[#allocation5 + $0x570] ss:$8 sps:$4 sm:$0xff]  }
  0xf0   :  { %4015 = vmatprep.subr.bf16.mxu0 %v9087_v21  ;;  %v9185_v21 = vld [vmem:[#allocation5 + $0x584] ss:$8 sps:$4 sm:$0xff]  }
  0xf3   :  { %4016 = vmatpush1.bf16.msra.mxu0 %v9089_v22  ;;  %v9183_v22 = vld [vmem:[#allocation5 + $0x580] ss:$8 sps:$4 sm:$0xff]  }
  0xf4   :  { %4017 = vmatprep.subr.bf16.mxu0 %v9090_v23  ;;  %v9188_v23 = vld [vmem:[#allocation5 + $0x594] ss:$8 sps:$4 sm:$0xff]  }
  0xf7   :  { %4018 = vmatpush1.bf16.msra.mxu0 %v9092_v24  ;;  %v9186_v24 = vld [vmem:[#allocation5 + $0x590] ss:$8 sps:$4 sm:$0xff]  }
  0xf8   :  { %4019 = vmatprep.subr.bf16.mxu0 %v9093_v25  ;;  %v9191_v25 = vld [vmem:[#allocation5 + $0x5a4] ss:$8 sps:$4 sm:$0xff]  }
  0xfb   :  { %4020 = vmatpush1.bf16.msra.mxu0 %v9095_v26  ;;  %v9189_v26 = vld [vmem:[#allocation5 + $0x5a0] ss:$8 sps:$4 sm:$0xff]  }
  0xfc   :  { %4021 = vmatprep.subr.bf16.mxu0 %v9096_v27  ;;  %v9194_v27 = vld [vmem:[#allocation5 + $0x5b4] ss:$8 sps:$4 sm:$0xff]  }
  0xff   :  { %4022 = vmatpush1.bf16.msra.mxu0 %v9098_v28  ;;  %v9192_v28 = vld [vmem:[#allocation5 + $0x5b0] ss:$8 sps:$4 sm:$0xff]  }
 0x100   :  { %4023 = vmatprep.subr.bf16.mxu0 %v9099_v29  ;;  %v9197_v29 = vld [vmem:[#allocation5 + $0x5c4] ss:$8 sps:$4 sm:$0xff]  }
 0x103   :  { %4024 = vmatpush1.bf16.msra.mxu0 %v9101_v30  ;;  %v9195_v30 = vld [vmem:[#allocation5 + $0x5c0] ss:$8 sps:$4 sm:$0xff]  }
 0x104   :  { %4025 = vmatprep.subr.bf16.mxu0 %v9102_v31  ;;  %v9200_v31 = vld [vmem:[#allocation5 + $0x5d4] ss:$8 sps:$4 sm:$0xff]  }
 0x107   :  { %4026 = vmatpush1.bf16.msra.mxu0 %v9104_v32  ;;  %v9198_v32 = vld [vmem:[#allocation5 + $0x5d0] ss:$8 sps:$4 sm:$0xff]  }
 0x108   :  { %4038 = vmatprep.subr.bf16.mxu0 %v9110_v33  ;;  %v9203_v33 = vld [vmem:[#allocation5 + $0x5e4] ss:$8 sps:$4 sm:$0xff]  }
 0x10a   :  { %4028 = vmatmul.mubr.bf16.vlgmr.msra.gmra.mrb[0].mxu0 %v9105_v34  ;;  %v9201_v34 = vld [vmem:[#allocation5 + $0x5e0] ss:$8 sps:$4 sm:$0xff]  }
 0x10b   :  { %4039 = vmatpush1.bf16.msra.mxu0 %v9108_v35  ;;  %4070 = vmatprep.mubr.bf16.mxu0 %v9158_v36  ;;  %v9206_v35 = vld [vmem:[#allocation5 + $0x5f4] ss:$8 sps:$4 sm:$0xff]   ;;  %v9204_v36 = vld [vmem:[#allocation5 + $0x5f0] ss:$8 sps:$4 sm:$0xff]  }
 0x10c   :  { %4040 = vmatprep.subr.bf16.mxu0 %v9113_v37  ;;  %v9212_v37 = vld [vmem:[#allocation5 + $0x604] ss:$8 sps:$4 sm:$0xff]  }
 0x10f   :  { %4041 = vmatpush1.bf16.msra.mxu0 %v9111_v38  ;;  %v9207_v38 = vld [vmem:[#allocation2 + $0x28] ss:$144 sps:$4 sm:$0xff]  }
 0x110   :  { %4042 = vmatprep.subr.bf16.mxu0 %v9116_v39  ;;  %v9210_v39 = vld [vmem:[#allocation5 + $0x600] ss:$8 sps:$4 sm:$0xff]  }
 0x113   :  { %4043 = vmatpush1.bf16.msra.mxu0 %v9114_v40  ;;  %v9260_v40 = vld [vmem:[#allocation2 + $0x34] ss:$144 sps:$4 sm:$0xff]  }
 0x114   :  { %4044 = vmatprep.subr.bf16.mxu0 %v9119_v41  ;;  %v9215_v41 = vld [vmem:[#allocation5 + $0x614] ss:$8 sps:$4 sm:$0xff]  }
 0x117   :  { %4045 = vmatpush1.bf16.msra.mxu0 %v9117_v42  ;;  %v9213_v42 = vld [vmem:[#allocation5 + $0x610] ss:$8 sps:$4 sm:$0xff]  }
 0x118   :  { %4046 = vmatprep.subr.bf16.mxu0 %v9122_v43  ;;  %v9218_v43 = vld [vmem:[#allocation5 + $0x624] ss:$8 sps:$4 sm:$0xff]  }
 0x11b   :  { %4047 = vmatpush1.bf16.msra.mxu0 %v9120_v44  ;;  %v9216_v44 = vld [vmem:[#allocation5 + $0x620] ss:$8 sps:$4 sm:$0xff]  }
 0x11c   :  { %4048 = vmatprep.subr.bf16.mxu0 %v9125_v45  ;;  %v9221_v45 = vld [vmem:[#allocation5 + $0x634] ss:$8 sps:$4 sm:$0xff]  }
 0x11f   :  { %4049 = vmatpush1.bf16.msra.mxu0 %v9123_v46  ;;  %v9219_v46 = vld [vmem:[#allocation5 + $0x630] ss:$8 sps:$4 sm:$0xff]  }
 0x120   :  { %4050 = vmatprep.subr.bf16.mxu0 %v9128_v47  ;;  %v9224_v47 = vld [vmem:[#allocation5 + $0x644] ss:$8 sps:$4 sm:$0xff]  }
 0x123   :  { %4051 = vmatpush1.bf16.msra.mxu0 %v9126_v48  ;;  %v9222_v48 = vld [vmem:[#allocation5 + $0x640] ss:$8 sps:$4 sm:$0xff]  }
 0x124   :  { %4052 = vmatprep.subr.bf16.mxu0 %v9131_v49  ;;  %v9227_v49 = vld [vmem:[#allocation5 + $0x654] ss:$8 sps:$4 sm:$0xff]  }
 0x127   :  { %4053 = vmatpush1.bf16.msra.mxu0 %v9129_v50  ;;  %v9225_v50 = vld [vmem:[#allocation5 + $0x650] ss:$8 sps:$4 sm:$0xff]  }
 0x128   :  { %4054 = vmatprep.subr.bf16.mxu0 %v9134_v51  ;;  %v9230_v51 = vld [vmem:[#allocation5 + $0x664] ss:$8 sps:$4 sm:$0xff]  }
 0x12b   :  { %4055 = vmatpush1.bf16.msra.mxu0 %v9132_v52  ;;  %v9228_v52 = vld [vmem:[#allocation5 + $0x660] ss:$8 sps:$4 sm:$0xff]  }
 0x12c   :  { %4056 = vmatprep.subr.bf16.mxu0 %v9137_v53  ;;  %v9233_v53 = vld [vmem:[#allocation5 + $0x674] ss:$8 sps:$4 sm:$0xff]  }
 0x12f   :  { %4057 = vmatpush1.bf16.msra.mxu0 %v9135_v54  ;;  %v9231_v54 = vld [vmem:[#allocation5 + $0x670] ss:$8 sps:$4 sm:$0xff]  }
 0x130   :  { %4058 = vmatprep.subr.bf16.mxu0 %v9140_v55  ;;  %v9236_v55 = vld [vmem:[#allocation5 + $0x684] ss:$8 sps:$4 sm:$0xff]  }
 0x133   :  { %4059 = vmatpush1.bf16.msra.mxu0 %v9138_v56  ;;  %v9234_v56 = vld [vmem:[#allocation5 + $0x680] ss:$8 sps:$4 sm:$0xff]  }
 0x134   :  { %4060 = vmatprep.subr.bf16.mxu0 %v9143_v57  ;;  %v9239_v57 = vld [vmem:[#allocation5 + $0x694] ss:$8 sps:$4 sm:$0xff]  }
 0x137   :  { %4061 = vmatpush1.bf16.msra.mxu0 %v9141_v58  ;;  %v9237_v58 = vld [vmem:[#allocation5 + $0x690] ss:$8 sps:$4 sm:$0xff]  }
 0x138   :  { %4062 = vmatprep.subr.bf16.mxu0 %v9146_v59  ;;  %v9242_v59 = vld [vmem:[#allocation5 + $0x6a4] ss:$8 sps:$4 sm:$0xff]  }
 0x13b   :  { %4063 = vmatpush1.bf16.msra.mxu0 %v9144_v60  ;;  %v9240_v60 = vld [vmem:[#allocation5 + $0x6a0] ss:$8 sps:$4 sm:$0xff]  }
 0x13c   :  { %4064 = vmatprep.subr.bf16.mxu0 %v9149_v61  ;;  %v9245_v61 = vld [vmem:[#allocation5 + $0x6b4] ss:$8 sps:$4 sm:$0xff]  }
 0x13f   :  { %4065 = vmatpush1.bf16.msra.mxu0 %v9147_v62  ;;  %v9243_v62 = vld [vmem:[#allocation5 + $0x6b0] ss:$8 sps:$4 sm:$0xff]  }
 0x140   :  { %4066 = vmatprep.subr.bf16.mxu0 %v9152_v63  ;;  %v9248_v63 = vld [vmem:[#allocation5 + $0x6c4] ss:$8 sps:$4 sm:$0xff]  }
 0x143   :  { %4067 = vmatpush1.bf16.msra.mxu0 %v9150_v0  ;;  %v9246_v0 = vld [vmem:[#allocation5 + $0x6c0] ss:$8 sps:$4 sm:$0xff]  }
 0x144   :  { %4068 = vmatprep.subr.bf16.mxu0 %v9155_v1  ;;  %v9251_v1 = vld [vmem:[#allocation5 + $0x6d4] ss:$8 sps:$4 sm:$0xff]  }
 0x147   :  { %4069 = vmatpush1.bf16.msra.mxu0 %v9153_v2  ;;  %v9249_v2 = vld [vmem:[#allocation5 + $0x6d0] ss:$8 sps:$4 sm:$0xff]  }
 0x148   :  { %4081 = vmatprep.subr.bf16.mxu0 %v9161_v3  ;;  %v9254_v3 = vld [vmem:[#allocation5 + $0x6e4] ss:$8 sps:$4 sm:$0xff]  }
 0x14a   :  { %4071 = vmatmul.mubr.bf16.vlgmr.msra.gmra.mrb[0].mxu0 %v9156_v4  ;;  %v9252_v4 = vld [vmem:[#allocation5 + $0x6e0] ss:$8 sps:$4 sm:$0xff]  }
 0x14b   :  { %4082 = vmatpush1.bf16.msra.mxu0 %v9159_v5  ;;  %4113 = vmatprep.mubr.bf16.mxu0 %v9209_v6  ;;  %v9257_v5 = vld [vmem:[#allocation5 + $0x6f4] ss:$8 sps:$4 sm:$0xff]   ;;  %v9255_v6 = vld [vmem:[#allocation5 + $0x6f0] ss:$8 sps:$4 sm:$0xff]  }
 0x14c   :  { %4083 = vmatprep.subr.bf16.mxu0 %v9164_v7  ;;  %v9263_v7 = vld [vmem:[#allocation5 + $0x704] ss:$8 sps:$4 sm:$0xff]  }
 0x14f   :  { %4084 = vmatpush1.bf16.msra.mxu0 %v9162_v8  ;;  %v9258_v8 = vld [vmem:[#allocation2 + $0x30] ss:$144 sps:$4 sm:$0xff]  }
 0x150   :  { %4085 = vmatprep.subr.bf16.mxu0 %v9167_v9  ;;  %v9261_v9 = vld [vmem:[#allocation5 + $0x700] ss:$8 sps:$4 sm:$0xff]  }
 0x153   :  { %4086 = vmatpush1.bf16.msra.mxu0 %v9165_v10  ;;  %v9311_v10 = vld [vmem:[#allocation2 + $0x3c] ss:$144 sps:$4 sm:$0xff]  }
 0x154   :  { %4087 = vmatprep.subr.bf16.mxu0 %v9170_v11  ;;  %v9266_v11 = vld [vmem:[#allocation5 + $0x714] ss:$8 sps:$4 sm:$0xff]  }
 0x157   :  { %4088 = vmatpush1.bf16.msra.mxu0 %v9168_v12  ;;  %v9264_v12 = vld [vmem:[#allocation5 + $0x710] ss:$8 sps:$4 sm:$0xff]  }
 0x158   :  { %4089 = vmatprep.subr.bf16.mxu0 %v9173_v13  ;;  %v9269_v13 = vld [vmem:[#allocation5 + $0x724] ss:$8 sps:$4 sm:$0xff]  }
 0x15b   :  { %4090 = vmatpush1.bf16.msra.mxu0 %v9171_v14  ;;  %v9267_v14 = vld [vmem:[#allocation5 + $0x720] ss:$8 sps:$4 sm:$0xff]  }
 0x15c   :  { %4091 = vmatprep.subr.bf16.mxu0 %v9176_v15  ;;  %v9272_v15 = vld [vmem:[#allocation5 + $0x734] ss:$8 sps:$4 sm:$0xff]  }
 0x15f   :  { %4092 = vmatpush1.bf16.msra.mxu0 %v9174_v16  ;;  %v9270_v16 = vld [vmem:[#allocation5 + $0x730] ss:$8 sps:$4 sm:$0xff]  }
 0x160   :  { %4093 = vmatprep.subr.bf16.mxu0 %v9179_v17  ;;  %v9275_v17 = vld [vmem:[#allocation5 + $0x744] ss:$8 sps:$4 sm:$0xff]  }
 0x163   :  { %4094 = vmatpush1.bf16.msra.mxu0 %v9177_v18  ;;  %v9273_v18 = vld [vmem:[#allocation5 + $0x740] ss:$8 sps:$4 sm:$0xff]  }
 0x164   :  { %4095 = vmatprep.subr.bf16.mxu0 %v9182_v19  ;;  %v9278_v19 = vld [vmem:[#allocation5 + $0x754] ss:$8 sps:$4 sm:$0xff]  }
 0x167   :  { %4096 = vmatpush1.bf16.msra.mxu0 %v9180_v20  ;;  %v9276_v20 = vld [vmem:[#allocation5 + $0x750] ss:$8 sps:$4 sm:$0xff]  }
 0x168   :  { %4097 = vmatprep.subr.bf16.mxu0 %v9185_v21  ;;  %v9281_v21 = vld [vmem:[#allocation5 + $0x764] ss:$8 sps:$4 sm:$0xff]  }
 0x16b   :  { %4098 = vmatpush1.bf16.msra.mxu0 %v9183_v22  ;;  %v9279_v22 = vld [vmem:[#allocation5 + $0x760] ss:$8 sps:$4 sm:$0xff]  }
 0x16c   :  { %4099 = vmatprep.subr.bf16.mxu0 %v9188_v23  ;;  %v9284_v23 = vld [vmem:[#allocation5 + $0x774] ss:$8 sps:$4 sm:$0xff]  }
 0x16f   :  { %4100 = vmatpush1.bf16.msra.mxu0 %v9186_v24  ;;  %v9282_v24 = vld [vmem:[#allocation5 + $0x770] ss:$8 sps:$4 sm:$0xff]  }
 0x170   :  { %4101 = vmatprep.subr.bf16.mxu0 %v9191_v25  ;;  %v9287_v25 = vld [vmem:[#allocation5 + $0x784] ss:$8 sps:$4 sm:$0xff]  }
 0x173   :  { %4102 = vmatpush1.bf16.msra.mxu0 %v9189_v26  ;;  %v9285_v26 = vld [vmem:[#allocation5 + $0x780] ss:$8 sps:$4 sm:$0xff]  }
 0x174   :  { %4103 = vmatprep.subr.bf16.mxu0 %v9194_v27  ;;  %v9290_v27 = vld [vmem:[#allocation5 + $0x794] ss:$8 sps:$4 sm:$0xff]  }
 0x177   :  { %4104 = vmatpush1.bf16.msra.mxu0 %v9192_v28  ;;  %v9288_v28 = vld [vmem:[#allocation5 + $0x790] ss:$8 sps:$4 sm:$0xff]  }
 0x178   :  { %4105 = vmatprep.subr.bf16.mxu0 %v9197_v29  ;;  %v9293_v29 = vld [vmem:[#allocation5 + $0x7a4] ss:$8 sps:$4 sm:$0xff]  }
 0x17b   :  { %4106 = vmatpush1.bf16.msra.mxu0 %v9195_v30  ;;  %v9291_v30 = vld [vmem:[#allocation5 + $0x7a0] ss:$8 sps:$4 sm:$0xff]  }
 0x17c   :  { %4107 = vmatprep.subr.bf16.mxu0 %v9200_v31  ;;  %v9296_v31 = vld [vmem:[#allocation5 + $0x7b4] ss:$8 sps:$4 sm:$0xff]  }
 0x17f   :  { %4108 = vmatpush1.bf16.msra.mxu0 %v9198_v32  ;;  %v9294_v32 = vld [vmem:[#allocation5 + $0x7b0] ss:$8 sps:$4 sm:$0xff]  }
 0x180   :  { %4109 = vmatprep.subr.bf16.mxu0 %v9203_v33  ;;  %v9299_v33 = vld [vmem:[#allocation5 + $0x7c4] ss:$8 sps:$4 sm:$0xff]  }
 0x183   :  { %4110 = vmatpush1.bf16.msra.mxu0 %v9201_v34  ;;  %v9297_v34 = vld [vmem:[#allocation5 + $0x7c0] ss:$8 sps:$4 sm:$0xff]  }
 0x184   :  { %4111 = vmatprep.subr.bf16.mxu0 %v9206_v35  ;;  %v9302_v35 = vld [vmem:[#allocation5 + $0x7d4] ss:$8 sps:$4 sm:$0xff]  }
 0x187   :  { %4112 = vmatpush1.bf16.msra.mxu0 %v9204_v36  ;;  %v9300_v36 = vld [vmem:[#allocation5 + $0x7d0] ss:$8 sps:$4 sm:$0xff]  }
 0x188   :  { %4124 = vmatprep.subr.bf16.mxu0 %v9212_v37  ;;  %v9305_v37 = vld [vmem:[#allocation5 + $0x7e4] ss:$8 sps:$4 sm:$0xff]  }
 0x18a   :  { %4114 = vmatmul.mubr.bf16.vlgmr.msra.gmra.mrb[0].mxu0 %v9207_v38  ;;  %v9303_v38 = vld [vmem:[#allocation5 + $0x7e0] ss:$8 sps:$4 sm:$0xff]  }
 0x18b   :  { %4125 = vmatpush1.bf16.msra.mxu0 %v9210_v39  ;;  %4156 = vmatprep.mubr.bf16.mxu0 %v9260_v40  ;;  %v9308_v39 = vld [vmem:[#allocation5 + $0x7f4] ss:$8 sps:$4 sm:$0xff]   ;;  %v9306_v40 = vld [vmem:[#allocation5 + $0x7f0] ss:$8 sps:$4 sm:$0xff]  }
 0x18c   :  { %4126 = vmatprep.subr.bf16.mxu0 %v9215_v41  ;;  %v9314_v41 = vld [vmem:[#allocation5 + $0x804] ss:$8 sps:$4 sm:$0xff]  }
 0x18f   :  { %4127 = vmatpush1.bf16.msra.mxu0 %v9213_v42  ;;  %v9309_v42 = vld [vmem:[#allocation2 + $0x38] ss:$144 sps:$4 sm:$0xff]  }
 0x190   :  { %4128 = vmatprep.subr.bf16.mxu0 %v9218_v43  ;;  %v9312_v43 = vld [vmem:[#allocation5 + $0x800] ss:$8 sps:$4 sm:$0xff]  }
 0x193   :  { %4129 = vmatpush1.bf16.msra.mxu0 %v9216_v44  ;;  %v9362_v44 = vld [vmem:[#allocation2 + $0x44] ss:$144 sps:$4 sm:$0xff]  }
 0x194   :  { %4130 = vmatprep.subr.bf16.mxu0 %v9221_v45  ;;  %v9317_v45 = vld [vmem:[#allocation5 + $0x814] ss:$8 sps:$4 sm:$0xff]  }
 0x197   :  { %4131 = vmatpush1.bf16.msra.mxu0 %v9219_v46  ;;  %v9315_v46 = vld [vmem:[#allocation5 + $0x810] ss:$8 sps:$4 sm:$0xff]  }
 0x198   :  { %4132 = vmatprep.subr.bf16.mxu0 %v9224_v47  ;;  %v9320_v47 = vld [vmem:[#allocation5 + $0x824] ss:$8 sps:$4 sm:$0xff]  }
 0x19b   :  { %4133 = vmatpush1.bf16.msra.mxu0 %v9222_v48  ;;  %v9318_v48 = vld [vmem:[#allocation5 + $0x820] ss:$8 sps:$4 sm:$0xff]  }
 0x19c   :  { %4134 = vmatprep.subr.bf16.mxu0 %v9227_v49  ;;  %v9323_v49 = vld [vmem:[#allocation5 + $0x834] ss:$8 sps:$4 sm:$0xff]  }
 0x19f   :  { %4135 = vmatpush1.bf16.msra.mxu0 %v9225_v50  ;;  %v9321_v50 = vld [vmem:[#allocation5 + $0x830] ss:$8 sps:$4 sm:$0xff]  }
 0x1a0   :  { %4136 = vmatprep.subr.bf16.mxu0 %v9230_v51  ;;  %v9326_v51 = vld [vmem:[#allocation5 + $0x844] ss:$8 sps:$4 sm:$0xff]  }
 0x1a3   :  { %4137 = vmatpush1.bf16.msra.mxu0 %v9228_v52  ;;  %v9324_v52 = vld [vmem:[#allocation5 + $0x840] ss:$8 sps:$4 sm:$0xff]  }
 0x1a4   :  { %4138 = vmatprep.subr.bf16.mxu0 %v9233_v53  ;;  %v9329_v53 = vld [vmem:[#allocation5 + $0x854] ss:$8 sps:$4 sm:$0xff]  }
 0x1a7   :  { %4139 = vmatpush1.bf16.msra.mxu0 %v9231_v54  ;;  %v9327_v54 = vld [vmem:[#allocation5 + $0x850] ss:$8 sps:$4 sm:$0xff]  }
 0x1a8   :  { %4140 = vmatprep.subr.bf16.mxu0 %v9236_v55  ;;  %v9332_v55 = vld [vmem:[#allocation5 + $0x864] ss:$8 sps:$4 sm:$0xff]  }
 0x1ab   :  { %4141 = vmatpush1.bf16.msra.mxu0 %v9234_v56  ;;  %v9330_v56 = vld [vmem:[#allocation5 + $0x860] ss:$8 sps:$4 sm:$0xff]  }
 0x1ac   :  { %4142 = vmatprep.subr.bf16.mxu0 %v9239_v57  ;;  %v9335_v57 = vld [vmem:[#allocation5 + $0x874] ss:$8 sps:$4 sm:$0xff]  }
 0x1af   :  { %4143 = vmatpush1.bf16.msra.mxu0 %v9237_v58  ;;  %v9333_v58 = vld [vmem:[#allocation5 + $0x870] ss:$8 sps:$4 sm:$0xff]  }
 0x1b0   :  { %4144 = vmatprep.subr.bf16.mxu0 %v9242_v59  ;;  %v9338_v59 = vld [vmem:[#allocation5 + $0x884] ss:$8 sps:$4 sm:$0xff]  }
 0x1b3   :  { %4145 = vmatpush1.bf16.msra.mxu0 %v9240_v60  ;;  %v9336_v60 = vld [vmem:[#allocation5 + $0x880] ss:$8 sps:$4 sm:$0xff]  }
 0x1b4   :  { %4146 = vmatprep.subr.bf16.mxu0 %v9245_v61  ;;  %v9341_v61 = vld [vmem:[#allocation5 + $0x894] ss:$8 sps:$4 sm:$0xff]  }
 0x1b7   :  { %4147 = vmatpush1.bf16.msra.mxu0 %v9243_v62  ;;  %v9339_v62 = vld [vmem:[#allocation5 + $0x890] ss:$8 sps:$4 sm:$0xff]  }
 0x1b8   :  { %4148 = vmatprep.subr.bf16.mxu0 %v9248_v63  ;;  %v9344_v63 = vld [vmem:[#allocation5 + $0x8a4] ss:$8 sps:$4 sm:$0xff]  }
 0x1bb   :  { %4149 = vmatpush1.bf16.msra.mxu0 %v9246_v0  ;;  %v9342_v0 = vld [vmem:[#allocation5 + $0x8a0] ss:$8 sps:$4 sm:$0xff]  }
 0x1bc   :  { %4150 = vmatprep.subr.bf16.mxu0 %v9251_v1  ;;  %v9347_v1 = vld [vmem:[#allocation5 + $0x8b4] ss:$8 sps:$4 sm:$0xff]  }
 0x1bf   :  { %4151 = vmatpush1.bf16.msra.mxu0 %v9249_v2  ;;  %v9345_v2 = vld [vmem:[#allocation5 + $0x8b0] ss:$8 sps:$4 sm:$0xff]  }
 0x1c0   :  { %4152 = vmatprep.subr.bf16.mxu0 %v9254_v3  ;;  %v9350_v3 = vld [vmem:[#allocation5 + $0x8c4] ss:$8 sps:$4 sm:$0xff]  }
 0x1c3   :  { %4153 = vmatpush1.bf16.msra.mxu0 %v9252_v4  ;;  %v9348_v4 = vld [vmem:[#allocation5 + $0x8c0] ss:$8 sps:$4 sm:$0xff]  }
 0x1c4   :  { %4154 = vmatprep.subr.bf16.mxu0 %v9257_v5  ;;  %v9353_v5 = vld [vmem:[#allocation5 + $0x8d4] ss:$8 sps:$4 sm:$0xff]  }
 0x1c7   :  { %4155 = vmatpush1.bf16.msra.mxu0 %v9255_v6  ;;  %v9351_v6 = vld [vmem:[#allocation5 + $0x8d0] ss:$8 sps:$4 sm:$0xff]  }
 0x1c8   :  { %4167 = vmatprep.subr.bf16.mxu0 %v9263_v7  ;;  %v9356_v7 = vld [vmem:[#allocation5 + $0x8e4] ss:$8 sps:$4 sm:$0xff]  }
 0x1ca   :  { %4157 = vmatmul.mubr.bf16.vlgmr.msra.gmra.mrb[0].mxu0 %v9258_v8  ;;  %v9354_v8 = vld [vmem:[#allocation5 + $0x8e0] ss:$8 sps:$4 sm:$0xff]  }
 0x1cb   :  { %4168 = vmatpush1.bf16.msra.mxu0 %v9261_v9  ;;  %4199 = vmatprep.mubr.bf16.mxu0 %v9311_v10  ;;  %v9359_v9 = vld [vmem:[#allocation5 + $0x8f4] ss:$8 sps:$4 sm:$0xff]   ;;  %v9357_v10 = vld [vmem:[#allocation5 + $0x8f0] ss:$8 sps:$4 sm:$0xff]  }
 0x1cc   :  { %4169 = vmatprep.subr.bf16.mxu0 %v9266_v11  ;;  %v9365_v11 = vld [vmem:[#allocation5 + $0x904] ss:$8 sps:$4 sm:$0xff]  }
 0x1cf   :  { %4170 = vmatpush1.bf16.msra.mxu0 %v9264_v12  ;;  %v9360_v12 = vld [vmem:[#allocation2 + $0x40] ss:$144 sps:$4 sm:$0xff]  }
 0x1d0   :  { %4171 = vmatprep.subr.bf16.mxu0 %v9269_v13  ;;  %v9363_v13 = vld [vmem:[#allocation5 + $0x900] ss:$8 sps:$4 sm:$0xff]  }
 0x1d3   :  { %4172 = vmatpush1.bf16.msra.mxu0 %v9267_v14  ;;  %v9413_v14 = vld [vmem:[#allocation2 + $0x4c] ss:$144 sps:$4 sm:$0xff]  }
 0x1d4   :  { %4173 = vmatprep.subr.bf16.mxu0 %v9272_v15  ;;  %v9368_v15 = vld [vmem:[#allocation5 + $0x914] ss:$8 sps:$4 sm:$0xff]  }
 0x1d7   :  { %4174 = vmatpush1.bf16.msra.mxu0 %v9270_v16  ;;  %v9366_v16 = vld [vmem:[#allocation5 + $0x910] ss:$8 sps:$4 sm:$0xff]  }
 0x1d8   :  { %4175 = vmatprep.subr.bf16.mxu0 %v9275_v17  ;;  %v9371_v17 = vld [vmem:[#allocation5 + $0x924] ss:$8 sps:$4 sm:$0xff]  }
 0x1db   :  { %4176 = vmatpush1.bf16.msra.mxu0 %v9273_v18  ;;  %v9369_v18 = vld [vmem:[#allocation5 + $0x920] ss:$8 sps:$4 sm:$0xff]  }
 0x1dc   :  { %4177 = vmatprep.subr.bf16.mxu0 %v9278_v19  ;;  %v9374_v19 = vld [vmem:[#allocation5 + $0x934] ss:$8 sps:$4 sm:$0xff]  }
 0x1df   :  { %4178 = vmatpush1.bf16.msra.mxu0 %v9276_v20  ;;  %v9372_v20 = vld [vmem:[#allocation5 + $0x930] ss:$8 sps:$4 sm:$0xff]  }
 0x1e0   :  { %4179 = vmatprep.subr.bf16.mxu0 %v9281_v21  ;;  %v9377_v21 = vld [vmem:[#allocation5 + $0x944] ss:$8 sps:$4 sm:$0xff]  }
 0x1e3   :  { %4180 = vmatpush1.bf16.msra.mxu0 %v9279_v22  ;;  %v9375_v22 = vld [vmem:[#allocation5 + $0x940] ss:$8 sps:$4 sm:$0xff]  }
 0x1e4   :  { %4181 = vmatprep.subr.bf16.mxu0 %v9284_v23  ;;  %v9380_v23 = vld [vmem:[#allocation5 + $0x954] ss:$8 sps:$4 sm:$0xff]  }
 0x1e7   :  { %4182 = vmatpush1.bf16.msra.mxu0 %v9282_v24  ;;  %v9378_v24 = vld [vmem:[#allocation5 + $0x950] ss:$8 sps:$4 sm:$0xff]  }
 0x1e8   :  { %4183 = vmatprep.subr.bf16.mxu0 %v9287_v25  ;;  %v9383_v25 = vld [vmem:[#allocation5 + $0x964] ss:$8 sps:$4 sm:$0xff]  }
 0x1eb   :  { %4184 = vmatpush1.bf16.msra.mxu0 %v9285_v26  ;;  %v9381_v26 = vld [vmem:[#allocation5 + $0x960] ss:$8 sps:$4 sm:$0xff]  }
 0x1ec   :  { %4185 = vmatprep.subr.bf16.mxu0 %v9290_v27  ;;  %v9386_v27 = vld [vmem:[#allocation5 + $0x974] ss:$8 sps:$4 sm:$0xff]  }
 0x1ef   :  { %4186 = vmatpush1.bf16.msra.mxu0 %v9288_v28  ;;  %v9384_v28 = vld [vmem:[#allocation5 + $0x970] ss:$8 sps:$4 sm:$0xff]  }
 0x1f0   :  { %4187 = vmatprep.subr.bf16.mxu0 %v9293_v29  ;;  %v9389_v29 = vld [vmem:[#allocation5 + $0x984] ss:$8 sps:$4 sm:$0xff]  }
 0x1f3   :  { %4188 = vmatpush1.bf16.msra.mxu0 %v9291_v30  ;;  %v9387_v30 = vld [vmem:[#allocation5 + $0x980] ss:$8 sps:$4 sm:$0xff]  }
 0x1f4   :  { %4189 = vmatprep.subr.bf16.mxu0 %v9296_v31  ;;  %v9392_v31 = vld [vmem:[#allocation5 + $0x994] ss:$8 sps:$4 sm:$0xff]  }
 0x1f7   :  { %4190 = vmatpush1.bf16.msra.mxu0 %v9294_v32  ;;  %v9390_v32 = vld [vmem:[#allocation5 + $0x990] ss:$8 sps:$4 sm:$0xff]  }
 0x1f8   :  { %4191 = vmatprep.subr.bf16.mxu0 %v9299_v33  ;;  %v9395_v33 = vld [vmem:[#allocation5 + $0x9a4] ss:$8 sps:$4 sm:$0xff]  }
 0x1fb   :  { %4192 = vmatpush1.bf16.msra.mxu0 %v9297_v34  ;;  %v9393_v34 = vld [vmem:[#allocation5 + $0x9a0] ss:$8 sps:$4 sm:$0xff]  }
 0x1fc   :  { %4193 = vmatprep.subr.bf16.mxu0 %v9302_v35  ;;  %v9398_v35 = vld [vmem:[#allocation5 + $0x9b4] ss:$8 sps:$4 sm:$0xff]  }
 0x1ff   :  { %4194 = vmatpush1.bf16.msra.mxu0 %v9300_v36  ;;  %v9396_v36 = vld [vmem:[#allocation5 + $0x9b0] ss:$8 sps:$4 sm:$0xff]  }
 0x200   :  { %4195 = vmatprep.subr.bf16.mxu0 %v9305_v37  ;;  %v9401_v37 = vld [vmem:[#allocation5 + $0x9c4] ss:$8 sps:$4 sm:$0xff]  }
 0x203   :  { %4196 = vmatpush1.bf16.msra.mxu0 %v9303_v38  ;;  %v9399_v38 = vld [vmem:[#allocation5 + $0x9c0] ss:$8 sps:$4 sm:$0xff]  }
 0x204   :  { %4197 = vmatprep.subr.bf16.mxu0 %v9308_v39  ;;  %v9404_v39 = vld [vmem:[#allocation5 + $0x9d4] ss:$8 sps:$4 sm:$0xff]  }
 0x207   :  { %4198 = vmatpush1.bf16.msra.mxu0 %v9306_v40  ;;  %v9402_v40 = vld [vmem:[#allocation5 + $0x9d0] ss:$8 sps:$4 sm:$0xff]  }
 0x208   :  { %4210 = vmatprep.subr.bf16.mxu0 %v9314_v41  ;;  %v9407_v41 = vld [vmem:[#allocation5 + $0x9e4] ss:$8 sps:$4 sm:$0xff]  }
 0x20a   :  { %4200 = vmatmul.mubr.bf16.vlgmr.msra.gmra.mrb[0].mxu0 %v9309_v42  ;;  %v9405_v42 = vld [vmem:[#allocation5 + $0x9e0] ss:$8 sps:$4 sm:$0xff]  }
 0x20b   :  { %4211 = vmatpush1.bf16.msra.mxu0 %v9312_v43  ;;  %4242 = vmatprep.mubr.bf16.mxu0 %v9362_v44  ;;  %v9410_v43 = vld [vmem:[#allocation5 + $0x9f4] ss:$8 sps:$4 sm:$0xff]   ;;  %v9408_v44 = vld [vmem:[#allocation5 + $0x9f0] ss:$8 sps:$4 sm:$0xff]  }
 0x20c   :  { %4212 = vmatprep.subr.bf16.mxu0 %v9317_v45  ;;  %v9416_v45 = vld [vmem:[#allocation5 + $0xa04] ss:$8 sps:$4 sm:$0xff]  }
 0x20f   :  { %4213 = vmatpush1.bf16.msra.mxu0 %v9315_v46  ;;  %v9411_v46 = vld [vmem:[#allocation2 + $0x48] ss:$144 sps:$4 sm:$0xff]  }
 0x210   :  { %4214 = vmatprep.subr.bf16.mxu0 %v9320_v47  ;;  %v9414_v47 = vld [vmem:[#allocation5 + $0xa00] ss:$8 sps:$4 sm:$0xff]  }
 0x213   :  { %4215 = vmatpush1.bf16.msra.mxu0 %v9318_v48  ;;  %v9464_v48 = vld [vmem:[#allocation2 + $0x54] ss:$144 sps:$4 sm:$0xff]  }
 0x214   :  { %4216 = vmatprep.subr.bf16.mxu0 %v9323_v49  ;;  %v9419_v49 = vld [vmem:[#allocation5 + $0xa14] ss:$8 sps:$4 sm:$0xff]  }
 0x217   :  { %4217 = vmatpush1.bf16.msra.mxu0 %v9321_v50  ;;  %v9417_v50 = vld [vmem:[#allocation5 + $0xa10] ss:$8 sps:$4 sm:$0xff]  }
 0x218   :  { %4218 = vmatprep.subr.bf16.mxu0 %v9326_v51  ;;  %v9422_v51 = vld [vmem:[#allocation5 + $0xa24] ss:$8 sps:$4 sm:$0xff]  }
 0x21b   :  { %4219 = vmatpush1.bf16.msra.mxu0 %v9324_v52  ;;  %v9420_v52 = vld [vmem:[#allocation5 + $0xa20] ss:$8 sps:$4 sm:$0xff]  }
 0x21c   :  { %4220 = vmatprep.subr.bf16.mxu0 %v9329_v53  ;;  %v9425_v53 = vld [vmem:[#allocation5 + $0xa34] ss:$8 sps:$4 sm:$0xff]  }
 0x21f   :  { %4221 = vmatpush1.bf16.msra.mxu0 %v9327_v54  ;;  %v9423_v54 = vld [vmem:[#allocation5 + $0xa30] ss:$8 sps:$4 sm:$0xff]  }
 0x220   :  { %4222 = vmatprep.subr.bf16.mxu0 %v9332_v55  ;;  %v9428_v55 = vld [vmem:[#allocation5 + $0xa44] ss:$8 sps:$4 sm:$0xff]  }
 0x223   :  { %4223 = vmatpush1.bf16.msra.mxu0 %v9330_v56  ;;  %v9426_v56 = vld [vmem:[#allocation5 + $0xa40] ss:$8 sps:$4 sm:$0xff]  }
 0x224   :  { %4224 = vmatprep.subr.bf16.mxu0 %v9335_v57  ;;  %v9431_v57 = vld [vmem:[#allocation5 + $0xa54] ss:$8 sps:$4 sm:$0xff]  }
 0x227   :  { %4225 = vmatpush1.bf16.msra.mxu0 %v9333_v58  ;;  %v9429_v58 = vld [vmem:[#allocation5 + $0xa50] ss:$8 sps:$4 sm:$0xff]  }
 0x228   :  { %4226 = vmatprep.subr.bf16.mxu0 %v9338_v59  ;;  %v9434_v59 = vld [vmem:[#allocation5 + $0xa64] ss:$8 sps:$4 sm:$0xff]  }
 0x22b   :  { %4227 = vmatpush1.bf16.msra.mxu0 %v9336_v60  ;;  %v9432_v60 = vld [vmem:[#allocation5 + $0xa60] ss:$8 sps:$4 sm:$0xff]  }
 0x22c   :  { %4228 = vmatprep.subr.bf16.mxu0 %v9341_v61  ;;  %v9437_v61 = vld [vmem:[#allocation5 + $0xa74] ss:$8 sps:$4 sm:$0xff]  }
 0x22f   :  { %4229 = vmatpush1.bf16.msra.mxu0 %v9339_v62  ;;  %v9435_v62 = vld [vmem:[#allocation5 + $0xa70] ss:$8 sps:$4 sm:$0xff]  }
 0x230   :  { %4230 = vmatprep.subr.bf16.mxu0 %v9344_v63  ;;  %v9440_v63 = vld [vmem:[#allocation5 + $0xa84] ss:$8 sps:$4 sm:$0xff]  }
 0x233   :  { %4231 = vmatpush1.bf16.msra.mxu0 %v9342_v0  ;;  %v9438_v0 = vld [vmem:[#allocation5 + $0xa80] ss:$8 sps:$4 sm:$0xff]  }
 0x234   :  { %4232 = vmatprep.subr.bf16.mxu0 %v9347_v1  ;;  %v9443_v1 = vld [vmem:[#allocation5 + $0xa94] ss:$8 sps:$4 sm:$0xff]  }
 0x237   :  { %4233 = vmatpush1.bf16.msra.mxu0 %v9345_v2  ;;  %v9441_v2 = vld [vmem:[#allocation5 + $0xa90] ss:$8 sps:$4 sm:$0xff]  }
 0x238   :  { %4234 = vmatprep.subr.bf16.mxu0 %v9350_v3  ;;  %v9446_v3 = vld [vmem:[#allocation5 + $0xaa4] ss:$8 sps:$4 sm:$0xff]  }
 0x23b   :  { %4235 = vmatpush1.bf16.msra.mxu0 %v9348_v4  ;;  %v9444_v4 = vld [vmem:[#allocation5 + $0xaa0] ss:$8 sps:$4 sm:$0xff]  }
 0x23c   :  { %4236 = vmatprep.subr.bf16.mxu0 %v9353_v5  ;;  %v9449_v5 = vld [vmem:[#allocation5 + $0xab4] ss:$8 sps:$4 sm:$0xff]  }
 0x23f   :  { %4237 = vmatpush1.bf16.msra.mxu0 %v9351_v6  ;;  %v9447_v6 = vld [vmem:[#allocation5 + $0xab0] ss:$8 sps:$4 sm:$0xff]  }
 0x240   :  { %4238 = vmatprep.subr.bf16.mxu0 %v9356_v7  ;;  %v9452_v7 = vld [vmem:[#allocation5 + $0xac4] ss:$8 sps:$4 sm:$0xff]  }
 0x243   :  { %4239 = vmatpush1.bf16.msra.mxu0 %v9354_v8  ;;  %v9450_v8 = vld [vmem:[#allocation5 + $0xac0] ss:$8 sps:$4 sm:$0xff]  }
 0x244   :  { %4240 = vmatprep.subr.bf16.mxu0 %v9359_v9  ;;  %v9455_v9 = vld [vmem:[#allocation5 + $0xad4] ss:$8 sps:$4 sm:$0xff]  }
 0x247   :  { %4241 = vmatpush1.bf16.msra.mxu0 %v9357_v10  ;;  %v9453_v10 = vld [vmem:[#allocation5 + $0xad0] ss:$8 sps:$4 sm:$0xff]  }
 0x248   :  { %4253 = vmatprep.subr.bf16.mxu0 %v9365_v11  ;;  %v9458_v11 = vld [vmem:[#allocation5 + $0xae4] ss:$8 sps:$4 sm:$0xff]  }
 0x24a   :  { %4243 = vmatmul.mubr.bf16.vlgmr.msra.gmra.mrb[0].mxu0 %v9360_v12  ;;  %v9456_v12 = vld [vmem:[#allocation5 + $0xae0] ss:$8 sps:$4 sm:$0xff]  }
 0x24b   :  { %4254 = vmatpush1.bf16.msra.mxu0 %v9363_v13  ;;  %4285 = vmatprep.mubr.bf16.mxu0 %v9413_v14  ;;  %v9461_v13 = vld [vmem:[#allocation5 + $0xaf4] ss:$8 sps:$4 sm:$0xff]   ;;  %v9459_v14 = vld [vmem:[#allocation5 + $0xaf0] ss:$8 sps:$4 sm:$0xff]  }
 0x24c   :  { %4255 = vmatprep.subr.bf16.mxu0 %v9368_v15  ;;  %v9561_v15 = vld [vmem:[#allocation5 + $0x4] ss:$8 sps:$4 sm:$0xff]  }
 0x24d   :  { %3866 = vmatprep.subr.bf16.mxu1 %v9561_v15  ;;  %v9659_v15 = vld [vmem:[#allocation5 + $0xf0] ss:$8 sps:$4 sm:$0xff]  }
 0x24f   :  { %4256 = vmatpush1.bf16.msra.mxu0 %v9366_v16  ;;  %v9467_v16 = vld [vmem:[#allocation5 + $0xb04] ss:$8 sps:$4 sm:$0xff]  }
 0x250   :  { %4257 = vmatprep.subr.bf16.mxu0 %v9371_v17  ;;  %v9566_v17 = vld [vmem:[#allocation5] ss:$8 sps:$4 sm:$0xff]  }
 0x251   :  { %3867 = vmatpush1.bf16.msra.mxu1 %v9566_v17  ;;  %v9660_v17 = vld [vmem:[#allocation2] ss:$144 sps:$4 sm:$0xff]  }
 0x253   :  { %4258 = vmatpush1.bf16.msra.mxu0 %v9369_v18  ;;  %v9462_v18 = vld [vmem:[#allocation2 + $0x50] ss:$144 sps:$4 sm:$0xff]  }
 0x254   :  { %4259 = vmatprep.subr.bf16.mxu0 %v9374_v19  ;;  %v9465_v19 = vld [vmem:[#allocation5 + $0xb00] ss:$8 sps:$4 sm:$0xff]  }
 0x257   :  { %4260 = vmatpush1.bf16.msra.mxu0 %v9372_v20  ;;  %v9515_v20 = vld [vmem:[#allocation2 + $0x5c] ss:$144 sps:$4 sm:$0xff]  }
 0x258   :  { %4261 = vmatprep.subr.bf16.mxu0 %v9377_v21  ;;  %v9567_v21 = vld [vmem:[#allocation5 + $0x14] ss:$8 sps:$4 sm:$0xff]  }
 0x259   :  { %3868 = vmatprep.subr.bf16.mxu1 %v9567_v21  ;;  %v9665_v21 = vld [vmem:[#allocation5 + $0x104] ss:$8 sps:$4 sm:$0xff]  }
 0x25b   :  { %4262 = vmatpush1.bf16.msra.mxu0 %v9375_v22  ;;  %v9470_v22 = vld [vmem:[#allocation5 + $0xb14] ss:$8 sps:$4 sm:$0xff]  }
 0x25c   :  { %4263 = vmatprep.subr.bf16.mxu0 %v9380_v23  ;;  %v9575_v23 = vld [vmem:[#allocation5 + $0x10] ss:$8 sps:$4 sm:$0xff]  }
 0x25d   :  { %3869 = vmatpush1.bf16.msra.mxu1 %v9575_v23  ;;  %v9516_v23 = vld [vmem:[#allocation5 + $0xc00] ss:$8 sps:$4 sm:$0xff]  }
 0x25f   :  { %4264 = vmatpush1.bf16.msra.mxu0 %v9378_v24  ;;  %v9468_v24 = vld [vmem:[#allocation5 + $0xb10] ss:$8 sps:$4 sm:$0xff]  }
 0x260   :  { %4265 = vmatprep.subr.bf16.mxu0 %v9383_v25  ;;  %v9576_v25 = vld [vmem:[#allocation5 + $0x24] ss:$8 sps:$4 sm:$0xff]  }
 0x261   :  { %3870 = vmatprep.subr.bf16.mxu1 %v9576_v25  ;;  %v9671_v25 = vld [vmem:[#allocation5 + $0x114] ss:$8 sps:$4 sm:$0xff]  }
 0x263   :  { %4266 = vmatpush1.bf16.msra.mxu0 %v9381_v26  ;;  %v9473_v26 = vld [vmem:[#allocation5 + $0xb24] ss:$8 sps:$4 sm:$0xff]  }
 0x264   :  { %4267 = vmatprep.subr.bf16.mxu0 %v9386_v27  ;;  %v9581_v27 = vld [vmem:[#allocation5 + $0x20] ss:$8 sps:$4 sm:$0xff]  }
 0x265   :  { %3871 = vmatpush1.bf16.msra.mxu1 %v9581_v27  ;;  %v9669_v27 = vld [vmem:[#allocation5 + $0x110] ss:$8 sps:$4 sm:$0xff]  }
 0x267   :  { %4268 = vmatpush1.bf16.msra.mxu0 %v9384_v28  ;;  %v9471_v28 = vld [vmem:[#allocation5 + $0xb20] ss:$8 sps:$4 sm:$0xff]  }
 0x268   :  { %4269 = vmatprep.subr.bf16.mxu0 %v9389_v29  ;;  %v9582_v29 = vld [vmem:[#allocation5 + $0x34] ss:$8 sps:$4 sm:$0xff]  }
 0x269   :  { %3872 = vmatprep.subr.bf16.mxu1 %v9582_v29  ;;  %v9680_v29 = vld [vmem:[#allocation5 + $0x124] ss:$8 sps:$4 sm:$0xff]  }
 0x26b   :  { %4270 = vmatpush1.bf16.msra.mxu0 %v9387_v30  ;;  %v9476_v30 = vld [vmem:[#allocation5 + $0xb34] ss:$8 sps:$4 sm:$0xff]  }
 0x26c   :  { %4271 = vmatprep.subr.bf16.mxu0 %v9392_v31  ;;  %v9587_v31 = vld [vmem:[#allocation5 + $0x30] ss:$8 sps:$4 sm:$0xff]  }
 0x26d   :  { %3873 = vmatpush1.bf16.msra.mxu1 %v9587_v31  ;;  %v9678_v31 = vld [vmem:[#allocation5 + $0x120] ss:$8 sps:$4 sm:$0xff]  }
 0x26f   :  { %4272 = vmatpush1.bf16.msra.mxu0 %v9390_v32  ;;  %v9474_v32 = vld [vmem:[#allocation5 + $0xb30] ss:$8 sps:$4 sm:$0xff]  }
 0x270   :  { %4273 = vmatprep.subr.bf16.mxu0 %v9395_v33  ;;  %v9588_v33 = vld [vmem:[#allocation5 + $0x44] ss:$8 sps:$4 sm:$0xff]  }
 0x271   :  { %3874 = vmatprep.subr.bf16.mxu1 %v9588_v33  ;;  %v9686_v33 = vld [vmem:[#allocation5 + $0x134] ss:$8 sps:$4 sm:$0xff]  }
 0x273   :  { %4274 = vmatpush1.bf16.msra.mxu0 %v9393_v34  ;;  %v9479_v34 = vld [vmem:[#allocation5 + $0xb44] ss:$8 sps:$4 sm:$0xff]  }
 0x274   :  { %4275 = vmatprep.subr.bf16.mxu0 %v9398_v35  ;;  %v9593_v35 = vld [vmem:[#allocation5 + $0x40] ss:$8 sps:$4 sm:$0xff]  }
 0x275   :  { %3875 = vmatpush1.bf16.msra.mxu1 %v9593_v35  ;;  %v9684_v35 = vld [vmem:[#allocation5 + $0x130] ss:$8 sps:$4 sm:$0xff]  }
 0x277   :  { %4276 = vmatpush1.bf16.msra.mxu0 %v9396_v36  ;;  %v9477_v36 = vld [vmem:[#allocation5 + $0xb40] ss:$8 sps:$4 sm:$0xff]  }
 0x278   :  { %4277 = vmatprep.subr.bf16.mxu0 %v9401_v37  ;;  %v9594_v37 = vld [vmem:[#allocation5 + $0x54] ss:$8 sps:$4 sm:$0xff]  }
 0x279   :  { %3876 = vmatprep.subr.bf16.mxu1 %v9594_v37  ;;  %v9692_v37 = vld [vmem:[#allocation5 + $0x144] ss:$8 sps:$4 sm:$0xff]  }
 0x27b   :  { %4278 = vmatpush1.bf16.msra.mxu0 %v9399_v38  ;;  %v9482_v38 = vld [vmem:[#allocation5 + $0xb54] ss:$8 sps:$4 sm:$0xff]  }
 0x27c   :  { %4279 = vmatprep.subr.bf16.mxu0 %v9404_v39  ;;  %v9599_v39 = vld [vmem:[#allocation5 + $0x50] ss:$8 sps:$4 sm:$0xff]  }
 0x27d   :  { %3877 = vmatpush1.bf16.msra.mxu1 %v9599_v39  ;;  %v9690_v39 = vld [vmem:[#allocation5 + $0x140] ss:$8 sps:$4 sm:$0xff]  }
 0x27f   :  { %4280 = vmatpush1.bf16.msra.mxu0 %v9402_v40  ;;  %v9480_v40 = vld [vmem:[#allocation5 + $0xb50] ss:$8 sps:$4 sm:$0xff]  }
 0x280   :  { %4281 = vmatprep.subr.bf16.mxu0 %v9407_v41  ;;  %v9600_v41 = vld [vmem:[#allocation5 + $0x64] ss:$8 sps:$4 sm:$0xff]  }
 0x281   :  { %3878 = vmatprep.subr.bf16.mxu1 %v9600_v41  ;;  %v9698_v41 = vld [vmem:[#allocation5 + $0x154] ss:$8 sps:$4 sm:$0xff]  }
 0x283   :  { %4282 = vmatpush1.bf16.msra.mxu0 %v9405_v42  ;;  %v9485_v42 = vld [vmem:[#allocation5 + $0xb64] ss:$8 sps:$4 sm:$0xff]  }
 0x284   :  { %4283 = vmatprep.subr.bf16.mxu0 %v9410_v43  ;;  %v9605_v43 = vld [vmem:[#allocation5 + $0x60] ss:$8 sps:$4 sm:$0xff]  }
 0x285   :  { %3879 = vmatpush1.bf16.msra.mxu1 %v9605_v43  ;;  %v9696_v43 = vld [vmem:[#allocation5 + $0x150] ss:$8 sps:$4 sm:$0xff]  }
 0x287   :  { %4284 = vmatpush1.bf16.msra.mxu0 %v9408_v44  ;;  %v9483_v44 = vld [vmem:[#allocation5 + $0xb60] ss:$8 sps:$4 sm:$0xff]  }
 0x288   :  { %4296 = vmatprep.subr.bf16.mxu0 %v9416_v45  ;;  %v9606_v45 = vld [vmem:[#allocation5 + $0x74] ss:$8 sps:$4 sm:$0xff]  }
 0x289   :  { %3880 = vmatprep.subr.bf16.mxu1 %v9606_v45  ;;  %v9704_v45 = vld [vmem:[#allocation5 + $0x164] ss:$8 sps:$4 sm:$0xff]  }
 0x28a   :  { %4286 = vmatmul.mubr.bf16.vlgmr.msra.gmra.mrb[0].mxu0 %v9411_v46  ;;  %v9488_v46 = vld [vmem:[#allocation5 + $0xb74] ss:$8 sps:$4 sm:$0xff]  }
 0x28b   :  { %4297 = vmatpush1.bf16.msra.mxu0 %v9414_v47  ;;  %4328 = vmatprep.mubr.bf16.mxu0 %v9464_v48  ;;  %v9611_v47 = vld [vmem:[#allocation5 + $0x70] ss:$8 sps:$4 sm:$0xff]  }
 0x28c   :  { %4298 = vmatprep.subr.bf16.mxu0 %v9419_v49  ;;  %3881 = vmatpush1.bf16.msra.mxu1 %v9611_v47  ;;  %v9486_v48 = vld [vmem:[#allocation5 + $0xb70] ss:$8 sps:$4 sm:$0xff]   ;;  %v9612_v49 = vld [vmem:[#allocation5 + $0x84] ss:$8 sps:$4 sm:$0xff]   ;;  %v9702_v47 = vld [vmem:[#allocation5 + $0x160] ss:$8 sps:$4 sm:$0xff]  }
 0x28d   :  { %3882 = vmatprep.subr.bf16.mxu1 %v9612_v49  ;;  %v9710_v49 = vld [vmem:[#allocation5 + $0x174] ss:$8 sps:$4 sm:$0xff]  }
 0x28f   :  { %4299 = vmatpush1.bf16.msra.mxu0 %v9417_v50  ;;  %v9491_v50 = vld [vmem:[#allocation5 + $0xb84] ss:$8 sps:$4 sm:$0xff]  }
 0x290   :  { %4300 = vmatprep.subr.bf16.mxu0 %v9422_v51  ;;  %v9617_v51 = vld [vmem:[#allocation5 + $0x80] ss:$8 sps:$4 sm:$0xff]  }
 0x291   :  { %3883 = vmatpush1.bf16.msra.mxu1 %v9617_v51  ;;  %v9708_v51 = vld [vmem:[#allocation5 + $0x170] ss:$8 sps:$4 sm:$0xff]  }
 0x293   :  { %4301 = vmatpush1.bf16.msra.mxu0 %v9420_v52  ;;  %v9489_v52 = vld [vmem:[#allocation5 + $0xb80] ss:$8 sps:$4 sm:$0xff]  }
 0x294   :  { %4302 = vmatprep.subr.bf16.mxu0 %v9425_v53  ;;  %v9618_v53 = vld [vmem:[#allocation5 + $0x94] ss:$8 sps:$4 sm:$0xff]  }
 0x295   :  { %3884 = vmatprep.subr.bf16.mxu1 %v9618_v53  ;;  %v9716_v53 = vld [vmem:[#allocation5 + $0x184] ss:$8 sps:$4 sm:$0xff]  }
 0x297   :  { %4303 = vmatpush1.bf16.msra.mxu0 %v9423_v54  ;;  %v9494_v54 = vld [vmem:[#allocation5 + $0xb94] ss:$8 sps:$4 sm:$0xff]  }
 0x298   :  { %4304 = vmatprep.subr.bf16.mxu0 %v9428_v55  ;;  %v9623_v55 = vld [vmem:[#allocation5 + $0x90] ss:$8 sps:$4 sm:$0xff]  }
 0x299   :  { %3885 = vmatpush1.bf16.msra.mxu1 %v9623_v55  ;;  %v9714_v55 = vld [vmem:[#allocation5 + $0x180] ss:$8 sps:$4 sm:$0xff]  }
 0x29b   :  { %4305 = vmatpush1.bf16.msra.mxu0 %v9426_v56  ;;  %v9492_v56 = vld [vmem:[#allocation5 + $0xb90] ss:$8 sps:$4 sm:$0xff]  }
 0x29c   :  { %4306 = vmatprep.subr.bf16.mxu0 %v9431_v57  ;;  %v9624_v57 = vld [vmem:[#allocation5 + $0xa4] ss:$8 sps:$4 sm:$0xff]  }
 0x29d   :  { %3886 = vmatprep.subr.bf16.mxu1 %v9624_v57  ;;  %v9722_v57 = vld [vmem:[#allocation5 + $0x194] ss:$8 sps:$4 sm:$0xff]  }
 0x29f   :  { %4307 = vmatpush1.bf16.msra.mxu0 %v9429_v58  ;;  %v9497_v58 = vld [vmem:[#allocation5 + $0xba4] ss:$8 sps:$4 sm:$0xff]  }
 0x2a0   :  { %4308 = vmatprep.subr.bf16.mxu0 %v9434_v59  ;;  %v9629_v59 = vld [vmem:[#allocation5 + $0xa0] ss:$8 sps:$4 sm:$0xff]  }
 0x2a1   :  { %3887 = vmatpush1.bf16.msra.mxu1 %v9629_v59  ;;  %v9720_v59 = vld [vmem:[#allocation5 + $0x190] ss:$8 sps:$4 sm:$0xff]  }
 0x2a3   :  { %4309 = vmatpush1.bf16.msra.mxu0 %v9432_v60  ;;  %v9495_v60 = vld [vmem:[#allocation5 + $0xba0] ss:$8 sps:$4 sm:$0xff]  }
 0x2a4   :  { %4310 = vmatprep.subr.bf16.mxu0 %v9437_v61  ;;  %v9630_v61 = vld [vmem:[#allocation5 + $0xb4] ss:$8 sps:$4 sm:$0xff]  }
 0x2a5   :  { %3888 = vmatprep.subr.bf16.mxu1 %v9630_v61  ;;  %v9728_v61 = vld [vmem:[#allocation5 + $0x1a4] ss:$8 sps:$4 sm:$0xff]  }
 0x2a7   :  { %4311 = vmatpush1.bf16.msra.mxu0 %v9435_v62  ;;  %v9500_v62 = vld [vmem:[#allocation5 + $0xbb4] ss:$8 sps:$4 sm:$0xff]  }
 0x2a8   :  { %4312 = vmatprep.subr.bf16.mxu0 %v9440_v63  ;;  %v9635_v63 = vld [vmem:[#allocation5 + $0xb0] ss:$8 sps:$4 sm:$0xff]  }
 0x2a9   :  { %3889 = vmatpush1.bf16.msra.mxu1 %v9635_v63  ;;  %v9726_v63 = vld [vmem:[#allocation5 + $0x1a0] ss:$8 sps:$4 sm:$0xff]  }
 0x2ab   :  { %4313 = vmatpush1.bf16.msra.mxu0 %v9438_v0  ;;  %v9498_v0 = vld [vmem:[#allocation5 + $0xbb0] ss:$8 sps:$4 sm:$0xff]  }
 0x2ac   :  { %4314 = vmatprep.subr.bf16.mxu0 %v9443_v1  ;;  %v9636_v1 = vld [vmem:[#allocation5 + $0xc4] ss:$8 sps:$4 sm:$0xff]  }
 0x2ad   :  { %3890 = vmatprep.subr.bf16.mxu1 %v9636_v1  ;;  %v9734_v1 = vld [vmem:[#allocation5 + $0x1b4] ss:$8 sps:$4 sm:$0xff]  }
 0x2af   :  { %4315 = vmatpush1.bf16.msra.mxu0 %v9441_v2  ;;  %v9503_v2 = vld [vmem:[#allocation5 + $0xbc4] ss:$8 sps:$4 sm:$0xff]  }
 0x2b0   :  { %4316 = vmatprep.subr.bf16.mxu0 %v9446_v3  ;;  %v9641_v3 = vld [vmem:[#allocation5 + $0xc0] ss:$8 sps:$4 sm:$0xff]  }
 0x2b1   :  { %3891 = vmatpush1.bf16.msra.mxu1 %v9641_v3  ;;  %v9732_v3 = vld [vmem:[#allocation5 + $0x1b0] ss:$8 sps:$4 sm:$0xff]  }
 0x2b3   :  { %4317 = vmatpush1.bf16.msra.mxu0 %v9444_v4  ;;  %v9501_v4 = vld [vmem:[#allocation5 + $0xbc0] ss:$8 sps:$4 sm:$0xff]  }
 0x2b4   :  { %4318 = vmatprep.subr.bf16.mxu0 %v9449_v5  ;;  %v9642_v5 = vld [vmem:[#allocation5 + $0xd4] ss:$8 sps:$4 sm:$0xff]  }
 0x2b5   :  { %3892 = vmatprep.subr.bf16.mxu1 %v9642_v5  ;;  %v9740_v5 = vld [vmem:[#allocation5 + $0x1c4] ss:$8 sps:$4 sm:$0xff]  }
 0x2b7   :  { %4319 = vmatpush1.bf16.msra.mxu0 %v9447_v6  ;;  %v9506_v6 = vld [vmem:[#allocation5 + $0xbd4] ss:$8 sps:$4 sm:$0xff]  }
 0x2b8   :  { %4320 = vmatprep.subr.bf16.mxu0 %v9452_v7  ;;  %v9647_v7 = vld [vmem:[#allocation5 + $0xd0] ss:$8 sps:$4 sm:$0xff]  }
 0x2b9   :  { %3893 = vmatpush1.bf16.msra.mxu1 %v9647_v7  ;;  %v9738_v7 = vld [vmem:[#allocation5 + $0x1c0] ss:$8 sps:$4 sm:$0xff]  }
 0x2bb   :  { %4321 = vmatpush1.bf16.msra.mxu0 %v9450_v8  ;;  %v9504_v8 = vld [vmem:[#allocation5 + $0xbd0] ss:$8 sps:$4 sm:$0xff]  }
 0x2bc   :  { %4322 = vmatprep.subr.bf16.mxu0 %v9455_v9  ;;  %v9648_v9 = vld [vmem:[#allocation5 + $0xe4] ss:$8 sps:$4 sm:$0xff]  }
 0x2bd   :  { %3894 = vmatprep.subr.bf16.mxu1 %v9648_v9  ;;  %v9746_v9 = vld [vmem:[#allocation5 + $0x1d4] ss:$8 sps:$4 sm:$0xff]  }
 0x2bf   :  { %4323 = vmatpush1.bf16.msra.mxu0 %v9453_v10  ;;  %v9509_v10 = vld [vmem:[#allocation5 + $0xbe4] ss:$8 sps:$4 sm:$0xff]  }
 0x2c0   :  { %4324 = vmatprep.subr.bf16.mxu0 %v9458_v11  ;;  %v9653_v11 = vld [vmem:[#allocation5 + $0xe0] ss:$8 sps:$4 sm:$0xff]  }
 0x2c1   :  { %3895 = vmatpush1.bf16.msra.mxu1 %v9653_v11  ;;  %v9744_v11 = vld [vmem:[#allocation5 + $0x1d0] ss:$8 sps:$4 sm:$0xff]  }
 0x2c3   :  { %4325 = vmatpush1.bf16.msra.mxu0 %v9456_v12  ;;  %v9507_v12 = vld [vmem:[#allocation5 + $0xbe0] ss:$8 sps:$4 sm:$0xff]  }
 0x2c4   :  { %4326 = vmatprep.subr.bf16.mxu0 %v9461_v13  ;;  %v9654_v13 = vld [vmem:[#allocation5 + $0xf4] ss:$8 sps:$4 sm:$0xff]  }
 0x2c5   :  { %3896 = vmatprep.subr.bf16.mxu1 %v9654_v13  ;;  %v9752_v13 = vld [vmem:[#allocation5 + $0x1e4] ss:$8 sps:$4 sm:$0xff]  }
 0x2c6   :  { %3897 = vmatpush1.bf16.msra.mxu1 %v9659_v15  ;;  %v9750_v15 = vld [vmem:[#allocation5 + $0x1e0] ss:$8 sps:$4 sm:$0xff]  }
 0x2c7   :  { %4327 = vmatpush1.bf16.msra.mxu0 %v9459_v14  ;;  %v9512_v14 = vld [vmem:[#allocation5 + $0xbf4] ss:$8 sps:$4 sm:$0xff]   ;;  %3909 = vmatprep.subr.bf16.mxu1 %v9665_v21  ;;  %v9762_v21 = vld [vmem:[#allocation2 + $0x8] ss:$144 sps:$4 sm:$0xff]  }
 0x2c8   :  { %4339 = vmatprep.subr.bf16.mxu0 %v9467_v16  ;;  %v9510_v16 = vld [vmem:[#allocation5 + $0xbf0] ss:$8 sps:$4 sm:$0xff]  }
 0x2ca   :  { %4329 = vmatmul.mubr.bf16.vlgmr.msra.gmra.mrb[0].mxu0 %v9462_v18  ;;  %v9662_v18 = vld [vmem:[#allocation2 + $0x4] ss:$144 sps:$4 sm:$0xff]  }
 0x2cb   :  { %4340 = vmatpush1.bf16.msra.mxu0 %v9465_v19  ;;  %4371 = vmatprep.mubr.bf16.mxu0 %v9515_v20  ;;  %v9663_v19 = vld [vmem:[#allocation5 + $0x100] ss:$8 sps:$4 sm:$0xff]   ;;  %v9518_v20 = vld [vmem:[#allocation5 + $0xc04] ss:$8 sps:$4 sm:$0xff]  }
 0x2cc   :  { %4341 = vmatprep.subr.bf16.mxu0 %v9470_v22  ;;  %3898 = vmatprep.mubr.bf16.mxu1 %v9662_v18  ;;  %v9513_v22 = vld [vmem:[#allocation2 + $0x58] ss:$144 sps:$4 sm:$0xff]   ;;  %v9565_v18 = vld [vmem:[#allocation5 + $0xcf4] ss:$8 sps:$4 sm:$0xff]  }
 0x2cd   :  { %3899 = vmatmul.mubr.bf16.vlgmr.msra.gmra.mrb[0].mxu1 %v9660_v17  ;;  %v9758_v17 = vld [vmem:[#allocation5 + $0x1f4] ss:$8 sps:$4 sm:$0xff]  }
 0x2ce   :  { %3910 = vmatpush1.bf16.msra.mxu1 %v9663_v19  ;;  %v9756_v19 = vld [vmem:[#allocation5 + $0x1f0] ss:$8 sps:$4 sm:$0xff]  }
 0x2cf   :  { %4342 = vmatpush1.bf16.msra.mxu0 %v9468_v24  ;;  %v9571_v24 = vld [vmem:[#allocation2 + $0x64] ss:$144 sps:$4 sm:$0xff]   ;;  %3911 = vmatprep.subr.bf16.mxu1 %v9671_v25 }
 0x2d0   :  { %4343 = vmatprep.subr.bf16.mxu0 %v9473_v26  ;;  %v9521_v26 = vld [vmem:[#allocation5 + $0xc14] ss:$8 sps:$4 sm:$0xff]   ;;  %v9767_v25 = vld [vmem:[#allocation5 + $0x204] ss:$8 sps:$4 sm:$0xff]  }
 0x2d2   :  { %3912 = vmatpush1.bf16.msra.mxu1 %v9669_v27  ;;  %v9572_v27 = vld [vmem:[#allocation5 + $0xd00] ss:$8 sps:$4 sm:$0xff]  }
 0x2d3   :  { %4344 = vmatpush1.bf16.msra.mxu0 %v9471_v28  ;;  %v9519_v28 = vld [vmem:[#allocation5 + $0xc10] ss:$8 sps:$4 sm:$0xff]   ;;  %3913 = vmatprep.subr.bf16.mxu1 %v9680_v29  ;;  %v9773_v29 = vld [vmem:[#allocation5 + $0x214] ss:$8 sps:$4 sm:$0xff]  }
 0x2d4   :  { %4345 = vmatprep.subr.bf16.mxu0 %v9476_v30  ;;  %v9524_v30 = vld [vmem:[#allocation5 + $0xc24] ss:$8 sps:$4 sm:$0xff]  }
 0x2d6   :  { %3914 = vmatpush1.bf16.msra.mxu1 %v9678_v31  ;;  %v9771_v31 = vld [vmem:[#allocation5 + $0x210] ss:$8 sps:$4 sm:$0xff]  }
 0x2d7   :  { %4346 = vmatpush1.bf16.msra.mxu0 %v9474_v32  ;;  %v9522_v32 = vld [vmem:[#allocation5 + $0xc20] ss:$8 sps:$4 sm:$0xff]   ;;  %3915 = vmatprep.subr.bf16.mxu1 %v9686_v33  ;;  %v9782_v33 = vld [vmem:[#allocation5 + $0x224] ss:$8 sps:$4 sm:$0xff]  }
 0x2d8   :  { %4347 = vmatprep.subr.bf16.mxu0 %v9479_v34  ;;  %v9527_v34 = vld [vmem:[#allocation5 + $0xc34] ss:$8 sps:$4 sm:$0xff]  }
 0x2da   :  { %3916 = vmatpush1.bf16.msra.mxu1 %v9684_v35  ;;  %v9780_v35 = vld [vmem:[#allocation5 + $0x220] ss:$8 sps:$4 sm:$0xff]  }
 0x2db   :  { %4348 = vmatpush1.bf16.msra.mxu0 %v9477_v36  ;;  %v9525_v36 = vld [vmem:[#allocation5 + $0xc30] ss:$8 sps:$4 sm:$0xff]   ;;  %3917 = vmatprep.subr.bf16.mxu1 %v9692_v37  ;;  %v9788_v37 = vld [vmem:[#allocation5 + $0x234] ss:$8 sps:$4 sm:$0xff]  }
 0x2dc   :  { %4349 = vmatprep.subr.bf16.mxu0 %v9482_v38  ;;  %v9530_v38 = vld [vmem:[#allocation5 + $0xc44] ss:$8 sps:$4 sm:$0xff]  }
 0x2de   :  { %3918 = vmatpush1.bf16.msra.mxu1 %v9690_v39  ;;  %v9786_v39 = vld [vmem:[#allocation5 + $0x230] ss:$8 sps:$4 sm:$0xff]  }
 0x2df   :  { %4350 = vmatpush1.bf16.msra.mxu0 %v9480_v40  ;;  %v9528_v40 = vld [vmem:[#allocation5 + $0xc40] ss:$8 sps:$4 sm:$0xff]   ;;  %3919 = vmatprep.subr.bf16.mxu1 %v9698_v41  ;;  %v9794_v41 = vld [vmem:[#allocation5 + $0x244] ss:$8 sps:$4 sm:$0xff]  }
 0x2e0   :  { %4351 = vmatprep.subr.bf16.mxu0 %v9485_v42  ;;  %v9533_v42 = vld [vmem:[#allocation5 + $0xc54] ss:$8 sps:$4 sm:$0xff]  }
 0x2e2   :  { %3920 = vmatpush1.bf16.msra.mxu1 %v9696_v43  ;;  %v9792_v43 = vld [vmem:[#allocation5 + $0x240] ss:$8 sps:$4 sm:$0xff]  }
 0x2e3   :  { %4352 = vmatpush1.bf16.msra.mxu0 %v9483_v44  ;;  %v9531_v44 = vld [vmem:[#allocation5 + $0xc50] ss:$8 sps:$4 sm:$0xff]   ;;  %3921 = vmatprep.subr.bf16.mxu1 %v9704_v45  ;;  %v9800_v45 = vld [vmem:[#allocation5 + $0x254] ss:$8 sps:$4 sm:$0xff]  }
 0x2e4   :  { %4353 = vmatprep.subr.bf16.mxu0 %v9488_v46  ;;  %v9536_v46 = vld [vmem:[#allocation5 + $0xc64] ss:$8 sps:$4 sm:$0xff]  }
 0x2e6   :  { %3922 = vmatpush1.bf16.msra.mxu1 %v9702_v47  ;;  %v9798_v47 = vld [vmem:[#allocation5 + $0x250] ss:$8 sps:$4 sm:$0xff]  }
 0x2e7   :  { %4354 = vmatpush1.bf16.msra.mxu0 %v9486_v48  ;;  %v9534_v48 = vld [vmem:[#allocation5 + $0xc60] ss:$8 sps:$4 sm:$0xff]   ;;  %3923 = vmatprep.subr.bf16.mxu1 %v9710_v49  ;;  %v9806_v49 = vld [vmem:[#allocation5 + $0x264] ss:$8 sps:$4 sm:$0xff]  }
 0x2e8   :  { %4355 = vmatprep.subr.bf16.mxu0 %v9491_v50  ;;  %v9539_v50 = vld [vmem:[#allocation5 + $0xc74] ss:$8 sps:$4 sm:$0xff]  }
 0x2ea   :  { %3924 = vmatpush1.bf16.msra.mxu1 %v9708_v51  ;;  %v9804_v51 = vld [vmem:[#allocation5 + $0x260] ss:$8 sps:$4 sm:$0xff]  }
 0x2eb   :  { %4356 = vmatpush1.bf16.msra.mxu0 %v9489_v52  ;;  %v9537_v52 = vld [vmem:[#allocation5 + $0xc70] ss:$8 sps:$4 sm:$0xff]   ;;  %3925 = vmatprep.subr.bf16.mxu1 %v9716_v53  ;;  %v9812_v53 = vld [vmem:[#allocation5 + $0x274] ss:$8 sps:$4 sm:$0xff]  }
 0x2ec   :  { %4357 = vmatprep.subr.bf16.mxu0 %v9494_v54  ;;  %v9542_v54 = vld [vmem:[#allocation5 + $0xc84] ss:$8 sps:$4 sm:$0xff]  }
 0x2ee   :  { %3926 = vmatpush1.bf16.msra.mxu1 %v9714_v55  ;;  %v9810_v55 = vld [vmem:[#allocation5 + $0x270] ss:$8 sps:$4 sm:$0xff]  }
 0x2ef   :  { %4358 = vmatpush1.bf16.msra.mxu0 %v9492_v56  ;;  %v9540_v56 = vld [vmem:[#allocation5 + $0xc80] ss:$8 sps:$4 sm:$0xff]   ;;  %3927 = vmatprep.subr.bf16.mxu1 %v9722_v57  ;;  %v9818_v57 = vld [vmem:[#allocation5 + $0x284] ss:$8 sps:$4 sm:$0xff]  }
 0x2f0   :  { %4359 = vmatprep.subr.bf16.mxu0 %v9497_v58  ;;  %v9545_v58 = vld [vmem:[#allocation5 + $0xc94] ss:$8 sps:$4 sm:$0xff]  }
 0x2f2   :  { %3928 = vmatpush1.bf16.msra.mxu1 %v9720_v59  ;;  %v9816_v59 = vld [vmem:[#allocation5 + $0x280] ss:$8 sps:$4 sm:$0xff]  }
 0x2f3   :  { %4360 = vmatpush1.bf16.msra.mxu0 %v9495_v60  ;;  %v9543_v60 = vld [vmem:[#allocation5 + $0xc90] ss:$8 sps:$4 sm:$0xff]   ;;  %3929 = vmatprep.subr.bf16.mxu1 %v9728_v61  ;;  %v9824_v61 = vld [vmem:[#allocation5 + $0x294] ss:$8 sps:$4 sm:$0xff]  }
 0x2f4   :  { %4361 = vmatprep.subr.bf16.mxu0 %v9500_v62  ;;  %v9548_v62 = vld [vmem:[#allocation5 + $0xca4] ss:$8 sps:$4 sm:$0xff]  }
 0x2f6   :  { %3930 = vmatpush1.bf16.msra.mxu1 %v9726_v63  ;;  %v9822_v63 = vld [vmem:[#allocation5 + $0x290] ss:$8 sps:$4 sm:$0xff]  }
 0x2f7   :  { %4362 = vmatpush1.bf16.msra.mxu0 %v9498_v0  ;;  %v9546_v0 = vld [vmem:[#allocation5 + $0xca0] ss:$8 sps:$4 sm:$0xff]   ;;  %3931 = vmatprep.subr.bf16.mxu1 %v9734_v1  ;;  %v9830_v1 = vld [vmem:[#allocation5 + $0x2a4] ss:$8 sps:$4 sm:$0xff]  }
 0x2f8   :  { %4363 = vmatprep.subr.bf16.mxu0 %v9503_v2  ;;  %v9551_v2 = vld [vmem:[#allocation5 + $0xcb4] ss:$8 sps:$4 sm:$0xff]  }
 0x2fa   :  { %3932 = vmatpush1.bf16.msra.mxu1 %v9732_v3  ;;  %v9828_v3 = vld [vmem:[#allocation5 + $0x2a0] ss:$8 sps:$4 sm:$0xff]  }
 0x2fb   :  { %4364 = vmatpush1.bf16.msra.mxu0 %v9501_v4  ;;  %v9549_v4 = vld [vmem:[#allocation5 + $0xcb0] ss:$8 sps:$4 sm:$0xff]   ;;  %3933 = vmatprep.subr.bf16.mxu1 %v9740_v5  ;;  %v9836_v5 = vld [vmem:[#allocation5 + $0x2b4] ss:$8 sps:$4 sm:$0xff]  }
 0x2fc   :  { %4365 = vmatprep.subr.bf16.mxu0 %v9506_v6  ;;  %v9554_v6 = vld [vmem:[#allocation5 + $0xcc4] ss:$8 sps:$4 sm:$0xff]  }
 0x2fe   :  { %3934 = vmatpush1.bf16.msra.mxu1 %v9738_v7  ;;  %v9834_v7 = vld [vmem:[#allocation5 + $0x2b0] ss:$8 sps:$4 sm:$0xff]  }
 0x2ff   :  { %4366 = vmatpush1.bf16.msra.mxu0 %v9504_v8  ;;  %v9552_v8 = vld [vmem:[#allocation5 + $0xcc0] ss:$8 sps:$4 sm:$0xff]   ;;  %3935 = vmatprep.subr.bf16.mxu1 %v9746_v9  ;;  %v9842_v9 = vld [vmem:[#allocation5 + $0x2c4] ss:$8 sps:$4 sm:$0xff]  }
 0x300   :  { %4367 = vmatprep.subr.bf16.mxu0 %v9509_v10  ;;  %v9557_v10 = vld [vmem:[#allocation5 + $0xcd4] ss:$8 sps:$4 sm:$0xff]  }
 0x302   :  { %3936 = vmatpush1.bf16.msra.mxu1 %v9744_v11  ;;  %v9840_v11 = vld [vmem:[#allocation5 + $0x2c0] ss:$8 sps:$4 sm:$0xff]  }
 0x303   :  { %4368 = vmatpush1.bf16.msra.mxu0 %v9507_v12  ;;  %v9555_v12 = vld [vmem:[#allocation5 + $0xcd0] ss:$8 sps:$4 sm:$0xff]   ;;  %3937 = vmatprep.subr.bf16.mxu1 %v9752_v13  ;;  %v9848_v13 = vld [vmem:[#allocation5 + $0x2d4] ss:$8 sps:$4 sm:$0xff]  }
 0x304   :  { %4369 = vmatprep.subr.bf16.mxu0 %v9512_v14  ;;  %v9560_v14 = vld [vmem:[#allocation5 + $0xce4] ss:$8 sps:$4 sm:$0xff]  }
 0x306   :  { %3938 = vmatpush1.bf16.msra.mxu1 %v9750_v15  ;;  %v9846_v15 = vld [vmem:[#allocation5 + $0x2d0] ss:$8 sps:$4 sm:$0xff]  }
 0x307   :  { %4370 = vmatpush1.bf16.msra.mxu0 %v9510_v16  ;;  %v9558_v16 = vld [vmem:[#allocation5 + $0xce0] ss:$8 sps:$4 sm:$0xff]   ;;  %3939 = vmatprep.subr.bf16.mxu1 %v9758_v17  ;;  %v9854_v17 = vld [vmem:[#allocation5 + $0x2e4] ss:$8 sps:$4 sm:$0xff]  }
 0x308   :  { %4382 = vmatprep.subr.bf16.mxu0 %v9518_v20  ;;  %v9563_v20 = vld [vmem:[#allocation5 + $0xcf0] ss:$8 sps:$4 sm:$0xff]  }
 0x30a   :  { %4372 = vmatmul.mubr.bf16.vlgmr.msra.gmra.mrb[0].mxu0 %v9513_v22  ;;  %v9764_v22 = vld [vmem:[#allocation2 + $0xc] ss:$144 sps:$4 sm:$0xff]   ;;  %3940 = vmatpush1.bf16.msra.mxu1 %v9756_v19  ;;  %v9852_v19 = vld [vmem:[#allocation5 + $0x2e0] ss:$8 sps:$4 sm:$0xff]  }
 0x30b   :  { %4383 = vmatpush1.bf16.msra.mxu0 %v9516_v23  ;;  %4414 = vmatprep.mubr.bf16.mxu0 %v9571_v24  ;;  %v9574_v23 = vld [vmem:[#allocation5 + $0xd04] ss:$8 sps:$4 sm:$0xff]   ;;  %v9765_v24 = vld [vmem:[#allocation5 + $0x200] ss:$8 sps:$4 sm:$0xff]  }
 0x30c   :  { %4384 = vmatprep.subr.bf16.mxu0 %v9521_v26  ;;  %3941 = vmatprep.mubr.bf16.mxu1 %v9764_v22  ;;  %v9569_v26 = vld [vmem:[#allocation2 + $0x60] ss:$144 sps:$4 sm:$0xff]   ;;  %v9668_v22 = vld [vmem:[#allocation5 + $0xdf4] ss:$8 sps:$4 sm:$0xff]  }
 0x30d   :  { %3952 = vmatprep.subr.bf16.mxu1 %v9767_v25  ;;  %3942 = vmatmul.mubr.bf16.vlgmr.msra.gmra.mrb[0].mxu1 %v9762_v21  ;;  %v9860_v21 = vld [vmem:[#allocation5 + $0x2f4] ss:$8 sps:$4 sm:$0xff]   ;;  %v9864_v25 = vld [vmem:[#allocation2 + $0x10] ss:$144 sps:$4 sm:$0xff]  }
 0x30e   :  { %3953 = vmatpush1.bf16.msra.mxu1 %v9765_v24  ;;  %v9666_v24 = vld [vmem:[#allocation5 + $0xdf0] ss:$8 sps:$4 sm:$0xff]  }
 0x30f   :  { %4385 = vmatpush1.bf16.msra.mxu0 %v9519_v28  ;;  %v9674_v28 = vld [vmem:[#allocation2 + $0x6c] ss:$144 sps:$4 sm:$0xff]   ;;  %3954 = vmatprep.subr.bf16.mxu1 %v9773_v29  ;;  %v9675_v29 = vld [vmem:[#allocation5 + $0xe00] ss:$8 sps:$4 sm:$0xff]  }
 0x310   :  { %4386 = vmatprep.subr.bf16.mxu0 %v9524_v30  ;;  %v9580_v30 = vld [vmem:[#allocation5 + $0xd14] ss:$8 sps:$4 sm:$0xff]  }
 0x312   :  { %3955 = vmatpush1.bf16.msra.mxu1 %v9771_v31  ;;  %v9683_v31 = vld [vmem:[#allocation5 + $0xe14] ss:$8 sps:$4 sm:$0xff]  }
 0x313   :  { %4387 = vmatpush1.bf16.msra.mxu0 %v9522_v32  ;;  %v9578_v32 = vld [vmem:[#allocation5 + $0xd10] ss:$8 sps:$4 sm:$0xff]   ;;  %3956 = vmatprep.subr.bf16.mxu1 %v9782_v33  ;;  %v9689_v33 = vld [vmem:[#allocation5 + $0xe24] ss:$8 sps:$4 sm:$0xff]  }
 0x314   :  { %4388 = vmatprep.subr.bf16.mxu0 %v9527_v34  ;;  %v9586_v34 = vld [vmem:[#allocation5 + $0xd24] ss:$8 sps:$4 sm:$0xff]  }
 0x316   :  { %3957 = vmatpush1.bf16.msra.mxu1 %v9780_v35  ;;  %v9695_v35 = vld [vmem:[#allocation5 + $0xe34] ss:$8 sps:$4 sm:$0xff]  }
 0x317   :  { %4389 = vmatpush1.bf16.msra.mxu0 %v9525_v36  ;;  %v9584_v36 = vld [vmem:[#allocation5 + $0xd20] ss:$8 sps:$4 sm:$0xff]   ;;  %3958 = vmatprep.subr.bf16.mxu1 %v9788_v37  ;;  %v9701_v37 = vld [vmem:[#allocation5 + $0xe44] ss:$8 sps:$4 sm:$0xff]  }
 0x318   :  { %4390 = vmatprep.subr.bf16.mxu0 %v9530_v38  ;;  %v9592_v38 = vld [vmem:[#allocation5 + $0xd34] ss:$8 sps:$4 sm:$0xff]  }
 0x31a   :  { %3959 = vmatpush1.bf16.msra.mxu1 %v9786_v39  ;;  %v9707_v39 = vld [vmem:[#allocation5 + $0xe54] ss:$8 sps:$4 sm:$0xff]  }
 0x31b   :  { %4391 = vmatpush1.bf16.msra.mxu0 %v9528_v40  ;;  %v9590_v40 = vld [vmem:[#allocation5 + $0xd30] ss:$8 sps:$4 sm:$0xff]   ;;  %3960 = vmatprep.subr.bf16.mxu1 %v9794_v41  ;;  %v9713_v41 = vld [vmem:[#allocation5 + $0xe64] ss:$8 sps:$4 sm:$0xff]  }
 0x31c   :  { %4392 = vmatprep.subr.bf16.mxu0 %v9533_v42  ;;  %v9598_v42 = vld [vmem:[#allocation5 + $0xd44] ss:$8 sps:$4 sm:$0xff]  }
 0x31e   :  { %3961 = vmatpush1.bf16.msra.mxu1 %v9792_v43  ;;  %v9719_v43 = vld [vmem:[#allocation5 + $0xe74] ss:$8 sps:$4 sm:$0xff]  }
 0x31f   :  { %4393 = vmatpush1.bf16.msra.mxu0 %v9531_v44  ;;  %v9596_v44 = vld [vmem:[#allocation5 + $0xd40] ss:$8 sps:$4 sm:$0xff]   ;;  %3962 = vmatprep.subr.bf16.mxu1 %v9800_v45  ;;  %v9725_v45 = vld [vmem:[#allocation5 + $0xe84] ss:$8 sps:$4 sm:$0xff]  }
 0x320   :  { %4394 = vmatprep.subr.bf16.mxu0 %v9536_v46  ;;  %v9604_v46 = vld [vmem:[#allocation5 + $0xd54] ss:$8 sps:$4 sm:$0xff]  }
 0x322   :  { %3963 = vmatpush1.bf16.msra.mxu1 %v9798_v47  ;;  %v9731_v47 = vld [vmem:[#allocation5 + $0xe94] ss:$8 sps:$4 sm:$0xff]  }
 0x323   :  { %4395 = vmatpush1.bf16.msra.mxu0 %v9534_v48  ;;  %v9602_v48 = vld [vmem:[#allocation5 + $0xd50] ss:$8 sps:$4 sm:$0xff]   ;;  %3964 = vmatprep.subr.bf16.mxu1 %v9806_v49  ;;  %v9737_v49 = vld [vmem:[#allocation5 + $0xea4] ss:$8 sps:$4 sm:$0xff]  }
 0x324   :  { %4396 = vmatprep.subr.bf16.mxu0 %v9539_v50  ;;  %v9610_v50 = vld [vmem:[#allocation5 + $0xd64] ss:$8 sps:$4 sm:$0xff]  }
 0x326   :  { %3965 = vmatpush1.bf16.msra.mxu1 %v9804_v51  ;;  %v9743_v51 = vld [vmem:[#allocation5 + $0xeb4] ss:$8 sps:$4 sm:$0xff]  }
 0x327   :  { %4397 = vmatpush1.bf16.msra.mxu0 %v9537_v52  ;;  %v9608_v52 = vld [vmem:[#allocation5 + $0xd60] ss:$8 sps:$4 sm:$0xff]   ;;  %3966 = vmatprep.subr.bf16.mxu1 %v9812_v53  ;;  %v9749_v53 = vld [vmem:[#allocation5 + $0xec4] ss:$8 sps:$4 sm:$0xff]  }
 0x328   :  { %4398 = vmatprep.subr.bf16.mxu0 %v9542_v54  ;;  %v9616_v54 = vld [vmem:[#allocation5 + $0xd74] ss:$8 sps:$4 sm:$0xff]  }
 0x32a   :  { %3967 = vmatpush1.bf16.msra.mxu1 %v9810_v55  ;;  %v9755_v55 = vld [vmem:[#allocation5 + $0xed4] ss:$8 sps:$4 sm:$0xff]  }
 0x32b   :  { %4399 = vmatpush1.bf16.msra.mxu0 %v9540_v56  ;;  %v9614_v56 = vld [vmem:[#allocation5 + $0xd70] ss:$8 sps:$4 sm:$0xff]   ;;  %3968 = vmatprep.subr.bf16.mxu1 %v9818_v57  ;;  %v9761_v57 = vld [vmem:[#allocation5 + $0xee4] ss:$8 sps:$4 sm:$0xff]  }
 0x32c   :  { %4400 = vmatprep.subr.bf16.mxu0 %v9545_v58  ;;  %v9622_v58 = vld [vmem:[#allocation5 + $0xd84] ss:$8 sps:$4 sm:$0xff]  }
 0x32e   :  { %3969 = vmatpush1.bf16.msra.mxu1 %v9816_v59  ;;  %v9770_v59 = vld [vmem:[#allocation5 + $0xef4] ss:$8 sps:$4 sm:$0xff]  }
 0x32f   :  { %4401 = vmatpush1.bf16.msra.mxu0 %v9543_v60  ;;  %v9620_v60 = vld [vmem:[#allocation5 + $0xd80] ss:$8 sps:$4 sm:$0xff]   ;;  %3970 = vmatprep.subr.bf16.mxu1 %v9824_v61  ;;  %v9779_v61 = vld [vmem:[#allocation5 + $0xf04] ss:$8 sps:$4 sm:$0xff]  }
 0x330   :  { %4402 = vmatprep.subr.bf16.mxu0 %v9548_v62  ;;  %v9628_v62 = vld [vmem:[#allocation5 + $0xd94] ss:$8 sps:$4 sm:$0xff]  }
 0x332   :  { %3971 = vmatpush1.bf16.msra.mxu1 %v9822_v63  ;;  %v9777_v63 = vld [vmem:[#allocation5 + $0xf00] ss:$8 sps:$4 sm:$0xff]  }
 0x333   :  { %4403 = vmatpush1.bf16.msra.mxu0 %v9546_v0  ;;  %v9626_v0 = vld [vmem:[#allocation5 + $0xd90] ss:$8 sps:$4 sm:$0xff]   ;;  %3972 = vmatprep.subr.bf16.mxu1 %v9830_v1  ;;  %v9785_v1 = vld [vmem:[#allocation5 + $0xf14] ss:$8 sps:$4 sm:$0xff]  }
 0x334   :  { %4404 = vmatprep.subr.bf16.mxu0 %v9551_v2  ;;  %v9634_v2 = vld [vmem:[#allocation5 + $0xda4] ss:$8 sps:$4 sm:$0xff]  }
 0x336   :  { %3973 = vmatpush1.bf16.msra.mxu1 %v9828_v3  ;;  %v9791_v3 = vld [vmem:[#allocation5 + $0xf24] ss:$8 sps:$4 sm:$0xff]  }
 0x337   :  { %4405 = vmatpush1.bf16.msra.mxu0 %v9549_v4  ;;  %v9632_v4 = vld [vmem:[#allocation5 + $0xda0] ss:$8 sps:$4 sm:$0xff]   ;;  %3974 = vmatprep.subr.bf16.mxu1 %v9836_v5  ;;  %v9797_v5 = vld [vmem:[#allocation5 + $0xf34] ss:$8 sps:$4 sm:$0xff]  }
 0x338   :  { %4406 = vmatprep.subr.bf16.mxu0 %v9554_v6  ;;  %v9640_v6 = vld [vmem:[#allocation5 + $0xdb4] ss:$8 sps:$4 sm:$0xff]  }
 0x33a   :  { %3975 = vmatpush1.bf16.msra.mxu1 %v9834_v7  ;;  %v9803_v7 = vld [vmem:[#allocation5 + $0xf44] ss:$8 sps:$4 sm:$0xff]  }
 0x33b   :  { %4407 = vmatpush1.bf16.msra.mxu0 %v9552_v8  ;;  %v9638_v8 = vld [vmem:[#allocation5 + $0xdb0] ss:$8 sps:$4 sm:$0xff]   ;;  %3976 = vmatprep.subr.bf16.mxu1 %v9842_v9  ;;  %v9809_v9 = vld [vmem:[#allocation5 + $0xf54] ss:$8 sps:$4 sm:$0xff]  }
 0x33c   :  { %4408 = vmatprep.subr.bf16.mxu0 %v9557_v10  ;;  %v9646_v10 = vld [vmem:[#allocation5 + $0xdc4] ss:$8 sps:$4 sm:$0xff]  }
 0x33e   :  { %3977 = vmatpush1.bf16.msra.mxu1 %v9840_v11  ;;  %v9815_v11 = vld [vmem:[#allocation5 + $0xf64] ss:$8 sps:$4 sm:$0xff]  }
 0x33f   :  { %4409 = vmatpush1.bf16.msra.mxu0 %v9555_v12  ;;  %v9644_v12 = vld [vmem:[#allocation5 + $0xdc0] ss:$8 sps:$4 sm:$0xff]   ;;  %3978 = vmatprep.subr.bf16.mxu1 %v9848_v13  ;;  %v9821_v13 = vld [vmem:[#allocation5 + $0xf74] ss:$8 sps:$4 sm:$0xff]  }
 0x340   :  { %4410 = vmatprep.subr.bf16.mxu0 %v9560_v14  ;;  %v9652_v14 = vld [vmem:[#allocation5 + $0xdd4] ss:$8 sps:$4 sm:$0xff]  }
 0x342   :  { %3979 = vmatpush1.bf16.msra.mxu1 %v9846_v15  ;;  %v9827_v15 = vld [vmem:[#allocation5 + $0xf84] ss:$8 sps:$4 sm:$0xff]  }
 0x343   :  { %4411 = vmatpush1.bf16.msra.mxu0 %v9558_v16  ;;  %v9650_v16 = vld [vmem:[#allocation5 + $0xdd0] ss:$8 sps:$4 sm:$0xff]   ;;  %3980 = vmatprep.subr.bf16.mxu1 %v9854_v17  ;;  %v9833_v17 = vld [vmem:[#allocation5 + $0xf94] ss:$8 sps:$4 sm:$0xff]  }
 0x344   :  { %4412 = vmatprep.subr.bf16.mxu0 %v9565_v18  ;;  %v9658_v18 = vld [vmem:[#allocation5 + $0xde4] ss:$8 sps:$4 sm:$0xff]  }
 0x346   :  { %3981 = vmatpush1.bf16.msra.mxu1 %v9852_v19  ;;  %v9839_v19 = vld [vmem:[#allocation5 + $0xfa4] ss:$8 sps:$4 sm:$0xff]  }
 0x347   :  { %4413 = vmatpush1.bf16.msra.mxu0 %v9563_v20  ;;  %v9656_v20 = vld [vmem:[#allocation5 + $0xde0] ss:$8 sps:$4 sm:$0xff]   ;;  %3982 = vmatprep.subr.bf16.mxu1 %v9860_v21  ;;  %v9845_v21 = vld [vmem:[#allocation5 + $0xfb4] ss:$8 sps:$4 sm:$0xff]  }
 0x348   :  { %4425 = vmatprep.subr.bf16.mxu0 %v9574_v23  ;;  %v9858_v23 = vld [vmem:[#allocation5 + $0x2f0] ss:$8 sps:$4 sm:$0xff]  }
 0x34a   :  { %4415 = vmatmul.mubr.bf16.vlgmr.msra.gmra.mrb[0].mxu0 %v9569_v26  ;;  %v9866_v26 = vld [vmem:[#allocation2 + $0x14] ss:$144 sps:$4 sm:$0xff]   ;;  %3983 = vmatpush1.bf16.msra.mxu1 %v9858_v23 }
 0x34b   :  { %4426 = vmatpush1.bf16.msra.mxu0 %v9572_v27  ;;  %4457 = vmatprep.mubr.bf16.mxu0 %v9674_v28  ;;  %v9677_v27 = vld [vmem:[#allocation5 + $0xe04] ss:$8 sps:$4 sm:$0xff]   ;;  %v9672_v28 = vld [vmem:[#allocation2 + $0x68] ss:$144 sps:$4 sm:$0xff]  }
 0x34c   :  { %4427 = vmatprep.subr.bf16.mxu0 %v9580_v30  ;;  %3984 = vmatprep.mubr.bf16.mxu1 %v9866_v26  ;;  %v9776_v30 = vld [vmem:[#allocation2 + $0x74] ss:$144 sps:$4 sm:$0xff]   ;;  %v9855_v26 = vld [vmem:[#allocation5 + $0xfd0] ss:$8 sps:$4 sm:$0xff]  }
 0x34d   :  { %3985 = vmatmul.mubr.bf16.vlgmr.msra.gmra.mrb[0].mxu1 %v9864_v25  ;;  %v9851_v23 = vld [vmem:[#allocation5 + $0xfc4] ss:$8 sps:$4 sm:$0xff]   ;;  %v9857_v25 = vld [vmem:[#allocation5 + $0xfd4] ss:$8 sps:$4 sm:$0xff]  }
 0x34f   :  { %4428 = vmatpush1.bf16.msra.mxu0 %v9578_v32  ;;  %v9681_v32 = vld [vmem:[#allocation5 + $0xe10] ss:$8 sps:$4 sm:$0xff]  }
 0x350   :  { %4429 = vmatprep.subr.bf16.mxu0 %v9586_v34  ;;  %v9687_v34 = vld [vmem:[#allocation5 + $0xe20] ss:$8 sps:$4 sm:$0xff]  }
 0x353   :  { %4430 = vmatpush1.bf16.msra.mxu0 %v9584_v36  ;;  %v9693_v36 = vld [vmem:[#allocation5 + $0xe30] ss:$8 sps:$4 sm:$0xff]  }
 0x354   :  { %4431 = vmatprep.subr.bf16.mxu0 %v9592_v38  ;;  %v9699_v38 = vld [vmem:[#allocation5 + $0xe40] ss:$8 sps:$4 sm:$0xff]  }
 0x357   :  { %4432 = vmatpush1.bf16.msra.mxu0 %v9590_v40  ;;  %v9705_v40 = vld [vmem:[#allocation5 + $0xe50] ss:$8 sps:$4 sm:$0xff]  }
 0x358   :  { %4433 = vmatprep.subr.bf16.mxu0 %v9598_v42  ;;  %v9711_v42 = vld [vmem:[#allocation5 + $0xe60] ss:$8 sps:$4 sm:$0xff]  }
 0x35b   :  { %4434 = vmatpush1.bf16.msra.mxu0 %v9596_v44  ;;  %v9717_v44 = vld [vmem:[#allocation5 + $0xe70] ss:$8 sps:$4 sm:$0xff]  }
 0x35c   :  { %4435 = vmatprep.subr.bf16.mxu0 %v9604_v46  ;;  %v9723_v46 = vld [vmem:[#allocation5 + $0xe80] ss:$8 sps:$4 sm:$0xff]  }
 0x35f   :  { %4436 = vmatpush1.bf16.msra.mxu0 %v9602_v48  ;;  %v9729_v48 = vld [vmem:[#allocation5 + $0xe90] ss:$8 sps:$4 sm:$0xff]  }
 0x360   :  { %4437 = vmatprep.subr.bf16.mxu0 %v9610_v50  ;;  %v9735_v50 = vld [vmem:[#allocation5 + $0xea0] ss:$8 sps:$4 sm:$0xff]  }
 0x363   :  { %4438 = vmatpush1.bf16.msra.mxu0 %v9608_v52  ;;  %v9741_v52 = vld [vmem:[#allocation5 + $0xeb0] ss:$8 sps:$4 sm:$0xff]  }
 0x364   :  { %4439 = vmatprep.subr.bf16.mxu0 %v9616_v54  ;;  %v9747_v54 = vld [vmem:[#allocation5 + $0xec0] ss:$8 sps:$4 sm:$0xff]  }
 0x367   :  { %4440 = vmatpush1.bf16.msra.mxu0 %v9614_v56  ;;  %v9753_v56 = vld [vmem:[#allocation5 + $0xed0] ss:$8 sps:$4 sm:$0xff]  }
 0x368   :  { %4441 = vmatprep.subr.bf16.mxu0 %v9622_v58  ;;  %v9759_v58 = vld [vmem:[#allocation5 + $0xee0] ss:$8 sps:$4 sm:$0xff]  }
 0x36b   :  { %4442 = vmatpush1.bf16.msra.mxu0 %v9620_v60  ;;  %v9768_v60 = vld [vmem:[#allocation5 + $0xef0] ss:$8 sps:$4 sm:$0xff]  }
 0x36c   :  { %4443 = vmatprep.subr.bf16.mxu0 %v9628_v62  ;;  %v9774_v62 = vld [vmem:[#allocation2 + $0x70] ss:$144 sps:$4 sm:$0xff]  }
 0x36f   :  { %4444 = vmatpush1.bf16.msra.mxu0 %v9626_v0  ;;  %v9872_v0 = vld [vmem:[#allocation2 + $0x7c] ss:$144 sps:$4 sm:$0xff]  }
 0x370   :  { %4445 = vmatprep.subr.bf16.mxu0 %v9634_v2  ;;  %v9783_v2 = vld [vmem:[#allocation5 + $0xf10] ss:$8 sps:$4 sm:$0xff]  }
 0x373   :  { %4446 = vmatpush1.bf16.msra.mxu0 %v9632_v4  ;;  %v9789_v4 = vld [vmem:[#allocation5 + $0xf20] ss:$8 sps:$4 sm:$0xff]  }
 0x374   :  { %4447 = vmatprep.subr.bf16.mxu0 %v9640_v6  ;;  %v9795_v6 = vld [vmem:[#allocation5 + $0xf30] ss:$8 sps:$4 sm:$0xff]  }
 0x377   :  { %4448 = vmatpush1.bf16.msra.mxu0 %v9638_v8  ;;  %v9801_v8 = vld [vmem:[#allocation5 + $0xf40] ss:$8 sps:$4 sm:$0xff]  }
 0x378   :  { %4449 = vmatprep.subr.bf16.mxu0 %v9646_v10  ;;  %v9807_v10 = vld [vmem:[#allocation5 + $0xf50] ss:$8 sps:$4 sm:$0xff]  }
 0x37b   :  { %4450 = vmatpush1.bf16.msra.mxu0 %v9644_v12  ;;  %v9813_v12 = vld [vmem:[#allocation5 + $0xf60] ss:$8 sps:$4 sm:$0xff]  }
 0x37c   :  { %4451 = vmatprep.subr.bf16.mxu0 %v9652_v14  ;;  %v9819_v14 = vld [vmem:[#allocation5 + $0xf70] ss:$8 sps:$4 sm:$0xff]  }
 0x37f   :  { %4452 = vmatpush1.bf16.msra.mxu0 %v9650_v16  ;;  %v9825_v16 = vld [vmem:[#allocation5 + $0xf80] ss:$8 sps:$4 sm:$0xff]  }
 0x380   :  { %4453 = vmatprep.subr.bf16.mxu0 %v9658_v18  ;;  %v9831_v18 = vld [vmem:[#allocation5 + $0xf90] ss:$8 sps:$4 sm:$0xff]  }
 0x383   :  { %4454 = vmatpush1.bf16.msra.mxu0 %v9656_v20  ;;  %v9837_v20 = vld [vmem:[#allocation5 + $0xfa0] ss:$8 sps:$4 sm:$0xff]  }
 0x384   :  { %4455 = vmatprep.subr.bf16.mxu0 %v9668_v22  ;;  %v9843_v22 = vld [vmem:[#allocation5 + $0xfb0] ss:$8 sps:$4 sm:$0xff]  }
 0x387   :  { %4456 = vmatpush1.bf16.msra.mxu0 %v9666_v24  ;;  %v9849_v24 = vld [vmem:[#allocation5 + $0xfc0] ss:$8 sps:$4 sm:$0xff]  }
 0x388   :  { %4468 = vmatprep.subr.bf16.mxu0 %v9677_v27  ;;  %v9863_v27 = vld [vmem:[#allocation5 + $0xfe4] ss:$8 sps:$4 sm:$0xff]  }
 0x38a   :  { %4458 = vmatmul.mubr.bf16.vlgmr.msra.gmra.mrb[0].mxu0 %v9672_v28  ;;  %v9861_v28 = vld [vmem:[#allocation5 + $0xfe0] ss:$8 sps:$4 sm:$0xff]  }
 0x38b   :  { %4469 = vmatpush1.bf16.msra.mxu0 %v9675_v29  ;;  %4500 = vmatprep.mubr.bf16.mxu0 %v9776_v30  ;;  %v9869_v29 = vld [vmem:[#allocation5 + $0xff4] ss:$8 sps:$4 sm:$0xff]   ;;  %v9867_v30 = vld [vmem:[#allocation5 + $0xff0] ss:$8 sps:$4 sm:$0xff]  }
 0x38c   :  { %4470 = vmatprep.subr.bf16.mxu0 %v9683_v31  ;;  %v9875_v31 = vld [vmem:[#allocation5 + $0x1004] ss:$8 sps:$4 sm:$0xff]  }
 0x38f   :  { %4471 = vmatpush1.bf16.msra.mxu0 %v9681_v32  ;;  %v9870_v32 = vld [vmem:[#allocation2 + $0x78] ss:$144 sps:$4 sm:$0xff]  }
 0x390   :  { %4472 = vmatprep.subr.bf16.mxu0 %v9689_v33  ;;  %v9873_v33 = vld [vmem:[#allocation5 + $0x1000] ss:$8 sps:$4 sm:$0xff]  }
 0x393   :  { %4473 = vmatpush1.bf16.msra.mxu0 %v9687_v34  ;;  %v9923_v34 = vld [vmem:[#allocation2 + $0x84] ss:$144 sps:$4 sm:$0xff]  }
 0x394   :  { %4474 = vmatprep.subr.bf16.mxu0 %v9695_v35  ;;  %v9878_v35 = vld [vmem:[#allocation5 + $0x1014] ss:$8 sps:$4 sm:$0xff]  }
 0x397   :  { %4475 = vmatpush1.bf16.msra.mxu0 %v9693_v36  ;;  %v9975_v36 = vld [vmem:[#allocation8] ss:$16 sps:$4 sm:$0xff]  }
 0x398   :  { %4476 = vmatprep.subr.bf16.mxu0 %v9701_v37  ;;  %v9977_v37 = vld [vmem:[#allocation8 + $0x4] ss:$16 sps:$4 sm:$0xff]  }
 0x399   :  { %5052 = vmatprep.subr.bf16.mxu1 %v9977_v37  ;;  %v9935_v37 = vld [vmem:[#allocation5 + $0x1134] ss:$8 sps:$4 sm:$0xff]  }
 0x39a   :  { %5053 = vmatpush1.bf16.msra.mxu1 %v9975_v36  ;;  %v9930_v36 = vld [vmem:[#allocation5 + $0x1120] ss:$8 sps:$4 sm:$0xff]  }
 0x39b   :  { %4477 = vmatpush1.bf16.msra.mxu0 %v9699_v38  ;;  %v9876_v38 = vld [vmem:[#allocation5 + $0x1010] ss:$8 sps:$4 sm:$0xff]  }
 0x39c   :  { %4478 = vmatprep.subr.bf16.mxu0 %v9707_v39  ;;  %v9980_v39 = vld [vmem:[#allocation8 + $0x24] ss:$16 sps:$4 sm:$0xff]  }
 0x39d   :  { %5054 = vmatprep.subr.bf16.mxu1 %v9980_v39  ;;  %v9938_v39 = vld [vmem:[#allocation5 + $0x1144] ss:$8 sps:$4 sm:$0xff]  }
 0x39f   :  { %4479 = vmatpush1.bf16.msra.mxu0 %v9705_v40  ;;  %v9881_v40 = vld [vmem:[#allocation5 + $0x1024] ss:$8 sps:$4 sm:$0xff]  }
 0x3a0   :  { %4480 = vmatprep.subr.bf16.mxu0 %v9713_v41  ;;  %v9978_v41 = vld [vmem:[#allocation8 + $0x20] ss:$16 sps:$4 sm:$0xff]  }
 0x3a1   :  { %5055 = vmatpush1.bf16.msra.mxu1 %v9978_v41  ;;  %v9941_v41 = vld [vmem:[#allocation5 + $0x1154] ss:$8 sps:$4 sm:$0xff]  }
 0x3a3   :  { %4481 = vmatpush1.bf16.msra.mxu0 %v9711_v42  ;;  %v9983_v42 = vld [vmem:[#allocation8 + $0x44] ss:$16 sps:$4 sm:$0xff]  }
 0x3a4   :  { %4482 = vmatprep.subr.bf16.mxu0 %v9719_v43  ;;  %v9879_v43 = vld [vmem:[#allocation5 + $0x1020] ss:$8 sps:$4 sm:$0xff]   ;;  %5056 = vmatprep.subr.bf16.mxu1 %v9983_v42 }
 0x3a7   :  { %4483 = vmatpush1.bf16.msra.mxu0 %v9717_v44  ;;  %v9884_v44 = vld [vmem:[#allocation5 + $0x1034] ss:$8 sps:$4 sm:$0xff]  }
 0x3a8   :  { %4484 = vmatprep.subr.bf16.mxu0 %v9725_v45  ;;  %v9981_v45 = vld [vmem:[#allocation8 + $0x40] ss:$16 sps:$4 sm:$0xff]  }
 0x3a9   :  { %5057 = vmatpush1.bf16.msra.mxu1 %v9981_v45  ;;  %v9944_v45 = vld [vmem:[#allocation5 + $0x1164] ss:$8 sps:$4 sm:$0xff]  }
 0x3ab   :  { %4485 = vmatpush1.bf16.msra.mxu0 %v9723_v46  ;;  %v9986_v46 = vld [vmem:[#allocation8 + $0x64] ss:$16 sps:$4 sm:$0xff]  }
 0x3ac   :  { %4486 = vmatprep.subr.bf16.mxu0 %v9731_v47  ;;  %v9882_v47 = vld [vmem:[#allocation5 + $0x1030] ss:$8 sps:$4 sm:$0xff]   ;;  %5058 = vmatprep.subr.bf16.mxu1 %v9986_v46 }
 0x3af   :  { %4487 = vmatpush1.bf16.msra.mxu0 %v9729_v48  ;;  %v9887_v48 = vld [vmem:[#allocation5 + $0x1044] ss:$8 sps:$4 sm:$0xff]  }
 0x3b0   :  { %4488 = vmatprep.subr.bf16.mxu0 %v9737_v49  ;;  %v9984_v49 = vld [vmem:[#allocation8 + $0x60] ss:$16 sps:$4 sm:$0xff]  }
 0x3b1   :  { %5059 = vmatpush1.bf16.msra.mxu1 %v9984_v49  ;;  %v9947_v49 = vld [vmem:[#allocation5 + $0x1174] ss:$8 sps:$4 sm:$0xff]  }
 0x3b3   :  { %4489 = vmatpush1.bf16.msra.mxu0 %v9735_v50  ;;  %v9989_v50 = vld [vmem:[#allocation8 + $0x84] ss:$16 sps:$4 sm:$0xff]  }
 0x3b4   :  { %4490 = vmatprep.subr.bf16.mxu0 %v9743_v51  ;;  %v9885_v51 = vld [vmem:[#allocation5 + $0x1040] ss:$8 sps:$4 sm:$0xff]   ;;  %5060 = vmatprep.subr.bf16.mxu1 %v9989_v50  ;;  %v9945_v50 = vld [vmem:[#allocation5 + $0x1170] ss:$8 sps:$4 sm:$0xff]  }
 0x3b7   :  { %4491 = vmatpush1.bf16.msra.mxu0 %v9741_v52  ;;  %v9890_v52 = vld [vmem:[#allocation5 + $0x1054] ss:$8 sps:$4 sm:$0xff]  }
 0x3b8   :  { %4492 = vmatprep.subr.bf16.mxu0 %v9749_v53  ;;  %v9987_v53 = vld [vmem:[#allocation8 + $0x80] ss:$16 sps:$4 sm:$0xff]  }
 0x3b9   :  { %5061 = vmatpush1.bf16.msra.mxu1 %v9987_v53  ;;  %v9953_v53 = vld [vmem:[#allocation5 + $0x1194] ss:$8 sps:$4 sm:$0xff]  }
 0x3bb   :  { %4493 = vmatpush1.bf16.msra.mxu0 %v9747_v54  ;;  %v9992_v54 = vld [vmem:[#allocation8 + $0xa4] ss:$16 sps:$4 sm:$0xff]  }
 0x3bc   :  { %4494 = vmatprep.subr.bf16.mxu0 %v9755_v55  ;;  %v9888_v55 = vld [vmem:[#allocation5 + $0x1050] ss:$8 sps:$4 sm:$0xff]   ;;  %5062 = vmatprep.subr.bf16.mxu1 %v9992_v54 }
 0x3bd   :  { %v9951_v54 = vld [vmem:[#allocation5 + $0x1190] ss:$8 sps:$4 sm:$0xff]  }
 0x3bf   :  { %4495 = vmatpush1.bf16.msra.mxu0 %v9753_v56  ;;  %v9893_v56 = vld [vmem:[#allocation5 + $0x1064] ss:$8 sps:$4 sm:$0xff]  }
 0x3c0   :  { %4496 = vmatprep.subr.bf16.mxu0 %v9761_v57  ;;  %v9990_v57 = vld [vmem:[#allocation8 + $0xa0] ss:$16 sps:$4 sm:$0xff]  }
 0x3c1   :  { %5063 = vmatpush1.bf16.msra.mxu1 %v9990_v57  ;;  %v9959_v57 = vld [vmem:[#allocation5 + $0x11b4] ss:$8 sps:$4 sm:$0xff]  }
 0x3c3   :  { %4497 = vmatpush1.bf16.msra.mxu0 %v9759_v58  ;;  %v9995_v58 = vld [vmem:[#allocation8 + $0xc4] ss:$16 sps:$4 sm:$0xff]  }
 0x3c4   :  { %4498 = vmatprep.subr.bf16.mxu0 %v9770_v59  ;;  %v9891_v59 = vld [vmem:[#allocation5 + $0x1060] ss:$8 sps:$4 sm:$0xff]   ;;  %5064 = vmatprep.subr.bf16.mxu1 %v9995_v58  ;;  %v9957_v58 = vld [vmem:[#allocation5 + $0x11b0] ss:$8 sps:$4 sm:$0xff]  }
 0x3c7   :  { %4499 = vmatpush1.bf16.msra.mxu0 %v9768_v60  ;;  %v9896_v60 = vld [vmem:[#allocation5 + $0x1074] ss:$8 sps:$4 sm:$0xff]  }
 0x3c8   :  { %4511 = vmatprep.subr.bf16.mxu0 %v9779_v61  ;;  %v9993_v61 = vld [vmem:[#allocation8 + $0xc0] ss:$16 sps:$4 sm:$0xff]  }
 0x3c9   :  { %5065 = vmatpush1.bf16.msra.mxu1 %v9993_v61  ;;  %v9965_v61 = vld [vmem:[#allocation5 + $0x11d4] ss:$8 sps:$4 sm:$0xff]  }
 0x3ca   :  { %4501 = vmatmul.mubr.bf16.vlgmr.msra.gmra.mrb[0].mxu0 %v9774_v62  ;;  %v9998_v62 = vld [vmem:[#allocation8 + $0xe4] ss:$16 sps:$4 sm:$0xff]  }
 0x3cb   :  { %4512 = vmatpush1.bf16.msra.mxu0 %v9777_v63  ;;  %4543 = vmatprep.mubr.bf16.mxu0 %v9872_v0  ;;  %v9894_v63 = vld [vmem:[#allocation5 + $0x1070] ss:$8 sps:$4 sm:$0xff]   ;;  %v9899_v0 = vld [vmem:[#allocation5 + $0x1084] ss:$8 sps:$4 sm:$0xff]  }
 0x3cc   :  { %4513 = vmatprep.subr.bf16.mxu0 %v9785_v1  ;;  %v9996_v1 = vld [vmem:[#allocation8 + $0xe0] ss:$16 sps:$4 sm:$0xff]   ;;  %5066 = vmatprep.subr.bf16.mxu1 %v9998_v62 }
 0x3cd   :  { %5067 = vmatpush1.bf16.msra.mxu1 %v9996_v1  ;;  %v9963_v62 = vld [vmem:[#allocation5 + $0x11d0] ss:$8 sps:$4 sm:$0xff]   ;;  %v9971_v1 = vld [vmem:[#allocation5 + $0x11f4] ss:$8 sps:$4 sm:$0xff]  }
 0x3cf   :  { %4514 = vmatpush1.bf16.msra.mxu0 %v9783_v2  ;;  %v10001_v2 = vld [vmem:[#allocation8 + $0x104] ss:$16 sps:$4 sm:$0xff]  }
 0x3d0   :  { %4515 = vmatprep.subr.bf16.mxu0 %v9791_v3  ;;  %v9897_v3 = vld [vmem:[#allocation5 + $0x1080] ss:$8 sps:$4 sm:$0xff]   ;;  %5068 = vmatprep.subr.bf16.mxu1 %v10001_v2  ;;  %v9969_v2 = vld [vmem:[#allocation5 + $0x11f0] ss:$8 sps:$4 sm:$0xff]  }
 0x3d3   :  { %4516 = vmatpush1.bf16.msra.mxu0 %v9789_v4  ;;  %v9902_v4 = vld [vmem:[#allocation5 + $0x1094] ss:$8 sps:$4 sm:$0xff]  }
 0x3d4   :  { %4517 = vmatprep.subr.bf16.mxu0 %v9797_v5  ;;  %v9999_v5 = vld [vmem:[#allocation8 + $0x100] ss:$16 sps:$4 sm:$0xff]  }
 0x3d5   :  { %5069 = vmatpush1.bf16.msra.mxu1 %v9999_v5  ;;  %v10017_v5 = vld [vmem:[#allocation8 + $0x1c0] ss:$16 sps:$4 sm:$0xff]  }
 0x3d7   :  { %4518 = vmatpush1.bf16.msra.mxu0 %v9795_v6  ;;  %v10004_v6 = vld [vmem:[#allocation8 + $0x124] ss:$16 sps:$4 sm:$0xff]  }
 0x3d8   :  { %4519 = vmatprep.subr.bf16.mxu0 %v9803_v7  ;;  %v9900_v7 = vld [vmem:[#allocation5 + $0x1090] ss:$8 sps:$4 sm:$0xff]   ;;  %5070 = vmatprep.subr.bf16.mxu1 %v10004_v6 }
 0x3d9   :  { %v10022_v6 = vld [vmem:[#allocation8 + $0x1e4] ss:$16 sps:$4 sm:$0xff]  }
 0x3db   :  { %4520 = vmatpush1.bf16.msra.mxu0 %v9801_v8  ;;  %v9905_v8 = vld [vmem:[#allocation5 + $0x10a4] ss:$8 sps:$4 sm:$0xff]  }
 0x3dc   :  { %4521 = vmatprep.subr.bf16.mxu0 %v9809_v9  ;;  %v10002_v9 = vld [vmem:[#allocation8 + $0x120] ss:$16 sps:$4 sm:$0xff]  }
 0x3dd   :  { %5071 = vmatpush1.bf16.msra.mxu1 %v10002_v9  ;;  %v796_v9 = vlaneseq }
 0x3df   :  { %4522 = vmatpush1.bf16.msra.mxu0 %v9807_v10  ;;  %v10007_v10 = vld [vmem:[#allocation8 + $0x144] ss:$16 sps:$4 sm:$0xff]  }
 0x3e0   :  { %4523 = vmatprep.subr.bf16.mxu0 %v9815_v11  ;;  %v9903_v11 = vld [vmem:[#allocation5 + $0x10a0] ss:$8 sps:$4 sm:$0xff]   ;;  %5072 = vmatprep.subr.bf16.mxu1 %v10007_v10  ;;  %v10675_v10 = vshrl.u32 %v796_v9, 7 }
 0x3e1   :  { %v5170_v9 = vld [vmem:[#allocation11 + $0xa0] sm:$0xff] }
 0x3e3   :  { %4524 = vmatpush1.bf16.msra.mxu0 %v9813_v12  ;;  %v9908_v12 = vld [vmem:[#allocation5 + $0x10b4] ss:$8 sps:$4 sm:$0xff]  }
 0x3e4   :  { %4525 = vmatprep.subr.bf16.mxu0 %v9821_v13  ;;  %v10005_v13 = vld [vmem:[#allocation8 + $0x140] ss:$16 sps:$4 sm:$0xff]  }
 0x3e5   :  { %5073 = vmatpush1.bf16.msra.mxu1 %v10005_v13  ;;  %v10681_v13 = vsub.s32 1, %v10675_v10 }
 0x3e7   :  { %4526 = vmatpush1.bf16.msra.mxu0 %v9819_v14  ;;  %v10010_v14 = vld [vmem:[#allocation8 + $0x164] ss:$16 sps:$4 sm:$0xff]  }
 0x3e8   :  { %4527 = vmatprep.subr.bf16.mxu0 %v9827_v15  ;;  %v9906_v15 = vld [vmem:[#allocation5 + $0x10b0] ss:$8 sps:$4 sm:$0xff]   ;;  %5074 = vmatprep.subr.bf16.mxu1 %v10010_v14 }
 0x3eb   :  { %4528 = vmatpush1.bf16.msra.mxu0 %v9825_v16  ;;  %v9911_v16 = vld [vmem:[#allocation5 + $0x10c4] ss:$8 sps:$4 sm:$0xff]  }
 0x3ec   :  { %4529 = vmatprep.subr.bf16.mxu0 %v9833_v17  ;;  %v10008_v17 = vld [vmem:[#allocation8 + $0x160] ss:$16 sps:$4 sm:$0xff]  }
 0x3ed   :  { %5075 = vmatpush1.bf16.msra.mxu1 %v10008_v17 }
 0x3ef   :  { %4530 = vmatpush1.bf16.msra.mxu0 %v9831_v18  ;;  %v10013_v18 = vld [vmem:[#allocation8 + $0x184] ss:$16 sps:$4 sm:$0xff]  }
 0x3f0   :  { %4531 = vmatprep.subr.bf16.mxu0 %v9839_v19  ;;  %v9909_v19 = vld [vmem:[#allocation5 + $0x10c0] ss:$8 sps:$4 sm:$0xff]   ;;  %5076 = vmatprep.subr.bf16.mxu1 %v10013_v18 }
 0x3f3   :  { %4532 = vmatpush1.bf16.msra.mxu0 %v9837_v20  ;;  %v9914_v20 = vld [vmem:[#allocation5 + $0x10d4] ss:$8 sps:$4 sm:$0xff]  }
 0x3f4   :  { %4533 = vmatprep.subr.bf16.mxu0 %v9845_v21  ;;  %v10011_v21 = vld [vmem:[#allocation8 + $0x180] ss:$16 sps:$4 sm:$0xff]  }
 0x3f5   :  { %5077 = vmatpush1.bf16.msra.mxu1 %v10011_v21 }
 0x3f7   :  { %4534 = vmatpush1.bf16.msra.mxu0 %v9843_v22  ;;  %v10016_v22 = vld [vmem:[#allocation8 + $0x1a4] ss:$16 sps:$4 sm:$0xff]  }
 0x3f8   :  { %4535 = vmatprep.subr.bf16.mxu0 %v9851_v23  ;;  %v9912_v23 = vld [vmem:[#allocation5 + $0x10d0] ss:$8 sps:$4 sm:$0xff]   ;;  %5078 = vmatprep.subr.bf16.mxu1 %v10016_v22 }
 0x3fb   :  { %4536 = vmatpush1.bf16.msra.mxu0 %v9849_v24  ;;  %v9917_v24 = vld [vmem:[#allocation5 + $0x10e4] ss:$8 sps:$4 sm:$0xff]  }
 0x3fc   :  { %4537 = vmatprep.subr.bf16.mxu0 %v9857_v25  ;;  %v10014_v25 = vld [vmem:[#allocation8 + $0x1a0] ss:$16 sps:$4 sm:$0xff]  }
 0x3fd   :  { %5079 = vmatpush1.bf16.msra.mxu1 %v10014_v25 }
 0x3ff   :  { %4538 = vmatpush1.bf16.msra.mxu0 %v9855_v26  ;;  %v9915_v26 = vld [vmem:[#allocation5 + $0x10e0] ss:$8 sps:$4 sm:$0xff]  }
 0x400   :  { %4539 = vmatprep.subr.bf16.mxu0 %v9863_v27  ;;  %v9920_v27 = vld [vmem:[#allocation5 + $0x10f4] ss:$8 sps:$4 sm:$0xff]  }
 0x403   :  { %4540 = vmatpush1.bf16.msra.mxu0 %v9861_v28  ;;  %v9918_v28 = vld [vmem:[#allocation5 + $0x10f0] ss:$8 sps:$4 sm:$0xff]  }
 0x404   :  { %4541 = vmatprep.subr.bf16.mxu0 %v9869_v29  ;;  %v9926_v29 = vld [vmem:[#allocation5 + $0x1104] ss:$8 sps:$4 sm:$0xff]  }
 0x407   :  { %4542 = vmatpush1.bf16.msra.mxu0 %v9867_v30  ;;  %v9921_v30 = vld [vmem:[#allocation2 + $0x80] ss:$144 sps:$4 sm:$0xff]  }
 0x408   :  { %4554 = vmatprep.subr.bf16.mxu0 %v9875_v31  ;;  %v9924_v31 = vld [vmem:[#allocation5 + $0x1100] ss:$8 sps:$4 sm:$0xff]  }
 0x40a   :  { %4544 = vmatmul.mubr.bf16.vlgmr.msra.gmra.mrb[0].mxu0 %v9870_v32  ;;  %v9974_v32 = vld [vmem:[#allocation2 + $0x8c] ss:$144 sps:$4 sm:$0xff]  }
 0x40b   :  { %4555 = vmatpush1.bf16.msra.mxu0 %v9873_v33  ;;  %4586 = vmatprep.mubr.bf16.mxu0 %v9923_v34  ;;  %v9929_v33 = vld [vmem:[#allocation5 + $0x1114] ss:$8 sps:$4 sm:$0xff]   ;;  %v9927_v34 = vld [vmem:[#allocation5 + $0x1110] ss:$8 sps:$4 sm:$0xff]  }
 0x40c   :  { %4556 = vmatprep.subr.bf16.mxu0 %v9878_v35  ;;  %v9932_v35 = vld [vmem:[#allocation5 + $0x1124] ss:$8 sps:$4 sm:$0xff]  }
 0x40f   :  { %4557 = vmatpush1.bf16.msra.mxu0 %v9876_v38  ;;  %v9933_v38 = vld [vmem:[#allocation5 + $0x1130] ss:$8 sps:$4 sm:$0xff]  }
 0x410   :  { %4558 = vmatprep.subr.bf16.mxu0 %v9881_v40  ;;  %v9936_v40 = vld [vmem:[#allocation5 + $0x1140] ss:$8 sps:$4 sm:$0xff]  }
 0x413   :  { %4559 = vmatpush1.bf16.msra.mxu0 %v9879_v43  ;;  %v9939_v43 = vld [vmem:[#allocation5 + $0x1150] ss:$8 sps:$4 sm:$0xff]  }
 0x414   :  { %4560 = vmatprep.subr.bf16.mxu0 %v9884_v44 }
 0x417   :  { %4561 = vmatpush1.bf16.msra.mxu0 %v9882_v47 }
 0x418   :  { %4562 = vmatprep.subr.bf16.mxu0 %v9887_v48  ;;  %v9942_v48 = vld [vmem:[#allocation5 + $0x1160] ss:$8 sps:$4 sm:$0xff]  }
 0x41b   :  { %4563 = vmatpush1.bf16.msra.mxu0 %v9885_v51  ;;  %v9950_v51 = vld [vmem:[#allocation5 + $0x1184] ss:$8 sps:$4 sm:$0xff]  }
 0x41c   :  { %4564 = vmatprep.subr.bf16.mxu0 %v9890_v52  ;;  %v9948_v52 = vld [vmem:[#allocation5 + $0x1180] ss:$8 sps:$4 sm:$0xff]  }
 0x41f   :  { %4565 = vmatpush1.bf16.msra.mxu0 %v9888_v55  ;;  %v9956_v55 = vld [vmem:[#allocation5 + $0x11a4] ss:$8 sps:$4 sm:$0xff]  }
 0x420   :  { %4566 = vmatprep.subr.bf16.mxu0 %v9893_v56  ;;  %v10667_v42 = vpop.f32.mrb[0].mxu1  ;;  %v9954_v56 = vld [vmem:[#allocation5 + $0x11a0] ss:$8 sps:$4 sm:$0xff]  }
 0x421   :  { %v10669_v44 = vpop.f32.mrb[1].mxu1 }
 0x422   :  { %v10671_v46 = vpop.f32.mrb[2].mxu1 }
 0x423   :  { %4567 = vmatpush1.bf16.msra.mxu0 %v9891_v59  ;;  %v10673_v47 = vpop.f32.mrb[3].mxu1  ;;  %v9962_v59 = vld [vmem:[#allocation5 + $0x11c4] ss:$8 sps:$4 sm:$0xff]  }
 0x424   :  { %4568 = vmatprep.subr.bf16.mxu0 %v9896_v60  ;;  %v9960_v60 = vld [vmem:[#allocation5 + $0x11c0] ss:$8 sps:$4 sm:$0xff]  }
 0x427   :  { %4569 = vmatpush1.bf16.msra.mxu0 %v9894_v63  ;;  %v9968_v63 = vld [vmem:[#allocation5 + $0x11e4] ss:$8 sps:$4 sm:$0xff]  }
 0x428   :  { %4570 = vmatprep.subr.bf16.mxu0 %v9899_v0  ;;  %v9966_v0 = vld [vmem:[#allocation5 + $0x11e0] ss:$8 sps:$4 sm:$0xff]  }
 0x42b   :  { %4571 = vmatpush1.bf16.msra.mxu0 %v9897_v3  ;;  %v9972_v3 = vld [vmem:[#allocation2 + $0x88] ss:$144 sps:$4 sm:$0xff]  }
 0x42c   :  { %4572 = vmatprep.subr.bf16.mxu0 %v9902_v4  ;;  %v10019_v4 = vld [vmem:[#allocation8 + $0x1c4] ss:$16 sps:$4 sm:$0xff]  }
 0x42d   :  { %5080 = vmatprep.subr.bf16.mxu1 %v10019_v4  ;;  %v5158_v4 = vld [vmem:[#allocation11 + $0x40] sm:$0xff] }
 0x42e   :  { %5081 = vmatpush1.bf16.msra.mxu1 %v10017_v5  ;;  %v5162_v5 = vld [vmem:[#allocation11 + $0x60] sm:$0xff] }
 0x42f   :  { %4573 = vmatpush1.bf16.msra.mxu0 %v9900_v7  ;;  %v10020_v7 = vld [vmem:[#allocation8 + $0x1e0] ss:$16 sps:$4 sm:$0xff]   ;;  %5082 = vmatprep.subr.bf16.mxu1 %v10022_v6 }
 0x430   :  { %4574 = vmatprep.subr.bf16.mxu0 %v9905_v8  ;;  %v10025_v8 = vld [vmem:[#allocation8 + $0xc] ss:$16 sps:$4 sm:$0xff]  }
 0x432   :  { %5083 = vmatpush1.bf16.msra.mxu1 %v10020_v7  ;;  %v8529_v7 = vcombine.high %v5158_v4, %v5162_v5 }
 0x433   :  { %4575 = vmatpush1.bf16.msra.mxu0 %v9903_v11  ;;  %5095 = vmatprep.subr.bf16.mxu1 %v10025_v8  ;;  %v10678_v11 = vsub.s32 0, %v10675_v10  ;;  %v5166_v8 = vld [vmem:[#allocation11 + $0x80] sm:$0xff] }
 0x434   :  { %4576 = vmatprep.subr.bf16.mxu0 %v9908_v12  ;;  %v794_v12 = vld [vmem:[#allocation7] sm:$0x3] }
 0x435   :  { %v799_v14 = vrot.slane %v794_v12, %v10678_v11 }
 0x437   :  { %4577 = vmatpush1.bf16.msra.mxu0 %v9906_v15  ;;  %v803_v15 = vrot.slane %v794_v12, %v10681_v13  ;;  %v8528_v12 = vcombine.low %v5158_v4, %v5162_v5 }
 0x438   :  { %4578 = vmatprep.subr.bf16.mxu0 %v9911_v16  ;;  %v8930_v16 = vadd.f32 %v10667_v42, %v799_v14  ;;  %v10035_v42 = vld [vmem:[#allocation8 + $0x88] ss:$16 sps:$4 sm:$0xff]  }
 0x439   :  { %v8932_v17 = vadd.f32 %v10669_v44, %v803_v15  ;;  %v8936_v22 = vadd.f32 %v10673_v47, %v803_v15  ;;  %v10038_v44 = vld [vmem:[#allocation8 + $0xa8] ss:$16 sps:$4 sm:$0xff]   ;;  %v10046_v47 = vld [vmem:[#allocation8 + $0xec] ss:$16 sps:$4 sm:$0xff]  }
 0x43a   :  { %v5174_v15 = vld [vmem:[#allocation11 + $0xc0] sm:$0xff] }
 0x43b   :  { %4579 = vmatpush1.bf16.msra.mxu0 %v9909_v19  ;;  %v8934_v19 = vadd.f32 %v10671_v46, %v799_v14  ;;  %v10041_v46 = vld [vmem:[#allocation8 + $0xc8] ss:$16 sps:$4 sm:$0xff]   ;;  %v8537_v14 = vcombine.high %v5166_v8, %v5170_v9 }
 0x43c   :  { %4580 = vmatprep.subr.bf16.mxu0 %v9914_v20 }
 0x43f   :  { %4581 = vmatpush1.bf16.msra.mxu0 %v9912_v23 }
 0x440   :  { %4582 = vmatprep.subr.bf16.mxu0 %v9917_v24 }
 0x443   :  { %4583 = vmatpush1.bf16.msra.mxu0 %v9915_v26 }
 0x444   :  { %4584 = vmatprep.subr.bf16.mxu0 %v9920_v27 }
 0x447   :  { %4585 = vmatpush1.bf16.msra.mxu0 %v9918_v28 }
 0x448   :  { %4597 = vmatprep.subr.bf16.mxu0 %v9926_v29 }
 0x44a   :  { %4587 = vmatmul.mubr.bf16.vlgmr.msra.gmra.mrb[0].mxu0 %v9921_v30 }
 0x44b   :  { %4598 = vmatpush1.bf16.msra.mxu0 %v9924_v31  ;;  %4629 = vmatprep.mubr.bf16.mxu0 %v9974_v32 }
 0x44c   :  { %4599 = vmatprep.subr.bf16.mxu0 %v9929_v33 }
 0x44f   :  { %4600 = vmatpush1.bf16.msra.mxu0 %v9927_v34  ;;  %v10023_v34 = vld [vmem:[#allocation8 + $0x8] ss:$16 sps:$4 sm:$0xff]  }
 0x450   :  { %4601 = vmatprep.subr.bf16.mxu0 %v9932_v35  ;;  %v10028_v35 = vld [vmem:[#allocation8 + $0x2c] ss:$16 sps:$4 sm:$0xff]  }
 0x453   :  { %4602 = vmatpush1.bf16.msra.mxu0 %v9930_v36  ;;  %v10026_v36 = vld [vmem:[#allocation8 + $0x28] ss:$16 sps:$4 sm:$0xff]  }
 0x454   :  { %4603 = vmatprep.subr.bf16.mxu0 %v9935_v37  ;;  %v10031_v37 = vld [vmem:[#allocation8 + $0x4c] ss:$16 sps:$4 sm:$0xff]  }
 0x457   :  { %4604 = vmatpush1.bf16.msra.mxu0 %v9933_v38  ;;  %v10029_v38 = vld [vmem:[#allocation8 + $0x48] ss:$16 sps:$4 sm:$0xff]  }
 0x458   :  { %4605 = vmatprep.subr.bf16.mxu0 %v9938_v39  ;;  %v10034_v39 = vld [vmem:[#allocation8 + $0x6c] ss:$16 sps:$4 sm:$0xff]  }
 0x45b   :  { %4606 = vmatpush1.bf16.msra.mxu0 %v9936_v40  ;;  %v10032_v40 = vld [vmem:[#allocation8 + $0x68] ss:$16 sps:$4 sm:$0xff]  }
 0x45c   :  { %4607 = vmatprep.subr.bf16.mxu0 %v9941_v41  ;;  %v10037_v41 = vld [vmem:[#allocation8 + $0x8c] ss:$16 sps:$4 sm:$0xff]  }
 0x45f   :  { %4608 = vmatpush1.bf16.msra.mxu0 %v9939_v43  ;;  %v10040_v43 = vld [vmem:[#allocation8 + $0xac] ss:$16 sps:$4 sm:$0xff]  }
 0x460   :  { %4609 = vmatprep.subr.bf16.mxu0 %v9944_v45  ;;  %v10043_v45 = vld [vmem:[#allocation8 + $0xcc] ss:$16 sps:$4 sm:$0xff]  }
 0x463   :  { %4610 = vmatpush1.bf16.msra.mxu0 %v9942_v48  ;;  %v10044_v48 = vld [vmem:[#allocation8 + $0xe8] ss:$16 sps:$4 sm:$0xff]  }
 0x464   :  { %4611 = vmatprep.subr.bf16.mxu0 %v9947_v49  ;;  %v10049_v49 = vld [vmem:[#allocation8 + $0x10c] ss:$16 sps:$4 sm:$0xff]  }
 0x467   :  { %4612 = vmatpush1.bf16.msra.mxu0 %v9945_v50  ;;  %v10047_v50 = vld [vmem:[#allocation8 + $0x108] ss:$16 sps:$4 sm:$0xff]  }
 0x468   :  { %4613 = vmatprep.subr.bf16.mxu0 %v9950_v51  ;;  %v10052_v51 = vld [vmem:[#allocation8 + $0x12c] ss:$16 sps:$4 sm:$0xff]  }
 0x46b   :  { %4614 = vmatpush1.bf16.msra.mxu0 %v9948_v52  ;;  %v10050_v52 = vld [vmem:[#allocation8 + $0x128] ss:$16 sps:$4 sm:$0xff]  }
 0x46c   :  { %4615 = vmatprep.subr.bf16.mxu0 %v9953_v53  ;;  %v10055_v53 = vld [vmem:[#allocation8 + $0x14c] ss:$16 sps:$4 sm:$0xff]  }
 0x46f   :  { %4616 = vmatpush1.bf16.msra.mxu0 %v9951_v54  ;;  %v10053_v54 = vld [vmem:[#allocation8 + $0x148] ss:$16 sps:$4 sm:$0xff]  }
 0x470   :  { %4617 = vmatprep.subr.bf16.mxu0 %v9956_v55  ;;  %v10058_v55 = vld [vmem:[#allocation8 + $0x16c] ss:$16 sps:$4 sm:$0xff]  }
 0x473   :  { %4618 = vmatpush1.bf16.msra.mxu0 %v9954_v56  ;;  %v10056_v56 = vld [vmem:[#allocation8 + $0x168] ss:$16 sps:$4 sm:$0xff]  }
 0x474   :  { %4619 = vmatprep.subr.bf16.mxu0 %v9959_v57  ;;  %v10061_v57 = vld [vmem:[#allocation8 + $0x18c] ss:$16 sps:$4 sm:$0xff]  }
 0x477   :  { %4620 = vmatpush1.bf16.msra.mxu0 %v9957_v58  ;;  %v10059_v58 = vld [vmem:[#allocation8 + $0x188] ss:$16 sps:$4 sm:$0xff]  }
 0x478   :  { %4621 = vmatprep.subr.bf16.mxu0 %v9962_v59  ;;  %v10064_v59 = vld [vmem:[#allocation8 + $0x1ac] ss:$16 sps:$4 sm:$0xff]  }
 0x47b   :  { %4622 = vmatpush1.bf16.msra.mxu0 %v9960_v60  ;;  %v10062_v60 = vld [vmem:[#allocation8 + $0x1a8] ss:$16 sps:$4 sm:$0xff]  }
 0x47c   :  { %4623 = vmatprep.subr.bf16.mxu0 %v9965_v61  ;;  %v10067_v61 = vld [vmem:[#allocation8 + $0x1cc] ss:$16 sps:$4 sm:$0xff]  }
 0x47f   :  { %4624 = vmatpush1.bf16.msra.mxu0 %v9963_v62  ;;  %v10065_v62 = vld [vmem:[#allocation8 + $0x1c8] ss:$16 sps:$4 sm:$0xff]  }
 0x480   :  { %4625 = vmatprep.subr.bf16.mxu0 %v9968_v63  ;;  %v10070_v63 = vld [vmem:[#allocation8 + $0x1ec] ss:$16 sps:$4 sm:$0xff]  }
 0x483   :  { %4626 = vmatpush1.bf16.msra.mxu0 %v9966_v0  ;;  %v5150_v0 = vld [vmem:[#allocation11] sm:$0xff] }
 0x484   :  { %4627 = vmatprep.subr.bf16.mxu0 %v9971_v1  ;;  %v5154_v1 = vld [vmem:[#allocation11 + $0x20] sm:$0xff] }
 0x485   :  { %v8520_v6 = vcombine.low %v5150_v0, %v5154_v1 }
 0x487   :  { %4628 = vmatpush1.bf16.msra.mxu0 %v9969_v2  ;;  %v10068_v2 = vld [vmem:[#allocation8 + $0x1e8] ss:$16 sps:$4 sm:$0xff]  }
 0x48a   :  { %4630 = vmatmul.mubr.bf16.vlgmr.msra.gmra.mrb[0].mxu0 %v9972_v3  ;;  %v8521_v3 = vcombine.high %v5150_v0, %v5154_v1 }
 0x55d   :  { %v4631_v18 = vpop.f32.mrb[0].mxu0 }
 0x55e   :  { %v8931_v20 = vadd.f32 %v8930_v16, %v4631_v18  ;;  %v4633_v21 = vpop.f32.mrb[1].mxu0  ;;  %v5178_v16 = vld [vmem:[#allocation11 + $0xe0] sm:$0xff] }
 0x55f   :  { %v8933_v23 = vadd.f32 %v8932_v17, %v4633_v21  ;;  %v4635_v24 = vpop.f32.mrb[2].mxu0  ;;  %v8536_v17 = vcombine.low %v5166_v8, %v5170_v9  ;;  %v8545_v18 = vcombine.high %v5174_v15, %v5178_v16  ;;  %v8544_v21 = vcombine.low %v5174_v15, %v5178_v16  ;;  %v10701_v8 = vld [vmem:[#allocation10] sm:$0xf] }
 0x560   :  { %v8935_v25 = vadd.f32 %v8934_v19, %v4635_v24  ;;  %v4637_v26 = vpop.f32.mrb[3].mxu0  ;;  %v4640_v28 = vmax.f32 %v8931_v20, 0.0  ;;  %v5182_v19 = vld [vmem:[#allocation11 + $0x100] sm:$0xff]  ;;  %v4719_v9 = vrot.slane %v10701_v8, %v10681_v13 }
 0x561   :  { %v8937_v27 = vadd.f32 %v8936_v22, %v4637_v26  ;;  %v4641_v30 = vmax.f32 %v8933_v23, 0.0  ;;  %v5186_v20 = vld [vmem:[#allocation11 + $0x120] sm:$0xff] }
 0x562   :  { %v4642_v29 = vmax.f32 %v8935_v25, 0.0  ;;  %v8553_v22 = vcombine.high %v5182_v19, %v5186_v20  ;;  %v5190_v23 = vld [vmem:[#allocation11 + $0x140] sm:$0xff]  ;;  %v8552_v25 = vcombine.low %v5182_v19, %v5186_v20 }
 0x563   :  { %v4643_v31 = vmax.f32 %v8937_v27, 0.0  ;;  %v5194_v24 = vld [vmem:[#allocation11 + $0x160] sm:$0xff] }
 0x564   :  { %v10689_v32 = vpack.c.bf16 %v4642_v29, %v4640_v28  ;;  %v8561_v26 = vcombine.high %v5190_v23, %v5194_v24  ;;  %v5198_v27 = vld [vmem:[#allocation11 + $0x180] sm:$0xff]  ;;  %v8560_v29 = vcombine.low %v5190_v23, %v5194_v24 }
 0x565   :  { %v4645_v33 = vpack.c.bf16 %v4643_v31, %v4641_v30  ;;  %v5202_v28 = vld [vmem:[#allocation11 + $0x1a0] sm:$0xff] }
 0x566   :  { %v8569_v30 = vcombine.high %v5198_v27, %v5202_v28  ;;  %v5206_v31 = vld [vmem:[#allocation11 + $0x1c0] sm:$0xff] }
 0x567   :  { %5084 = vmatprep.mubr.bf16.mxu1 %v4645_v33 }
 0x568   :  { %5085 = vmatmul.mubr.bf16.vlgmr.msra.gmra.mrb[4].mxu1 %v10689_v32 }
 0x569   :  { %5096 = vmatpush1.bf16.msra.mxu1 %v10023_v34  ;;  %5127 = vmatprep.mubr.bf16.mxu1 %v4645_v33  ;;  %v8568_v33 = vcombine.low %v5198_v27, %v5202_v28 }
 0x56a   :  { %5097 = vmatprep.subr.bf16.mxu1 %v10028_v35  ;;  %v5214_v35 = vld [vmem:[#allocation11 + $0x200] sm:$0xff] }
 0x56d   :  { %5098 = vmatpush1.bf16.msra.mxu1 %v10026_v36  ;;  %v5218_v36 = vld [vmem:[#allocation11 + $0x220] sm:$0xff] }
 0x56e   :  { %5099 = vmatprep.subr.bf16.mxu1 %v10031_v37 }
 0x571   :  { %5100 = vmatpush1.bf16.msra.mxu1 %v10029_v38  ;;  %v8585_v38 = vcombine.high %v5214_v35, %v5218_v36 }
 0x572   :  { %5101 = vmatprep.subr.bf16.mxu1 %v10034_v39  ;;  %v5222_v39 = vld [vmem:[#allocation11 + $0x240] sm:$0xff] }
 0x575   :  { %5102 = vmatpush1.bf16.msra.mxu1 %v10032_v40  ;;  %v5226_v40 = vld [vmem:[#allocation11 + $0x260] sm:$0xff] }
 0x576   :  { %5103 = vmatprep.subr.bf16.mxu1 %v10037_v41  ;;  %v10693_v41 = vld [vmem:[#allocation11 + $0x400] sm:$0xff] }
 0x579   :  { %5104 = vmatpush1.bf16.msra.mxu1 %v10035_v42  ;;  %v10695_v42 = vld [vmem:[#allocation11 + $0x420] sm:$0xff] }
 0x57a   :  { %5105 = vmatprep.subr.bf16.mxu1 %v10040_v43  ;;  %v8584_v43 = vcombine.low %v5214_v35, %v5218_v36  ;;  %v5302_v35 = vld [vmem:[#allocation11 + $0x4c0] sm:$0xff] }
 0x57b   :  { %v5306_v36 = vld [vmem:[#allocation11 + $0x4e0] sm:$0xff] }
 0x57d   :  { %5106 = vmatpush1.bf16.msra.mxu1 %v10038_v44  ;;  %v8648_v44 = vcombine.low %v10693_v41, %v10695_v42 }
 0x57e   :  { %5107 = vmatprep.subr.bf16.mxu1 %v10043_v45  ;;  %v8593_v45 = vcombine.high %v5222_v39, %v5226_v40 }
 0x581   :  { %5108 = vmatpush1.bf16.msra.mxu1 %v10041_v46  ;;  %v5230_v46 = vld [vmem:[#allocation11 + $0x280] sm:$0xff] }
 0x582   :  { %5109 = vmatprep.subr.bf16.mxu1 %v10046_v47  ;;  %v5234_v47 = vld [vmem:[#allocation11 + $0x2a0] sm:$0xff] }
 0x585   :  { %5110 = vmatpush1.bf16.msra.mxu1 %v10044_v48  ;;  %v8592_v48 = vcombine.low %v5222_v39, %v5226_v40  ;;  %v5310_v39 = vld [vmem:[#allocation11 + $0x500] sm:$0xff] }
 0x586   :  { %5111 = vmatprep.subr.bf16.mxu1 %v10049_v49  ;;  %v8601_v49 = vcombine.high %v5230_v46, %v5234_v47  ;;  %v5314_v40 = vld [vmem:[#allocation11 + $0x520] sm:$0xff] }
 0x589   :  { %5112 = vmatpush1.bf16.msra.mxu1 %v10047_v50  ;;  %v5238_v50 = vld [vmem:[#allocation11 + $0x2c0] sm:$0xff] }
 0x58a   :  { %5113 = vmatprep.subr.bf16.mxu1 %v10052_v51  ;;  %v5242_v51 = vld [vmem:[#allocation11 + $0x2e0] sm:$0xff] }
 0x58d   :  { %5114 = vmatpush1.bf16.msra.mxu1 %v10050_v52  ;;  %v8600_v52 = vcombine.low %v5230_v46, %v5234_v47  ;;  %v5318_v46 = vld [vmem:[#allocation11 + $0x540] sm:$0xff] }
 0x58e   :  { %5115 = vmatprep.subr.bf16.mxu1 %v10055_v53  ;;  %v8609_v53 = vcombine.high %v5238_v50, %v5242_v51  ;;  %v5322_v47 = vld [vmem:[#allocation11 + $0x560] sm:$0xff] }
 0x591   :  { %5116 = vmatpush1.bf16.msra.mxu1 %v10053_v54  ;;  %v5246_v54 = vld [vmem:[#allocation11 + $0x300] sm:$0xff] }
 0x592   :  { %5117 = vmatprep.subr.bf16.mxu1 %v10058_v55  ;;  %v5250_v55 = vld [vmem:[#allocation11 + $0x320] sm:$0xff] }
 0x595   :  { %5118 = vmatpush1.bf16.msra.mxu1 %v10056_v56  ;;  %v8608_v56 = vcombine.low %v5238_v50, %v5242_v51  ;;  %v5334_v51 = vld [vmem:[#allocation11 + $0x5c0] sm:$0xff] }
 0x596   :  { %5119 = vmatprep.subr.bf16.mxu1 %v10061_v57  ;;  %v8617_v57 = vcombine.high %v5246_v54, %v5250_v55 }
 0x599   :  { %5120 = vmatpush1.bf16.msra.mxu1 %v10059_v58  ;;  %v5254_v58 = vld [vmem:[#allocation11 + $0x340] sm:$0xff] }
 0x59a   :  { %5121 = vmatprep.subr.bf16.mxu1 %v10064_v59  ;;  %v5258_v59 = vld [vmem:[#allocation11 + $0x360] sm:$0xff] }
 0x59b   :  { %v8624_v0 = vcombine.low %v5254_v58, %v5258_v59 }
 0x59d   :  { %5122 = vmatpush1.bf16.msra.mxu1 %v10062_v60  ;;  %v8616_v60 = vcombine.low %v5246_v54, %v5250_v55  ;;  %v5342_v55 = vld [vmem:[#allocation11 + $0x600] sm:$0xff] }
 0x59e   :  { %5123 = vmatprep.subr.bf16.mxu1 %v10067_v61  ;;  %v8625_v61 = vcombine.high %v5254_v58, %v5258_v59  ;;  %v5350_v59 = vld [vmem:[#allocation11 + $0x640] sm:$0xff] }
 0x5a1   :  { %5124 = vmatpush1.bf16.msra.mxu1 %v10065_v62  ;;  %v5262_v62 = vld [vmem:[#allocation11 + $0x380] sm:$0xff] }
 0x5a2   :  { %5125 = vmatprep.subr.bf16.mxu1 %v10070_v63  ;;  %v5266_v63 = vld [vmem:[#allocation11 + $0x3a0] sm:$0xff] }
 0x5a3   :  { %v8633_v1 = vcombine.high %v5262_v62, %v5266_v63  ;;  %v8632_v4 = vcombine.low %v5262_v62, %v5266_v63  ;;  %v5358_v63 = vld [vmem:[#allocation11 + $0x680] sm:$0xff] }
 0x5a5   :  { %5126 = vmatpush1.bf16.msra.mxu1 %v10068_v2  ;;  %v5270_v2 = vld [vmem:[#allocation11 + $0x3c0] sm:$0xff] }
 0x5a6   :  { %6728 = vmatprep.subr.bf16.mxu1 %v8521_v3  ;;  %v5274_v3 = vld [vmem:[#allocation11 + $0x3e0] sm:$0xff] }
 0x5a7   :  { %v8641_v5 = vcombine.high %v5270_v2, %v5274_v3 }
 0x5a8   :  { %5128 = vmatmul.mubr.bf16.vlgmr.msra.gmra.mrb[8].mxu1 %v10689_v32  ;;  %v5210_v32 = vld [vmem:[#allocation11 + $0x1e0] sm:$0xff] }
 0x5a9   :  { %6729 = vmatpush1.bf16.msra.mxu1 %v8520_v6  ;;  %v8577_v34 = vcombine.high %v5206_v31, %v5210_v32  ;;  %v8576_v37 = vcombine.low %v5206_v31, %v5210_v32  ;;  %v8640_v6 = vcombine.low %v5270_v2, %v5274_v3  ;;  %v5294_v31 = vld [vmem:[#allocation11 + $0x480] sm:$0xff] }
 0x5aa   :  { %6730 = vmatprep.subr.bf16.mxu1 %v8529_v7  ;;  %v8649_v7 = vcombine.high %v10693_v41, %v10695_v42  ;;  %v5298_v32 = vld [vmem:[#allocation11 + $0x4a0] sm:$0xff]  ;;  %v8680_v41 = vcombine.low %v5310_v39, %v5314_v40  ;;  %v8689_v42 = vcombine.high %v5318_v46, %v5322_v47 }
 0x5ab   :  { %v5366_v3 = vld [vmem:[#allocation11 + $0x6c0] sm:$0xff] }
 0x5ad   :  { %6731 = vmatpush1.bf16.msra.mxu1 %v8528_v12  ;;  %v4715_v12 = vrot.slane %v10701_v8, %v10678_v11 }
 0x5ae   :  { %6732 = vmatprep.subr.bf16.mxu1 %v8537_v14 }
 0x5b1   :  { %6733 = vmatpush1.bf16.msra.mxu1 %v8536_v17 }
 0x5b2   :  { %6734 = vmatprep.subr.bf16.mxu1 %v8545_v18 }
 0x5b5   :  { %6735 = vmatpush1.bf16.msra.mxu1 %v8544_v21 }
 0x5b6   :  { %6736 = vmatprep.subr.bf16.mxu1 %v8553_v22 }
 0x5b9   :  { %6737 = vmatpush1.bf16.msra.mxu1 %v8552_v25  ;;  %v5286_v25 = vld [vmem:[#allocation11 + $0x440] sm:$0xff] }
 0x5ba   :  { %6738 = vmatprep.subr.bf16.mxu1 %v8561_v26  ;;  %v5290_v26 = vld [vmem:[#allocation11 + $0x460] sm:$0xff] }
 0x5bd   :  { %6739 = vmatpush1.bf16.msra.mxu1 %v8560_v29 }
 0x5be   :  { %6740 = vmatprep.subr.bf16.mxu1 %v8569_v30  ;;  %v8657_v30 = vcombine.high %v5286_v25, %v5290_v26 }
 0x5c1   :  { %6741 = vmatpush1.bf16.msra.mxu1 %v8568_v33  ;;  %v8656_v33 = vcombine.low %v5286_v25, %v5290_v26  ;;  %v4722_v25 = vsub.s32 2, %v10675_v10 }
 0x5c2   :  { %6742 = vmatprep.subr.bf16.mxu1 %v8577_v34  ;;  %v8665_v34 = vcombine.high %v5294_v31, %v5298_v32 }
 0x5c5   :  { %6743 = vmatpush1.bf16.msra.mxu1 %v8576_v37  ;;  %v8664_v37 = vcombine.low %v5294_v31, %v5298_v32  ;;  %v5398_v32 = vld [vmem:[#allocation11 + $0x7c0] sm:$0xff] }
 0x5c6   :  { %6744 = vmatprep.subr.bf16.mxu1 %v8585_v38  ;;  %v8673_v38 = vcombine.high %v5302_v35, %v5306_v36 }
 0x5c9   :  { %6745 = vmatpush1.bf16.msra.mxu1 %v8584_v43  ;;  %v8672_v43 = vcombine.low %v5302_v35, %v5306_v36 }
 0x5ca   :  { %6746 = vmatprep.subr.bf16.mxu1 %v8593_v45  ;;  %v8681_v45 = vcombine.high %v5310_v39, %v5314_v40 }
 0x5cd   :  { %6747 = vmatpush1.bf16.msra.mxu1 %v8592_v48  ;;  %v5330_v48 = vld [vmem:[#allocation11 + $0x5a0] sm:$0xff] }
 0x5ce   :  { %6748 = vmatprep.subr.bf16.mxu1 %v8601_v49  ;;  %v8688_v49 = vcombine.low %v5318_v46, %v5322_v47 }
 0x5d1   :  { %6749 = vmatpush1.bf16.msra.mxu1 %v8600_v52  ;;  %v5338_v52 = vld [vmem:[#allocation11 + $0x5e0] sm:$0xff] }
 0x5d2   :  { %6750 = vmatprep.subr.bf16.mxu1 %v8609_v53  ;;  %v8705_v54 = vcombine.high %v5334_v51, %v5338_v52 }
 0x5d5   :  { %6751 = vmatpush1.bf16.msra.mxu1 %v8608_v56  ;;  %v5346_v56 = vld [vmem:[#allocation11 + $0x620] sm:$0xff] }
 0x5d6   :  { %6752 = vmatprep.subr.bf16.mxu1 %v8617_v57  ;;  %v8704_v57 = vcombine.low %v5334_v51, %v5338_v52  ;;  %v8713_v58 = vcombine.high %v5342_v55, %v5346_v56  ;;  %v5159_v51 = vld [vmem:[#allocation11 + $0x48] sm:$0xff] }
 0x5d7   :  { %v5163_v52 = vld [vmem:[#allocation11 + $0x68] sm:$0xff] }
 0x5d9   :  { %6753 = vmatpush1.bf16.msra.mxu1 %v8616_v60  ;;  %v5354_v60 = vld [vmem:[#allocation11 + $0x660] sm:$0xff] }
 0x5da   :  { %6754 = vmatprep.subr.bf16.mxu1 %v8625_v61  ;;  %v8712_v61 = vcombine.low %v5342_v55, %v5346_v56  ;;  %v8721_v62 = vcombine.high %v5350_v59, %v5354_v60 }
 0x5dd   :  { %6755 = vmatpush1.bf16.msra.mxu1 %v8624_v0  ;;  %v5362_v0 = vld [vmem:[#allocation11 + $0x6a0] sm:$0xff] }
 0x5de   :  { %6756 = vmatprep.subr.bf16.mxu1 %v8633_v1  ;;  %v8720_v1 = vcombine.low %v5350_v59, %v5354_v60  ;;  %v8729_v2 = vcombine.high %v5358_v63, %v5362_v0  ;;  %v5171_v59 = vld [vmem:[#allocation11 + $0xa8] sm:$0xff]  ;;  %v8530_v60 = vcombine.low %v5159_v51, %v5163_v52 }
 0x5e1   :  { %6757 = vmatpush1.bf16.msra.mxu1 %v8632_v4  ;;  %v5370_v4 = vld [vmem:[#allocation11 + $0x6e0] sm:$0xff] }
 0x5e2   :  { %6758 = vmatprep.subr.bf16.mxu1 %v8641_v5  ;;  %v8728_v5 = vcombine.low %v5358_v63, %v5362_v0  ;;  %v5179_v63 = vld [vmem:[#allocation11 + $0xe8] sm:$0xff] }
 0x5e5   :  { %6759 = vmatpush1.bf16.msra.mxu1 %v8640_v6  ;;  %v8737_v6 = vcombine.high %v5366_v3, %v5370_v4 }
 0x5e6   :  { %6771 = vmatprep.subr.bf16.mxu1 %v8649_v7  ;;  %v5374_v7 = vld [vmem:[#allocation11 + $0x700] sm:$0xff] }
 0x63b   :  { %v5086_v14 = vpop.f32.mrb[4].mxu1 }
 0x63c   :  { %v5088_v15 = vpop.f32.mrb[5].mxu1  ;;  %v5087_v18 = vadd.f32 %v5086_v14, %v4715_v12 }
 0x63d   :  { %v5089_v16 = vadd.f32 %v5088_v15, %v4719_v9  ;;  %v5090_v17 = vpop.f32.mrb[6].mxu1  ;;  %v5382_v15 = vld [vmem:[#allocation11 + $0x740] sm:$0xff] }
 0x63e   :  { %v5091_v19 = vadd.f32 %v5090_v17, %v4715_v12  ;;  %v5092_v20 = vpop.f32.mrb[7].mxu1  ;;  %v10713_v27 = vmax.f32 %v5087_v18, 0.0  ;;  %v8736_v12 = vcombine.low %v5366_v3, %v5370_v4  ;;  %v5187_v3 = vld [vmem:[#allocation11 + $0x128] sm:$0xff] }
 0x63f   :  { %v5093_v21 = vadd.f32 %v5092_v20, %v4719_v9  ;;  %v10709_v23 = vmax.f32 %v5089_v16, 0.0  ;;  %v5378_v9 = vld [vmem:[#allocation11 + $0x720] sm:$0xff] }
 0x640   :  { %v10707_v22 = vmax.f32 %v5091_v19, 0.0  ;;  %v8745_v14 = vcombine.high %v5374_v7, %v5378_v9  ;;  %v5386_v16 = vld [vmem:[#allocation11 + $0x760] sm:$0xff]  ;;  %v8744_v17 = vcombine.low %v5374_v7, %v5378_v9  ;;  %v4726_v19 = vsub.s32 3, %v10675_v10  ;;  %v5195_v7 = vld [vmem:[#allocation11 + $0x168] sm:$0xff] }
 0x641   :  { %v10711_v24 = vmax.f32 %v5093_v21, 0.0  ;;  %v8753_v18 = vcombine.high %v5382_v15, %v5386_v16  ;;  %v5390_v20 = vld [vmem:[#allocation11 + $0x780] sm:$0xff]  ;;  %v8752_v26 = vcombine.low %v5382_v15, %v5386_v16  ;;  %v5203_v15 = vld [vmem:[#allocation11 + $0x1a8] sm:$0xff] }
 0x642   :  { %v10721_v29 = vpack.c.bf16 %v10707_v22, %v10713_v27  ;;  %v5394_v21 = vld [vmem:[#allocation11 + $0x7a0] sm:$0xff]  ;;  %v4727_v31 = vrot.slane %v10701_v8, %v4726_v19 }
 0x643   :  { %v10717_v28 = vpack.c.bf16 %v10711_v24, %v10709_v23  ;;  %v8760_v36 = vcombine.low %v5390_v20, %v5394_v21 }
 0x645   :  { %6760 = vmatprep.mubr.bf16.mxu1 %v10717_v28 }
 0x646   :  { %6761 = vmatmul.mubr.bf16.vlgmr.msra.gmra.mrb[12].mxu1 %v10721_v29 }
 0x647   :  { %6772 = vmatpush1.bf16.msra.mxu1 %v8648_v44  ;;  %v5326_v44 = vld [vmem:[#allocation11 + $0x580] sm:$0xff] }
 0x648   :  { %6773 = vmatprep.subr.bf16.mxu1 %v8657_v30  ;;  %v8697_v50 = vcombine.high %v5326_v44, %v5330_v48  ;;  %v8696_v53 = vcombine.low %v5326_v44, %v5330_v48  ;;  %v8761_v30 = vcombine.high %v5390_v20, %v5394_v21  ;;  %v5211_v20 = vld [vmem:[#allocation11 + $0x1e8] sm:$0xff] }
 0x64b   :  { %6774 = vmatpush1.bf16.msra.mxu1 %v8656_v33  ;;  %v5402_v33 = vld [vmem:[#allocation11 + $0x7e0] sm:$0xff] }
 0x64c   :  { %6775 = vmatprep.subr.bf16.mxu1 %v8665_v34  ;;  %v4723_v34 = vrot.slane %v10701_v8, %v4722_v25  ;;  %v8768_v44 = vcombine.low %v5398_v32, %v5402_v33 }
 0x64f   :  { %6776 = vmatpush1.bf16.msra.mxu1 %v8664_v37 }
 0x650   :  { %6777 = vmatprep.subr.bf16.mxu1 %v8673_v38  ;;  %v8769_v38 = vcombine.high %v5398_v32, %v5402_v33 }
 0x653   :  { %6778 = vmatpush1.bf16.msra.mxu1 %v8672_v43  ;;  %v5151_v43 = vld [vmem:[#allocation11 + $0x8] sm:$0xff] }
 0x654   :  { %6779 = vmatprep.subr.bf16.mxu1 %v8681_v45  ;;  %v5155_v45 = vld [vmem:[#allocation11 + $0x28] sm:$0xff] }
 0x655   :  { %v8523_v8 = vcombine.high %v5151_v43, %v5155_v45  ;;  %v8522_v55 = vcombine.low %v5151_v43, %v5155_v45  ;;  %v5239_v45 = vld [vmem:[#allocation11 + $0x2c8] sm:$0xff] }
 0x657   :  { %6780 = vmatpush1.bf16.msra.mxu1 %v8680_v41 }
 0x658   :  { %6781 = vmatprep.subr.bf16.mxu1 %v8689_v42 }
 0x65b   :  { %6782 = vmatpush1.bf16.msra.mxu1 %v8688_v49 }
 0x65c   :  { %6783 = vmatprep.subr.bf16.mxu1 %v8697_v50 }
 0x65f   :  { %6784 = vmatpush1.bf16.msra.mxu1 %v8696_v53 }
 0x660   :  { %6785 = vmatprep.subr.bf16.mxu1 %v8705_v54 }
 0x663   :  { %6786 = vmatpush1.bf16.msra.mxu1 %v8704_v57  ;;  %v8531_v57 = vcombine.high %v5159_v51, %v5163_v52  ;;  %v5255_v52 = vld [vmem:[#allocation11 + $0x348] sm:$0xff] }
 0x664   :  { %6787 = vmatprep.subr.bf16.mxu1 %v8713_v58  ;;  %v5167_v58 = vld [vmem:[#allocation11 + $0x88] sm:$0xff] }
 0x665   :  { %v8538_v0 = vcombine.low %v5167_v58, %v5171_v59 }
 0x667   :  { %6788 = vmatpush1.bf16.msra.mxu1 %v8712_v61  ;;  %v8539_v61 = vcombine.high %v5167_v58, %v5171_v59  ;;  %v5263_v59 = vld [vmem:[#allocation11 + $0x388] sm:$0xff] }
 0x668   :  { %6789 = vmatprep.subr.bf16.mxu1 %v8721_v62  ;;  %v5175_v62 = vld [vmem:[#allocation11 + $0xc8] sm:$0xff] }
 0x669   :  { %v8546_v4 = vcombine.low %v5175_v62, %v5179_v63 }
 0x66b   :  { %6790 = vmatpush1.bf16.msra.mxu1 %v8720_v1  ;;  %v8547_v1 = vcombine.high %v5175_v62, %v5179_v63  ;;  %v5271_v63 = vld [vmem:[#allocation11 + $0x3c8] sm:$0xff] }
 0x66c   :  { %6791 = vmatprep.subr.bf16.mxu1 %v8729_v2  ;;  %v5183_v2 = vld [vmem:[#allocation11 + $0x108] sm:$0xff] }
 0x66d   :  { %v8554_v9 = vcombine.low %v5183_v2, %v5187_v3 }
 0x66f   :  { %6792 = vmatpush1.bf16.msra.mxu1 %v8728_v5  ;;  %v8555_v5 = vcombine.high %v5183_v2, %v5187_v3  ;;  %v5279_v3 = vld [vmem:[#allocation11 + $0x408] sm:$0xff] }
 0x670   :  { %6793 = vmatprep.subr.bf16.mxu1 %v8737_v6  ;;  %v5191_v6 = vld [vmem:[#allocation11 + $0x148] sm:$0xff] }
 0x671   :  { %v8562_v16 = vcombine.low %v5191_v6, %v5195_v7 }
 0x673   :  { %6794 = vmatpush1.bf16.msra.mxu1 %v8736_v12  ;;  %v8563_v12 = vcombine.high %v5191_v6, %v5195_v7  ;;  %v5287_v7 = vld [vmem:[#allocation11 + $0x448] sm:$0xff] }
 0x674   :  { %6795 = vmatprep.subr.bf16.mxu1 %v8745_v14  ;;  %v5199_v14 = vld [vmem:[#allocation11 + $0x188] sm:$0xff] }
 0x675   :  { %v8570_v21 = vcombine.low %v5199_v14, %v5203_v15 }
 0x677   :  { %6796 = vmatpush1.bf16.msra.mxu1 %v8744_v17  ;;  %v8571_v17 = vcombine.high %v5199_v14, %v5203_v15  ;;  %v5295_v15 = vld [vmem:[#allocation11 + $0x488] sm:$0xff] }
 0x678   :  { %6797 = vmatprep.subr.bf16.mxu1 %v8753_v18  ;;  %v5207_v18 = vld [vmem:[#allocation11 + $0x1c8] sm:$0xff] }
 0x679   :  { %v8578_v32 = vcombine.low %v5207_v18, %v5211_v20 }
 0x67b   :  { %v5129_v35 = vpop.f32.mrb[8].mxu1  ;;  %6798 = vmatpush1.bf16.msra.mxu1 %v8752_v26  ;;  %v8579_v26 = vcombine.high %v5207_v18, %v5211_v20  ;;  %v5303_v20 = vld [vmem:[#allocation11 + $0x4c8] sm:$0xff] }
 0x67c   :  { %v5131_v37 = vpop.f32.mrb[9].mxu1  ;;  %6799 = vmatprep.subr.bf16.mxu1 %v8761_v30  ;;  %v5130_v46 = vadd.f32 %v5129_v35, %v4723_v34  ;;  %v5215_v30 = vld [vmem:[#allocation11 + $0x208] sm:$0xff] }
 0x67d   :  { %v5132_v39 = vadd.f32 %v5131_v37, %v4727_v31  ;;  %v5133_v40 = vpop.f32.mrb[10].mxu1  ;;  %v5227_v35 = vld [vmem:[#allocation11 + $0x268] sm:$0xff] }
 0x67e   :  { %v5134_v47 = vadd.f32 %v5133_v40, %v4723_v34  ;;  %v5135_v41 = vpop.f32.mrb[11].mxu1  ;;  %v10742_v53 = vmax.f32 %v5130_v46, 0.0  ;;  %v5223_v34 = vld [vmem:[#allocation11 + $0x248] sm:$0xff] }
 0x67f   :  { %v5136_v42 = vadd.f32 %v5135_v41, %v4727_v31  ;;  %6800 = vmatpush1.bf16.msra.mxu1 %v8760_v36  ;;  %v10738_v49 = vmax.f32 %v5132_v39, 0.0  ;;  %v5219_v31 = vld [vmem:[#allocation11 + $0x228] sm:$0xff]  ;;  %v8595_v37 = vcombine.high %v5223_v34, %v5227_v35  ;;  %v8594_v40 = vcombine.low %v5223_v34, %v5227_v35 }
 0x680   :  { %v10736_v48 = vmax.f32 %v5134_v47, 0.0  ;;  %6801 = vmatprep.subr.bf16.mxu1 %v8769_v38  ;;  %v8587_v33 = vcombine.high %v5215_v30, %v5219_v31  ;;  %v8586_v36 = vcombine.low %v5215_v30, %v5219_v31  ;;  %v5231_v38 = vld [vmem:[#allocation11 + $0x288] sm:$0xff] }
 0x681   :  { %v10740_v50 = vmax.f32 %v5136_v42, 0.0  ;;  %v5235_v39 = vld [vmem:[#allocation11 + $0x2a8] sm:$0xff] }
 0x682   :  { %v10750_v56 = vpack.c.bf16 %v10736_v48, %v10742_v53  ;;  %v8603_v43 = vcombine.high %v5231_v38, %v5235_v39  ;;  %v5243_v46 = vld [vmem:[#allocation11 + $0x2e8] sm:$0xff]  ;;  %v8602_v47 = vcombine.low %v5231_v38, %v5235_v39 }
 0x683   :  { %v10746_v54 = vpack.c.bf16 %v10740_v50, %v10738_v49  ;;  %6802 = vmatpush1.bf16.msra.mxu1 %v8768_v44  ;;  %v8611_v41 = vcombine.high %v5239_v45, %v5243_v46  ;;  %v5247_v42 = vld [vmem:[#allocation11 + $0x308] sm:$0xff] }
 0x684   :  { %6814 = vmatprep.subr.bf16.mxu1 %v8523_v8  ;;  %v5251_v44 = vld [vmem:[#allocation11 + $0x328] sm:$0xff]  ;;  %v8610_v8 = vcombine.low %v5239_v45, %v5243_v46 }
 0x685   :  { %6803 = vmatprep.mubr.bf16.mxu1 %v10746_v54  ;;  %v8619_v51 = vcombine.high %v5247_v42, %v5251_v44  ;;  %v5311_v31 = vld [vmem:[#allocation11 + $0x508] sm:$0xff] }
 0x686   :  { %6804 = vmatmul.mubr.bf16.vlgmr.msra.gmra.mrb[12].mxu1 %v10750_v56  ;;  %v5319_v35 = vld [vmem:[#allocation11 + $0x548] sm:$0xff] }
 0x687   :  { %6815 = vmatpush1.bf16.msra.mxu1 %v8522_v55  ;;  %6846 = vmatprep.mubr.bf16.mxu1 %v10717_v28  ;;  %v5259_v55 = vld [vmem:[#allocation11 + $0x368] sm:$0xff] }
 0x688   :  { %6816 = vmatprep.subr.bf16.mxu1 %v8531_v57  ;;  %v8618_v57 = vcombine.low %v5247_v42, %v5251_v44  ;;  %v8627_v58 = vcombine.high %v5255_v52, %v5259_v55  ;;  %v5327_v39 = vld [vmem:[#allocation11 + $0x588] sm:$0xff] }
 0x689   :  { %v5335_v46 = vld [vmem:[#allocation11 + $0x5c8] sm:$0xff] }
 0x68a   :  { %v5343_v44 = vld [vmem:[#allocation11 + $0x608] sm:$0xff] }
 0x68b   :  { %6817 = vmatpush1.bf16.msra.mxu1 %v8530_v60  ;;  %v5267_v60 = vld [vmem:[#allocation11 + $0x3a8] sm:$0xff] }
 0x68c   :  { %6818 = vmatprep.subr.bf16.mxu1 %v8539_v61  ;;  %v8626_v61 = vcombine.low %v5255_v52, %v5259_v55  ;;  %v8635_v62 = vcombine.high %v5263_v59, %v5267_v60  ;;  %v5351_v55 = vld [vmem:[#allocation11 + $0x648] sm:$0xff] }
 0x68f   :  { %6819 = vmatpush1.bf16.msra.mxu1 %v8538_v0  ;;  %v5275_v0 = vld [vmem:[#allocation11 + $0x3e8] sm:$0xff] }
 0x690   :  { %6820 = vmatprep.subr.bf16.mxu1 %v8547_v1  ;;  %v8634_v1 = vcombine.low %v5263_v59, %v5267_v60  ;;  %v8643_v2 = vcombine.high %v5271_v63, %v5275_v0  ;;  %v5359_v60 = vld [vmem:[#allocation11 + $0x688] sm:$0xff] }
 0x693   :  { %6821 = vmatpush1.bf16.msra.mxu1 %v8546_v4  ;;  %v5283_v4 = vld [vmem:[#allocation11 + $0x428] sm:$0xff] }
 0x694   :  { %6822 = vmatprep.subr.bf16.mxu1 %v8555_v5  ;;  %v8642_v5 = vcombine.low %v5271_v63, %v5275_v0  ;;  %v8651_v6 = vcombine.high %v5279_v3, %v5283_v4  ;;  %v5367_v0 = vld [vmem:[#allocation11 + $0x6c8] sm:$0xff] }
 0x697   :  { %6823 = vmatpush1.bf16.msra.mxu1 %v8554_v9  ;;  %v5291_v9 = vld [vmem:[#allocation11 + $0x468] sm:$0xff] }
 0x698   :  { %6824 = vmatprep.subr.bf16.mxu1 %v8563_v12  ;;  %v8650_v12 = vcombine.low %v5279_v3, %v5283_v4  ;;  %v8659_v14 = vcombine.high %v5287_v7, %v5291_v9  ;;  %v5375_v4 = vld [vmem:[#allocation11 + $0x708] sm:$0xff] }
 0x69b   :  { %6825 = vmatpush1.bf16.msra.mxu1 %v8562_v16  ;;  %v5299_v16 = vld [vmem:[#allocation11 + $0x4a8] sm:$0xff] }
 0x69c   :  { %6826 = vmatprep.subr.bf16.mxu1 %v8571_v17  ;;  %v8658_v17 = vcombine.low %v5287_v7, %v5291_v9  ;;  %v8667_v18 = vcombine.high %v5295_v15, %v5299_v16  ;;  %v5383_v9 = vld [vmem:[#allocation11 + $0x748] sm:$0xff] }
 0x69f   :  { %6827 = vmatpush1.bf16.msra.mxu1 %v8570_v21  ;;  %v5307_v21 = vld [vmem:[#allocation11 + $0x4e8] sm:$0xff] }
 0x6a0   :  { %6828 = vmatprep.subr.bf16.mxu1 %v8579_v26  ;;  %v8666_v26 = vcombine.low %v5295_v15, %v5299_v16  ;;  %v8675_v30 = vcombine.high %v5303_v20, %v5307_v21  ;;  %v5391_v16 = vld [vmem:[#allocation11 + $0x788] sm:$0xff] }
 0x6a3   :  { %6829 = vmatpush1.bf16.msra.mxu1 %v8578_v32  ;;  %v5315_v32 = vld [vmem:[#allocation11 + $0x528] sm:$0xff] }
 0x6a4   :  { %6830 = vmatprep.subr.bf16.mxu1 %v8587_v33  ;;  %v8674_v33 = vcombine.low %v5303_v20, %v5307_v21  ;;  %v8683_v34 = vcombine.high %v5311_v31, %v5315_v32  ;;  %v5399_v21 = vld [vmem:[#allocation11 + $0x7c8] sm:$0xff] }
 0x6a7   :  { %6831 = vmatpush1.bf16.msra.mxu1 %v8586_v36  ;;  %v5323_v36 = vld [vmem:[#allocation11 + $0x568] sm:$0xff] }
 0x6a8   :  { %6832 = vmatprep.subr.bf16.mxu1 %v8595_v37  ;;  %v8682_v37 = vcombine.low %v5311_v31, %v5315_v32  ;;  %v8691_v38 = vcombine.high %v5319_v35, %v5323_v36  ;;  %v5152_v32 = vld [vmem:[#allocation11 + $0x10] sm:$0xff] }
 0x6ab   :  { %6833 = vmatpush1.bf16.msra.mxu1 %v8594_v40  ;;  %v5331_v40 = vld [vmem:[#allocation11 + $0x5a8] sm:$0xff] }
 0x6ac   :  { %6834 = vmatprep.subr.bf16.mxu1 %v8603_v43  ;;  %v8690_v43 = vcombine.low %v5319_v35, %v5323_v36  ;;  %v8699_v45 = vcombine.high %v5327_v39, %v5331_v40  ;;  %v5160_v36 = vld [vmem:[#allocation11 + $0x50] sm:$0xff] }
 0x6af   :  { %6835 = vmatpush1.bf16.msra.mxu1 %v8602_v47  ;;  %v5339_v47 = vld [vmem:[#allocation11 + $0x5e8] sm:$0xff] }
 0x6b0   :  { %6836 = vmatprep.subr.bf16.mxu1 %v8611_v41  ;;  %v8698_v41 = vcombine.low %v5327_v39, %v5331_v40  ;;  %v8707_v42 = vcombine.high %v5335_v46, %v5339_v47  ;;  %v5168_v40 = vld [vmem:[#allocation11 + $0x90] sm:$0xff] }
 0x6b3   :  { %6837 = vmatpush1.bf16.msra.mxu1 %v8610_v8  ;;  %v5347_v8 = vld [vmem:[#allocation11 + $0x628] sm:$0xff] }
 0x6b4   :  { %6838 = vmatprep.subr.bf16.mxu1 %v8619_v51  ;;  %v8706_v51 = vcombine.low %v5335_v46, %v5339_v47  ;;  %v8715_v52 = vcombine.high %v5343_v44, %v5347_v8  ;;  %v5176_v47 = vld [vmem:[#allocation11 + $0xd0] sm:$0xff] }
 0x6b7   :  { %6839 = vmatpush1.bf16.msra.mxu1 %v8618_v57  ;;  %v5355_v57 = vld [vmem:[#allocation11 + $0x668] sm:$0xff] }
 0x6b8   :  { %6840 = vmatprep.subr.bf16.mxu1 %v8627_v58  ;;  %v8714_v58 = vcombine.low %v5343_v44, %v5347_v8  ;;  %v8723_v59 = vcombine.high %v5351_v55, %v5355_v57  ;;  %v5184_v8 = vld [vmem:[#allocation11 + $0x110] sm:$0xff] }
 0x6bb   :  { %6841 = vmatpush1.bf16.msra.mxu1 %v8626_v61  ;;  %v5363_v61 = vld [vmem:[#allocation11 + $0x6a8] sm:$0xff] }
 0x6bc   :  { %6842 = vmatprep.subr.bf16.mxu1 %v8635_v62  ;;  %v8722_v62 = vcombine.low %v5351_v55, %v5355_v57  ;;  %v8731_v63 = vcombine.high %v5359_v60, %v5363_v61  ;;  %v5192_v57 = vld [vmem:[#allocation11 + $0x150] sm:$0xff] }
 0x6bf   :  { %6843 = vmatpush1.bf16.msra.mxu1 %v8634_v1  ;;  %v5371_v1 = vld [vmem:[#allocation11 + $0x6e8] sm:$0xff] }
 0x6c0   :  { %6844 = vmatprep.subr.bf16.mxu1 %v8643_v2  ;;  %v8730_v2 = vcombine.low %v5359_v60, %v5363_v61  ;;  %v8739_v3 = vcombine.high %v5367_v0, %v5371_v1  ;;  %v5200_v61 = vld [vmem:[#allocation11 + $0x190] sm:$0xff] }
 0x6c3   :  { %6845 = vmatpush1.bf16.msra.mxu1 %v8642_v5  ;;  %v5379_v5 = vld [vmem:[#allocation11 + $0x728] sm:$0xff] }
 0x6c4   :  { %6857 = vmatprep.subr.bf16.mxu1 %v8651_v6  ;;  %v8738_v6 = vcombine.low %v5367_v0, %v5371_v1  ;;  %v8747_v7 = vcombine.high %v5375_v4, %v5379_v5  ;;  %v5208_v1 = vld [vmem:[#allocation11 + $0x1d0] sm:$0xff] }
 0x6c6   :  { %6847 = vmatmul.mubr.bf16.vlgmr.msra.gmra.mrb[16].mxu1 %v10721_v29 }
 0x6c7   :  { %6858 = vmatpush1.bf16.msra.mxu1 %v8650_v12  ;;  %6889 = vmatprep.mubr.bf16.mxu1 %v10746_v54  ;;  %v5387_v12 = vld [vmem:[#allocation11 + $0x768] sm:$0xff] }
 0x6c8   :  { %6859 = vmatprep.subr.bf16.mxu1 %v8659_v14  ;;  %v8746_v14 = vcombine.low %v5375_v4, %v5379_v5  ;;  %v8755_v15 = vcombine.high %v5383_v9, %v5387_v12  ;;  %v5216_v5 = vld [vmem:[#allocation11 + $0x210] sm:$0xff] }
 0x6cb   :  { %6860 = vmatpush1.bf16.msra.mxu1 %v8658_v17  ;;  %v5395_v17 = vld [vmem:[#allocation11 + $0x7a8] sm:$0xff] }
 0x6cc   :  { %6861 = vmatprep.subr.bf16.mxu1 %v8667_v18  ;;  %v8754_v18 = vcombine.low %v5383_v9, %v5387_v12  ;;  %v8763_v20 = vcombine.high %v5391_v16, %v5395_v17  ;;  %v5224_v12 = vld [vmem:[#allocation11 + $0x250] sm:$0xff] }
 0x6cf   :  { %6862 = vmatpush1.bf16.msra.mxu1 %v8666_v26  ;;  %v5403_v26 = vld [vmem:[#allocation11 + $0x7e8] sm:$0xff] }
 0x6d0   :  { %6863 = vmatprep.subr.bf16.mxu1 %v8675_v30  ;;  %v8762_v30 = vcombine.low %v5391_v16, %v5395_v17  ;;  %v8771_v31 = vcombine.high %v5399_v21, %v5403_v26  ;;  %v5232_v17 = vld [vmem:[#allocation11 + $0x290] sm:$0xff] }
 0x6d3   :  { %6864 = vmatpush1.bf16.msra.mxu1 %v8674_v33  ;;  %v5156_v33 = vld [vmem:[#allocation11 + $0x30] sm:$0xff] }
 0x6d4   :  { %6865 = vmatprep.subr.bf16.mxu1 %v8683_v34  ;;  %v8770_v34 = vcombine.low %v5399_v21, %v5403_v26  ;;  %v8525_v35 = vcombine.high %v5152_v32, %v5156_v33  ;;  %v5240_v26 = vld [vmem:[#allocation11 + $0x2d0] sm:$0xff] }
 0x6d7   :  { %6866 = vmatpush1.bf16.msra.mxu1 %v8682_v37  ;;  %v5164_v37 = vld [vmem:[#allocation11 + $0x70] sm:$0xff] }
 0x6d8   :  { %6867 = vmatprep.subr.bf16.mxu1 %v8691_v38  ;;  %v8524_v38 = vcombine.low %v5152_v32, %v5156_v33  ;;  %v8533_v39 = vcombine.high %v5160_v36, %v5164_v37  ;;  %v5248_v33 = vld [vmem:[#allocation11 + $0x310] sm:$0xff] }
 0x6db   :  { %6868 = vmatpush1.bf16.msra.mxu1 %v8690_v43  ;;  %v5172_v43 = vld [vmem:[#allocation11 + $0xb0] sm:$0xff] }
 0x6dc   :  { %6869 = vmatprep.subr.bf16.mxu1 %v8699_v45  ;;  %v8532_v45 = vcombine.low %v5160_v36, %v5164_v37  ;;  %v8541_v46 = vcombine.high %v5168_v40, %v5172_v43  ;;  %v5256_v37 = vld [vmem:[#allocation11 + $0x350] sm:$0xff] }
 0x6df   :  { %6870 = vmatpush1.bf16.msra.mxu1 %v8698_v41  ;;  %v5180_v41 = vld [vmem:[#allocation11 + $0xf0] sm:$0xff] }
 0x6e0   :  { %6871 = vmatprep.subr.bf16.mxu1 %v8707_v42  ;;  %v8540_v42 = vcombine.low %v5168_v40, %v5172_v43  ;;  %v8549_v44 = vcombine.high %v5176_v47, %v5180_v41  ;;  %v5264_v43 = vld [vmem:[#allocation11 + $0x390] sm:$0xff] }
 0x6e3   :  { %6872 = vmatpush1.bf16.msra.mxu1 %v8706_v51  ;;  %v5188_v51 = vld [vmem:[#allocation11 + $0x130] sm:$0xff] }
 0x6e4   :  { %6873 = vmatprep.subr.bf16.mxu1 %v8715_v52  ;;  %v8548_v52 = vcombine.low %v5176_v47, %v5180_v41  ;;  %v8557_v55 = vcombine.high %v5184_v8, %v5188_v51  ;;  %v5272_v41 = vld [vmem:[#allocation11 + $0x3d0] sm:$0xff] }
 0x6e7   :  { %6874 = vmatpush1.bf16.msra.mxu1 %v8714_v58  ;;  %v5196_v58 = vld [vmem:[#allocation11 + $0x170] sm:$0xff] }
 0x6e8   :  { %6875 = vmatprep.subr.bf16.mxu1 %v8723_v59  ;;  %v8556_v59 = vcombine.low %v5184_v8, %v5188_v51  ;;  %v8565_v60 = vcombine.high %v5192_v57, %v5196_v58  ;;  %v5280_v51 = vld [vmem:[#allocation11 + $0x410] sm:$0xff] }
 0x6eb   :  { %6876 = vmatpush1.bf16.msra.mxu1 %v8722_v62  ;;  %v5204_v62 = vld [vmem:[#allocation11 + $0x1b0] sm:$0xff] }
 0x6ec   :  { %6877 = vmatprep.subr.bf16.mxu1 %v8731_v63  ;;  %v8564_v63 = vcombine.low %v5192_v57, %v5196_v58  ;;  %v8573_v0 = vcombine.high %v5200_v61, %v5204_v62  ;;  %v5288_v58 = vld [vmem:[#allocation11 + $0x450] sm:$0xff] }
 0x6ef   :  { %6878 = vmatpush1.bf16.msra.mxu1 %v8730_v2  ;;  %v5212_v2 = vld [vmem:[#allocation11 + $0x1f0] sm:$0xff] }
 0x6f0   :  { %6879 = vmatprep.subr.bf16.mxu1 %v8739_v3  ;;  %v8572_v3 = vcombine.low %v5200_v61, %v5204_v62  ;;  %v8581_v4 = vcombine.high %v5208_v1, %v5212_v2  ;;  %v5296_v62 = vld [vmem:[#allocation11 + $0x490] sm:$0xff] }
 0x6f3   :  { %6880 = vmatpush1.bf16.msra.mxu1 %v8738_v6  ;;  %v5220_v6 = vld [vmem:[#allocation11 + $0x230] sm:$0xff] }
 0x6f4   :  { %6881 = vmatprep.subr.bf16.mxu1 %v8747_v7  ;;  %v8580_v7 = vcombine.low %v5208_v1, %v5212_v2  ;;  %v8589_v9 = vcombine.high %v5216_v5, %v5220_v6  ;;  %v5304_v2 = vld [vmem:[#allocation11 + $0x4d0] sm:$0xff] }
 0x6f7   :  { %6882 = vmatpush1.bf16.msra.mxu1 %v8746_v14  ;;  %v5228_v14 = vld [vmem:[#allocation11 + $0x270] sm:$0xff] }
 0x6f8   :  { %6883 = vmatprep.subr.bf16.mxu1 %v8755_v15  ;;  %v8588_v15 = vcombine.low %v5216_v5, %v5220_v6  ;;  %v8597_v16 = vcombine.high %v5224_v12, %v5228_v14  ;;  %v5312_v6 = vld [vmem:[#allocation11 + $0x510] sm:$0xff] }
 0x6fb   :  { %6884 = vmatpush1.bf16.msra.mxu1 %v8754_v18  ;;  %v5236_v18 = vld [vmem:[#allocation11 + $0x2b0] sm:$0xff] }
 0x6fc   :  { %6885 = vmatprep.subr.bf16.mxu1 %v8763_v20  ;;  %v8596_v20 = vcombine.low %v5224_v12, %v5228_v14  ;;  %v8605_v21 = vcombine.high %v5232_v17, %v5236_v18  ;;  %v5320_v14 = vld [vmem:[#allocation11 + $0x550] sm:$0xff] }
 0x6ff   :  { %6886 = vmatpush1.bf16.msra.mxu1 %v8762_v30  ;;  %v5244_v30 = vld [vmem:[#allocation11 + $0x2f0] sm:$0xff] }
 0x700   :  { %6887 = vmatprep.subr.bf16.mxu1 %v8771_v31  ;;  %v8604_v31 = vcombine.low %v5232_v17, %v5236_v18  ;;  %v8613_v32 = vcombine.high %v5240_v26, %v5244_v30  ;;  %v10761_v17 = vld [vmem:[#allocation13] sm:$0xff] }
 0x703   :  { %6888 = vmatpush1.bf16.msra.mxu1 %v8770_v34  ;;  %v5252_v34 = vld [vmem:[#allocation11 + $0x330] sm:$0xff] }
 0x704   :  { %6900 = vmatprep.subr.bf16.mxu1 %v8525_v35  ;;  %v8612_v35 = vcombine.low %v5240_v26, %v5244_v30  ;;  %v8621_v36 = vcombine.high %v5248_v33, %v5252_v34  ;;  %v5411_v26 = vrot.slane %v10761_v17, %v10678_v11  ;;  %v5415_v30 = vrot.slane %v10761_v17, %v10681_v13  ;;  %v5344_v13 = vld [vmem:[#allocation11 + $0x610] sm:$0xff] }
 0x706   :  { %6890 = vmatmul.mubr.bf16.vlgmr.msra.gmra.mrb[16].mxu1 %v10750_v56 }
 0x707   :  { %6901 = vmatpush1.bf16.msra.mxu1 %v8524_v38  ;;  %6932 = vmatprep.mubr.bf16.mxu1 %v10717_v28  ;;  %v5260_v38 = vld [vmem:[#allocation11 + $0x370] sm:$0xff] }
 0x708   :  { %6902 = vmatprep.subr.bf16.mxu1 %v8533_v39  ;;  %v8620_v39 = vcombine.low %v5248_v33, %v5252_v34  ;;  %v8629_v40 = vcombine.high %v5256_v37, %v5260_v38  ;;  %v5336_v34 = vld [vmem:[#allocation11 + $0x5d0] sm:$0xff] }
 0x70b   :  { %6903 = vmatpush1.bf16.msra.mxu1 %v8532_v45  ;;  %v5268_v45 = vld [vmem:[#allocation11 + $0x3b0] sm:$0xff] }
 0x70c   :  { %6904 = vmatprep.subr.bf16.mxu1 %v8541_v46  ;;  %v8628_v46 = vcombine.low %v5256_v37, %v5260_v38  ;;  %v8637_v47 = vcombine.high %v5264_v43, %v5268_v45 }
 0x70f   :  { %6905 = vmatpush1.bf16.msra.mxu1 %v8540_v42  ;;  %v5276_v42 = vld [vmem:[#allocation11 + $0x3f0] sm:$0xff] }
 0x710   :  { %6906 = vmatprep.subr.bf16.mxu1 %v8549_v44  ;;  %v8636_v44 = vcombine.low %v5264_v43, %v5268_v45  ;;  %v8645_v8 = vcombine.high %v5272_v41, %v5276_v42 }
 0x713   :  { %6907 = vmatpush1.bf16.msra.mxu1 %v8548_v52  ;;  %v5284_v52 = vld [vmem:[#allocation11 + $0x430] sm:$0xff] }
 0x714   :  { %6908 = vmatprep.subr.bf16.mxu1 %v8557_v55  ;;  %v8644_v55 = vcombine.low %v5272_v41, %v5276_v42  ;;  %v8653_v57 = vcombine.high %v5280_v51, %v5284_v52  ;;  %v5348_v42 = vld [vmem:[#allocation11 + $0x630] sm:$0xff] }
 0x717   :  { %6909 = vmatpush1.bf16.msra.mxu1 %v8556_v59  ;;  %v5292_v59 = vld [vmem:[#allocation11 + $0x470] sm:$0xff] }
 0x718   :  { %6910 = vmatprep.subr.bf16.mxu1 %v8565_v60  ;;  %v8652_v60 = vcombine.low %v5280_v51, %v5284_v52  ;;  %v8661_v61 = vcombine.high %v5288_v58, %v5292_v59 }
 0x71b   :  { %6911 = vmatpush1.bf16.msra.mxu1 %v8564_v63  ;;  %v5300_v63 = vld [vmem:[#allocation11 + $0x4b0] sm:$0xff] }
 0x71c   :  { %6912 = vmatprep.subr.bf16.mxu1 %v8573_v0  ;;  %v8660_v0 = vcombine.low %v5288_v58, %v5292_v59  ;;  %v8669_v1 = vcombine.high %v5296_v62, %v5300_v63 }
 0x71f   :  { %6913 = vmatpush1.bf16.msra.mxu1 %v8572_v3  ;;  %v5308_v3 = vld [vmem:[#allocation11 + $0x4f0] sm:$0xff] }
 0x720   :  { %6914 = vmatprep.subr.bf16.mxu1 %v8581_v4  ;;  %v8668_v4 = vcombine.low %v5296_v62, %v5300_v63  ;;  %v8677_v5 = vcombine.high %v5304_v2, %v5308_v3  ;;  %v8716_v63 = vcombine.low %v5344_v13, %v5348_v42 }
 0x723   :  { %6915 = vmatpush1.bf16.msra.mxu1 %v8580_v7  ;;  %v5316_v7 = vld [vmem:[#allocation11 + $0x530] sm:$0xff] }
 0x724   :  { %6916 = vmatprep.subr.bf16.mxu1 %v8589_v9  ;;  %v8676_v9 = vcombine.low %v5304_v2, %v5308_v3  ;;  %v8685_v12 = vcombine.high %v5312_v6, %v5316_v7  ;;  %v5360_v2 = vld [vmem:[#allocation11 + $0x690] sm:$0xff] }
 0x725   :  { %v5364_v3 = vld [vmem:[#allocation11 + $0x6b0] sm:$0xff] }
 0x727   :  { %6917 = vmatpush1.bf16.msra.mxu1 %v8588_v15  ;;  %v5324_v15 = vld [vmem:[#allocation11 + $0x570] sm:$0xff] }
 0x728   :  { %6918 = vmatprep.subr.bf16.mxu1 %v8597_v16  ;;  %v8684_v16 = vcombine.low %v5312_v6, %v5316_v7  ;;  %v8693_v18 = vcombine.high %v5320_v14, %v5324_v15  ;;  %v5368_v6 = vld [vmem:[#allocation11 + $0x6d0] sm:$0xff] }
 0x729   :  { %v5372_v7 = vld [vmem:[#allocation11 + $0x6f0] sm:$0xff] }
 0x72b   :  { %6919 = vmatpush1.bf16.msra.mxu1 %v8596_v20  ;;  %v5328_v20 = vld [vmem:[#allocation11 + $0x590] sm:$0xff] }
 0x72c   :  { %6920 = vmatprep.subr.bf16.mxu1 %v8605_v21  ;;  %v5332_v21 = vld [vmem:[#allocation11 + $0x5b0] sm:$0xff] }
 0x72f   :  { %6921 = vmatpush1.bf16.msra.mxu1 %v8604_v31  ;;  %v8692_v31 = vcombine.low %v5320_v14, %v5324_v15  ;;  %v5376_v14 = vld [vmem:[#allocation11 + $0x710] sm:$0xff] }
 0x730   :  { %6922 = vmatprep.subr.bf16.mxu1 %v8613_v32  ;;  %v8701_v32 = vcombine.high %v5328_v20, %v5332_v21  ;;  %v5380_v15 = vld [vmem:[#allocation11 + $0x730] sm:$0xff] }
 0x733   :  { %6923 = vmatpush1.bf16.msra.mxu1 %v8612_v35  ;;  %v5340_v35 = vld [vmem:[#allocation11 + $0x5f0] sm:$0xff] }
 0x734   :  { %6924 = vmatprep.subr.bf16.mxu1 %v8621_v36  ;;  %v8709_v11 = vcombine.high %v5336_v34, %v5340_v35  ;;  %v8708_v51 = vcombine.low %v5336_v34, %v5340_v35  ;;  %v5400_v35 = vld [vmem:[#allocation11 + $0x7d0] sm:$0xff] }
 0x737   :  { %6925 = vmatpush1.bf16.msra.mxu1 %v8620_v39 }
 0x738   :  { %6926 = vmatprep.subr.bf16.mxu1 %v8629_v40  ;;  %v8700_v40 = vcombine.low %v5328_v20, %v5332_v21  ;;  %v5384_v20 = vld [vmem:[#allocation11 + $0x750] sm:$0xff] }
 0x739   :  { %v5388_v21 = vld [vmem:[#allocation11 + $0x770] sm:$0xff] }
 0x73b   :  { %6927 = vmatpush1.bf16.msra.mxu1 %v8628_v46 }
 0x73c   :  { %6928 = vmatprep.subr.bf16.mxu1 %v8637_v47 }
 0x73f   :  { %6929 = vmatpush1.bf16.msra.mxu1 %v8636_v44 }
 0x740   :  { %6930 = vmatprep.subr.bf16.mxu1 %v8645_v8 }
 0x743   :  { %6931 = vmatpush1.bf16.msra.mxu1 %v8644_v55 }
 0x744   :  { %6943 = vmatprep.subr.bf16.mxu1 %v8653_v57  ;;  %v8717_v57 = vcombine.high %v5344_v13, %v5348_v42  ;;  %v5169_v13 = vld [vmem:[#allocation11 + $0x98] sm:$0xff] }
 0x745   :  { %v5173_v42 = vld [vmem:[#allocation11 + $0xb8] sm:$0xff] }
 0x746   :  { %6933 = vmatmul.mubr.bf16.vlgmr.msra.gmra.mrb[20].mxu1 %v10721_v29 }
 0x747   :  { %6944 = vmatpush1.bf16.msra.mxu1 %v8652_v60  ;;  %6975 = vmatprep.mubr.bf16.mxu1 %v10746_v54  ;;  %v5352_v60 = vld [vmem:[#allocation11 + $0x650] sm:$0xff] }
 0x748   :  { %6945 = vmatprep.subr.bf16.mxu1 %v8661_v61  ;;  %v5356_v61 = vld [vmem:[#allocation11 + $0x670] sm:$0xff] }
 0x74b   :  { %6946 = vmatpush1.bf16.msra.mxu1 %v8660_v0 }
 0x74c   :  { %6947 = vmatprep.subr.bf16.mxu1 %v8669_v1  ;;  %v8725_v1 = vcombine.high %v5352_v60, %v5356_v61 }
 0x74f   :  { %6948 = vmatpush1.bf16.msra.mxu1 %v8668_v4  ;;  %v8724_v4 = vcombine.low %v5352_v60, %v5356_v61  ;;  %v8542_v60 = vcombine.low %v5169_v13, %v5173_v42 }
 0x750   :  { %6949 = vmatprep.subr.bf16.mxu1 %v8677_v5  ;;  %v8733_v5 = vcombine.high %v5360_v2, %v5364_v3 }
 0x753   :  { %6950 = vmatpush1.bf16.msra.mxu1 %v8676_v9  ;;  %v8732_v9 = vcombine.low %v5360_v2, %v5364_v3 }
 0x754   :  { %6951 = vmatprep.subr.bf16.mxu1 %v8685_v12  ;;  %v8741_v12 = vcombine.high %v5368_v6, %v5372_v7 }
 0x757   :  { %6952 = vmatpush1.bf16.msra.mxu1 %v8684_v16  ;;  %v8740_v16 = vcombine.low %v5368_v6, %v5372_v7  ;;  %v5201_v7 = vld [vmem:[#allocation11 + $0x198] sm:$0xff] }
 0x758   :  { %6953 = vmatprep.subr.bf16.mxu1 %v8693_v18  ;;  %v8749_v18 = vcombine.high %v5376_v14, %v5380_v15 }
 0x759   :  { %v6805_v33 = vpop.f32.mrb[12].mxu1 }
 0x75a   :  { %v8938_v36 = vadd.f32 %v6805_v33, %v5411_v26  ;;  %v6807_v37 = vpop.f32.mrb[13].mxu1  ;;  %v8756_v33 = vcombine.low %v5384_v20, %v5388_v21 }
 0x75b   :  { %v8939_v38 = vadd.f32 %v6807_v37, %v5415_v30  ;;  %v6809_v39 = vpop.f32.mrb[14].mxu1  ;;  %6954 = vmatpush1.bf16.msra.mxu1 %v8692_v31  ;;  %v5392_v31 = vld [vmem:[#allocation11 + $0x790] sm:$0xff] }
 0x75c   :  { %v7072_v43 = vmax.f32 %v8938_v36, 0.0  ;;  %v8940_v45 = vadd.f32 %v6809_v39, %v5411_v26  ;;  %v6811_v46 = vpop.f32.mrb[15].mxu1  ;;  %6955 = vmatprep.subr.bf16.mxu1 %v8701_v32  ;;  %v8748_v26 = vcombine.low %v5376_v14, %v5380_v15  ;;  %v5396_v32 = vld [vmem:[#allocation11 + $0x7b0] sm:$0xff]  ;;  %v5153_v39 = vld [vmem:[#allocation11 + $0x18] sm:$0xff] }
 0x75d   :  { %v7073_v47 = vmax.f32 %v8939_v38, 0.0  ;;  %v8941_v41 = vadd.f32 %v6811_v46, %v5415_v30  ;;  %v8757_v30 = vcombine.high %v5384_v20, %v5388_v21  ;;  %v8765_v34 = vcombine.high %v5392_v31, %v5396_v32  ;;  %v5404_v36 = vld [vmem:[#allocation11 + $0x7f0] sm:$0xff]  ;;  %v5161_v46 = vld [vmem:[#allocation11 + $0x58] sm:$0xff] }
 0x75e   :  { %v7080_v44 = vmax.f32 %v8940_v45, 0.0  ;;  %v10768_v52 = vadd.f32 %v7072_v43, %v10713_v27  ;;  %v8764_v37 = vcombine.low %v5392_v31, %v5396_v32  ;;  %v8773_v38 = vcombine.high %v5400_v35, %v5404_v36  ;;  %v5209_v15 = vld [vmem:[#allocation11 + $0x1d8] sm:$0xff] }
 0x75f   :  { %v7081_v8 = vmax.f32 %v8941_v41, 0.0  ;;  %6956 = vmatpush1.bf16.msra.mxu1 %v8700_v40  ;;  %v10774_v58 = vadd.f32 %v7073_v47, %v10709_v23  ;;  %v5157_v40 = vld [vmem:[#allocation11 + $0x38] sm:$0xff]  ;;  %v8772_v43 = vcombine.low %v5400_v35, %v5404_v36 }
 0x760   :  { %v10771_v55 = vadd.f32 %v7080_v44, %v10707_v22  ;;  %6957 = vmatprep.subr.bf16.mxu1 %v8709_v11  ;;  %v8527_v45 = vcombine.high %v5153_v39, %v5157_v40  ;;  %v5165_v11 = vld [vmem:[#allocation11 + $0x78] sm:$0xff]  ;;  %v8526_v47 = vcombine.low %v5153_v39, %v5157_v40 }
 0x761   :  { %v10777_v59 = vadd.f32 %v7081_v8, %v10711_v24  ;;  %v8535_v41 = vcombine.high %v5161_v46, %v5165_v11  ;;  %v8534_v44 = vcombine.low %v5161_v46, %v5165_v11  ;;  %v8543_v8 = vcombine.high %v5169_v13, %v5173_v42  ;;  %v5217_v21 = vld [vmem:[#allocation11 + $0x218] sm:$0xff] }
 0x762   :  { %v7455_v62 = vpack.c.bf16 %v10771_v55, %v10768_v52  ;;  %v5225_v32 = vld [vmem:[#allocation11 + $0x258] sm:$0xff] }
 0x763   :  { %6958 = vmatpush1.bf16.msra.mxu1 %v8708_v51  ;;  %v7456_v0 = vpack.c.bf16 %v10777_v59, %v10774_v58  ;;  %v5177_v51 = vld [vmem:[#allocation11 + $0xd8] sm:$0xff] }
 0x764   :  { %6959 = vmatprep.subr.bf16.mxu1 %v8717_v57  ;;  %v5181_v57 = vld [vmem:[#allocation11 + $0xf8] sm:$0xff] }
 0x765   :  { %v8551_v61 = vcombine.high %v5177_v51, %v5181_v57  ;;  %v8550_v2 = vcombine.low %v5177_v51, %v5181_v57  ;;  %v5233_v36 = vld [vmem:[#allocation11 + $0x298] sm:$0xff] }
 0x766   :  { %v5241_v40 = vld [vmem:[#allocation11 + $0x2d8] sm:$0xff] }
 0x767   :  { %6960 = vmatpush1.bf16.msra.mxu1 %v8716_v63  ;;  %v5185_v63 = vld [vmem:[#allocation11 + $0x118] sm:$0xff] }
 0x768   :  { %6961 = vmatprep.subr.bf16.mxu1 %v8725_v1  ;;  %v5189_v1 = vld [vmem:[#allocation11 + $0x138] sm:$0xff] }
 0x769   :  { %v8559_v3 = vcombine.high %v5185_v63, %v5189_v1  ;;  %v8558_v6 = vcombine.low %v5185_v63, %v5189_v1  ;;  %v5249_v11 = vld [vmem:[#allocation11 + $0x318] sm:$0xff] }
 0x76a   :  { %v5257_v42 = vld [vmem:[#allocation11 + $0x358] sm:$0xff] }
 0x76b   :  { %6962 = vmatpush1.bf16.msra.mxu1 %v8724_v4  ;;  %v5193_v4 = vld [vmem:[#allocation11 + $0x158] sm:$0xff] }
 0x76c   :  { %6963 = vmatprep.subr.bf16.mxu1 %v8733_v5  ;;  %v5197_v5 = vld [vmem:[#allocation11 + $0x178] sm:$0xff] }
 0x76d   :  { %v5265_v57 = vld [vmem:[#allocation11 + $0x398] sm:$0xff] }
 0x76e   :  { %v5273_v1 = vld [vmem:[#allocation11 + $0x3d8] sm:$0xff] }
 0x76f   :  { %6964 = vmatpush1.bf16.msra.mxu1 %v8732_v9  ;;  %v5205_v9 = vld [vmem:[#allocation11 + $0x1b8] sm:$0xff] }
 0x770   :  { %6965 = vmatprep.subr.bf16.mxu1 %v8741_v12  ;;  %v8566_v12 = vcombine.low %v5193_v4, %v5197_v5  ;;  %v8575_v14 = vcombine.high %v5201_v7, %v5205_v9  ;;  %v10115_v58 = vld [vmem:[#allocation17 + $0x70] sm:$0xff]   ;;  %v10129_v52 = vld [vmem:[#allocation17 + $0xe8] sm:$0xff]  }
 0x771   :  { %v10116_v59 = vld [vmem:[#allocation17 + $0x30] sm:$0xff]   ;;  %v10130_v55 = vld [vmem:[#allocation17 + $0xa8] sm:$0xff]  }
 0x773   :  { %6966 = vmatpush1.bf16.msra.mxu1 %v8740_v16  ;;  %v5213_v16 = vld [vmem:[#allocation11 + $0x1f8] sm:$0xff] }
 0x774   :  { %6967 = vmatprep.subr.bf16.mxu1 %v8749_v18  ;;  %v8574_v18 = vcombine.low %v5201_v7, %v5205_v9  ;;  %v8583_v20 = vcombine.high %v5209_v15, %v5213_v16  ;;  %v5289_v9 = vld [vmem:[#allocation11 + $0x458] sm:$0xff] }
 0x777   :  { %6968 = vmatpush1.bf16.msra.mxu1 %v8748_v26  ;;  %v5221_v26 = vld [vmem:[#allocation11 + $0x238] sm:$0xff] }
 0x778   :  { %6969 = vmatprep.subr.bf16.mxu1 %v8757_v30  ;;  %v8582_v30 = vcombine.low %v5209_v15, %v5213_v16  ;;  %v8591_v31 = vcombine.high %v5217_v21, %v5221_v26  ;;  %v5297_v16 = vld [vmem:[#allocation11 + $0x498] sm:$0xff] }
 0x77b   :  { %6970 = vmatpush1.bf16.msra.mxu1 %v8756_v33  ;;  %v5229_v33 = vld [vmem:[#allocation11 + $0x278] sm:$0xff] }
 0x77c   :  { %6971 = vmatprep.subr.bf16.mxu1 %v8765_v34  ;;  %v8590_v34 = vcombine.low %v5217_v21, %v5221_v26  ;;  %v8599_v35 = vcombine.high %v5225_v32, %v5229_v33  ;;  %v5305_v26 = vld [vmem:[#allocation11 + $0x4d8] sm:$0xff] }
 0x77f   :  { %6972 = vmatpush1.bf16.msra.mxu1 %v8764_v37  ;;  %v5237_v37 = vld [vmem:[#allocation11 + $0x2b8] sm:$0xff] }
 0x780   :  { %6973 = vmatprep.subr.bf16.mxu1 %v8773_v38  ;;  %v8598_v38 = vcombine.low %v5225_v32, %v5229_v33  ;;  %v8607_v39 = vcombine.high %v5233_v36, %v5237_v37  ;;  %v5313_v33 = vld [vmem:[#allocation11 + $0x518] sm:$0xff] }
 0x783   :  { %6974 = vmatpush1.bf16.msra.mxu1 %v8772_v43  ;;  %v5245_v43 = vld [vmem:[#allocation11 + $0x2f8] sm:$0xff] }
 0x784   :  { %6986 = vmatprep.subr.bf16.mxu1 %v8527_v45  ;;  %v8606_v45 = vcombine.low %v5233_v36, %v5237_v37  ;;  %v8615_v46 = vcombine.high %v5241_v40, %v5245_v43  ;;  %v5321_v37 = vld [vmem:[#allocation11 + $0x558] sm:$0xff] }
 0x786   :  { %6976 = vmatmul.mubr.bf16.vlgmr.msra.gmra.mrb[20].mxu1 %v10750_v56 }
 0x787   :  { %6987 = vmatpush1.bf16.msra.mxu1 %v8526_v47  ;;  %7018 = vmatprep.mubr.bf16.mxu1 %v10717_v28  ;;  %v8567_v28 = vcombine.high %v5193_v4, %v5197_v5  ;;  %v5253_v47 = vld [vmem:[#allocation11 + $0x338] sm:$0xff] }
 0x788   :  { %6988 = vmatprep.subr.bf16.mxu1 %v8535_v41  ;;  %v8614_v41 = vcombine.low %v5241_v40, %v5245_v43  ;;  %v8623_v13 = vcombine.high %v5249_v11, %v5253_v47  ;;  %v5281_v5 = vld [vmem:[#allocation11 + $0x418] sm:$0xff]  ;;  %v5419_v43 = vrot.slane %v10761_v17, %v4722_v25 }
 0x789   :  { %v5333_v40 = vld [vmem:[#allocation11 + $0x5b8] sm:$0xff] }
 0x78b   :  { %6989 = vmatpush1.bf16.msra.mxu1 %v8534_v44  ;;  %v5261_v44 = vld [vmem:[#allocation11 + $0x378] sm:$0xff] }
 0x78c   :  { %6990 = vmatprep.subr.bf16.mxu1 %v8543_v8  ;;  %v8622_v8 = vcombine.low %v5249_v11, %v5253_v47  ;;  %v8631_v51 = vcombine.high %v5257_v42, %v5261_v44 }
 0x78f   :  { %6991 = vmatpush1.bf16.msra.mxu1 %v8542_v60  ;;  %v5269_v60 = vld [vmem:[#allocation11 + $0x3b8] sm:$0xff] }
 0x790   :  { %6992 = vmatprep.subr.bf16.mxu1 %v8551_v61  ;;  %v8630_v61 = vcombine.low %v5257_v42, %v5261_v44  ;;  %v8639_v63 = vcombine.high %v5265_v57, %v5269_v60 }
 0x793   :  { %6993 = vmatpush1.bf16.msra.mxu1 %v8550_v2  ;;  %v5277_v2 = vld [vmem:[#allocation11 + $0x3f8] sm:$0xff] }
 0x794   :  { %6994 = vmatprep.subr.bf16.mxu1 %v8559_v3  ;;  %v8638_v3 = vcombine.low %v5265_v57, %v5269_v60  ;;  %v8647_v4 = vcombine.high %v5273_v1, %v5277_v2 }
 0x797   :  { %6995 = vmatpush1.bf16.msra.mxu1 %v8558_v6  ;;  %v5285_v6 = vld [vmem:[#allocation11 + $0x438] sm:$0xff] }
 0x798   :  { %6996 = vmatprep.subr.bf16.mxu1 %v8567_v28  ;;  %v8646_v28 = vcombine.low %v5273_v1, %v5277_v2  ;;  %v8655_v7 = vcombine.high %v5281_v5, %v5285_v6 }
 0x79b   :  { %6997 = vmatpush1.bf16.msra.mxu1 %v8566_v12  ;;  %v5293_v12 = vld [vmem:[#allocation11 + $0x478] sm:$0xff] }
 0x79c   :  { %6998 = vmatprep.subr.bf16.mxu1 %v8575_v14  ;;  %v8654_v14 = vcombine.low %v5281_v5, %v5285_v6  ;;  %v8663_v15 = vcombine.high %v5289_v9, %v5293_v12 }
 0x79f   :  { %6999 = vmatpush1.bf16.msra.mxu1 %v8574_v18  ;;  %v5301_v18 = vld [vmem:[#allocation11 + $0x4b8] sm:$0xff] }
 0x7a0   :  { %7000 = vmatprep.subr.bf16.mxu1 %v8583_v20  ;;  %v8662_v20 = vcombine.low %v5289_v9, %v5293_v12  ;;  %v8671_v21 = vcombine.high %v5297_v16, %v5301_v18 }
 0x7a3   :  { %7001 = vmatpush1.bf16.msra.mxu1 %v8582_v30  ;;  %v5309_v30 = vld [vmem:[#allocation11 + $0x4f8] sm:$0xff] }
 0x7a4   :  { %7002 = vmatprep.subr.bf16.mxu1 %v8591_v31  ;;  %v8670_v31 = vcombine.low %v5297_v16, %v5301_v18  ;;  %v8679_v32 = vcombine.high %v5305_v26, %v5309_v30  ;;  %v5357_v16 = vld [vmem:[#allocation11 + $0x678] sm:$0xff] }
 0x7a7   :  { %7003 = vmatpush1.bf16.msra.mxu1 %v8590_v34  ;;  %v5317_v34 = vld [vmem:[#allocation11 + $0x538] sm:$0xff] }
 0x7a8   :  { %7004 = vmatprep.subr.bf16.mxu1 %v8599_v35  ;;  %v8678_v35 = vcombine.low %v5305_v26, %v5309_v30  ;;  %v8687_v36 = vcombine.high %v5313_v33, %v5317_v34  ;;  %v5361_v30 = vld [vmem:[#allocation11 + $0x698] sm:$0xff] }
 0x7ab   :  { %7005 = vmatpush1.bf16.msra.mxu1 %v8598_v38  ;;  %v8686_v38 = vcombine.low %v5313_v33, %v5317_v34  ;;  %v5369_v34 = vld [vmem:[#allocation11 + $0x6d8] sm:$0xff] }
 0x7ac   :  { %7006 = vmatprep.subr.bf16.mxu1 %v8607_v39  ;;  %v5329_v39 = vld [vmem:[#allocation11 + $0x598] sm:$0xff] }
 0x7ad   :  { %v8703_v11 = vcombine.high %v5329_v39, %v5333_v40  ;;  %v8702_v57 = vcombine.low %v5329_v39, %v5333_v40  ;;  %v5385_v40 = vld [vmem:[#allocation11 + $0x758] sm:$0xff] }
 0x7af   :  { %7007 = vmatpush1.bf16.msra.mxu1 %v8606_v45  ;;  %v5423_v45 = vrot.slane %v10761_v17, %v4726_v19  ;;  %v5345_v19 = vld [vmem:[#allocation11 + $0x618] sm:$0xff] }
 0x7b0   :  { %7008 = vmatprep.subr.bf16.mxu1 %v8615_v46 }
 0x7b3   :  { %7009 = vmatpush1.bf16.msra.mxu1 %v8614_v41  ;;  %v5337_v41 = vld [vmem:[#allocation11 + $0x5d8] sm:$0xff] }
 0x7b4   :  { %7010 = vmatprep.subr.bf16.mxu1 %v8623_v13  ;;  %v5341_v13 = vld [vmem:[#allocation11 + $0x5f8] sm:$0xff] }
 0x7b5   :  { %v8710_v6 = vcombine.low %v5337_v41, %v5341_v13 }
 0x7b7   :  { %7011 = vmatpush1.bf16.msra.mxu1 %v8622_v8 }
 0x7b8   :  { %7012 = vmatprep.subr.bf16.mxu1 %v8631_v51 }
 0x7bb   :  { %7013 = vmatpush1.bf16.msra.mxu1 %v8630_v61 }
 0x7bc   :  { %7014 = vmatprep.subr.bf16.mxu1 %v8639_v63  ;;  %v8711_v63 = vcombine.high %v5337_v41, %v5341_v13 }
 0x7bf   :  { %7015 = vmatpush1.bf16.msra.mxu1 %v8638_v3  ;;  %v5349_v3 = vld [vmem:[#allocation11 + $0x638] sm:$0xff] }
 0x7c0   :  { %7016 = vmatprep.subr.bf16.mxu1 %v8647_v4  ;;  %v8719_v9 = vcombine.high %v5345_v19, %v5349_v3 }
 0x7c3   :  { %7017 = vmatpush1.bf16.msra.mxu1 %v8646_v28 }
 0x7c4   :  { %7029 = vmatprep.subr.bf16.mxu1 %v8655_v7 }
 0x7c6   :  { %7019 = vmatmul.mubr.bf16.vlgmr.msra.gmra.mrb[24].mxu1 %v10721_v29  ;;  %v5325_v29 = vld [vmem:[#allocation11 + $0x578] sm:$0xff] }
 0x7c7   :  { %7030 = vmatpush1.bf16.msra.mxu1 %v8654_v14  ;;  %7061 = vmatprep.mubr.bf16.mxu1 %v10746_v54  ;;  %v8695_v54 = vcombine.high %v5321_v37, %v5325_v29  ;;  %v8694_v46 = vcombine.low %v5321_v37, %v5325_v29  ;;  %v5377_v29 = vld [vmem:[#allocation11 + $0x718] sm:$0xff] }
 0x7c8   :  { %7031 = vmatprep.subr.bf16.mxu1 %v8663_v15  ;;  %v5353_v15 = vld [vmem:[#allocation11 + $0x658] sm:$0xff] }
 0x7c9   :  { %v8727_v26 = vcombine.high %v5353_v15, %v5357_v16 }
 0x7cb   :  { %7032 = vmatpush1.bf16.msra.mxu1 %v8662_v20  ;;  %v8718_v20 = vcombine.low %v5345_v19, %v5349_v3  ;;  %v10077_v19 = vld [vmem:[#allocation14 + $0x58] sm:$0xff]  }
 0x7cc   :  { %7033 = vmatprep.subr.bf16.mxu1 %v8671_v21  ;;  %v10078_v3 = vld [vmem:[#allocation14 + $0x18] sm:$0xff]  }
 0x7cf   :  { %7034 = vmatpush1.bf16.msra.mxu1 %v8670_v31  ;;  %v5365_v31 = vld [vmem:[#allocation11 + $0x6b8] sm:$0xff] }
 0x7d0   :  { %7035 = vmatprep.subr.bf16.mxu1 %v8679_v32  ;;  %v8726_v32 = vcombine.low %v5353_v15, %v5357_v16  ;;  %v8735_v33 = vcombine.high %v5361_v30, %v5365_v31  ;;  %v10084_v15 = vld [vmem:[#allocation14 + $0x30] sm:$0xff]   ;;  %v10085_v16 = vld [vmem:[#allocation14 + $0x78] sm:$0xff]  }
 0x7d3   :  { %7036 = vmatpush1.bf16.msra.mxu1 %v8678_v35  ;;  %v5373_v35 = vld [vmem:[#allocation11 + $0x6f8] sm:$0xff] }
 0x7d4   :  { %7037 = vmatprep.subr.bf16.mxu1 %v8687_v36  ;;  %v8734_v36 = vcombine.low %v5361_v30, %v5365_v31  ;;  %v8743_v37 = vcombine.high %v5369_v34, %v5373_v35  ;;  %v5426_v30 = vsub.s32 4, %v10675_v10  ;;  %v5430_v31 = vsub.s32 5, %v10675_v10 }
 0x7d7   :  { %7038 = vmatpush1.bf16.msra.mxu1 %v8686_v38  ;;  %v5381_v38 = vld [vmem:[#allocation11 + $0x738] sm:$0xff] }
 0x7d8   :  { %7039 = vmatprep.subr.bf16.mxu1 %v8695_v54  ;;  %v8742_v54 = vcombine.low %v5369_v34, %v5373_v35  ;;  %v8751_v39 = vcombine.high %v5377_v29, %v5381_v38 }
 0x7d9   :  { %v6891_v47 = vpop.f32.mrb[16].mxu1 }
 0x7da   :  { %v8942_v42 = vadd.f32 %v6891_v47, %v5419_v43  ;;  %v6893_v44 = vpop.f32.mrb[17].mxu1  ;;  %v5397_v47 = vld [vmem:[#allocation11 + $0x7b8] sm:$0xff] }
 0x7db   :  { %v8943_v8 = vadd.f32 %v6893_v44, %v5423_v45  ;;  %v6895_v51 = vpop.f32.mrb[18].mxu1  ;;  %7040 = vmatpush1.bf16.msra.mxu1 %v8694_v46  ;;  %v5405_v44 = vld [vmem:[#allocation11 + $0x7f8] sm:$0xff] }
 0x7dc   :  { %v7074_v60 = vmax.f32 %v8942_v42, 0.0  ;;  %v8944_v61 = vadd.f32 %v6895_v51, %v5419_v43  ;;  %v6897_v25 = vpop.f32.mrb[19].mxu1  ;;  %7041 = vmatprep.subr.bf16.mxu1 %v8703_v11  ;;  %v5389_v43 = vld [vmem:[#allocation11 + $0x778] sm:$0xff] }
 0x7dd   :  { %v7075_v1 = vmax.f32 %v8943_v8, 0.0  ;;  %v8945_v2 = vadd.f32 %v6897_v25, %v5423_v45  ;;  %v8750_v45 = vcombine.low %v5377_v29, %v5381_v38  ;;  %v8759_v46 = vcombine.high %v5385_v40, %v5389_v43  ;;  %v5393_v11 = vld [vmem:[#allocation11 + $0x798] sm:$0xff]  ;;  %v10073_v25 = vld [vmem:[#allocation14 + $0x48] sm:$0xff]  }
 0x7de   :  { %v7082_v4 = vmax.f32 %v8944_v61, 0.0  ;;  %v10794_v28 = vadd.f32 %v7074_v60, %v10742_v53  ;;  %v8758_v41 = vcombine.low %v5385_v40, %v5389_v43  ;;  %v8767_v13 = vcombine.high %v5393_v11, %v5397_v47  ;;  %v5401_v42 = vld [vmem:[#allocation11 + $0x7d8] sm:$0xff]  ;;  %v10071_v60 = vld [vmem:[#allocation14 + $0x40] sm:$0xff]  }
 0x7df   :  { %v7083_v5 = vmax.f32 %v8945_v2, 0.0  ;;  %7042 = vmatpush1.bf16.msra.mxu1 %v8702_v57  ;;  %v10800_v12 = vadd.f32 %v7075_v1, %v10738_v49  ;;  %v8766_v8 = vcombine.low %v5393_v11, %v5397_v47  ;;  %v8775_v51 = vcombine.high %v5401_v42, %v5405_v44  ;;  %v10072_v61 = vld [vmem:[#allocation14] sm:$0xff]   ;;  %v10075_v1 = vld [vmem:[#allocation14 + $0x50] sm:$0xff]  }
 0x7e0   :  { %v10797_v7 = vadd.f32 %v7082_v4, %v10736_v48  ;;  %7043 = vmatprep.subr.bf16.mxu1 %v8711_v63  ;;  %v8774_v57 = vcombine.low %v5401_v42, %v5405_v44  ;;  %v10074_v63 = vld [vmem:[#allocation14 + $0x8] sm:$0xff]   ;;  %v10076_v2 = vld [vmem:[#allocation14 + $0x10] sm:$0xff]   ;;  %v10079_v4 = vld [vmem:[#allocation14 + $0x60] sm:$0xff]  }
 0x7e1   :  { %v10803_v14 = vadd.f32 %v7083_v5, %v10740_v50  ;;  %v10080_v5 = vld [vmem:[#allocation14 + $0x20] sm:$0xff]  }
 0x7e2   :  { %v7457_v18 = vpack.c.bf16 %v10797_v7, %v10794_v28 }
 0x7e3   :  { %7044 = vmatpush1.bf16.msra.mxu1 %v8710_v6  ;;  %v7458_v21 = vpack.c.bf16 %v10803_v14, %v10800_v12  ;;  %v10081_v6 = vld [vmem:[#allocation14 + $0x68] sm:$0xff]   ;;  %v10132_v12 = vld [vmem:[#allocation17 + $0xb0] sm:$0xff]   ;;  %v10133_v14 = vld [vmem:[#allocation17 + $0xf8] sm:$0xff]  }
 0x7e4   :  { %7045 = vmatprep.subr.bf16.mxu1 %v8719_v9  ;;  %v10082_v9 = vld [vmem:[#allocation14 + $0x28] sm:$0xff]  }
 0x7e7   :  { %7046 = vmatpush1.bf16.msra.mxu1 %v8718_v20  ;;  %v10086_v20 = vld [vmem:[#allocation14 + $0x38] sm:$0xff]  }
 0x7e8   :  { %7047 = vmatprep.subr.bf16.mxu1 %v8727_v26  ;;  %v10087_v26 = vld [vmem:[#allocation14 + $0xc0] sm:$0xff]  }
 0x7eb   :  { %7048 = vmatpush1.bf16.msra.mxu1 %v8726_v32  ;;  %v5427_v32 = vrot.slane %v10761_v17, %v5426_v30 }
 0x7ec   :  { %7049 = vmatprep.subr.bf16.mxu1 %v8735_v33  ;;  %v5431_v33 = vrot.slane %v10761_v17, %v5430_v31 }
 0x7ef   :  { %7050 = vmatpush1.bf16.msra.mxu1 %v8734_v36 }
 0x7f0   :  { %7051 = vmatprep.subr.bf16.mxu1 %v8743_v37 }
 0x7f3   :  { %7052 = vmatpush1.bf16.msra.mxu1 %v8742_v54 }
 0x7f4   :  { %7053 = vmatprep.subr.bf16.mxu1 %v8751_v39 }
 0x7f7   :  { %7054 = vmatpush1.bf16.msra.mxu1 %v8750_v45 }
 0x7f8   :  { %7055 = vmatprep.subr.bf16.mxu1 %v8759_v46 }
 0x7fb   :  { %7056 = vmatpush1.bf16.msra.mxu1 %v8758_v41 }
 0x7fc   :  { %7057 = vmatprep.subr.bf16.mxu1 %v8767_v13 }
 0x7ff   :  { %7058 = vmatpush1.bf16.msra.mxu1 %v8766_v8  ;;  %v10088_v8 = vld [vmem:[#allocation14 + $0x80] sm:$0xff]  }
 0x800   :  { %7059 = vmatprep.subr.bf16.mxu1 %v8775_v51  ;;  %v10089_v51 = vld [vmem:[#allocation14 + $0xc8] sm:$0xff]  }
 0x803   :  { %7060 = vmatpush1.bf16.msra.mxu1 %v8774_v57  ;;  %v10090_v57 = vld [vmem:[#allocation14 + $0x88] sm:$0xff]  }
 0x804   :  { %8842 = vmatprep.subr.bf16.mxu1 %v10071_v60  ;;  %v10091_v60 = vld [vmem:[#allocation14 + $0xd0] sm:$0xff]  }
 0x806   :  { %7062 = vmatmul.mubr.bf16.vlgmr.msra.gmra.mrb[24].mxu1 %v10750_v56  ;;  %v10083_v56 = vld [vmem:[#allocation14 + $0x70] sm:$0xff]  }
 0x807   :  { %8843 = vmatpush3.bf16.msra.mxu1 %v10072_v61  ;;  %v10092_v61 = vld [vmem:[#allocation14 + $0x90] sm:$0xff]  }
 0x808   :  { %8844 = vmatprep.subr.bf16.mxu1 %v10073_v25  ;;  %v10097_v25 = vld [vmem:[#allocation14 + $0xe8] sm:$0xff]  }
 0x80b   :  { %8845 = vmatpush3.bf16.msra.mxu1 %v10074_v63  ;;  %v10098_v63 = vld [vmem:[#allocation14 + $0xa8] sm:$0xff]  }
 0x80c   :  { %8846 = vmatprep.subr.bf16.mxu1 %v10075_v1  ;;  %v10099_v1 = vld [vmem:[#allocation14 + $0xf0] sm:$0xff]  }
 0x80f   :  { %8847 = vmatpush3.bf16.msra.mxu1 %v10076_v2  ;;  %v10100_v2 = vld [vmem:[#allocation14 + $0xb0] sm:$0xff]  }
 0x810   :  { %8848 = vmatprep.subr.bf16.mxu1 %v10077_v19  ;;  %v10101_v19 = vld [vmem:[#allocation14 + $0xf8] sm:$0xff]  }
 0x813   :  { %8849 = vmatpush3.bf16.msra.mxu1 %v10078_v3  ;;  %v10102_v3 = vld [vmem:[#allocation14 + $0xb8] sm:$0xff]  }
 0x814   :  { %8850 = vmatprep.subr.bf16.mxu1 %v10079_v4  ;;  %v10103_v4 = vld [vmem:[#allocation17 + $0x40] sm:$0xff]  }
 0x817   :  { %8851 = vmatpush3.bf16.msra.mxu1 %v10080_v5  ;;  %v5434_v5 = vsub.s32 6, %v10675_v10 }
 0x818   :  { %8852 = vmatprep.subr.bf16.mxu1 %v10081_v6  ;;  %v5438_v6 = vsub.s32 7, %v10675_v10 }
 0x81b   :  { %8853 = vmatpush3.bf16.msra.mxu1 %v10082_v9  ;;  %v5435_v9 = vrot.slane %v10761_v17, %v5434_v5 }
 0x81c   :  { %8854 = vmatprep.subr.bf16.mxu1 %v10083_v56  ;;  %v5439_v56 = vrot.slane %v10761_v17, %v5438_v6 }
 0x81f   :  { %8855 = vmatpush3.bf16.msra.mxu1 %v10084_v15 }
 0x820   :  { %8856 = vmatprep.subr.bf16.mxu1 %v10085_v16 }
 0x823   :  { %8857 = vmatpush3.bf16.msra.mxu1 %v10086_v20 }
 0x824   :  { %8864 = vmatprep.subr.bf16.mxu1 %v10087_v26 }
 0x859   :  { %v6977_v34 = vpop.f32.mrb[20].mxu1 }
 0x85a   :  { %v8946_v35 = vadd.f32 %v6977_v34, %v5427_v32  ;;  %v6979_v36 = vpop.f32.mrb[21].mxu1 }
 0x85b   :  { %v8947_v37 = vadd.f32 %v6979_v36, %v5431_v33  ;;  %v6981_v29 = vpop.f32.mrb[22].mxu1 }
 0x85c   :  { %v7076_v38 = vmax.f32 %v8946_v35, 0.0  ;;  %v8948_v54 = vadd.f32 %v6981_v29, %v5427_v32  ;;  %v6983_v39 = vpop.f32.mrb[23].mxu1 }
 0x85d   :  { %v7077_v40 = vmax.f32 %v8947_v37, 0.0  ;;  %v8949_v43 = vadd.f32 %v6983_v39, %v5431_v33 }
 0x85e   :  { %v7084_v45 = vmax.f32 %v8948_v54, 0.0  ;;  %v7096_v11 = vadd.f32 %v7076_v38, %v10713_v27  ;;  %v10093_v27 = vld [vmem:[#allocation14 + $0xd8] sm:$0xff]  }
 0x85f   :  { %v7085_v46 = vmax.f32 %v8949_v43, 0.0  ;;  %v7097_v41 = vadd.f32 %v7077_v40, %v10709_v23  ;;  %v10095_v23 = vld [vmem:[#allocation14 + $0xe0] sm:$0xff]   ;;  %v10105_v43 = vld [vmem:[#allocation17 + $0x48] sm:$0xff]  }
 0x860   :  { %v7100_v47 = vadd.f32 %v7084_v45, %v10707_v22  ;;  %v10094_v22 = vld [vmem:[#allocation14 + $0x98] sm:$0xff]   ;;  %v10104_v40 = vld [vmem:[#allocation17] sm:$0xff]   ;;  %v10106_v45 = vld [vmem:[#allocation17 + $0x8] sm:$0xff]  }
 0x861   :  { %v7101_v13 = vadd.f32 %v7085_v46, %v10711_v24  ;;  %v10096_v24 = vld [vmem:[#allocation14 + $0xa0] sm:$0xff]  }
 0x862   :  { %v7104_v42 = vpack.c.bf16 %v7100_v47, %v7096_v11  ;;  %v10111_v46 = vld [vmem:[#allocation17 + $0x60] sm:$0xff]   ;;  %v10113_v47 = vld [vmem:[#allocation17 + $0x68] sm:$0xff]  }
 0x863   :  { %v7105_v44 = vpack.c.bf16 %v7101_v13, %v7097_v41  ;;  %v10112_v11 = vld [vmem:[#allocation17 + $0x20] sm:$0xff]   ;;  %v10114_v41 = vld [vmem:[#allocation17 + $0x28] sm:$0xff]   ;;  %v10118_v13 = vld [vmem:[#allocation17 + $0x38] sm:$0xff]  }
 0x865   :  { %7403 = vmatprep.mubr.bf16.mxu1 %v7105_v44  ;;  %v10120_v44 = vld [vmem:[#allocation17 + $0x80] sm:$0xff]  }
 0x866   :  { %7404 = vmatmul.mubr.bf16.vlgmr.msra.gmra.mrb[28].mxu1 %v7104_v42  ;;  %v10119_v42 = vld [vmem:[#allocation17 + $0xc0] sm:$0xff]  }
 0x867   :  { %8865 = vmatpush3.bf16.msra.mxu1 %v10088_v8  ;;  %v10121_v8 = vld [vmem:[#allocation17 + $0xc8] sm:$0xff]  }
 0x868   :  { %8866 = vmatprep.subr.bf16.mxu1 %v10089_v51  ;;  %v10122_v51 = vld [vmem:[#allocation17 + $0x88] sm:$0xff]  }
 0x86b   :  { %8867 = vmatpush3.bf16.msra.mxu1 %v10090_v57  ;;  %v10123_v57 = vld [vmem:[#allocation17 + $0xd0] sm:$0xff]  }
 0x86c   :  { %8868 = vmatprep.subr.bf16.mxu1 %v10091_v60  ;;  %v10124_v60 = vld [vmem:[#allocation17 + $0x90] sm:$0xff]  }
 0x86f   :  { %8869 = vmatpush3.bf16.msra.mxu1 %v10092_v61  ;;  %v10125_v61 = vld [vmem:[#allocation17 + $0xd8] sm:$0xff]  }
 0x870   :  { %8870 = vmatprep.subr.bf16.mxu1 %v10093_v27  ;;  %v10126_v27 = vld [vmem:[#allocation17 + $0x98] sm:$0xff]  }
 0x873   :  { %8871 = vmatpush3.bf16.msra.mxu1 %v10094_v22  ;;  %v10127_v22 = vld [vmem:[#allocation17 + $0xe0] sm:$0xff]  }
 0x874   :  { %8872 = vmatprep.subr.bf16.mxu1 %v10095_v23  ;;  %v10128_v23 = vld [vmem:[#allocation17 + $0xa0] sm:$0xff]  }
 0x877   :  { %8873 = vmatpush3.bf16.msra.mxu1 %v10096_v24 }
 0x878   :  { %8874 = vmatprep.subr.bf16.mxu1 %v10097_v25 }
 0x87b   :  { %8875 = vmatpush3.bf16.msra.mxu1 %v10098_v63 }
 0x87c   :  { %8876 = vmatprep.subr.bf16.mxu1 %v10099_v1 }
 0x87f   :  { %8877 = vmatpush3.bf16.msra.mxu1 %v10100_v2 }
 0x880   :  { %8878 = vmatprep.subr.bf16.mxu1 %v10101_v19 }
 0x883   :  { %8879 = vmatpush3.bf16.msra.mxu1 %v10102_v3  ;;  %v8776_v3 = vld [vmem:[#allocation16] ss:$0 sm:$0xff] }
 0x884   :  { %8886 = vmatprep.subr.bf16.mxu1 %v10103_v4 }
 0x8d9   :  { %v7063_v15 = vpop.f32.mrb[24].mxu1 }
 0x8da   :  { %v8950_v16 = vadd.f32 %v7063_v15, %v5435_v9  ;;  %v7065_v20 = vpop.f32.mrb[25].mxu1 }
 0x8db   :  { %v8951_v26 = vadd.f32 %v7065_v20, %v5439_v56  ;;  %v7067_v30 = vpop.f32.mrb[26].mxu1 }
 0x8dc   :  { %v7078_v31 = vmax.f32 %v8950_v16, 0.0  ;;  %v8952_v32 = vadd.f32 %v7067_v30, %v5435_v9  ;;  %v7069_v33 = vpop.f32.mrb[27].mxu1 }
 0x8dd   :  { %v7079_v34 = vmax.f32 %v8951_v26, 0.0  ;;  %v8953_v35 = vadd.f32 %v7069_v33, %v5439_v56 }
 0x8de   :  { %v7086_v36 = vmax.f32 %v8952_v32, 0.0  ;;  %v7098_v29 = vadd.f32 %v7078_v31, %v10742_v53  ;;  %v10107_v53 = vld [vmem:[#allocation17 + $0x50] sm:$0xff]  }
 0x8df   :  { %v7087_v37 = vmax.f32 %v8953_v35, 0.0  ;;  %v7099_v38 = vadd.f32 %v7079_v34, %v10738_v49  ;;  %v10109_v49 = vld [vmem:[#allocation17 + $0x58] sm:$0xff]  }
 0x8e0   :  { %v7102_v10 = vadd.f32 %v7086_v36, %v10736_v48  ;;  %v10108_v48 = vld [vmem:[#allocation17 + $0x10] sm:$0xff]  }
 0x8e1   :  { %v7103_v17 = vadd.f32 %v7087_v37, %v10740_v50  ;;  %v10110_v50 = vld [vmem:[#allocation17 + $0x18] sm:$0xff]  }
 0x8e2   :  { %v7106_v54 = vpack.c.bf16 %v7102_v10, %v7098_v29 }
 0x8e3   :  { %v7107_v39 = vpack.c.bf16 %v7103_v17, %v7099_v38 }
 0x8e5   :  { %7444 = vmatprep.mubr.bf16.mxu1 %v7107_v39 }
 0x8e6   :  { %7445 = vmatmul.mubr.bf16.vlgmr.msra.gmra.mrb[32].mxu1 %v7106_v54 }
 0x8e7   :  { %8887 = vmatpush3.bf16.msra.mxu1 %v10104_v40  ;;  %7754 = vmatprep.mubr.bf16.mxu1 %v7456_v0  ;;  %v10117_v0 = vld [vmem:[#allocation17 + $0x78] sm:$0xff]  }
 0x8e8   :  { %8888 = vmatprep.subr.bf16.mxu1 %v10105_v43 }
 0x8eb   :  { %8889 = vmatpush3.bf16.msra.mxu1 %v10106_v45 }
 0x8ec   :  { %8890 = vmatprep.subr.bf16.mxu1 %v10107_v53 }
 0x8ef   :  { %8891 = vmatpush3.bf16.msra.mxu1 %v10108_v48 }
 0x8f0   :  { %8892 = vmatprep.subr.bf16.mxu1 %v10109_v49 }
 0x8f3   :  { %8893 = vmatpush3.bf16.msra.mxu1 %v10110_v50 }
 0x8f4   :  { %8894 = vmatprep.subr.bf16.mxu1 %v10111_v46 }
 0x8f7   :  { %8895 = vmatpush3.bf16.msra.mxu1 %v10112_v11 }
 0x8f8   :  { %8896 = vmatprep.subr.bf16.mxu1 %v10113_v47 }
 0x8fb   :  { %8897 = vmatpush3.bf16.msra.mxu1 %v10114_v41 }
 0x8fc   :  { %8898 = vmatprep.subr.bf16.mxu1 %v10115_v58 }
 0x8ff   :  { %8899 = vmatpush3.bf16.msra.mxu1 %v10116_v59 }
 0x900   :  { %8900 = vmatprep.subr.bf16.mxu1 %v10117_v0 }
 0x903   :  { %8901 = vmatpush3.bf16.msra.mxu1 %v10118_v13 }
 0x904   :  { %8908 = vmatprep.subr.bf16.mxu1 %v10119_v42 }
 0x906   :  { %7755 = vmatmul.mubr.bf16.vlgmr.msra.gmra.mrb[36].mxu1 %v7455_v62  ;;  %v10131_v62 = vld [vmem:[#allocation17 + $0xf0] sm:$0xff]  }
 0x907   :  { %8909 = vmatpush3.bf16.msra.mxu1 %v10120_v44  ;;  %7795 = vmatprep.mubr.bf16.mxu1 %v7458_v21  ;;  %v10134_v21 = vld [vmem:[#allocation17 + $0xb8] sm:$0xff]  }
 0x908   :  { %8910 = vmatprep.subr.bf16.mxu1 %v10121_v8 }
 0x90b   :  { %8911 = vmatpush3.bf16.msra.mxu1 %v10122_v51 }
 0x90c   :  { %8912 = vmatprep.subr.bf16.mxu1 %v10123_v57 }
 0x90f   :  { %8913 = vmatpush3.bf16.msra.mxu1 %v10124_v60 }
 0x910   :  { %8914 = vmatprep.subr.bf16.mxu1 %v10125_v61 }
 0x913   :  { %8915 = vmatpush3.bf16.msra.mxu1 %v10126_v27 }
 0x914   :  { %8916 = vmatprep.subr.bf16.mxu1 %v10127_v22 }
 0x917   :  { %8917 = vmatpush3.bf16.msra.mxu1 %v10128_v23 }
 0x918   :  { %8918 = vmatprep.subr.bf16.mxu1 %v10129_v52 }
 0x91b   :  { %8919 = vmatpush3.bf16.msra.mxu1 %v10130_v55 }
 0x91c   :  { %8920 = vmatprep.subr.bf16.mxu1 %v10131_v62 }
 0x91f   :  { %8921 = vmatpush3.bf16.msra.mxu1 %v10132_v12 }
 0x920   :  { %8922 = vmatprep.subr.bf16.mxu1 %v10133_v14 }
 0x923   :  { %8923 = vmatpush3.bf16.msra.mxu1 %v10134_v21 }
 0x926   :  { %7796 = vmatmul.mubr.bf16.vlgmr.msra.gmra.mrb[40].mxu1 %v7457_v18 }
 0x939   :  { %v8858_v24 = vpop.f32.mrb[28].mxu1 }
 0x93a   :  { %v8859_v25 = vpop.f32.mrb[29].mxu1 }
 0x93b   :  { %v8860_v63 = vadd.f32 %v8859_v25, %v8858_v24  ;;  %v8861_v1 = vpop.f32.mrb[30].mxu1 }
 0x93c   :  { %v8862_v2 = vpop.f32.mrb[31].mxu1 }
 0x93d   :  { %v8863_v19 = vadd.f32 %v8862_v2, %v8861_v1  ;;  %v7406_v6 = vadd.f32 %v8860_v63, %v8776_v3 }
 0x93f   :  { %v7409_v16 = vadd.f32 %v8863_v19, %v8776_v3 }
 0x9b9   :  { %v8880_v4 = vpop.f32.mrb[32].mxu1 }
 0x9ba   :  { %v8881_v5 = vpop.f32.mrb[33].mxu1 }
 0x9bb   :  { %v8882_v9 = vadd.f32 %v8881_v5, %v8880_v4  ;;  %v8883_v56 = vpop.f32.mrb[34].mxu1 }
 0x9bc   :  { %v8884_v15 = vpop.f32.mrb[35].mxu1 }
 0x9bd   :  { %v7447_v20 = vadd.f32 %v8882_v9, %v7406_v6  ;;  %v8885_v26 = vadd.f32 %v8884_v15, %v8883_v56 }
 0x9bf   :  { %7453 = vst [vmem:[#allocation20] sm:$0xff] %v7447_v20  ;;  %v7450_v28 = vadd.f32 %v8885_v26, %v7409_v16 }
 0x9c1   :  { %7454 = vst [vmem:[#allocation20 + $0x8] sm:$0xff] %v7450_v28 }
 0x9c2   :  { %10388 = shalt.err (!%p10385_p8)
}
 0x9c3   :  { %s10389_s27 = scalar_lea.hbm %s10879_s11, 256 }
 0x9c4   :  { %p10390_p9 = scmp.ne.s32.totalorder %s10879_s11, %s10389_s27  ;;  %p10393_p10 = scmp.lt.u32.totalorder %s10389_s27, %s10879_s11 }
 0x9c6   :  { %p10395_p11 = pnand %p10393_p10, %p10390_p9 }
 0x9c8   :  { %10398 = shalt.err (!%p10395_p11)
}
 0x9c9   :  { %7817 = dma.vmem_to_hbm [thread:$0]  %s7812_s16, 256, %s10879_s11, [#allocation4], %s10438_s13, %s10438_s13, %s10439_s14   ;;  %v8809_v34 = vld [vmem:[#allocation19] ss:$0 sm:$0xff] }
 0x9ca   :  { %s10459_s6 = smov [#allocation21]  }
 0x9cb   :  { %s7823_s28 = sshll.u32 %s10459_s6, 4  ;;  %s7824_s28 = int_to_ptr.vmem [resolvable:$true] %s7823_s28 }
 0x9cc   :  { %s10399_s11 = scalar_lea.vmem %s7824_s28, 256  ;;  %p10404_p13 = scmp.lt.s32.totalorder %s7824_s28, %s7824_s28 }
 0x9cd   :  { %p10400_p12 = scmp.ne.s32.totalorder %s7824_s28, %s10399_s11  ;;  %p10405_p0 = scmp.lt.s32.totalorder %s10399_s11, %s10399_s11 }
 0x9cf   :  { %p10406_p1 = por %p10405_p0, %p10404_p13 }
 0x9d1   :  { %p10407_p2 = pnand %p10406_p1, %p10400_p12 }
 0x9d9   :  { %v8902_v7 = vpop.f32.mrb[36].mxu1 }
 0x9da   :  { %v8903_v18 = vpop.f32.mrb[37].mxu1 }
 0x9db   :  { %v8904_v30 = vadd.f32 %v8903_v18, %v8902_v7  ;;  %v8905_v31 = vpop.f32.mrb[38].mxu1 }
 0x9dc   :  { %v8906_v32 = vpop.f32.mrb[39].mxu1 }
 0x9dd   :  { %v8907_v33 = vadd.f32 %v8906_v32, %v8905_v31  ;;  %v7757_v37 = vadd.f32 %v8904_v30, %v8809_v34 }
 0x9df   :  { %v7760_v17 = vadd.f32 %v8907_v33, %v8809_v34 }
 0x9f9   :  { %v8924_v35 = vpop.f32.mrb[40].mxu1 }
 0x9fa   :  { %v8925_v36 = vpop.f32.mrb[41].mxu1 }
 0x9fb   :  { %v8926_v29 = vadd.f32 %v8925_v36, %v8924_v35  ;;  %v8927_v10 = vpop.f32.mrb[42].mxu1 }
 0x9fc   :  { %v8928_v38 = vpop.f32.mrb[43].mxu1 }
 0x9fd   :  { %v7798_v54 = vadd.f32 %v8926_v29, %v7757_v37  ;;  %v8929_v39 = vadd.f32 %v8928_v38, %v8927_v10 }
 0x9ff   :  { %7804 = vst [vmem:[#allocation21] sm:$0xff] %v7798_v54  ;;  %v7801_v40 = vadd.f32 %v8929_v39, %v7760_v17 }
 0xa01   :  { %7805 = vst [vmem:[#allocation21 + $0x8] sm:$0xff] %v7801_v40 }
 0xa02   :  { %10410 = shalt.err (!%p10407_p2)
}
 0xa03   :  { %s10411_s17 = scalar_lea.hbm %s10880_s12, 256 }
 0xa04   :  { %p10412_p3 = scmp.ne.s32.totalorder %s10880_s12, %s10411_s17  ;;  %p10415_p4 = scmp.lt.u32.totalorder %s10411_s17, %s10880_s12 }
 0xa06   :  { %p10417_p5 = pnand %p10415_p4, %p10412_p3 }
 0xa08   :  { %10420 = shalt.err (!%p10417_p5)
}
 0xa09   :  { %7829 = dma.vmem_to_hbm [thread:$0]  %s7824_s28, 256, %s10880_s12, [#allocation22], %s10438_s13, %s10438_s13, %s10439_s14  }
 0xa0a   :  { %10433 = dma.done.wait [#allocation4], 256  }
 0xa0b   :  { %10434 = vsyncadd [#allocation4], 4294967040 }
 0xa0c   :  { %10435 = dma.done.wait [#allocation22], 256  }
 0xa0d   :  { %10436 = vsyncadd [#allocation22], 4294967040 }
 0xa0e   :  { %7836 = vsyncpa [#allocation3], 1 }
 0xa0f   :  { %7837 = vsyncpa [#allocation6], 1 }
 0xa10   :  { %7838 = vsyncpa [#allocation9], 1 }
 0xa11   :  { %7839 = vsyncpa [#allocation12], 1 }
 0xa12   :  { %7840 = vsyncpa [#allocation15], 1 }
 0xa13   :  { %7841 = vsyncpa [#allocation18], 1 }
 0xa14   :  { %7842 = vsyncpa [#allocation4], 1 }
 0xa15   :  { %7843 = vsyncpa [#allocation22], 1 }

</bundles_post_ra>
